<compile_context>
chip_gen: v7x
topology: tpu7x:2x2x1
jax: 0.10.0
libtpu: 0.0.40
codegen_flags: <defaults>
</compile_context>

<pallas_src>
import functools

import jax
import jax.numpy as jnp
from jax.experimental import pallas as pl
from jax.experimental.pallas import tpu as pltpu

# ----------------------------- config ---------------------------------------
NJOINTS = 4
NFEATS = 4
INPUT_FEATS = NJOINTS * NFEATS      # 16
LATENT = 32
FF_SIZE = 64
NUM_HEADS = 4
HEAD_DIM = LATENT // NUM_HEADS      # 8
MAX_LEN = 64
LN_EPS = 1e-5


# --------------------------- fused Pallas kernel -----------------------------
def _m2mdm_kernel(*refs, treedef, n_leaves, bs_local, T, Tc, Tt, passes, gw):
    """Entire (guided) M2MDM forward for one batch shard.

    refs = (x, cond, temb_pad, pe_cond, pe_xseq, *param_leaves, out)
    """
    x_ref, cond_ref, temb_ref, pe_c_ref, pe_x_ref = refs[:5]
    leaf_refs = refs[5:5 + n_leaves]
    o_ref = refs[5 + n_leaves]

    p = jax.tree_util.tree_unflatten(treedef, leaf_refs)

    f32 = jnp.float32
    bf16 = jnp.bfloat16
    D = LATENT
    Dh = HEAD_DIM
    H = NUM_HEADS
    Ttot = 1 + Tc + T                  # [emb | cond | motion] valid tokens/batch
    P = len(passes)

    def lin(x, w_ref, b_ref):
        # bf16 operands at the MXU boundary, f32 accumulation, f32 bias add.
        return jnp.dot(x.astype(bf16), w_ref[...],
                       preferred_element_type=f32) + b_ref[...]

    def layer_norm(x, g_ref, b_ref):
        # single-pass: both reductions directly on x, var = E[x^2] - mu^2.
        mu = jnp.mean(x, axis=-1, keepdims=True)
        ms = jnp.mean(x * x, axis=-1, keepdims=True)
        var = jnp.maximum(ms - mu * mu, 0.0)
        return (x - mu) * jax.lax.rsqrt(var + LN_EPS) * g_ref[...] + b_ref[...]

    def gelu(x):                       # exact (erf) GELU, torch default
        return 0.5 * x * (1.0 + jax.lax.erf(x * 0.7071067811865476))

    def encoder_layer(x2, nb, tt, lp, valid_len):
        """nn.TransformerEncoderLayer (post-LN, gelu, dropout inactive at eval)."""
        rows = nb * tt
        qkv = lin(x2, lp["attn"]["in_proj_w"], lp["attn"]["in_proj_b"])  # (rows,3D) f32
        # Heads stacked along the einsum batch axis (one long chain, vectorized
        # softmax over all heads at once).
        q = jnp.concatenate(
            [qkv[:, h * Dh:(h + 1) * Dh].reshape(nb, tt, Dh) for h in range(H)], axis=0)
        k = jnp.concatenate(
            [qkv[:, D + h * Dh:D + (h + 1) * Dh].reshape(nb, tt, Dh) for h in range(H)], axis=0)
        v = jnp.concatenate(
            [qkv[:, 2 * D + h * Dh:2 * D + (h + 1) * Dh].reshape(nb, tt, Dh) for h in range(H)], axis=0)
        s = jnp.einsum("bqd,bkd->bqk", q.astype(bf16), k.astype(bf16),
                       preferred_element_type=f32) * (1.0 / float(Dh) ** 0.5)
        if valid_len < tt:             # mask padded key positions (f32 math)
            kmask = jax.lax.broadcasted_iota(jnp.int32, s.shape, 2) < valid_len
            s = jnp.where(kmask, s, f32(-1e30))
        s = s - jnp.max(s, axis=-1, keepdims=True)
        e = jnp.exp(s)
        pr = e / jnp.sum(e, axis=-1, keepdims=True)        # exact softmax (f32)
        oh = jnp.einsum("bqk,bkd->bqd", pr.astype(bf16), v.astype(bf16),
                        preferred_element_type=f32)        # (H*nb, tt, Dh)
        # merge heads back into lanes and do ONE out-projection matmul
        merged = jnp.concatenate(
            [oh[h * nb:(h + 1) * nb].reshape(rows, Dh) for h in range(H)], axis=-1)
        attn = jnp.dot(merged.astype(bf16), lp["attn"]["out_proj_w"][...],
                       preferred_element_type=f32) + lp["attn"]["out_proj_b"][...]
        x2 = layer_norm(x2 + attn, lp["ln1_g"], lp["ln1_b"])
        hmid = gelu(lin(x2, lp["ff1_w"], lp["ff1_b"]))
        x2 = layer_norm(x2 + lin(hmid, lp["ff2_w"], lp["ff2_b"]),
                        lp["ln2_g"], lp["ln2_b"])
        return x2

    # ---- TimestepEmbedder: pe[t] -> Linear -> SiLU -> Linear ----------------
    te = lin(temb_ref[...].reshape(-1, D),
             p["embed_timestep"]["w1"], p["embed_timestep"]["b1"])
    te = te * jax.nn.sigmoid(te)
    te = lin(te, p["embed_timestep"]["w2"], p["embed_timestep"]["b2"])   # (bs_pad, D)

    # ---- InputProcess (shared by both CFG passes) ----------------------------
    xp = lin(x_ref[...], p["input_process"]["w"], p["input_process"]["b"])  # (bsl*T, D)

    # ---- conditional branch: CondProjection -> PE -> 2x encoder -> embed -----
    em_b = p["embed_motion"]["b"][...]                                   # (1, D)
    c_cond = None
    if any(not u for u in passes):
        c = lin(cond_ref[...], p["cond_projection"]["w"], p["cond_projection"]["b"])
        c = c + pe_c_ref[...]
        for lp in p["cond_encoder"]:
            c = encoder_layer(c, bs_local, Tc, lp, valid_len=Tc)
        c_cond = lin(c, p["embed_motion"]["w"], p["embed_motion"]["b"])  # (bsl*Tc, D)
    # unconditional pass: encoded condition is zeroed before embed_motion, so
    # its contribution is exactly the embed_motion bias.
    c_unc = jnp.broadcast_to(em_b, (Tc, D))

    # ---- assemble xseq as a register value (no scratch round trip) ----------
    # per (pass,batch) block: [motion (T) | cond (Tc) | emb + don't-care pad].
    # Pad rows are masked out of attention as keys and never read as outputs,
    # so broadcasting the timestep-embedding row over the pad is safe.
    pad_rows = Tt - T - Tc
    blocks = []
    for is_unc in passes:
        for b in range(bs_local):
            blocks.append(xp[b * T:(b + 1) * T, :])
            blocks.append(c_unc if is_unc else c_cond[b * Tc:(b + 1) * Tc, :])
            blocks.append(jnp.broadcast_to(te[b:b + 1, :], (pad_rows, D)))
    xseq = jnp.concatenate(blocks, axis=0) + pe_x_ref[...]
    xseq = encoder_layer(xseq, P * bs_local, Tt, p["seq_layer"], valid_len=Ttot)

    # ---- OutputProcess + CFG, fully vectorized (projection is affine) --------
    lat = jnp.concatenate([xseq[b * Tt:b * Tt + T, :] for b in range(bs_local)], axis=0)
    if P == 2:
        lat_c = jnp.concatenate(
            [xseq[(bs_local + b) * Tt:(bs_local + b) * Tt + T, :]
             for b in range(bs_local)], axis=0)
        lat = lat + gw * (lat_c - lat)
    o_ref[...] = (jnp.dot(lat.astype(bf16), p["output_process"]["w"][...],
                          preferred_element_type=f32)
                  + p["output_process"]["b"][...]).astype(o_ref.dtype)


# ------------------------------ wrappers -------------------------------------
def _num_batch_shards(bs):
    """2 shards on v7x (2 TensorCores/chip) when the batch splits evenly."""
    try:
        kind = jax.devices()[0].device_kind.lower()
    except Exception:       # pragma: no cover
        return 1
    if bs % 2 == 0 and ("v7" in kind or "tpu7" in kind):
        return 2
    return 1


def _run_fused(params, x, timesteps, cond, passes, gw):
    bs, nj, nf, T = x.shape
    Tc = cond.shape[3]
    D = LATENT
    P = len(passes)
    Ttot = 1 + Tc + T
    Tt = ((Ttot + 7) // 8) * 8           # per-batch block padded to sublane mult

    num_shards = _num_batch_shards(bs)
    bs_local = bs // num_shards
    bs_pad = ((bs_local + 7) // 8) * 8   # padded rows for the timestep-emb MLP

    pe2 = params["pe"][:, 0, :]          # (max_len, D)

    # batch-major flattening (rows = (batch, time)); identical per-row linears.
    x_flat = x.transpose(0, 3, 1, 2).reshape(bs * T, nj * nf).astype(jnp.float32)
    cond_flat = cond.transpose(0, 3, 1, 2).reshape(bs * Tc, nj * nf).astype(jnp.float32)

    temb = pe2[timesteps].astype(jnp.float32)               # (bs, D)
    temb_p = jnp.zeros((num_shards, bs_pad, D), jnp.float32)
    temb_p = temb_p.at[:, :bs_local, :].set(temb.reshape(num_shards, bs_local, D))

    # PE tables depend only on params / static shapes -> constant-folded under
    # jit (params are closed over by the caller).
    pe_cond = jnp.tile(pe2[:Tc], (bs_local, 1))             # (bs_local*Tc, D)
    pe_blocks = [pe2[1 + Tc:1 + Tc + T], pe2[1:1 + Tc], pe2[0:1]]
    if Tt > Ttot:
        pe_blocks.append(jnp.zeros((Tt - Ttot, D), jnp.float32))
    pe_xseq = jnp.tile(jnp.concatenate(pe_blocks, axis=0), (P * bs_local, 1))

    # matmul weights (shape[0] > 1) pre-cast to bf16 (MXU-native); biases / LN
    # params stay f32.  Constant-folded under jit.
    wparams = {k: v for k, v in params.items() if k != "pe"}
    wparams = jax.tree_util.tree_map(
        lambda a: a.astype(jnp.bfloat16) if a.shape[0] > 1 else a, wparams)
    leaves, treedef = jax.tree_util.tree_flatten(wparams)
    n_leaves = len(leaves)

    def full_spec(arr):                   # whole array, resident across steps
        return pl.BlockSpec(arr.shape, lambda s, _nd=arr.ndim: (0,) * _nd)

    in_specs = [
        pl.BlockSpec((bs_local * T, nj * nf), lambda s: (s, 0)),    # x
        pl.BlockSpec((bs_local * Tc, nj * nf), lambda s: (s, 0)),   # cond
        pl.BlockSpec((1, bs_pad, D), lambda s: (s, 0, 0)),          # timestep pe rows
        full_spec(pe_cond),
        full_spec(pe_xseq),
    ] + [full_spec(leaf) for leaf in leaves]
    out_spec = pl.BlockSpec((bs_local * T, nj * nf), lambda s: (s, 0))

    kernel = functools.partial(
        _m2mdm_kernel, treedef=treedef, n_leaves=n_leaves,
        bs_local=bs_local, T=T, Tc=Tc, Tt=Tt, passes=tuple(passes), gw=float(gw))

    out = pl.pallas_call(
        kernel,
        out_shape=jax.ShapeDtypeStruct((bs * T, nj * nf), jnp.float32),
        grid=(num_shards,),
        in_specs=in_specs,
        out_specs=out_spec,
        compiler_params=pltpu.CompilerParams(dimension_semantics=("parallel",)),
    )(x_flat, cond_flat, temb_p, pe_cond, pe_xseq, *leaves)

    # Kernel emits a lane-dense (bs*T, feats) slab; this tiny reshape/transpose
    # stays in XLA where it fuses (writing (.., T)-minor from the kernel would
    # make the store lane-sparser).
    return out.reshape(bs, T, nj, nf).transpose(0, 2, 3, 1)   # (bs, nj, nf, T)


def m2mdm_forward(params, x, timesteps, y, cond_mask_prob):
    # eval-mode mask_cond semantics: prob==1.0 -> zeros, else pass-through.
    # TODO(synk): training-mode Bernoulli condition masking not implemented.
    uncond = float(cond_mask_prob) == 1.0
    return _run_fused(params, x, timesteps, y["cond"], passes=(uncond,), gw=1.0)


def guided_forward(params, x, timesteps, y, guidance_weight):
    # unc + w*(cond - unc), both passes fused/batched in one kernel.
    return _run_fused(params, x, timesteps, y["cond"],
                      passes=(True, False), gw=guidance_weight)


# ----------------------------- parameter init --------------------------------
def make_pe_table(d_model, max_len):
    position = jnp.arange(max_len, dtype=jnp.float32)[:, None]
    div_term = jnp.exp(jnp.arange(0, d_model, 2, dtype=jnp.float32)
                       * (-jnp.log(10000.0) / d_model))
    pe = jnp.zeros((max_len, d_model), dtype=jnp.float32)
    pe = pe.at[:, 0::2].set(jnp.sin(position * div_term))
    pe = pe.at[:, 1::2].set(jnp.cos(position * div_term))
    return pe[:, None, :]                                    # (max_len, 1, d)


def init_params(key):
    keys = iter(jax.random.split(key, 128))

    def w(shape, scale=0.02):
        return (scale * jax.random.normal(next(keys), shape)).astype(jnp.float32)

    def zeros(n):
        return jnp.zeros((1, n), jnp.float32)

    def enc_layer_params():
        return {
            "attn": {
                "in_proj_w": w((LATENT, 3 * LATENT)),
                "in_proj_b": zeros(3 * LATENT),
                "out_proj_w": w((LATENT, LATENT)),
                "out_proj_b": zeros(LATENT),
            },
            "ln1_g": jnp.ones((1, LATENT), jnp.float32),
            "ln1_b": zeros(LATENT),
            "ff1_w": w((LATENT, FF_SIZE)),
            "ff1_b": zeros(FF_SIZE),
            "ff2_w": w((FF_SIZE, LATENT)),
            "ff2_b": zeros(LATENT),
            "ln2_g": jnp.ones((1, LATENT), jnp.float32),
            "ln2_b": zeros(LATENT),
        }

    return {
        "pe": make_pe_table(LATENT, MAX_LEN),
        "input_process": {"w": w((INPUT_FEATS, LATENT)), "b": zeros(LATENT)},
        "cond_projection": {"w": w((INPUT_FEATS, LATENT)), "b": zeros(LATENT)},
        "embed_timestep": {
            "w1": w((LATENT, LATENT)), "b1": zeros(LATENT),
            "w2": w((LATENT, LATENT)), "b2": zeros(LATENT),
        },
        "embed_motion": {"w": w((LATENT, LATENT)), "b": zeros(LATENT)},
        # nn.TransformerEncoder deep-copies the layer -> 2 independent layers
        "cond_encoder": [enc_layer_params(), enc_layer_params()],
        "seq_layer": enc_layer_params(),
        "output_process": {"w": w((LATENT, INPUT_FEATS)), "b": zeros(INPUT_FEATS)},
        # TODO(synk): Rot2xyz (SMPL forward kinematics) is constructed in
        # __init__ but never used in the base forward; not implemented.
    }


# --------------------------------- main ---------------------------------------
if __name__ == "__main__":
    key = jax.random.PRNGKey(0)
    kp, kx, kc = jax.random.split(key, 3)

    params = init_params(kp)

    bs, nframes = 2, 8
    x = jax.random.normal(kx, (bs, NJOINTS, NFEATS, nframes), jnp.float32)
    cond = jax.random.normal(kc, (bs, NJOINTS, NFEATS, nframes), jnp.float32)
    timesteps = jnp.array([3, 7], dtype=jnp.int32)

    run = jax.jit(lambda x_, t_, c_: guided_forward(
        params, x_, t_, {"cond": c_}, guidance_weight=2.0))

    out = run(x, timesteps, cond)
    jax.block_until_ready(out)
    assert out.shape == (bs, NJOINTS, NFEATS, nframes), out.shape
    print("KERNEL_OK")
</pallas_src>

<mosaic_0001>
module attributes {stable_mosaic.version = 11 : i64} {
  func.func @_m2mdm_kernel(%arg0: i32, %arg1: memref<16x16xf32, #tpu.memory_space<vmem>>, %arg2: memref<16x16xf32, #tpu.memory_space<vmem>>, %arg3: memref<1x8x32xf32, #tpu.memory_space<vmem>>, %arg4: memref<16x32xf32, #tpu.memory_space<vmem>>, %arg5: memref<96x32xf32, #tpu.memory_space<vmem>>, %arg6: memref<1x96xf32, #tpu.memory_space<vmem>>, %arg7: memref<32x96xbf16, #tpu.memory_space<vmem>>, %arg8: memref<1x32xf32, #tpu.memory_space<vmem>>, %arg9: memref<32x32xbf16, #tpu.memory_space<vmem>>, %arg10: memref<1x64xf32, #tpu.memory_space<vmem>>, %arg11: memref<32x64xbf16, #tpu.memory_space<vmem>>, %arg12: memref<1x32xf32, #tpu.memory_space<vmem>>, %arg13: memref<64x32xbf16, #tpu.memory_space<vmem>>, %arg14: memref<1x32xf32, #tpu.memory_space<vmem>>, %arg15: memref<1x32xf32, #tpu.memory_space<vmem>>, %arg16: memref<1x32xf32, #tpu.memory_space<vmem>>, %arg17: memref<1x32xf32, #tpu.memory_space<vmem>>, %arg18: memref<1x96xf32, #tpu.memory_space<vmem>>, %arg19: memref<32x96xbf16, #tpu.memory_space<vmem>>, %arg20: memref<1x32xf32, #tpu.memory_space<vmem>>, %arg21: memref<32x32xbf16, #tpu.memory_space<vmem>>, %arg22: memref<1x64xf32, #tpu.memory_space<vmem>>, %arg23: memref<32x64xbf16, #tpu.memory_space<vmem>>, %arg24: memref<1x32xf32, #tpu.memory_space<vmem>>, %arg25: memref<64x32xbf16, #tpu.memory_space<vmem>>, %arg26: memref<1x32xf32, #tpu.memory_space<vmem>>, %arg27: memref<1x32xf32, #tpu.memory_space<vmem>>, %arg28: memref<1x32xf32, #tpu.memory_space<vmem>>, %arg29: memref<1x32xf32, #tpu.memory_space<vmem>>, %arg30: memref<1x32xf32, #tpu.memory_space<vmem>>, %arg31: memref<16x32xbf16, #tpu.memory_space<vmem>>, %arg32: memref<1x32xf32, #tpu.memory_space<vmem>>, %arg33: memref<32x32xbf16, #tpu.memory_space<vmem>>, %arg34: memref<1x32xf32, #tpu.memory_space<vmem>>, %arg35: memref<1x32xf32, #tpu.memory_space<vmem>>, %arg36: memref<32x32xbf16, #tpu.memory_space<vmem>>, %arg37: memref<32x32xbf16, #tpu.memory_space<vmem>>, %arg38: memref<1x32xf32, #tpu.memory_space<vmem>>, %arg39: memref<16x32xbf16, #tpu.memory_space<vmem>>, %arg40: memref<1x16xf32, #tpu.memory_space<vmem>>, %arg41: memref<32x16xbf16, #tpu.memory_space<vmem>>, %arg42: memref<1x96xf32, #tpu.memory_space<vmem>>, %arg43: memref<32x96xbf16, #tpu.memory_space<vmem>>, %arg44: memref<1x32xf32, #tpu.memory_space<vmem>>, %arg45: memref<32x32xbf16, #tpu.memory_space<vmem>>, %arg46: memref<1x64xf32, #tpu.memory_space<vmem>>, %arg47: memref<32x64xbf16, #tpu.memory_space<vmem>>, %arg48: memref<1x32xf32, #tpu.memory_space<vmem>>, %arg49: memref<64x32xbf16, #tpu.memory_space<vmem>>, %arg50: memref<1x32xf32, #tpu.memory_space<vmem>>, %arg51: memref<1x32xf32, #tpu.memory_space<vmem>>, %arg52: memref<1x32xf32, #tpu.memory_space<vmem>>, %arg53: memref<1x32xf32, #tpu.memory_space<vmem>>, %arg54: memref<16x16xf32, #tpu.memory_space<vmem>>) attributes {dimension_semantics = [#tpu.dimension_semantics<parallel>], iteration_bounds = array<i64: 1>, scalar_prefetch = 0 : i64, scratch_operands = 0 : i64, tpu.core_type = #tpu.core_type<tc>, window_params = [{transform_indices = @transform_0, window_bounds = array<i64: 16, 16>}, {transform_indices = @transform_1, window_bounds = array<i64: 16, 16>}, {transform_indices = @transform_2, window_bounds = array<i64: 1, 8, 32>}, {pipeline_mode = #tpu.pipeline_mode<synchronous>, transform_indices = @transform_3, window_bounds = array<i64: 16, 32>}, {pipeline_mode = #tpu.pipeline_mode<synchronous>, transform_indices = @transform_4, window_bounds = array<i64: 96, 32>}, {pipeline_mode = #tpu.pipeline_mode<synchronous>, transform_indices = @transform_5, window_bounds = array<i64: 1, 96>}, {pipeline_mode = #tpu.pipeline_mode<synchronous>, transform_indices = @transform_6, window_bounds = array<i64: 32, 96>}, {pipeline_mode = #tpu.pipeline_mode<synchronous>, transform_indices = @transform_7, window_bounds = array<i64: 1, 32>}, {pipeline_mode = #tpu.pipeline_mode<synchronous>, transform_indices = @transform_8, window_bounds = array<i64: 32, 32>}, {pipeline_mode = #tpu.pipeline_mode<synchronous>, transform_indices = @transform_9, window_bounds = array<i64: 1, 64>}, {pipeline_mode = #tpu.pipeline_mode<synchronous>, transform_indices = @transform_10, window_bounds = array<i64: 32, 64>}, {pipeline_mode = #tpu.pipeline_mode<synchronous>, transform_indices = @transform_11, window_bounds = array<i64: 1, 32>}, {pipeline_mode = #tpu.pipeline_mode<synchronous>, transform_indices = @transform_12, window_bounds = array<i64: 64, 32>}, {pipeline_mode = #tpu.pipeline_mode<synchronous>, transform_indices = @transform_13, window_bounds = array<i64: 1, 32>}, {pipeline_mode = #tpu.pipeline_mode<synchronous>, transform_indices = @transform_14, window_bounds = array<i64: 1, 32>}, {pipeline_mode = #tpu.pipeline_mode<synchronous>, transform_indices = @transform_15, window_bounds = array<i64: 1, 32>}, {pipeline_mode = #tpu.pipeline_mode<synchronous>, transform_indices = @transform_16, window_bounds = array<i64: 1, 32>}, {pipeline_mode = #tpu.pipeline_mode<synchronous>, transform_indices = @transform_17, window_bounds = array<i64: 1, 96>}, {pipeline_mode = #tpu.pipeline_mode<synchronous>, transform_indices = @transform_18, window_bounds = array<i64: 32, 96>}, {pipeline_mode = #tpu.pipeline_mode<synchronous>, transform_indices = @transform_19, window_bounds = array<i64: 1, 32>}, {pipeline_mode = #tpu.pipeline_mode<synchronous>, transform_indices = @transform_20, window_bounds = array<i64: 32, 32>}, {pipeline_mode = #tpu.pipeline_mode<synchronous>, transform_indices = @transform_21, window_bounds = array<i64: 1, 64>}, {pipeline_mode = #tpu.pipeline_mode<synchronous>, transform_indices = @transform_22, window_bounds = array<i64: 32, 64>}, {pipeline_mode = #tpu.pipeline_mode<synchronous>, transform_indices = @transform_23, window_bounds = array<i64: 1, 32>}, {pipeline_mode = #tpu.pipeline_mode<synchronous>, transform_indices = @transform_24, window_bounds = array<i64: 64, 32>}, {pipeline_mode = #tpu.pipeline_mode<synchronous>, transform_indices = @transform_25, window_bounds = array<i64: 1, 32>}, {pipeline_mode = #tpu.pipeline_mode<synchronous>, transform_indices = @transform_26, window_bounds = array<i64: 1, 32>}, {pipeline_mode = #tpu.pipeline_mode<synchronous>, transform_indices = @transform_27, window_bounds = array<i64: 1, 32>}, {pipeline_mode = #tpu.pipeline_mode<synchronous>, transform_indices = @transform_28, window_bounds = array<i64: 1, 32>}, {pipeline_mode = #tpu.pipeline_mode<synchronous>, transform_indices = @transform_29, window_bounds = array<i64: 1, 32>}, {pipeline_mode = #tpu.pipeline_mode<synchronous>, transform_indices = @transform_30, window_bounds = array<i64: 16, 32>}, {pipeline_mode = #tpu.pipeline_mode<synchronous>, transform_indices = @transform_31, window_bounds = array<i64: 1, 32>}, {pipeline_mode = #tpu.pipeline_mode<synchronous>, transform_indices = @transform_32, window_bounds = array<i64: 32, 32>}, {pipeline_mode = #tpu.pipeline_mode<synchronous>, transform_indices = @transform_33, window_bounds = array<i64: 1, 32>}, {pipeline_mode = #tpu.pipeline_mode<synchronous>, transform_indices = @transform_34, window_bounds = array<i64: 1, 32>}, {pipeline_mode = #tpu.pipeline_mode<synchronous>, transform_indices = @transform_35, window_bounds = array<i64: 32, 32>}, {pipeline_mode = #tpu.pipeline_mode<synchronous>, transform_indices = @transform_36, window_bounds = array<i64: 32, 32>}, {pipeline_mode = #tpu.pipeline_mode<synchronous>, transform_indices = @transform_37, window_bounds = array<i64: 1, 32>}, {pipeline_mode = #tpu.pipeline_mode<synchronous>, transform_indices = @transform_38, window_bounds = array<i64: 16, 32>}, {pipeline_mode = #tpu.pipeline_mode<synchronous>, transform_indices = @transform_39, window_bounds = array<i64: 1, 16>}, {pipeline_mode = #tpu.pipeline_mode<synchronous>, transform_indices = @transform_40, window_bounds = array<i64: 32, 16>}, {pipeline_mode = #tpu.pipeline_mode<synchronous>, transform_indices = @transform_41, window_bounds = array<i64: 1, 96>}, {pipeline_mode = #tpu.pipeline_mode<synchronous>, transform_indices = @transform_42, window_bounds = array<i64: 32, 96>}, {pipeline_mode = #tpu.pipeline_mode<synchronous>, transform_indices = @transform_43, window_bounds = array<i64: 1, 32>}, {pipeline_mode = #tpu.pipeline_mode<synchronous>, transform_indices = @transform_44, window_bounds = array<i64: 32, 32>}, {pipeline_mode = #tpu.pipeline_mode<synchronous>, transform_indices = @transform_45, window_bounds = array<i64: 1, 64>}, {pipeline_mode = #tpu.pipeline_mode<synchronous>, transform_indices = @transform_46, window_bounds = array<i64: 32, 64>}, {pipeline_mode = #tpu.pipeline_mode<synchronous>, transform_indices = @transform_47, window_bounds = array<i64: 1, 32>}, {pipeline_mode = #tpu.pipeline_mode<synchronous>, transform_indices = @transform_48, window_bounds = array<i64: 64, 32>}, {pipeline_mode = #tpu.pipeline_mode<synchronous>, transform_indices = @transform_49, window_bounds = array<i64: 1, 32>}, {pipeline_mode = #tpu.pipeline_mode<synchronous>, transform_indices = @transform_50, window_bounds = array<i64: 1, 32>}, {pipeline_mode = #tpu.pipeline_mode<synchronous>, transform_indices = @transform_51, window_bounds = array<i64: 1, 32>}, {pipeline_mode = #tpu.pipeline_mode<synchronous>, transform_indices = @transform_52, window_bounds = array<i64: 1, 32>}, {transform_indices = @transform_53, window_bounds = array<i64: 16, 16>}]} {
    %c0 = arith.constant 0 : index
    %c0_0 = arith.constant 0 : index
    %c0_1 = arith.constant 0 : index
    %0 = vector.load %arg3[%c0, %c0_0, %c0_1] : memref<1x8x32xf32, #tpu.memory_space<vmem>>, vector<1x8x32xf32>
    %1 = vector.shape_cast %0 : vector<1x8x32xf32> to vector<8x32xf32>
    %2 = arith.truncf %1 : vector<8x32xf32> to vector<8x32xbf16>
    %c0_2 = arith.constant 0 : index
    %c0_3 = arith.constant 0 : index
    %3 = vector.load %arg36[%c0_2, %c0_3] : memref<32x32xbf16, #tpu.memory_space<vmem>>, vector<32x32xbf16>
    %cst = arith.constant dense<0.000000e+00> : vector<8x32xf32>
    %4 = tpu.matmul %2, %3, %cst {dimension_numbers = #tpu.dot_dimension_numbers<[1], [0], [0], [1], [0, 0, 1, 1], [], []>} : vector<8x32xbf16>, vector<32x32xbf16>, vector<8x32xf32> -> vector<8x32xf32>
    %c0_4 = arith.constant 0 : index
    %c0_5 = arith.constant 0 : index
    %5 = vector.load %arg34[%c0_4, %c0_5] : memref<1x32xf32, #tpu.memory_space<vmem>>, vector<1x32xf32>
    %6 = vector.broadcast %5 : vector<1x32xf32> to vector<8x32xf32>
    %7 = arith.addf %4, %6 : vector<8x32xf32>
    %8 = arith.negf %7 : vector<8x32xf32>
    %9 = math.exp %8 : vector<8x32xf32>
    %cst_6 = arith.constant 1.000000e+00 : f32
    %10 = vector.broadcast %cst_6 : f32 to vector<8x32xf32>
    %11 = arith.addf %10, %9 : vector<8x32xf32>
    %12 = arith.divf %10, %11 : vector<8x32xf32>
    %13 = arith.mulf %7, %12 : vector<8x32xf32>
    %14 = arith.truncf %13 : vector<8x32xf32> to vector<8x32xbf16>
    %c0_7 = arith.constant 0 : index
    %c0_8 = arith.constant 0 : index
    %15 = vector.load %arg37[%c0_7, %c0_8] : memref<32x32xbf16, #tpu.memory_space<vmem>>, vector<32x32xbf16>
    %cst_9 = arith.constant dense<0.000000e+00> : vector<8x32xf32>
    %16 = tpu.matmul %14, %15, %cst_9 {dimension_numbers = #tpu.dot_dimension_numbers<[1], [0], [0], [1], [0, 0, 1, 1], [], []>} : vector<8x32xbf16>, vector<32x32xbf16>, vector<8x32xf32> -> vector<8x32xf32>
    %c0_10 = arith.constant 0 : index
    %c0_11 = arith.constant 0 : index
    %17 = vector.load %arg35[%c0_10, %c0_11] : memref<1x32xf32, #tpu.memory_space<vmem>>, vector<1x32xf32>
    %18 = vector.broadcast %17 : vector<1x32xf32> to vector<8x32xf32>
    %19 = arith.addf %16, %18 : vector<8x32xf32>
    %c0_12 = arith.constant 0 : index
    %c0_13 = arith.constant 0 : index
    %20 = vector.load %arg1[%c0_12, %c0_13] : memref<16x16xf32, #tpu.memory_space<vmem>>, vector<16x16xf32>
    %21 = arith.truncf %20 : vector<16x16xf32> to vector<16x16xbf16>
    %c0_14 = arith.constant 0 : index
    %c0_15 = arith.constant 0 : index
    %22 = vector.load %arg39[%c0_14, %c0_15] : memref<16x32xbf16, #tpu.memory_space<vmem>>, vector<16x32xbf16>
    %cst_16 = arith.constant dense<0.000000e+00> : vector<16x32xf32>
    %23 = tpu.matmul %21, %22, %cst_16 {dimension_numbers = #tpu.dot_dimension_numbers<[1], [0], [0], [1], [0, 0, 1, 1], [], []>} : vector<16x16xbf16>, vector<16x32xbf16>, vector<16x32xf32> -> vector<16x32xf32>
    %c0_17 = arith.constant 0 : index
    %c0_18 = arith.constant 0 : index
    %24 = vector.load %arg38[%c0_17, %c0_18] : memref<1x32xf32, #tpu.memory_space<vmem>>, vector<1x32xf32>
    %25 = vector.broadcast %24 : vector<1x32xf32> to vector<16x32xf32>
    %26 = arith.addf %23, %25 : vector<16x32xf32>
    %c0_19 = arith.constant 0 : index
    %c0_20 = arith.constant 0 : index
    %27 = vector.load %arg32[%c0_19, %c0_20] : memref<1x32xf32, #tpu.memory_space<vmem>>, vector<1x32xf32>
    %c0_21 = arith.constant 0 : index
    %c0_22 = arith.constant 0 : index
    %28 = vector.load %arg2[%c0_21, %c0_22] : memref<16x16xf32, #tpu.memory_space<vmem>>, vector<16x16xf32>
    %29 = arith.truncf %28 : vector<16x16xf32> to vector<16x16xbf16>
    %c0_23 = arith.constant 0 : index
    %c0_24 = arith.constant 0 : index
    %30 = vector.load %arg31[%c0_23, %c0_24] : memref<16x32xbf16, #tpu.memory_space<vmem>>, vector<16x32xbf16>
    %cst_25 = arith.constant dense<0.000000e+00> : vector<16x32xf32>
    %31 = tpu.matmul %29, %30, %cst_25 {dimension_numbers = #tpu.dot_dimension_numbers<[1], [0], [0], [1], [0, 0, 1, 1], [], []>} : vector<16x16xbf16>, vector<16x32xbf16>, vector<16x32xf32> -> vector<16x32xf32>
    %c0_26 = arith.constant 0 : index
    %c0_27 = arith.constant 0 : index
    %32 = vector.load %arg30[%c0_26, %c0_27] : memref<1x32xf32, #tpu.memory_space<vmem>>, vector<1x32xf32>
    %33 = vector.broadcast %32 : vector<1x32xf32> to vector<16x32xf32>
    %34 = arith.addf %31, %33 : vector<16x32xf32>
    %c0_28 = arith.constant 0 : index
    %c0_29 = arith.constant 0 : index
    %35 = vector.load %arg4[%c0_28, %c0_29] : memref<16x32xf32, #tpu.memory_space<vmem>>, vector<16x32xf32>
    %36 = arith.addf %34, %35 : vector<16x32xf32>
    %37 = arith.truncf %36 : vector<16x32xf32> to vector<16x32xbf16>
    %c0_30 = arith.constant 0 : index
    %c0_31 = arith.constant 0 : index
    %38 = vector.load %arg7[%c0_30, %c0_31] : memref<32x96xbf16, #tpu.memory_space<vmem>>, vector<32x96xbf16>
    %cst_32 = arith.constant dense<0.000000e+00> : vector<16x96xf32>
    %39 = tpu.matmul %37, %38, %cst_32 {dimension_numbers = #tpu.dot_dimension_numbers<[1], [0], [0], [1], [0, 0, 1, 1], [], []>} : vector<16x32xbf16>, vector<32x96xbf16>, vector<16x96xf32> -> vector<16x96xf32>
    %c0_33 = arith.constant 0 : index
    %c0_34 = arith.constant 0 : index
    %40 = vector.load %arg6[%c0_33, %c0_34] : memref<1x96xf32, #tpu.memory_space<vmem>>, vector<1x96xf32>
    %41 = vector.broadcast %40 : vector<1x96xf32> to vector<16x96xf32>
    %42 = arith.addf %39, %41 : vector<16x96xf32>
    %43 = vector.extract_strided_slice %42 {offsets = [0, 0], sizes = [16, 8], strides = [1, 1]} : vector<16x96xf32> to vector<16x8xf32>
    %44 = vector.shape_cast %43 : vector<16x8xf32> to vector<2x8x8xf32>
    %45 = vector.extract_strided_slice %42 {offsets = [0, 8], sizes = [16, 8], strides = [1, 1]} : vector<16x96xf32> to vector<16x8xf32>
    %46 = vector.shape_cast %45 : vector<16x8xf32> to vector<2x8x8xf32>
    %47 = vector.extract_strided_slice %42 {offsets = [0, 16], sizes = [16, 8], strides = [1, 1]} : vector<16x96xf32> to vector<16x8xf32>
    %48 = vector.shape_cast %47 : vector<16x8xf32> to vector<2x8x8xf32>
    %49 = vector.extract_strided_slice %42 {offsets = [0, 24], sizes = [16, 8], strides = [1, 1]} : vector<16x96xf32> to vector<16x8xf32>
    %50 = vector.shape_cast %49 : vector<16x8xf32> to vector<2x8x8xf32>
    %51 = tpu.concatenate %44, %46, %48, %50 in 0 : vector<2x8x8xf32>, vector<2x8x8xf32>, vector<2x8x8xf32>, vector<2x8x8xf32> -> vector<8x8x8xf32>
    %52 = vector.extract_strided_slice %42 {offsets = [0, 32], sizes = [16, 8], strides = [1, 1]} : vector<16x96xf32> to vector<16x8xf32>
    %53 = vector.shape_cast %52 : vector<16x8xf32> to vector<2x8x8xf32>
    %54 = vector.extract_strided_slice %42 {offsets = [0, 40], sizes = [16, 8], strides = [1, 1]} : vector<16x96xf32> to vector<16x8xf32>
    %55 = vector.shape_cast %54 : vector<16x8xf32> to vector<2x8x8xf32>
    %56 = vector.extract_strided_slice %42 {offsets = [0, 48], sizes = [16, 8], strides = [1, 1]} : vector<16x96xf32> to vector<16x8xf32>
    %57 = vector.shape_cast %56 : vector<16x8xf32> to vector<2x8x8xf32>
    %58 = vector.extract_strided_slice %42 {offsets = [0, 56], sizes = [16, 8], strides = [1, 1]} : vector<16x96xf32> to vector<16x8xf32>
    %59 = vector.shape_cast %58 : vector<16x8xf32> to vector<2x8x8xf32>
    %60 = tpu.concatenate %53, %55, %57, %59 in 0 : vector<2x8x8xf32>, vector<2x8x8xf32>, vector<2x8x8xf32>, vector<2x8x8xf32> -> vector<8x8x8xf32>
    %61 = vector.extract_strided_slice %42 {offsets = [0, 64], sizes = [16, 8], strides = [1, 1]} : vector<16x96xf32> to vector<16x8xf32>
    %62 = vector.shape_cast %61 : vector<16x8xf32> to vector<2x8x8xf32>
    %63 = vector.extract_strided_slice %42 {offsets = [0, 72], sizes = [16, 8], strides = [1, 1]} : vector<16x96xf32> to vector<16x8xf32>
    %64 = vector.shape_cast %63 : vector<16x8xf32> to vector<2x8x8xf32>
    %65 = vector.extract_strided_slice %42 {offsets = [0, 80], sizes = [16, 8], strides = [1, 1]} : vector<16x96xf32> to vector<16x8xf32>
    %66 = vector.shape_cast %65 : vector<16x8xf32> to vector<2x8x8xf32>
    %67 = vector.extract_strided_slice %42 {offsets = [0, 88], sizes = [16, 8], strides = [1, 1]} : vector<16x96xf32> to vector<16x8xf32>
    %68 = vector.shape_cast %67 : vector<16x8xf32> to vector<2x8x8xf32>
    %69 = tpu.concatenate %62, %64, %66, %68 in 0 : vector<2x8x8xf32>, vector<2x8x8xf32>, vector<2x8x8xf32>, vector<2x8x8xf32> -> vector<8x8x8xf32>
    %70 = arith.truncf %51 : vector<8x8x8xf32> to vector<8x8x8xbf16>
    %71 = arith.truncf %60 : vector<8x8x8xf32> to vector<8x8x8xbf16>
    "tpu.trace_start"() <{level = 10 : i32, message = "bqd,bkd->bqk"}> : () -> ()
    %cst_35 = arith.constant dense<0.000000e+00> : vector<8x8x8xf32>
    %72 = tpu.matmul %70, %71, %cst_35 {dimension_numbers = #tpu.dot_dimension_numbers<[2], [2], [1], [1], [0, 0, 0, 1, 1, 1], [0], [0]>} : vector<8x8x8xbf16>, vector<8x8x8xbf16>, vector<8x8x8xf32> -> vector<8x8x8xf32>
    "tpu.trace_stop"() : () -> ()
    %cst_36 = arith.constant 0.353553385 : f32
    %73 = vector.broadcast %cst_36 : f32 to vector<8x8x8xf32>
    %74 = arith.mulf %72, %73 : vector<8x8x8xf32>
    %cst_37 = arith.constant dense<0xFF800000> : vector<8x8xf32>
    %75 = vector.multi_reduction <maximumf>, %74, %cst_37 [2] : vector<8x8x8xf32> to vector<8x8xf32>
    %76 = vector.shape_cast %75 : vector<8x8xf32> to vector<8x8x1xf32>
    %77 = vector.broadcast %76 : vector<8x8x1xf32> to vector<8x8x8xf32>
    %78 = arith.subf %74, %77 : vector<8x8x8xf32>
    %79 = math.exp %78 : vector<8x8x8xf32>
    %cst_38 = arith.constant dense<0.000000e+00> : vector<8x8xf32>
    %80 = vector.multi_reduction <add>, %79, %cst_38 [2] : vector<8x8x8xf32> to vector<8x8xf32>
    %81 = vector.shape_cast %80 : vector<8x8xf32> to vector<8x8x1xf32>
    %82 = vector.broadcast %81 : vector<8x8x1xf32> to vector<8x8x8xf32>
    %83 = arith.divf %79, %82 : vector<8x8x8xf32>
    %84 = arith.truncf %83 : vector<8x8x8xf32> to vector<8x8x8xbf16>
    %85 = arith.truncf %69 : vector<8x8x8xf32> to vector<8x8x8xbf16>
    "tpu.trace_start"() <{level = 10 : i32, message = "bqk,bkd->bqd"}> : () -> ()
    %cst_39 = arith.constant dense<0.000000e+00> : vector<8x8x8xf32>
    %86 = tpu.matmul %84, %85, %cst_39 {dimension_numbers = #tpu.dot_dimension_numbers<[2], [1], [1], [2], [0, 0, 0, 1, 1, 2], [0], [0]>} : vector<8x8x8xbf16>, vector<8x8x8xbf16>, vector<8x8x8xf32> -> vector<8x8x8xf32>
    "tpu.trace_stop"() : () -> ()
    %87 = vector.extract_strided_slice %86 {offsets = [0, 0, 0], sizes = [2, 8, 8], strides = [1, 1, 1]} : vector<8x8x8xf32> to vector<2x8x8xf32>
    %88 = vector.shape_cast %87 : vector<2x8x8xf32> to vector<16x8xf32>
    %89 = vector.extract_strided_slice %86 {offsets = [2, 0, 0], sizes = [2, 8, 8], strides = [1, 1, 1]} : vector<8x8x8xf32> to vector<2x8x8xf32>
    %90 = vector.shape_cast %89 : vector<2x8x8xf32> to vector<16x8xf32>
    %91 = vector.extract_strided_slice %86 {offsets = [4, 0, 0], sizes = [2, 8, 8], strides = [1, 1, 1]} : vector<8x8x8xf32> to vector<2x8x8xf32>
    %92 = vector.shape_cast %91 : vector<2x8x8xf32> to vector<16x8xf32>
    %93 = vector.extract_strided_slice %86 {offsets = [6, 0, 0], sizes = [2, 8, 8], strides = [1, 1, 1]} : vector<8x8x8xf32> to vector<2x8x8xf32>
    %94 = vector.shape_cast %93 : vector<2x8x8xf32> to vector<16x8xf32>
    %95 = tpu.concatenate %88, %90, %92, %94 in 1 : vector<16x8xf32>, vector<16x8xf32>, vector<16x8xf32>, vector<16x8xf32> -> vector<16x32xf32>
    %96 = arith.truncf %95 : vector<16x32xf32> to vector<16x32xbf16>
    %c0_40 = arith.constant 0 : index
    %c0_41 = arith.constant 0 : index
    %97 = vector.load %arg9[%c0_40, %c0_41] : memref<32x32xbf16, #tpu.memory_space<vmem>>, vector<32x32xbf16>
    %cst_42 = arith.constant dense<0.000000e+00> : vector<16x32xf32>
    %98 = tpu.matmul %96, %97, %cst_42 {dimension_numbers = #tpu.dot_dimension_numbers<[1], [0], [0], [1], [0, 0, 1, 1], [], []>} : vector<16x32xbf16>, vector<32x32xbf16>, vector<16x32xf32> -> vector<16x32xf32>
    %c0_43 = arith.constant 0 : index
    %c0_44 = arith.constant 0 : index
    %99 = vector.load %arg8[%c0_43, %c0_44] : memref<1x32xf32, #tpu.memory_space<vmem>>, vector<1x32xf32>
    %100 = vector.broadcast %99 : vector<1x32xf32> to vector<16x32xf32>
    %101 = arith.addf %98, %100 : vector<16x32xf32>
    %102 = arith.addf %36, %101 : vector<16x32xf32>
    %cst_45 = arith.constant dense<0.000000e+00> : vector<16xf32>
    %103 = vector.multi_reduction <add>, %102, %cst_45 [1] : vector<16x32xf32> to vector<16xf32>
    %104 = vector.shape_cast %103 : vector<16xf32> to vector<16x1xf32>
    %cst_46 = arith.constant 3.200000e+01 : f32
    %105 = vector.broadcast %cst_46 : f32 to vector<16x1xf32>
    %106 = arith.divf %104, %105 : vector<16x1xf32>
    %107 = arith.mulf %102, %102 : vector<16x32xf32>
    %cst_47 = arith.constant dense<0.000000e+00> : vector<16xf32>
    %108 = vector.multi_reduction <add>, %107, %cst_47 [1] : vector<16x32xf32> to vector<16xf32>
    %109 = vector.shape_cast %108 : vector<16xf32> to vector<16x1xf32>
    %cst_48 = arith.constant 3.200000e+01 : f32
    %110 = vector.broadcast %cst_48 : f32 to vector<16x1xf32>
    %111 = arith.divf %109, %110 : vector<16x1xf32>
    %112 = arith.mulf %106, %106 : vector<16x1xf32>
    %113 = arith.subf %111, %112 : vector<16x1xf32>
    %cst_49 = arith.constant 0.000000e+00 : f32
    %114 = vector.broadcast %cst_49 : f32 to vector<16x1xf32>
    %115 = arith.maximumf %113, %114 : vector<16x1xf32>
    %116 = vector.broadcast %106 : vector<16x1xf32> to vector<16x32xf32>
    %117 = arith.subf %102, %116 : vector<16x32xf32>
    %cst_50 = arith.constant 9.99999974E-6 : f32
    %118 = vector.broadcast %cst_50 : f32 to vector<16x1xf32>
    %119 = arith.addf %115, %118 : vector<16x1xf32>
    %120 = math.rsqrt %119 : vector<16x1xf32>
    %121 = vector.broadcast %120 : vector<16x1xf32> to vector<16x32xf32>
    %122 = arith.mulf %117, %121 : vector<16x32xf32>
    %c0_51 = arith.constant 0 : index
    %c0_52 = arith.constant 0 : index
    %123 = vector.load %arg15[%c0_51, %c0_52] : memref<1x32xf32, #tpu.memory_space<vmem>>, vector<1x32xf32>
    %124 = vector.broadcast %123 : vector<1x32xf32> to vector<16x32xf32>
    %125 = arith.mulf %122, %124 : vector<16x32xf32>
    %c0_53 = arith.constant 0 : index
    %c0_54 = arith.constant 0 : index
    %126 = vector.load %arg14[%c0_53, %c0_54] : memref<1x32xf32, #tpu.memory_space<vmem>>, vector<1x32xf32>
    %127 = vector.broadcast %126 : vector<1x32xf32> to vector<16x32xf32>
    %128 = arith.addf %125, %127 : vector<16x32xf32>
    %129 = arith.truncf %128 : vector<16x32xf32> to vector<16x32xbf16>
    %c0_55 = arith.constant 0 : index
    %c0_56 = arith.constant 0 : index
    %130 = vector.load %arg11[%c0_55, %c0_56] : memref<32x64xbf16, #tpu.memory_space<vmem>>, vector<32x64xbf16>
    %cst_57 = arith.constant dense<0.000000e+00> : vector<16x64xf32>
    %131 = tpu.matmul %129, %130, %cst_57 {dimension_numbers = #tpu.dot_dimension_numbers<[1], [0], [0], [1], [0, 0, 1, 1], [], []>} : vector<16x32xbf16>, vector<32x64xbf16>, vector<16x64xf32> -> vector<16x64xf32>
    %c0_58 = arith.constant 0 : index
    %c0_59 = arith.constant 0 : index
    %132 = vector.load %arg10[%c0_58, %c0_59] : memref<1x64xf32, #tpu.memory_space<vmem>>, vector<1x64xf32>
    %133 = vector.broadcast %132 : vector<1x64xf32> to vector<16x64xf32>
    %134 = arith.addf %131, %133 : vector<16x64xf32>
    %cst_60 = arith.constant 5.000000e-01 : f32
    %135 = vector.broadcast %cst_60 : f32 to vector<16x64xf32>
    %136 = arith.mulf %135, %134 : vector<16x64xf32>
    %cst_61 = arith.constant 0.707106769 : f32
    %137 = vector.broadcast %cst_61 : f32 to vector<16x64xf32>
    %138 = arith.mulf %134, %137 : vector<16x64xf32>
    %139 = math.erf %138 : vector<16x64xf32>
    %cst_62 = arith.constant 1.000000e+00 : f32
    %140 = vector.broadcast %cst_62 : f32 to vector<16x64xf32>
    %141 = arith.addf %140, %139 : vector<16x64xf32>
    %142 = arith.mulf %136, %141 : vector<16x64xf32>
    %143 = arith.truncf %142 : vector<16x64xf32> to vector<16x64xbf16>
    %c0_63 = arith.constant 0 : index
    %c0_64 = arith.constant 0 : index
    %144 = vector.load %arg13[%c0_63, %c0_64] : memref<64x32xbf16, #tpu.memory_space<vmem>>, vector<64x32xbf16>
    %cst_65 = arith.constant dense<0.000000e+00> : vector<16x32xf32>
    %145 = tpu.matmul %143, %144, %cst_65 {dimension_numbers = #tpu.dot_dimension_numbers<[1], [0], [0], [1], [0, 0, 1, 1], [], []>} : vector<16x64xbf16>, vector<64x32xbf16>, vector<16x32xf32> -> vector<16x32xf32>
    %c0_66 = arith.constant 0 : index
    %c0_67 = arith.constant 0 : index
    %146 = vector.load %arg12[%c0_66, %c0_67] : memref<1x32xf32, #tpu.memory_space<vmem>>, vector<1x32xf32>
    %147 = vector.broadcast %146 : vector<1x32xf32> to vector<16x32xf32>
    %148 = arith.addf %145, %147 : vector<16x32xf32>
    %149 = arith.addf %128, %148 : vector<16x32xf32>
    %cst_68 = arith.constant dense<0.000000e+00> : vector<16xf32>
    %150 = vector.multi_reduction <add>, %149, %cst_68 [1] : vector<16x32xf32> to vector<16xf32>
    %151 = vector.shape_cast %150 : vector<16xf32> to vector<16x1xf32>
    %cst_69 = arith.constant 3.200000e+01 : f32
    %152 = vector.broadcast %cst_69 : f32 to vector<16x1xf32>
    %153 = arith.divf %151, %152 : vector<16x1xf32>
    %154 = arith.mulf %149, %149 : vector<16x32xf32>
    %cst_70 = arith.constant dense<0.000000e+00> : vector<16xf32>
    %155 = vector.multi_reduction <add>, %154, %cst_70 [1] : vector<16x32xf32> to vector<16xf32>
    %156 = vector.shape_cast %155 : vector<16xf32> to vector<16x1xf32>
    %cst_71 = arith.constant 3.200000e+01 : f32
    %157 = vector.broadcast %cst_71 : f32 to vector<16x1xf32>
    %158 = arith.divf %156, %157 : vector<16x1xf32>
    %159 = arith.mulf %153, %153 : vector<16x1xf32>
    %160 = arith.subf %158, %159 : vector<16x1xf32>
    %cst_72 = arith.constant 0.000000e+00 : f32
    %161 = vector.broadcast %cst_72 : f32 to vector<16x1xf32>
    %162 = arith.maximumf %160, %161 : vector<16x1xf32>
    %163 = vector.broadcast %153 : vector<16x1xf32> to vector<16x32xf32>
    %164 = arith.subf %149, %163 : vector<16x32xf32>
    %cst_73 = arith.constant 9.99999974E-6 : f32
    %165 = vector.broadcast %cst_73 : f32 to vector<16x1xf32>
    %166 = arith.addf %162, %165 : vector<16x1xf32>
    %167 = math.rsqrt %166 : vector<16x1xf32>
    %168 = vector.broadcast %167 : vector<16x1xf32> to vector<16x32xf32>
    %169 = arith.mulf %164, %168 : vector<16x32xf32>
    %c0_74 = arith.constant 0 : index
    %c0_75 = arith.constant 0 : index
    %170 = vector.load %arg17[%c0_74, %c0_75] : memref<1x32xf32, #tpu.memory_space<vmem>>, vector<1x32xf32>
    %171 = vector.broadcast %170 : vector<1x32xf32> to vector<16x32xf32>
    %172 = arith.mulf %169, %171 : vector<16x32xf32>
    %c0_76 = arith.constant 0 : index
    %c0_77 = arith.constant 0 : index
    %173 = vector.load %arg16[%c0_76, %c0_77] : memref<1x32xf32, #tpu.memory_space<vmem>>, vector<1x32xf32>
    %174 = vector.broadcast %173 : vector<1x32xf32> to vector<16x32xf32>
    %175 = arith.addf %172, %174 : vector<16x32xf32>
    %176 = arith.truncf %175 : vector<16x32xf32> to vector<16x32xbf16>
    %c0_78 = arith.constant 0 : index
    %c0_79 = arith.constant 0 : index
    %177 = vector.load %arg19[%c0_78, %c0_79] : memref<32x96xbf16, #tpu.memory_space<vmem>>, vector<32x96xbf16>
    %cst_80 = arith.constant dense<0.000000e+00> : vector<16x96xf32>
    %178 = tpu.matmul %176, %177, %cst_80 {dimension_numbers = #tpu.dot_dimension_numbers<[1], [0], [0], [1], [0, 0, 1, 1], [], []>} : vector<16x32xbf16>, vector<32x96xbf16>, vector<16x96xf32> -> vector<16x96xf32>
    %c0_81 = arith.constant 0 : index
    %c0_82 = arith.constant 0 : index
    %179 = vector.load %arg18[%c0_81, %c0_82] : memref<1x96xf32, #tpu.memory_space<vmem>>, vector<1x96xf32>
    %180 = vector.broadcast %179 : vector<1x96xf32> to vector<16x96xf32>
    %181 = arith.addf %178, %180 : vector<16x96xf32>
    %182 = vector.extract_strided_slice %181 {offsets = [0, 0], sizes = [16, 8], strides = [1, 1]} : vector<16x96xf32> to vector<16x8xf32>
    %183 = vector.shape_cast %182 : vector<16x8xf32> to vector<2x8x8xf32>
    %184 = vector.extract_strided_slice %181 {offsets = [0, 8], sizes = [16, 8], strides = [1, 1]} : vector<16x96xf32> to vector<16x8xf32>
    %185 = vector.shape_cast %184 : vector<16x8xf32> to vector<2x8x8xf32>
    %186 = vector.extract_strided_slice %181 {offsets = [0, 16], sizes = [16, 8], strides = [1, 1]} : vector<16x96xf32> to vector<16x8xf32>
    %187 = vector.shape_cast %186 : vector<16x8xf32> to vector<2x8x8xf32>
    %188 = vector.extract_strided_slice %181 {offsets = [0, 24], sizes = [16, 8], strides = [1, 1]} : vector<16x96xf32> to vector<16x8xf32>
    %189 = vector.shape_cast %188 : vector<16x8xf32> to vector<2x8x8xf32>
    %190 = tpu.concatenate %183, %185, %187, %189 in 0 : vector<2x8x8xf32>, vector<2x8x8xf32>, vector<2x8x8xf32>, vector<2x8x8xf32> -> vector<8x8x8xf32>
    %191 = vector.extract_strided_slice %181 {offsets = [0, 32], sizes = [16, 8], strides = [1, 1]} : vector<16x96xf32> to vector<16x8xf32>
    %192 = vector.shape_cast %191 : vector<16x8xf32> to vector<2x8x8xf32>
    %193 = vector.extract_strided_slice %181 {offsets = [0, 40], sizes = [16, 8], strides = [1, 1]} : vector<16x96xf32> to vector<16x8xf32>
    %194 = vector.shape_cast %193 : vector<16x8xf32> to vector<2x8x8xf32>
    %195 = vector.extract_strided_slice %181 {offsets = [0, 48], sizes = [16, 8], strides = [1, 1]} : vector<16x96xf32> to vector<16x8xf32>
    %196 = vector.shape_cast %195 : vector<16x8xf32> to vector<2x8x8xf32>
    %197 = vector.extract_strided_slice %181 {offsets = [0, 56], sizes = [16, 8], strides = [1, 1]} : vector<16x96xf32> to vector<16x8xf32>
    %198 = vector.shape_cast %197 : vector<16x8xf32> to vector<2x8x8xf32>
    %199 = tpu.concatenate %192, %194, %196, %198 in 0 : vector<2x8x8xf32>, vector<2x8x8xf32>, vector<2x8x8xf32>, vector<2x8x8xf32> -> vector<8x8x8xf32>
    %200 = vector.extract_strided_slice %181 {offsets = [0, 64], sizes = [16, 8], strides = [1, 1]} : vector<16x96xf32> to vector<16x8xf32>
    %201 = vector.shape_cast %200 : vector<16x8xf32> to vector<2x8x8xf32>
    %202 = vector.extract_strided_slice %181 {offsets = [0, 72], sizes = [16, 8], strides = [1, 1]} : vector<16x96xf32> to vector<16x8xf32>
    %203 = vector.shape_cast %202 : vector<16x8xf32> to vector<2x8x8xf32>
    %204 = vector.extract_strided_slice %181 {offsets = [0, 80], sizes = [16, 8], strides = [1, 1]} : vector<16x96xf32> to vector<16x8xf32>
    %205 = vector.shape_cast %204 : vector<16x8xf32> to vector<2x8x8xf32>
    %206 = vector.extract_strided_slice %181 {offsets = [0, 88], sizes = [16, 8], strides = [1, 1]} : vector<16x96xf32> to vector<16x8xf32>
    %207 = vector.shape_cast %206 : vector<16x8xf32> to vector<2x8x8xf32>
    %208 = tpu.concatenate %201, %203, %205, %207 in 0 : vector<2x8x8xf32>, vector<2x8x8xf32>, vector<2x8x8xf32>, vector<2x8x8xf32> -> vector<8x8x8xf32>
    %209 = arith.truncf %190 : vector<8x8x8xf32> to vector<8x8x8xbf16>
    %210 = arith.truncf %199 : vector<8x8x8xf32> to vector<8x8x8xbf16>
    "tpu.trace_start"() <{level = 10 : i32, message = "bqd,bkd->bqk"}> : () -> ()
    %cst_83 = arith.constant dense<0.000000e+00> : vector<8x8x8xf32>
    %211 = tpu.matmul %209, %210, %cst_83 {dimension_numbers = #tpu.dot_dimension_numbers<[2], [2], [1], [1], [0, 0, 0, 1, 1, 1], [0], [0]>} : vector<8x8x8xbf16>, vector<8x8x8xbf16>, vector<8x8x8xf32> -> vector<8x8x8xf32>
    "tpu.trace_stop"() : () -> ()
    %cst_84 = arith.constant 0.353553385 : f32
    %212 = vector.broadcast %cst_84 : f32 to vector<8x8x8xf32>
    %213 = arith.mulf %211, %212 : vector<8x8x8xf32>
    %cst_85 = arith.constant dense<0xFF800000> : vector<8x8xf32>
    %214 = vector.multi_reduction <maximumf>, %213, %cst_85 [2] : vector<8x8x8xf32> to vector<8x8xf32>
    %215 = vector.shape_cast %214 : vector<8x8xf32> to vector<8x8x1xf32>
    %216 = vector.broadcast %215 : vector<8x8x1xf32> to vector<8x8x8xf32>
    %217 = arith.subf %213, %216 : vector<8x8x8xf32>
    %218 = math.exp %217 : vector<8x8x8xf32>
    %cst_86 = arith.constant dense<0.000000e+00> : vector<8x8xf32>
    %219 = vector.multi_reduction <add>, %218, %cst_86 [2] : vector<8x8x8xf32> to vector<8x8xf32>
    %220 = vector.shape_cast %219 : vector<8x8xf32> to vector<8x8x1xf32>
    %221 = vector.broadcast %220 : vector<8x8x1xf32> to vector<8x8x8xf32>
    %222 = arith.divf %218, %221 : vector<8x8x8xf32>
    %223 = arith.truncf %222 : vector<8x8x8xf32> to vector<8x8x8xbf16>
    %224 = arith.truncf %208 : vector<8x8x8xf32> to vector<8x8x8xbf16>
    "tpu.trace_start"() <{level = 10 : i32, message = "bqk,bkd->bqd"}> : () -> ()
    %cst_87 = arith.constant dense<0.000000e+00> : vector<8x8x8xf32>
    %225 = tpu.matmul %223, %224, %cst_87 {dimension_numbers = #tpu.dot_dimension_numbers<[2], [1], [1], [2], [0, 0, 0, 1, 1, 2], [0], [0]>} : vector<8x8x8xbf16>, vector<8x8x8xbf16>, vector<8x8x8xf32> -> vector<8x8x8xf32>
    "tpu.trace_stop"() : () -> ()
    %226 = vector.extract_strided_slice %225 {offsets = [0, 0, 0], sizes = [2, 8, 8], strides = [1, 1, 1]} : vector<8x8x8xf32> to vector<2x8x8xf32>
    %227 = vector.shape_cast %226 : vector<2x8x8xf32> to vector<16x8xf32>
    %228 = vector.extract_strided_slice %225 {offsets = [2, 0, 0], sizes = [2, 8, 8], strides = [1, 1, 1]} : vector<8x8x8xf32> to vector<2x8x8xf32>
    %229 = vector.shape_cast %228 : vector<2x8x8xf32> to vector<16x8xf32>
    %230 = vector.extract_strided_slice %225 {offsets = [4, 0, 0], sizes = [2, 8, 8], strides = [1, 1, 1]} : vector<8x8x8xf32> to vector<2x8x8xf32>
    %231 = vector.shape_cast %230 : vector<2x8x8xf32> to vector<16x8xf32>
    %232 = vector.extract_strided_slice %225 {offsets = [6, 0, 0], sizes = [2, 8, 8], strides = [1, 1, 1]} : vector<8x8x8xf32> to vector<2x8x8xf32>
    %233 = vector.shape_cast %232 : vector<2x8x8xf32> to vector<16x8xf32>
    %234 = tpu.concatenate %227, %229, %231, %233 in 1 : vector<16x8xf32>, vector<16x8xf32>, vector<16x8xf32>, vector<16x8xf32> -> vector<16x32xf32>
    %235 = arith.truncf %234 : vector<16x32xf32> to vector<16x32xbf16>
    %c0_88 = arith.constant 0 : index
    %c0_89 = arith.constant 0 : index
    %236 = vector.load %arg21[%c0_88, %c0_89] : memref<32x32xbf16, #tpu.memory_space<vmem>>, vector<32x32xbf16>
    %cst_90 = arith.constant dense<0.000000e+00> : vector<16x32xf32>
    %237 = tpu.matmul %235, %236, %cst_90 {dimension_numbers = #tpu.dot_dimension_numbers<[1], [0], [0], [1], [0, 0, 1, 1], [], []>} : vector<16x32xbf16>, vector<32x32xbf16>, vector<16x32xf32> -> vector<16x32xf32>
    %c0_91 = arith.constant 0 : index
    %c0_92 = arith.constant 0 : index
    %238 = vector.load %arg20[%c0_91, %c0_92] : memref<1x32xf32, #tpu.memory_space<vmem>>, vector<1x32xf32>
    %239 = vector.broadcast %238 : vector<1x32xf32> to vector<16x32xf32>
    %240 = arith.addf %237, %239 : vector<16x32xf32>
    %241 = arith.addf %175, %240 : vector<16x32xf32>
    %cst_93 = arith.constant dense<0.000000e+00> : vector<16xf32>
    %242 = vector.multi_reduction <add>, %241, %cst_93 [1] : vector<16x32xf32> to vector<16xf32>
    %243 = vector.shape_cast %242 : vector<16xf32> to vector<16x1xf32>
    %cst_94 = arith.constant 3.200000e+01 : f32
    %244 = vector.broadcast %cst_94 : f32 to vector<16x1xf32>
    %245 = arith.divf %243, %244 : vector<16x1xf32>
    %246 = arith.mulf %241, %241 : vector<16x32xf32>
    %cst_95 = arith.constant dense<0.000000e+00> : vector<16xf32>
    %247 = vector.multi_reduction <add>, %246, %cst_95 [1] : vector<16x32xf32> to vector<16xf32>
    %248 = vector.shape_cast %247 : vector<16xf32> to vector<16x1xf32>
    %cst_96 = arith.constant 3.200000e+01 : f32
    %249 = vector.broadcast %cst_96 : f32 to vector<16x1xf32>
    %250 = arith.divf %248, %249 : vector<16x1xf32>
    %251 = arith.mulf %245, %245 : vector<16x1xf32>
    %252 = arith.subf %250, %251 : vector<16x1xf32>
    %cst_97 = arith.constant 0.000000e+00 : f32
    %253 = vector.broadcast %cst_97 : f32 to vector<16x1xf32>
    %254 = arith.maximumf %252, %253 : vector<16x1xf32>
    %255 = vector.broadcast %245 : vector<16x1xf32> to vector<16x32xf32>
    %256 = arith.subf %241, %255 : vector<16x32xf32>
    %cst_98 = arith.constant 9.99999974E-6 : f32
    %257 = vector.broadcast %cst_98 : f32 to vector<16x1xf32>
    %258 = arith.addf %254, %257 : vector<16x1xf32>
    %259 = math.rsqrt %258 : vector<16x1xf32>
    %260 = vector.broadcast %259 : vector<16x1xf32> to vector<16x32xf32>
    %261 = arith.mulf %256, %260 : vector<16x32xf32>
    %c0_99 = arith.constant 0 : index
    %c0_100 = arith.constant 0 : index
    %262 = vector.load %arg27[%c0_99, %c0_100] : memref<1x32xf32, #tpu.memory_space<vmem>>, vector<1x32xf32>
    %263 = vector.broadcast %262 : vector<1x32xf32> to vector<16x32xf32>
    %264 = arith.mulf %261, %263 : vector<16x32xf32>
    %c0_101 = arith.constant 0 : index
    %c0_102 = arith.constant 0 : index
    %265 = vector.load %arg26[%c0_101, %c0_102] : memref<1x32xf32, #tpu.memory_space<vmem>>, vector<1x32xf32>
    %266 = vector.broadcast %265 : vector<1x32xf32> to vector<16x32xf32>
    %267 = arith.addf %264, %266 : vector<16x32xf32>
    %268 = arith.truncf %267 : vector<16x32xf32> to vector<16x32xbf16>
    %c0_103 = arith.constant 0 : index
    %c0_104 = arith.constant 0 : index
    %269 = vector.load %arg23[%c0_103, %c0_104] : memref<32x64xbf16, #tpu.memory_space<vmem>>, vector<32x64xbf16>
    %cst_105 = arith.constant dense<0.000000e+00> : vector<16x64xf32>
    %270 = tpu.matmul %268, %269, %cst_105 {dimension_numbers = #tpu.dot_dimension_numbers<[1], [0], [0], [1], [0, 0, 1, 1], [], []>} : vector<16x32xbf16>, vector<32x64xbf16>, vector<16x64xf32> -> vector<16x64xf32>
    %c0_106 = arith.constant 0 : index
    %c0_107 = arith.constant 0 : index
    %271 = vector.load %arg22[%c0_106, %c0_107] : memref<1x64xf32, #tpu.memory_space<vmem>>, vector<1x64xf32>
    %272 = vector.broadcast %271 : vector<1x64xf32> to vector<16x64xf32>
    %273 = arith.addf %270, %272 : vector<16x64xf32>
    %cst_108 = arith.constant 5.000000e-01 : f32
    %274 = vector.broadcast %cst_108 : f32 to vector<16x64xf32>
    %275 = arith.mulf %274, %273 : vector<16x64xf32>
    %cst_109 = arith.constant 0.707106769 : f32
    %276 = vector.broadcast %cst_109 : f32 to vector<16x64xf32>
    %277 = arith.mulf %273, %276 : vector<16x64xf32>
    %278 = math.erf %277 : vector<16x64xf32>
    %cst_110 = arith.constant 1.000000e+00 : f32
    %279 = vector.broadcast %cst_110 : f32 to vector<16x64xf32>
    %280 = arith.addf %279, %278 : vector<16x64xf32>
    %281 = arith.mulf %275, %280 : vector<16x64xf32>
    %282 = arith.truncf %281 : vector<16x64xf32> to vector<16x64xbf16>
    %c0_111 = arith.constant 0 : index
    %c0_112 = arith.constant 0 : index
    %283 = vector.load %arg25[%c0_111, %c0_112] : memref<64x32xbf16, #tpu.memory_space<vmem>>, vector<64x32xbf16>
    %cst_113 = arith.constant dense<0.000000e+00> : vector<16x32xf32>
    %284 = tpu.matmul %282, %283, %cst_113 {dimension_numbers = #tpu.dot_dimension_numbers<[1], [0], [0], [1], [0, 0, 1, 1], [], []>} : vector<16x64xbf16>, vector<64x32xbf16>, vector<16x32xf32> -> vector<16x32xf32>
    %c0_114 = arith.constant 0 : index
    %c0_115 = arith.constant 0 : index
    %285 = vector.load %arg24[%c0_114, %c0_115] : memref<1x32xf32, #tpu.memory_space<vmem>>, vector<1x32xf32>
    %286 = vector.broadcast %285 : vector<1x32xf32> to vector<16x32xf32>
    %287 = arith.addf %284, %286 : vector<16x32xf32>
    %288 = arith.addf %267, %287 : vector<16x32xf32>
    %cst_116 = arith.constant dense<0.000000e+00> : vector<16xf32>
    %289 = vector.multi_reduction <add>, %288, %cst_116 [1] : vector<16x32xf32> to vector<16xf32>
    %290 = vector.shape_cast %289 : vector<16xf32> to vector<16x1xf32>
    %cst_117 = arith.constant 3.200000e+01 : f32
    %291 = vector.broadcast %cst_117 : f32 to vector<16x1xf32>
    %292 = arith.divf %290, %291 : vector<16x1xf32>
    %293 = arith.mulf %288, %288 : vector<16x32xf32>
    %cst_118 = arith.constant dense<0.000000e+00> : vector<16xf32>
    %294 = vector.multi_reduction <add>, %293, %cst_118 [1] : vector<16x32xf32> to vector<16xf32>
    %295 = vector.shape_cast %294 : vector<16xf32> to vector<16x1xf32>
    %cst_119 = arith.constant 3.200000e+01 : f32
    %296 = vector.broadcast %cst_119 : f32 to vector<16x1xf32>
    %297 = arith.divf %295, %296 : vector<16x1xf32>
    %298 = arith.mulf %292, %292 : vector<16x1xf32>
    %299 = arith.subf %297, %298 : vector<16x1xf32>
    %cst_120 = arith.constant 0.000000e+00 : f32
    %300 = vector.broadcast %cst_120 : f32 to vector<16x1xf32>
    %301 = arith.maximumf %299, %300 : vector<16x1xf32>
    %302 = vector.broadcast %292 : vector<16x1xf32> to vector<16x32xf32>
    %303 = arith.subf %288, %302 : vector<16x32xf32>
    %cst_121 = arith.constant 9.99999974E-6 : f32
    %304 = vector.broadcast %cst_121 : f32 to vector<16x1xf32>
    %305 = arith.addf %301, %304 : vector<16x1xf32>
    %306 = math.rsqrt %305 : vector<16x1xf32>
    %307 = vector.broadcast %306 : vector<16x1xf32> to vector<16x32xf32>
    %308 = arith.mulf %303, %307 : vector<16x32xf32>
    %c0_122 = arith.constant 0 : index
    %c0_123 = arith.constant 0 : index
    %309 = vector.load %arg29[%c0_122, %c0_123] : memref<1x32xf32, #tpu.memory_space<vmem>>, vector<1x32xf32>
    %310 = vector.broadcast %309 : vector<1x32xf32> to vector<16x32xf32>
    %311 = arith.mulf %308, %310 : vector<16x32xf32>
    %c0_124 = arith.constant 0 : index
    %c0_125 = arith.constant 0 : index
    %312 = vector.load %arg28[%c0_124, %c0_125] : memref<1x32xf32, #tpu.memory_space<vmem>>, vector<1x32xf32>
    %313 = vector.broadcast %312 : vector<1x32xf32> to vector<16x32xf32>
    %314 = arith.addf %311, %313 : vector<16x32xf32>
    %315 = arith.truncf %314 : vector<16x32xf32> to vector<16x32xbf16>
    %c0_126 = arith.constant 0 : index
    %c0_127 = arith.constant 0 : index
    %316 = vector.load %arg33[%c0_126, %c0_127] : memref<32x32xbf16, #tpu.memory_space<vmem>>, vector<32x32xbf16>
    %cst_128 = arith.constant dense<0.000000e+00> : vector<16x32xf32>
    %317 = tpu.matmul %315, %316, %cst_128 {dimension_numbers = #tpu.dot_dimension_numbers<[1], [0], [0], [1], [0, 0, 1, 1], [], []>} : vector<16x32xbf16>, vector<32x32xbf16>, vector<16x32xf32> -> vector<16x32xf32>
    %c0_129 = arith.constant 0 : index
    %c0_130 = arith.constant 0 : index
    %318 = vector.load %arg32[%c0_129, %c0_130] : memref<1x32xf32, #tpu.memory_space<vmem>>, vector<1x32xf32>
    %319 = vector.broadcast %318 : vector<1x32xf32> to vector<16x32xf32>
    %320 = arith.addf %317, %319 : vector<16x32xf32>
    %321 = vector.shape_cast %27 : vector<1x32xf32> to vector<1x32xf32>
    %322 = vector.broadcast %321 : vector<1x32xf32> to vector<8x32xf32>
    %323 = vector.extract_strided_slice %26 {offsets = [0, 0], sizes = [8, 32], strides = [1, 1]} : vector<16x32xf32> to vector<8x32xf32>
    %324 = vector.extract_strided_slice %19 {offsets = [0, 0], sizes = [1, 32], strides = [1, 1]} : vector<8x32xf32> to vector<1x32xf32>
    %325 = vector.shape_cast %324 : vector<1x32xf32> to vector<1x32xf32>
    %326 = vector.broadcast %325 : vector<1x32xf32> to vector<8x32xf32>
    %327 = vector.extract_strided_slice %26 {offsets = [8, 0], sizes = [8, 32], strides = [1, 1]} : vector<16x32xf32> to vector<8x32xf32>
    %328 = vector.extract_strided_slice %19 {offsets = [1, 0], sizes = [1, 32], strides = [1, 1]} : vector<8x32xf32> to vector<1x32xf32>
    %329 = vector.shape_cast %328 : vector<1x32xf32> to vector<1x32xf32>
    %330 = vector.broadcast %329 : vector<1x32xf32> to vector<8x32xf32>
    %331 = vector.extract_strided_slice %26 {offsets = [0, 0], sizes = [8, 32], strides = [1, 1]} : vector<16x32xf32> to vector<8x32xf32>
    %332 = vector.extract_strided_slice %320 {offsets = [0, 0], sizes = [8, 32], strides = [1, 1]} : vector<16x32xf32> to vector<8x32xf32>
    %333 = vector.extract_strided_slice %19 {offsets = [0, 0], sizes = [1, 32], strides = [1, 1]} : vector<8x32xf32> to vector<1x32xf32>
    %334 = vector.shape_cast %333 : vector<1x32xf32> to vector<1x32xf32>
    %335 = vector.broadcast %334 : vector<1x32xf32> to vector<8x32xf32>
    %336 = vector.extract_strided_slice %26 {offsets = [8, 0], sizes = [8, 32], strides = [1, 1]} : vector<16x32xf32> to vector<8x32xf32>
    %337 = vector.extract_strided_slice %320 {offsets = [8, 0], sizes = [8, 32], strides = [1, 1]} : vector<16x32xf32> to vector<8x32xf32>
    %338 = vector.extract_strided_slice %19 {offsets = [1, 0], sizes = [1, 32], strides = [1, 1]} : vector<8x32xf32> to vector<1x32xf32>
    %339 = vector.shape_cast %338 : vector<1x32xf32> to vector<1x32xf32>
    %340 = vector.broadcast %339 : vector<1x32xf32> to vector<8x32xf32>
    %341 = tpu.concatenate %323, %322, %326, %327, %322, %330, %331, %332, %335, %336, %337, %340 in 0 : vector<8x32xf32>, vector<8x32xf32>, vector<8x32xf32>, vector<8x32xf32>, vector<8x32xf32>, vector<8x32xf32>, vector<8x32xf32>, vector<8x32xf32>, vector<8x32xf32>, vector<8x32xf32>, vector<8x32xf32>, vector<8x32xf32> -> vector<96x32xf32>
    %c0_131 = arith.constant 0 : index
    %c0_132 = arith.constant 0 : index
    %342 = vector.load %arg5[%c0_131, %c0_132] : memref<96x32xf32, #tpu.memory_space<vmem>>, vector<96x32xf32>
    %343 = arith.addf %341, %342 : vector<96x32xf32>
    %344 = arith.truncf %343 : vector<96x32xf32> to vector<96x32xbf16>
    %c0_133 = arith.constant 0 : index
    %c0_134 = arith.constant 0 : index
    %345 = vector.load %arg43[%c0_133, %c0_134] : memref<32x96xbf16, #tpu.memory_space<vmem>>, vector<32x96xbf16>
    %cst_135 = arith.constant dense<0.000000e+00> : vector<96x96xf32>
    %346 = tpu.matmul %344, %345, %cst_135 {dimension_numbers = #tpu.dot_dimension_numbers<[1], [0], [0], [1], [0, 0, 1, 1], [], []>} : vector<96x32xbf16>, vector<32x96xbf16>, vector<96x96xf32> -> vector<96x96xf32>
    %c0_136 = arith.constant 0 : index
    %c0_137 = arith.constant 0 : index
    %347 = vector.load %arg42[%c0_136, %c0_137] : memref<1x96xf32, #tpu.memory_space<vmem>>, vector<1x96xf32>
    %348 = vector.broadcast %347 : vector<1x96xf32> to vector<96x96xf32>
    %349 = arith.addf %346, %348 : vector<96x96xf32>
    %350 = vector.extract_strided_slice %349 {offsets = [0, 0], sizes = [96, 8], strides = [1, 1]} : vector<96x96xf32> to vector<96x8xf32>
    %351 = vector.shape_cast %350 : vector<96x8xf32> to vector<4x24x8xf32>
    %352 = vector.extract_strided_slice %349 {offsets = [0, 8], sizes = [96, 8], strides = [1, 1]} : vector<96x96xf32> to vector<96x8xf32>
    %353 = vector.shape_cast %352 : vector<96x8xf32> to vector<4x24x8xf32>
    %354 = vector.extract_strided_slice %349 {offsets = [0, 16], sizes = [96, 8], strides = [1, 1]} : vector<96x96xf32> to vector<96x8xf32>
    %355 = vector.shape_cast %354 : vector<96x8xf32> to vector<4x24x8xf32>
    %356 = vector.extract_strided_slice %349 {offsets = [0, 24], sizes = [96, 8], strides = [1, 1]} : vector<96x96xf32> to vector<96x8xf32>
    %357 = vector.shape_cast %356 : vector<96x8xf32> to vector<4x24x8xf32>
    %358 = tpu.concatenate %351, %353, %355, %357 in 0 : vector<4x24x8xf32>, vector<4x24x8xf32>, vector<4x24x8xf32>, vector<4x24x8xf32> -> vector<16x24x8xf32>
    %359 = vector.extract_strided_slice %349 {offsets = [0, 32], sizes = [96, 8], strides = [1, 1]} : vector<96x96xf32> to vector<96x8xf32>
    %360 = vector.shape_cast %359 : vector<96x8xf32> to vector<4x24x8xf32>
    %361 = vector.extract_strided_slice %349 {offsets = [0, 40], sizes = [96, 8], strides = [1, 1]} : vector<96x96xf32> to vector<96x8xf32>
    %362 = vector.shape_cast %361 : vector<96x8xf32> to vector<4x24x8xf32>
    %363 = vector.extract_strided_slice %349 {offsets = [0, 48], sizes = [96, 8], strides = [1, 1]} : vector<96x96xf32> to vector<96x8xf32>
    %364 = vector.shape_cast %363 : vector<96x8xf32> to vector<4x24x8xf32>
    %365 = vector.extract_strided_slice %349 {offsets = [0, 56], sizes = [96, 8], strides = [1, 1]} : vector<96x96xf32> to vector<96x8xf32>
    %366 = vector.shape_cast %365 : vector<96x8xf32> to vector<4x24x8xf32>
    %367 = tpu.concatenate %360, %362, %364, %366 in 0 : vector<4x24x8xf32>, vector<4x24x8xf32>, vector<4x24x8xf32>, vector<4x24x8xf32> -> vector<16x24x8xf32>
    %368 = vector.extract_strided_slice %349 {offsets = [0, 64], sizes = [96, 8], strides = [1, 1]} : vector<96x96xf32> to vector<96x8xf32>
    %369 = vector.shape_cast %368 : vector<96x8xf32> to vector<4x24x8xf32>
    %370 = vector.extract_strided_slice %349 {offsets = [0, 72], sizes = [96, 8], strides = [1, 1]} : vector<96x96xf32> to vector<96x8xf32>
    %371 = vector.shape_cast %370 : vector<96x8xf32> to vector<4x24x8xf32>
    %372 = vector.extract_strided_slice %349 {offsets = [0, 80], sizes = [96, 8], strides = [1, 1]} : vector<96x96xf32> to vector<96x8xf32>
    %373 = vector.shape_cast %372 : vector<96x8xf32> to vector<4x24x8xf32>
    %374 = vector.extract_strided_slice %349 {offsets = [0, 88], sizes = [96, 8], strides = [1, 1]} : vector<96x96xf32> to vector<96x8xf32>
    %375 = vector.shape_cast %374 : vector<96x8xf32> to vector<4x24x8xf32>
    %376 = tpu.concatenate %369, %371, %373, %375 in 0 : vector<4x24x8xf32>, vector<4x24x8xf32>, vector<4x24x8xf32>, vector<4x24x8xf32> -> vector<16x24x8xf32>
    %377 = arith.truncf %358 : vector<16x24x8xf32> to vector<16x24x8xbf16>
    %378 = arith.truncf %367 : vector<16x24x8xf32> to vector<16x24x8xbf16>
    "tpu.trace_start"() <{level = 10 : i32, message = "bqd,bkd->bqk"}> : () -> ()
    %cst_138 = arith.constant dense<0.000000e+00> : vector<16x24x24xf32>
    %379 = tpu.matmul %377, %378, %cst_138 {dimension_numbers = #tpu.dot_dimension_numbers<[2], [2], [1], [1], [0, 0, 0, 1, 1, 1], [0], [0]>} : vector<16x24x8xbf16>, vector<16x24x8xbf16>, vector<16x24x24xf32> -> vector<16x24x24xf32>
    "tpu.trace_stop"() : () -> ()
    %cst_139 = arith.constant 0.353553385 : f32
    %380 = vector.broadcast %cst_139 : f32 to vector<16x24x24xf32>
    %381 = arith.mulf %379, %380 : vector<16x24x24xf32>
    %382 = tpu.iota {dimensions = array<i32: 2>} : vector<16x24x24xi32>
    %c17_i32 = arith.constant 17 : i32
    %383 = vector.broadcast %c17_i32 : i32 to vector<16x24x24xi32>
    %384 = arith.cmpi slt, %382, %383 : vector<16x24x24xi32>
    %cst_140 = arith.constant -1.000000e+30 : f32
    %385 = vector.broadcast %cst_140 : f32 to vector<16x24x24xf32>
    %386 = arith.select %384, %381, %385 : vector<16x24x24xi1>, vector<16x24x24xf32>
    %cst_141 = arith.constant dense<0xFF800000> : vector<16x24xf32>
    %387 = vector.multi_reduction <maximumf>, %386, %cst_141 [2] : vector<16x24x24xf32> to vector<16x24xf32>
    %388 = vector.shape_cast %387 : vector<16x24xf32> to vector<16x24x1xf32>
    %389 = vector.broadcast %388 : vector<16x24x1xf32> to vector<16x24x24xf32>
    %390 = arith.subf %386, %389 : vector<16x24x24xf32>
    %391 = math.exp %390 : vector<16x24x24xf32>
    %cst_142 = arith.constant dense<0.000000e+00> : vector<16x24xf32>
    %392 = vector.multi_reduction <add>, %391, %cst_142 [2] : vector<16x24x24xf32> to vector<16x24xf32>
    %393 = vector.shape_cast %392 : vector<16x24xf32> to vector<16x24x1xf32>
    %394 = vector.broadcast %393 : vector<16x24x1xf32> to vector<16x24x24xf32>
    %395 = arith.divf %391, %394 : vector<16x24x24xf32>
    %396 = arith.truncf %395 : vector<16x24x24xf32> to vector<16x24x24xbf16>
    %397 = arith.truncf %376 : vector<16x24x8xf32> to vector<16x24x8xbf16>
    "tpu.trace_start"() <{level = 10 : i32, message = "bqk,bkd->bqd"}> : () -> ()
    %cst_143 = arith.constant dense<0.000000e+00> : vector<16x24x8xf32>
    %398 = tpu.matmul %396, %397, %cst_143 {dimension_numbers = #tpu.dot_dimension_numbers<[2], [1], [1], [2], [0, 0, 0, 1, 1, 2], [0], [0]>} : vector<16x24x24xbf16>, vector<16x24x8xbf16>, vector<16x24x8xf32> -> vector<16x24x8xf32>
    "tpu.trace_stop"() : () -> ()
    %399 = vector.extract_strided_slice %398 {offsets = [0, 0, 0], sizes = [4, 24, 8], strides = [1, 1, 1]} : vector<16x24x8xf32> to vector<4x24x8xf32>
    %400 = vector.shape_cast %399 : vector<4x24x8xf32> to vector<96x8xf32>
    %401 = vector.extract_strided_slice %398 {offsets = [4, 0, 0], sizes = [4, 24, 8], strides = [1, 1, 1]} : vector<16x24x8xf32> to vector<4x24x8xf32>
    %402 = vector.shape_cast %401 : vector<4x24x8xf32> to vector<96x8xf32>
    %403 = vector.extract_strided_slice %398 {offsets = [8, 0, 0], sizes = [4, 24, 8], strides = [1, 1, 1]} : vector<16x24x8xf32> to vector<4x24x8xf32>
    %404 = vector.shape_cast %403 : vector<4x24x8xf32> to vector<96x8xf32>
    %405 = vector.extract_strided_slice %398 {offsets = [12, 0, 0], sizes = [4, 24, 8], strides = [1, 1, 1]} : vector<16x24x8xf32> to vector<4x24x8xf32>
    %406 = vector.shape_cast %405 : vector<4x24x8xf32> to vector<96x8xf32>
    %407 = tpu.concatenate %400, %402, %404, %406 in 1 : vector<96x8xf32>, vector<96x8xf32>, vector<96x8xf32>, vector<96x8xf32> -> vector<96x32xf32>
    %408 = arith.truncf %407 : vector<96x32xf32> to vector<96x32xbf16>
    %c0_144 = arith.constant 0 : index
    %c0_145 = arith.constant 0 : index
    %409 = vector.load %arg45[%c0_144, %c0_145] : memref<32x32xbf16, #tpu.memory_space<vmem>>, vector<32x32xbf16>
    %cst_146 = arith.constant dense<0.000000e+00> : vector<96x32xf32>
    %410 = tpu.matmul %408, %409, %cst_146 {dimension_numbers = #tpu.dot_dimension_numbers<[1], [0], [0], [1], [0, 0, 1, 1], [], []>} : vector<96x32xbf16>, vector<32x32xbf16>, vector<96x32xf32> -> vector<96x32xf32>
    %c0_147 = arith.constant 0 : index
    %c0_148 = arith.constant 0 : index
    %411 = vector.load %arg44[%c0_147, %c0_148] : memref<1x32xf32, #tpu.memory_space<vmem>>, vector<1x32xf32>
    %412 = vector.broadcast %411 : vector<1x32xf32> to vector<96x32xf32>
    %413 = arith.addf %410, %412 : vector<96x32xf32>
    %414 = arith.addf %343, %413 : vector<96x32xf32>
    %cst_149 = arith.constant dense<0.000000e+00> : vector<96xf32>
    %415 = vector.multi_reduction <add>, %414, %cst_149 [1] : vector<96x32xf32> to vector<96xf32>
    %416 = vector.shape_cast %415 : vector<96xf32> to vector<96x1xf32>
    %cst_150 = arith.constant 3.200000e+01 : f32
    %417 = vector.broadcast %cst_150 : f32 to vector<96x1xf32>
    %418 = arith.divf %416, %417 : vector<96x1xf32>
    %419 = arith.mulf %414, %414 : vector<96x32xf32>
    %cst_151 = arith.constant dense<0.000000e+00> : vector<96xf32>
    %420 = vector.multi_reduction <add>, %419, %cst_151 [1] : vector<96x32xf32> to vector<96xf32>
    %421 = vector.shape_cast %420 : vector<96xf32> to vector<96x1xf32>
    %cst_152 = arith.constant 3.200000e+01 : f32
    %422 = vector.broadcast %cst_152 : f32 to vector<96x1xf32>
    %423 = arith.divf %421, %422 : vector<96x1xf32>
    %424 = arith.mulf %418, %418 : vector<96x1xf32>
    %425 = arith.subf %423, %424 : vector<96x1xf32>
    %cst_153 = arith.constant 0.000000e+00 : f32
    %426 = vector.broadcast %cst_153 : f32 to vector<96x1xf32>
    %427 = arith.maximumf %425, %426 : vector<96x1xf32>
    %428 = vector.broadcast %418 : vector<96x1xf32> to vector<96x32xf32>
    %429 = arith.subf %414, %428 : vector<96x32xf32>
    %cst_154 = arith.constant 9.99999974E-6 : f32
    %430 = vector.broadcast %cst_154 : f32 to vector<96x1xf32>
    %431 = arith.addf %427, %430 : vector<96x1xf32>
    %432 = math.rsqrt %431 : vector<96x1xf32>
    %433 = vector.broadcast %432 : vector<96x1xf32> to vector<96x32xf32>
    %434 = arith.mulf %429, %433 : vector<96x32xf32>
    %c0_155 = arith.constant 0 : index
    %c0_156 = arith.constant 0 : index
    %435 = vector.load %arg51[%c0_155, %c0_156] : memref<1x32xf32, #tpu.memory_space<vmem>>, vector<1x32xf32>
    %436 = vector.broadcast %435 : vector<1x32xf32> to vector<96x32xf32>
    %437 = arith.mulf %434, %436 : vector<96x32xf32>
    %c0_157 = arith.constant 0 : index
    %c0_158 = arith.constant 0 : index
    %438 = vector.load %arg50[%c0_157, %c0_158] : memref<1x32xf32, #tpu.memory_space<vmem>>, vector<1x32xf32>
    %439 = vector.broadcast %438 : vector<1x32xf32> to vector<96x32xf32>
    %440 = arith.addf %437, %439 : vector<96x32xf32>
    %441 = arith.truncf %440 : vector<96x32xf32> to vector<96x32xbf16>
    %c0_159 = arith.constant 0 : index
    %c0_160 = arith.constant 0 : index
    %442 = vector.load %arg47[%c0_159, %c0_160] : memref<32x64xbf16, #tpu.memory_space<vmem>>, vector<32x64xbf16>
    %cst_161 = arith.constant dense<0.000000e+00> : vector<96x64xf32>
    %443 = tpu.matmul %441, %442, %cst_161 {dimension_numbers = #tpu.dot_dimension_numbers<[1], [0], [0], [1], [0, 0, 1, 1], [], []>} : vector<96x32xbf16>, vector<32x64xbf16>, vector<96x64xf32> -> vector<96x64xf32>
    %c0_162 = arith.constant 0 : index
    %c0_163 = arith.constant 0 : index
    %444 = vector.load %arg46[%c0_162, %c0_163] : memref<1x64xf32, #tpu.memory_space<vmem>>, vector<1x64xf32>
    %445 = vector.broadcast %444 : vector<1x64xf32> to vector<96x64xf32>
    %446 = arith.addf %443, %445 : vector<96x64xf32>
    %cst_164 = arith.constant 5.000000e-01 : f32
    %447 = vector.broadcast %cst_164 : f32 to vector<96x64xf32>
    %448 = arith.mulf %447, %446 : vector<96x64xf32>
    %cst_165 = arith.constant 0.707106769 : f32
    %449 = vector.broadcast %cst_165 : f32 to vector<96x64xf32>
    %450 = arith.mulf %446, %449 : vector<96x64xf32>
    %451 = math.erf %450 : vector<96x64xf32>
    %cst_166 = arith.constant 1.000000e+00 : f32
    %452 = vector.broadcast %cst_166 : f32 to vector<96x64xf32>
    %453 = arith.addf %452, %451 : vector<96x64xf32>
    %454 = arith.mulf %448, %453 : vector<96x64xf32>
    %455 = arith.truncf %454 : vector<96x64xf32> to vector<96x64xbf16>
    %c0_167 = arith.constant 0 : index
    %c0_168 = arith.constant 0 : index
    %456 = vector.load %arg49[%c0_167, %c0_168] : memref<64x32xbf16, #tpu.memory_space<vmem>>, vector<64x32xbf16>
    %cst_169 = arith.constant dense<0.000000e+00> : vector<96x32xf32>
    %457 = tpu.matmul %455, %456, %cst_169 {dimension_numbers = #tpu.dot_dimension_numbers<[1], [0], [0], [1], [0, 0, 1, 1], [], []>} : vector<96x64xbf16>, vector<64x32xbf16>, vector<96x32xf32> -> vector<96x32xf32>
    %c0_170 = arith.constant 0 : index
    %c0_171 = arith.constant 0 : index
    %458 = vector.load %arg48[%c0_170, %c0_171] : memref<1x32xf32, #tpu.memory_space<vmem>>, vector<1x32xf32>
    %459 = vector.broadcast %458 : vector<1x32xf32> to vector<96x32xf32>
    %460 = arith.addf %457, %459 : vector<96x32xf32>
    %461 = arith.addf %440, %460 : vector<96x32xf32>
    %cst_172 = arith.constant dense<0.000000e+00> : vector<96xf32>
    %462 = vector.multi_reduction <add>, %461, %cst_172 [1] : vector<96x32xf32> to vector<96xf32>
    %463 = vector.shape_cast %462 : vector<96xf32> to vector<96x1xf32>
    %cst_173 = arith.constant 3.200000e+01 : f32
    %464 = vector.broadcast %cst_173 : f32 to vector<96x1xf32>
    %465 = arith.divf %463, %464 : vector<96x1xf32>
    %466 = arith.mulf %461, %461 : vector<96x32xf32>
    %cst_174 = arith.constant dense<0.000000e+00> : vector<96xf32>
    %467 = vector.multi_reduction <add>, %466, %cst_174 [1] : vector<96x32xf32> to vector<96xf32>
    %468 = vector.shape_cast %467 : vector<96xf32> to vector<96x1xf32>
    %cst_175 = arith.constant 3.200000e+01 : f32
    %469 = vector.broadcast %cst_175 : f32 to vector<96x1xf32>
    %470 = arith.divf %468, %469 : vector<96x1xf32>
    %471 = arith.mulf %465, %465 : vector<96x1xf32>
    %472 = arith.subf %470, %471 : vector<96x1xf32>
    %cst_176 = arith.constant 0.000000e+00 : f32
    %473 = vector.broadcast %cst_176 : f32 to vector<96x1xf32>
    %474 = arith.maximumf %472, %473 : vector<96x1xf32>
    %475 = vector.broadcast %465 : vector<96x1xf32> to vector<96x32xf32>
    %476 = arith.subf %461, %475 : vector<96x32xf32>
    %cst_177 = arith.constant 9.99999974E-6 : f32
    %477 = vector.broadcast %cst_177 : f32 to vector<96x1xf32>
    %478 = arith.addf %474, %477 : vector<96x1xf32>
    %479 = math.rsqrt %478 : vector<96x1xf32>
    %480 = vector.broadcast %479 : vector<96x1xf32> to vector<96x32xf32>
    %481 = arith.mulf %476, %480 : vector<96x32xf32>
    %c0_178 = arith.constant 0 : index
    %c0_179 = arith.constant 0 : index
    %482 = vector.load %arg53[%c0_178, %c0_179] : memref<1x32xf32, #tpu.memory_space<vmem>>, vector<1x32xf32>
    %483 = vector.broadcast %482 : vector<1x32xf32> to vector<96x32xf32>
    %484 = arith.mulf %481, %483 : vector<96x32xf32>
    %c0_180 = arith.constant 0 : index
    %c0_181 = arith.constant 0 : index
    %485 = vector.load %arg52[%c0_180, %c0_181] : memref<1x32xf32, #tpu.memory_space<vmem>>, vector<1x32xf32>
    %486 = vector.broadcast %485 : vector<1x32xf32> to vector<96x32xf32>
    %487 = arith.addf %484, %486 : vector<96x32xf32>
    %488 = vector.extract_strided_slice %487 {offsets = [0, 0], sizes = [8, 32], strides = [1, 1]} : vector<96x32xf32> to vector<8x32xf32>
    %489 = vector.extract_strided_slice %487 {offsets = [24, 0], sizes = [8, 32], strides = [1, 1]} : vector<96x32xf32> to vector<8x32xf32>
    %490 = tpu.concatenate %488, %489 in 0 : vector<8x32xf32>, vector<8x32xf32> -> vector<16x32xf32>
    %491 = vector.extract_strided_slice %487 {offsets = [48, 0], sizes = [8, 32], strides = [1, 1]} : vector<96x32xf32> to vector<8x32xf32>
    %492 = vector.extract_strided_slice %487 {offsets = [72, 0], sizes = [8, 32], strides = [1, 1]} : vector<96x32xf32> to vector<8x32xf32>
    %493 = tpu.concatenate %491, %492 in 0 : vector<8x32xf32>, vector<8x32xf32> -> vector<16x32xf32>
    %494 = arith.subf %493, %490 : vector<16x32xf32>
    %cst_182 = arith.constant 2.000000e+00 : f32
    %495 = vector.broadcast %cst_182 : f32 to vector<16x32xf32>
    %496 = arith.mulf %495, %494 : vector<16x32xf32>
    %497 = arith.addf %490, %496 : vector<16x32xf32>
    %498 = arith.truncf %497 : vector<16x32xf32> to vector<16x32xbf16>
    %c0_183 = arith.constant 0 : index
    %c0_184 = arith.constant 0 : index
    %499 = vector.load %arg41[%c0_183, %c0_184] : memref<32x16xbf16, #tpu.memory_space<vmem>>, vector<32x16xbf16>
    %cst_185 = arith.constant dense<0.000000e+00> : vector<16x16xf32>
    %500 = tpu.matmul %498, %499, %cst_185 {dimension_numbers = #tpu.dot_dimension_numbers<[1], [0], [0], [1], [0, 0, 1, 1], [], []>} : vector<16x32xbf16>, vector<32x16xbf16>, vector<16x16xf32> -> vector<16x16xf32>
    %c0_186 = arith.constant 0 : index
    %c0_187 = arith.constant 0 : index
    %501 = vector.load %arg40[%c0_186, %c0_187] : memref<1x16xf32, #tpu.memory_space<vmem>>, vector<1x16xf32>
    %502 = vector.broadcast %501 : vector<1x16xf32> to vector<16x16xf32>
    %503 = arith.addf %500, %502 : vector<16x16xf32>
    %c0_188 = arith.constant 0 : index
    %c0_189 = arith.constant 0 : index
    %504 = vector.load %arg54[%c0_188, %c0_189] : memref<16x16xf32, #tpu.memory_space<vmem>>, vector<16x16xf32>
    tpu.vector_store %arg54[%c0_188, %c0_189], %503 {strides = array<i32>} : memref<16x16xf32, #tpu.memory_space<vmem>>, vector<16x16xf32>,
    return
  }
  func.func @transform_0(%arg0: i32) -> (i32, i32) {
    %c0_i32 = arith.constant 0 : i32
    %c0_i32_0 = arith.constant 0 : i32
    return %arg0, %c0_i32 : i32, i32
  }
  func.func @transform_1(%arg0: i32) -> (i32, i32) {
    %c0_i32 = arith.constant 0 : i32
    %c0_i32_0 = arith.constant 0 : i32
    return %arg0, %c0_i32 : i32, i32
  }
  func.func @transform_2(%arg0: i32) -> (i32, i32, i32) {
    %c0_i32 = arith.constant 0 : i32
    %c0_i32_0 = arith.constant 0 : i32
    %c0_i32_1 = arith.constant 0 : i32
    return %arg0, %c0_i32, %c0_i32_0 : i32, i32, i32
  }
  func.func @transform_3(%arg0: i32) -> (i32, i32) {
    %c0_i32 = arith.constant 0 : i32
    %c0_i32_0 = arith.constant 0 : i32
    %c0_i32_1 = arith.constant 0 : i32
    return %c0_i32, %c0_i32_0 : i32, i32
  }
  func.func @transform_4(%arg0: i32) -> (i32, i32) {
    %c0_i32 = arith.constant 0 : i32
    %c0_i32_0 = arith.constant 0 : i32
    %c0_i32_1 = arith.constant 0 : i32
    return %c0_i32, %c0_i32_0 : i32, i32
  }
  func.func @transform_5(%arg0: i32) -> (i32, i32) {
    %c0_i32 = arith.constant 0 : i32
    %c0_i32_0 = arith.constant 0 : i32
    %c0_i32_1 = arith.constant 0 : i32
    return %c0_i32, %c0_i32_0 : i32, i32
  }
  func.func @transform_6(%arg0: i32) -> (i32, i32) {
    %c0_i32 = arith.constant 0 : i32
    %c0_i32_0 = arith.constant 0 : i32
    %c0_i32_1 = arith.constant 0 : i32
    return %c0_i32, %c0_i32_0 : i32, i32
  }
  func.func @transform_7(%arg0: i32) -> (i32, i32) {
    %c0_i32 = arith.constant 0 : i32
    %c0_i32_0 = arith.constant 0 : i32
    %c0_i32_1 = arith.constant 0 : i32
    return %c0_i32, %c0_i32_0 : i32, i32
  }
  func.func @transform_8(%arg0: i32) -> (i32, i32) {
    %c0_i32 = arith.constant 0 : i32
    %c0_i32_0 = arith.constant 0 : i32
    %c0_i32_1 = arith.constant 0 : i32
    return %c0_i32, %c0_i32_0 : i32, i32
  }
  func.func @transform_9(%arg0: i32) -> (i32, i32) {
    %c0_i32 = arith.constant 0 : i32
    %c0_i32_0 = arith.constant 0 : i32
    %c0_i32_1 = arith.constant 0 : i32
    return %c0_i32, %c0_i32_0 : i32, i32
  }
  func.func @transform_10(%arg0: i32) -> (i32, i32) {
    %c0_i32 = arith.constant 0 : i32
    %c0_i32_0 = arith.constant 0 : i32
    %c0_i32_1 = arith.constant 0 : i32
    return %c0_i32, %c0_i32_0 : i32, i32
  }
  func.func @transform_11(%arg0: i32) -> (i32, i32) {
    %c0_i32 = arith.constant 0 : i32
    %c0_i32_0 = arith.constant 0 : i32
    %c0_i32_1 = arith.constant 0 : i32
    return %c0_i32, %c0_i32_0 : i32, i32
  }
  func.func @transform_12(%arg0: i32) -> (i32, i32) {
    %c0_i32 = arith.constant 0 : i32
    %c0_i32_0 = arith.constant 0 : i32
    %c0_i32_1 = arith.constant 0 : i32
    return %c0_i32, %c0_i32_0 : i32, i32
  }
  func.func @transform_13(%arg0: i32) -> (i32, i32) {
    %c0_i32 = arith.constant 0 : i32
    %c0_i32_0 = arith.constant 0 : i32
    %c0_i32_1 = arith.constant 0 : i32
    return %c0_i32, %c0_i32_0 : i32, i32
  }
  func.func @transform_14(%arg0: i32) -> (i32, i32) {
    %c0_i32 = arith.constant 0 : i32
    %c0_i32_0 = arith.constant 0 : i32
    %c0_i32_1 = arith.constant 0 : i32
    return %c0_i32, %c0_i32_0 : i32, i32
  }
  func.func @transform_15(%arg0: i32) -> (i32, i32) {
    %c0_i32 = arith.constant 0 : i32
    %c0_i32_0 = arith.constant 0 : i32
    %c0_i32_1 = arith.constant 0 : i32
    return %c0_i32, %c0_i32_0 : i32, i32
  }
  func.func @transform_16(%arg0: i32) -> (i32, i32) {
    %c0_i32 = arith.constant 0 : i32
    %c0_i32_0 = arith.constant 0 : i32
    %c0_i32_1 = arith.constant 0 : i32
    return %c0_i32, %c0_i32_0 : i32, i32
  }
  func.func @transform_17(%arg0: i32) -> (i32, i32) {
    %c0_i32 = arith.constant 0 : i32
    %c0_i32_0 = arith.constant 0 : i32
    %c0_i32_1 = arith.constant 0 : i32
    return %c0_i32, %c0_i32_0 : i32, i32
  }
  func.func @transform_18(%arg0: i32) -> (i32, i32) {
    %c0_i32 = arith.constant 0 : i32
    %c0_i32_0 = arith.constant 0 : i32
    %c0_i32_1 = arith.constant 0 : i32
    return %c0_i32, %c0_i32_0 : i32, i32
  }
  func.func @transform_19(%arg0: i32) -> (i32, i32) {
    %c0_i32 = arith.constant 0 : i32
    %c0_i32_0 = arith.constant 0 : i32
    %c0_i32_1 = arith.constant 0 : i32
    return %c0_i32, %c0_i32_0 : i32, i32
  }
  func.func @transform_20(%arg0: i32) -> (i32, i32) {
    %c0_i32 = arith.constant 0 : i32
    %c0_i32_0 = arith.constant 0 : i32
    %c0_i32_1 = arith.constant 0 : i32
    return %c0_i32, %c0_i32_0 : i32, i32
  }
  func.func @transform_21(%arg0: i32) -> (i32, i32) {
    %c0_i32 = arith.constant 0 : i32
    %c0_i32_0 = arith.constant 0 : i32
    %c0_i32_1 = arith.constant 0 : i32
    return %c0_i32, %c0_i32_0 : i32, i32
  }
  func.func @transform_22(%arg0: i32) -> (i32, i32) {
    %c0_i32 = arith.constant 0 : i32
    %c0_i32_0 = arith.constant 0 : i32
    %c0_i32_1 = arith.constant 0 : i32
    return %c0_i32, %c0_i32_0 : i32, i32
  }
  func.func @transform_23(%arg0: i32) -> (i32, i32) {
    %c0_i32 = arith.constant 0 : i32
    %c0_i32_0 = arith.constant 0 : i32
    %c0_i32_1 = arith.constant 0 : i32
    return %c0_i32, %c0_i32_0 : i32, i32
  }
  func.func @transform_24(%arg0: i32) -> (i32, i32) {
    %c0_i32 = arith.constant 0 : i32
    %c0_i32_0 = arith.constant 0 : i32
    %c0_i32_1 = arith.constant 0 : i32
    return %c0_i32, %c0_i32_0 : i32, i32
  }
  func.func @transform_25(%arg0: i32) -> (i32, i32) {
    %c0_i32 = arith.constant 0 : i32
    %c0_i32_0 = arith.constant 0 : i32
    %c0_i32_1 = arith.constant 0 : i32
    return %c0_i32, %c0_i32_0 : i32, i32
  }
  func.func @transform_26(%arg0: i32) -> (i32, i32) {
    %c0_i32 = arith.constant 0 : i32
    %c0_i32_0 = arith.constant 0 : i32
    %c0_i32_1 = arith.constant 0 : i32
    return %c0_i32, %c0_i32_0 : i32, i32
  }
  func.func @transform_27(%arg0: i32) -> (i32, i32) {
    %c0_i32 = arith.constant 0 : i32
    %c0_i32_0 = arith.constant 0 : i32
    %c0_i32_1 = arith.constant 0 : i32
    return %c0_i32, %c0_i32_0 : i32, i32
  }
  func.func @transform_28(%arg0: i32) -> (i32, i32) {
    %c0_i32 = arith.constant 0 : i32
    %c0_i32_0 = arith.constant 0 : i32
    %c0_i32_1 = arith.constant 0 : i32
    return %c0_i32, %c0_i32_0 : i32, i32
  }
  func.func @transform_29(%arg0: i32) -> (i32, i32) {
    %c0_i32 = arith.constant 0 : i32
    %c0_i32_0 = arith.constant 0 : i32
    %c0_i32_1 = arith.constant 0 : i32
    return %c0_i32, %c0_i32_0 : i32, i32
  }
  func.func @transform_30(%arg0: i32) -> (i32, i32) {
    %c0_i32 = arith.constant 0 : i32
    %c0_i32_0 = arith.constant 0 : i32
    %c0_i32_1 = arith.constant 0 : i32
    return %c0_i32, %c0_i32_0 : i32, i32
  }
  func.func @transform_31(%arg0: i32) -> (i32, i32) {
    %c0_i32 = arith.constant 0 : i32
    %c0_i32_0 = arith.constant 0 : i32
    %c0_i32_1 = arith.constant 0 : i32
    return %c0_i32, %c0_i32_0 : i32, i32
  }
  func.func @transform_32(%arg0: i32) -> (i32, i32) {
    %c0_i32 = arith.constant 0 : i32
    %c0_i32_0 = arith.constant 0 : i32
    %c0_i32_1 = arith.constant 0 : i32
    return %c0_i32, %c0_i32_0 : i32, i32
  }
  func.func @transform_33(%arg0: i32) -> (i32, i32) {
    %c0_i32 = arith.constant 0 : i32
    %c0_i32_0 = arith.constant 0 : i32
    %c0_i32_1 = arith.constant 0 : i32
    return %c0_i32, %c0_i32_0 : i32, i32
  }
  func.func @transform_34(%arg0: i32) -> (i32, i32) {
    %c0_i32 = arith.constant 0 : i32
    %c0_i32_0 = arith.constant 0 : i32
    %c0_i32_1 = arith.constant 0 : i32
    return %c0_i32, %c0_i32_0 : i32, i32
  }
  func.func @transform_35(%arg0: i32) -> (i32, i32) {
    %c0_i32 = arith.constant 0 : i32
    %c0_i32_0 = arith.constant 0 : i32
    %c0_i32_1 = arith.constant 0 : i32
    return %c0_i32, %c0_i32_0 : i32, i32
  }
  func.func @transform_36(%arg0: i32) -> (i32, i32) {
    %c0_i32 = arith.constant 0 : i32
    %c0_i32_0 = arith.constant 0 : i32
    %c0_i32_1 = arith.constant 0 : i32
    return %c0_i32, %c0_i32_0 : i32, i32
  }
  func.func @transform_37(%arg0: i32) -> (i32, i32) {
    %c0_i32 = arith.constant 0 : i32
    %c0_i32_0 = arith.constant 0 : i32
    %c0_i32_1 = arith.constant 0 : i32
    return %c0_i32, %c0_i32_0 : i32, i32
  }
  func.func @transform_38(%arg0: i32) -> (i32, i32) {
    %c0_i32 = arith.constant 0 : i32
    %c0_i32_0 = arith.constant 0 : i32
    %c0_i32_1 = arith.constant 0 : i32
    return %c0_i32, %c0_i32_0 : i32, i32
  }
  func.func @transform_39(%arg0: i32) -> (i32, i32) {
    %c0_i32 = arith.constant 0 : i32
    %c0_i32_0 = arith.constant 0 : i32
    %c0_i32_1 = arith.constant 0 : i32
    return %c0_i32, %c0_i32_0 : i32, i32
  }
  func.func @transform_40(%arg0: i32) -> (i32, i32) {
    %c0_i32 = arith.constant 0 : i32
    %c0_i32_0 = arith.constant 0 : i32
    %c0_i32_1 = arith.constant 0 : i32
    return %c0_i32, %c0_i32_0 : i32, i32
  }
  func.func @transform_41(%arg0: i32) -> (i32, i32) {
    %c0_i32 = arith.constant 0 : i32
    %c0_i32_0 = arith.constant 0 : i32
    %c0_i32_1 = arith.constant 0 : i32
    return %c0_i32, %c0_i32_0 : i32, i32
  }
  func.func @transform_42(%arg0: i32) -> (i32, i32) {
    %c0_i32 = arith.constant 0 : i32
    %c0_i32_0 = arith.constant 0 : i32
    %c0_i32_1 = arith.constant 0 : i32
    return %c0_i32, %c0_i32_0 : i32, i32
  }
  func.func @transform_43(%arg0: i32) -> (i32, i32) {
    %c0_i32 = arith.constant 0 : i32
    %c0_i32_0 = arith.constant 0 : i32
    %c0_i32_1 = arith.constant 0 : i32
    return %c0_i32, %c0_i32_0 : i32, i32
  }
  func.func @transform_44(%arg0: i32) -> (i32, i32) {
    %c0_i32 = arith.constant 0 : i32
    %c0_i32_0 = arith.constant 0 : i32
    %c0_i32_1 = arith.constant 0 : i32
    return %c0_i32, %c0_i32_0 : i32, i32
  }
  func.func @transform_45(%arg0: i32) -> (i32, i32) {
    %c0_i32 = arith.constant 0 : i32
    %c0_i32_0 = arith.constant 0 : i32
    %c0_i32_1 = arith.constant 0 : i32
    return %c0_i32, %c0_i32_0 : i32, i32
  }
  func.func @transform_46(%arg0: i32) -> (i32, i32) {
    %c0_i32 = arith.constant 0 : i32
    %c0_i32_0 = arith.constant 0 : i32
    %c0_i32_1 = arith.constant 0 : i32
    return %c0_i32, %c0_i32_0 : i32, i32
  }
  func.func @transform_47(%arg0: i32) -> (i32, i32) {
    %c0_i32 = arith.constant 0 : i32
    %c0_i32_0 = arith.constant 0 : i32
    %c0_i32_1 = arith.constant 0 : i32
    return %c0_i32, %c0_i32_0 : i32, i32
  }
  func.func @transform_48(%arg0: i32) -> (i32, i32) {
    %c0_i32 = arith.constant 0 : i32
    %c0_i32_0 = arith.constant 0 : i32
    %c0_i32_1 = arith.constant 0 : i32
    return %c0_i32, %c0_i32_0 : i32, i32
  }
  func.func @transform_49(%arg0: i32) -> (i32, i32) {
    %c0_i32 = arith.constant 0 : i32
    %c0_i32_0 = arith.constant 0 : i32
    %c0_i32_1 = arith.constant 0 : i32
    return %c0_i32, %c0_i32_0 : i32, i32
  }
  func.func @transform_50(%arg0: i32) -> (i32, i32) {
    %c0_i32 = arith.constant 0 : i32
    %c0_i32_0 = arith.constant 0 : i32
    %c0_i32_1 = arith.constant 0 : i32
    return %c0_i32, %c0_i32_0 : i32, i32
  }
  func.func @transform_51(%arg0: i32) -> (i32, i32) {
    %c0_i32 = arith.constant 0 : i32
    %c0_i32_0 = arith.constant 0 : i32
    %c0_i32_1 = arith.constant 0 : i32
    return %c0_i32, %c0_i32_0 : i32, i32
  }
  func.func @transform_52(%arg0: i32) -> (i32, i32) {
    %c0_i32 = arith.constant 0 : i32
    %c0_i32_0 = arith.constant 0 : i32
    %c0_i32_1 = arith.constant 0 : i32
    return %c0_i32, %c0_i32_0 : i32, i32
  }
  func.func @transform_53(%arg0: i32) -> (i32, i32) {
    %c0_i32 = arith.constant 0 : i32
    %c0_i32_0 = arith.constant 0 : i32
    return %arg0, %c0_i32 : i32, i32
  }
}

</mosaic_0001>

<bundles_post_ra>
// kernel: _lambda_.1
= control target key start
LH: loop header
LB: loop body
LE: loop exit
PB: predicated region body
PF: predicated region fallthrough
CT: control target
= control target key end

     0   :  { %v11622_v0 = vmov 0.0   ;;  %s9204_s3 = smov 35   ;;  %vm9205_vm0 = vmmov 0   ;;  %s9206_s7 = smov 2   ;;  %vm244_vm1 = vcmask 261120   ;;  %vm380_vm2 = vcmask 130048   ;;  %s11621_s0 = inlined_call_operand.smem [shape: u32[54], index: -1, kind: input, shape index: {}] }
   0x1   :  { %7843 = vmatprep.subr.bf16.mxu0 %v11622_v0  ;;  %s7348_s6 = sld [smem:[%s11621_s0 + %s9204_s3]]   ;;  %7847 = vmatprep.mubr.msk.bf16.mxu0 %vm9205_vm0, %v11622_v0  ;;  %s9207_s11 = smov 36   ;;  %vm591_vm3 = vcmask 64512   ;;  %vm1090_vm4 = vcmask 1043456   ;;  %vm1498_vm5 = vcmask 195584   ;;  %vm1740_vm6 = vcmask 523264  }
   0x2   :  { %s7315_s10 = sld [smem:[%s11621_s0 + %s9206_s7]]   ;;  %7851 = vmatprep.subr.bf16.mxu1 %v11622_v0  ;;  %7855 = vmatprep.mubr.msk.bf16.mxu1 %vm9205_vm0, %v11622_v0  ;;  %s9208_s15 = smov 38  }
   0x3   :  { %s7349_s14 = sld [smem:[%s11621_s0 + %s9207_s11]]   ;;  %s9209_s22 = smov 30  }
   0x4   :  { %s7351_s18 = sld [smem:[%s11621_s0 + %s9208_s15]]   ;;  %s9210_s26 = smov 33  }
   0x5   :  { %s1_s21 = sld [smem:[%s11621_s0]]   ;;  %s9211_s30 = smov 1  }
   0x6   :  { %s7343_s25 = sld [smem:[%s11621_s0 + %s9209_s22]]   ;;  %s9212_s4 = smov 6  }
   0x7   :  { %v8823_v1 = vld [vmem:[%s7348_s6] sm:$0xff]   ;;  %v8824_v2 = vld [vmem:[%s7348_s6 + $0x8] sm:$0xff]   ;;  %s7346_s29 = sld [smem:[%s11621_s0 + %s9210_s26]]   ;;  %s9213_s8 = smov 29  }
   0x8   :  { %7844 = vmatpush3.bf16.msra.mxu0 %v8823_v1  ;;  %v219_v3 = vld [vmem:[%s7315_s10] sm:$0xff]  ;;  %s7314_s3 = sld [smem:[%s11621_s0 + %s9211_s30]]   ;;  %s9214_s12 = smov 3  }
   0x9   :  { %7845 = vmatprep.subr.bf16.mxu0 %v11622_v0  ;;  %v220_v4 = vpack.c.bf16 %v219_v3, %v219_v3  ;;  %v8825_v5 = vld [vmem:[%s7349_s14] sm:$0xff]   ;;  %v8826_v6 = vld [vmem:[%s7349_s14 + $0x8] sm:$0xff]   ;;  %s7319_s7 = sld [smem:[%s11621_s0 + %s9212_s4]]   ;;  %s9215_s16 = smov 5  }
   0xa   :  { %7852 = vmatpush3.bf16.msra.mxu1 %v8825_v5  ;;  %v8827_v7 = vld [vmem:[%s7351_s18] sm:$0xff]   ;;  %s7342_s11 = sld [smem:[%s11621_s0 + %s9213_s8]]   ;;  %s9216_s20 = smov 104  }
   0xb   :  { %7853 = vmatprep.subr.bf16.mxu1 %v11622_v0  ;;  %v362_v8 = vld [vmem:[%s1_s21] sm:$0xff]  ;;  %v363_v9 = vld [vmem:[%s1_s21 + $0x8] sm:$0xff]  ;;  %s7316_s15 = sld [smem:[%s11621_s0 + %s9214_s12]]   ;;  %s9217_s21 = smov 120  }
   0xc   :  { %7846 = vmatpush3.bf16.msra.mxu0 %v8824_v2  ;;  %v364_v10 = vpack.c.bf16 %v363_v9, %v362_v8  ;;  %v8828_v22 = vld [vmem:[%s7343_s25] sm:$0xff]   ;;  %s7318_s19 = sld [smem:[%s11621_s0 + %s9215_s16]]   ;;  %s9218_s22 = smov 96  }
   0xd   :  { %7859 = vmatprep.subr.bf16.mxu0 %v11622_v0  ;;  %v7367_v11 = vld [vmem:[%s7346_s29] ss:$0 sm:$0xff]  ;;  %s9219_s23 = smov 112   ;;  %s9220_s24 = smov 64  }
   0xe   :  { %7854 = vmatpush3.bf16.msra.mxu1 %v8826_v6  ;;  %v426_v24 = vld [vmem:[%s7314_s3] sm:$0xff]  ;;  %v427_v25 = vld [vmem:[%s7314_s3 + $0x8] sm:$0xff]  ;;  %s9221_s25 = smov 24   ;;  %s9222_s29 = smov 8  }
   0xf   :  { %7848 = vmatmul.mubr.msk.bf16.vlgmr.msra.gmra.mrb[0].mxu0 %vm244_vm1, %v220_v4  ;;  %7865 = vmatprep.subr.bf16.mxu1 %v11622_v0  ;;  %v428_v26 = vpack.c.bf16 %v427_v25, %v426_v24  ;;  %v8829_v31 = vld [vmem:[%s7319_s7] sm:$0xff]   ;;  %v8830_v32 = vld [vmem:[%s7319_s7 + $0x8] sm:$0xff]   ;;  %s9526_s28 = sld [smem:[%s11621_s0 + %s9221_s25]]   ;;  %s9223_s3 = smov 16  }
  0x10   :  { %7861 = vmatprep.mubr.msk.bf16.mxu0 %vm9205_vm0, %v11622_v0  ;;  %7860 = vmatpush3.bf16.msra.mxu0 %v8827_v7  ;;  %v7379_v37 = vld [vmem:[%s7342_s11] ss:$0 sm:$0xff]  ;;  %s7321_s2 = sld [smem:[%s11621_s0 + %s9222_s29]]   ;;  %s9224_s4 = smov 7  }
  0x11   :  { %7871 = vmatprep.subr.bf16.mxu0 %v11622_v0  ;;  %v488_v41 = vld [vmem:[%s7316_s15] sm:$0xff]  ;;  %v489_v43 = vld [vmem:[%s7316_s15 + $0x8] sm:$0xff]  ;;  %s7320_s7 = sld [smem:[%s11621_s0 + %s9224_s4]]   ;;  %s9225_s8 = smov 10  }
  0x12   :  { %v7382_v49 = vld [vmem:[%s7318_s19] ss:$0 sm:$0xff]  ;;  %s7323_s11 = sld [smem:[%s11621_s0 + %s9225_s8]]   ;;  %s9226_s12 = smov 14  }
  0x13   :  { %s7327_s15 = sld [smem:[%s11621_s0 + %s9226_s12]]   ;;  %s9227_s16 = smov 13  }
  0x14   :  { %s7326_s19 = sld [smem:[%s11621_s0 + %s9227_s16]]   ;;  %s9228_s26 = smov 12  }
  0x15   :  { %s7325_s1 = sld [smem:[%s11621_s0 + %s9228_s26]]   ;;  %s9232_s18 = smov 15  }
  0x16   :  { %s7329_s17 = sld [smem:[%s11621_s0 + %s9223_s3]]   ;;  %s9233_s30 = smov 17  }
  0x17   :  { %7862 = vmatmul.mubr.msk.bf16.vlgmr.msra.gmra.mrb[4].mxu0 %vm380_vm2, %v364_v10  ;;  %s7328_s27 = sld [smem:[%s11621_s0 + %s9232_s18]]   ;;  %s9234_s5 = smov 20  }
  0x18   :  { %7875 = vmatprep.mubr.msk.bf16.mxu0 %vm9205_vm0, %v11622_v0  ;;  %7872 = vmatpush3.bf16.msra.mxu0 %v8829_v31  ;;  %s7330_s4 = sld [smem:[%s11621_s0 + %s9233_s30]]   ;;  %s9235_s9 = smov 19  }
  0x19   :  { %7873 = vmatprep.subr.bf16.mxu0 %v11622_v0  ;;  %s7333_s8 = sld [smem:[%s11621_s0 + %s9234_s5]]   ;;  %s9236_s13 = smov 22  }
  0x1a   :  { %s7332_s12 = sld [smem:[%s11621_s0 + %s9235_s9]]   ;;  %s9246_s9 = smov 27  }
  0x1b   :  { %s7335_s16 = sld [smem:[%s11621_s0 + %s9236_s13]]   ;;  %s9247_s13 = smov 4  }
  0x1c   :  { %7874 = vmatpush3.bf16.msra.mxu0 %v8830_v32 }
  0x1d   :  { %7885 = vmatprep.subr.bf16.mxu0 %v11622_v0 }
  0xe2   :  { %v282_v12 = vpop.f32.mrb[0].mxu0 }
  0xe3   :  { %v283_v13 = vadd.f32 %v7367_v11, %v282_v12  ;;  %v7849_v14 = vpop.f32.mrb[1].mxu0 }
  0xe4   :  { %v285_v15 = vpop.f32.mrb[2].mxu0 }
  0xe5   :  { %v7371_v16 = vmul.f32 -1.442695, %v283_v13  ;;  %v7850_v17 = vpop.f32.mrb[3].mxu0 }
  0xe7   :  { %8863 = vpow2.f32 %v7371_v16 }
  0xea   :  { %v9316_v27 = vpop.f32.mrb[4].mxu0 }
  0xeb   :  { %v7863_v28 = vpop.f32.mrb[5].mxu0 }
  0xec   :  { %v9318_v29 = vpop.f32.mrb[6].mxu0 }
  0xed   :  { %v7864_v30 = vpop.f32.mrb[7].mxu0 }
  0xf1   :  { %v8864_v18 = vpop.eup %8863 }
  0xf2   :  { %v291_v19 = vadd.f32 1.0, %v8864_v18 }
  0xf4   :  { %8865 = vrcp.f32 %v291_v19 }
  0xfe   :  { %v8866_v20 = vpop.eup %8865 }
  0xff   :  { %v294_v21 = vmul.f32 %v8866_v20, %v283_v13 }
 0x101   :  { %v295_v23 = vpack.c.bf16 %v294_v21, %v294_v21 }
 0x103   :  { %7856 = vmatmul.mubr.msk.bf16.vlgmr.msra.gmra.mrb[0].mxu1 %vm244_vm1, %v295_v23 }
 0x104   :  { %7866 = vmatpush3.bf16.msra.mxu1 %v8828_v22  ;;  %7867 = vmatprep.mubr.msk.bf16.mxu1 %vm9205_vm0, %v11622_v0 }
 0x105   :  { %7879 = vmatprep.subr.bf16.mxu1 %v11622_v0 }
 0x10b   :  { %7868 = vmatmul.mubr.msk.bf16.vlgmr.msra.gmra.mrb[4].mxu1 %vm380_vm2, %v428_v26 }
 0x10c   :  { %7881 = vmatprep.mubr.msk.bf16.mxu1 %vm9205_vm0, %v11622_v0 }
 0x1d6   :  { %v9328_v33 = vpop.f32.mrb[0].mxu1 }
 0x1d7   :  { %v7857_v34 = vpop.f32.mrb[1].mxu1 }
 0x1d8   :  { %v359_v35 = vpop.f32.mrb[2].mxu1 }
 0x1d9   :  { %v7858_v36 = vpop.f32.mrb[3].mxu1 }
 0x1de   :  { %v481_v38 = vpop.f32.mrb[4].mxu1 }
 0x1df   :  { %v482_v39 = vadd.f32 %v7379_v37, %v481_v38  ;;  %v7869_v40 = vpop.f32.mrb[5].mxu1 }
 0x1e0   :  { %v484_v42 = vpop.f32.mrb[6].mxu1 }
 0x1e1   :  { %v485_v44 = vadd.f32 %v7379_v37, %v484_v42  ;;  %v7870_v45 = vpop.f32.mrb[7].mxu1  ;;  %v9333_v46 = vadd.f32 %v488_v41, %v482_v39 }
 0x1e3   :  { %v9335_v47 = vadd.f32 %v489_v43, %v485_v44 }
 0x1e5   :  { %v492_v48 = vpack.c.bf16 %v9335_v47, %v9333_v46 }
 0x1e7   :  { %7876 = vmatmul.mubr.msk.bf16.vlgmr.msra.gmra.mrb[8].mxu0 %vm244_vm1, %v492_v48 }
 0x1e8   :  { %7887 = vmatprep.mubr.msk.bf16.mxu0 %vm9205_vm0, %v11622_v0 }
 0x2ba   :  { %v553_v50 = vpop.f32.mrb[8].mxu0 }
 0x2bb   :  { %v7877_v51 = vpop.f32.mrb[9].mxu0  ;;  %v554_v53 = vadd.f32 %v7382_v49, %v553_v50 }
 0x2bc   :  { %v556_v52 = vpop.f32.mrb[10].mxu0 }
 0x2bd   :  { %v557_v54 = vadd.f32 %v7382_v49, %v556_v52  ;;  %v7878_v55 = vpop.f32.mrb[11].mxu0  ;;  %v580_v57 = vpack.c.bf16 %v554_v53, %v554_v53 }
 0x2bf   :  { %v8593_v56 = vpack.i.bf16 %v557_v54, %v554_v53  ;;  %v581_v58 = vpack.c.bf16 %v557_v54, %v557_v54 }
 0x2c1   :  { %8594 = vrot.lane.b32.xlu1 %v8593_v56, %s9216_s20  ;;  %8584 = vrot.lane.b32.xlu0 %v8593_v56, %s9217_s21 }
 0x2c5   :  { %589 = vrot.lane.b32.xlu1 %v580_v57, %s9218_s22  ;;  %8589 = vrot.lane.b32.xlu0 %v8593_v56, %s9219_s23 }
 0x2c9   :  { %639 = vrot.lane.b32.xlu0 %v581_v58, %s9218_s22 }
 0x333   :  { %v8595_v59 = vpop.permute.xlu1 %8594  ;;  %v8585_v60 = vpop.permute.xlu0 %8584 }
 0x334   :  { %v8587_v61 = vunpack.i.h.bf16 %v8585_v60  ;;  %v8586_v62 = vunpack.i.l.bf16 %v8585_v60  ;;  %v8596_v7 = vunpack.i.l.bf16 %v8595_v59  ;;  %v8597_v10 = vunpack.i.h.bf16 %v8595_v59 }
 0x336   :  { %v9350_v63 = vpack.c.bf16 %v8586_v62, %v8586_v62  ;;  %v9352_v1 = vpack.c.bf16 %v8587_v61, %v8587_v61  ;;  %v9369_v13 = vpack.c.bf16 %v8596_v7, %v8596_v7  ;;  %v9372_v14 = vpack.c.bf16 %v8597_v10, %v8597_v10 }
 0x337   :  { %v590_v2 = vpop.permute.xlu1 %589  ;;  %v8590_v3 = vpop.permute.xlu0 %8589 }
 0x338   :  { %v596_v4 = vsel %vm591_vm3, %v590_v2, 0  ;;  %v8592_v5 = vunpack.i.h.bf16 %v8590_v3  ;;  %v8591_v6 = vunpack.i.l.bf16 %v8590_v3  ;;  %688 = vrot.lane.b32.xlu1 %v9350_v63, %s9218_s22  ;;  %737 = vrot.lane.b32.xlu0 %v9352_v1, %s9218_s22 }
 0x339   :  { %7880 = vmatpush3.bf16.xpose.msra.mxu1 %v596_v4 }
 0x33a   :  { %v9359_v8 = vpack.c.bf16 %v8591_v6, %v8591_v6  ;;  %v9361_v9 = vpack.c.bf16 %v8592_v5, %v8592_v5  ;;  %7891 = vmatprep.subr.bf16.mxu1 %v11622_v0 }
 0x33b   :  { %v640_v11 = vpop.permute.xlu0 %639 }
 0x33c   :  { %v645_v12 = vsel %vm591_vm3, %v640_v11, 0  ;;  %786 = vrot.lane.b32.xlu1 %v9359_v8, %s9218_s22  ;;  %835 = vrot.lane.b32.xlu0 %v9361_v9, %s9218_s22 }
 0x33d   :  { %7886 = vmatpush3.bf16.xpose.msra.mxu0 %v645_v12 }
 0x33e   :  { %7897 = vmatprep.subr.bf16.mxu0 %v11622_v0 }
 0x340   :  { %7882 = vmatmul.mubr.msk.bf16.vlgmr.msra.gmra.mrb[8].mxu1 %vm591_vm3, %v580_v57  ;;  %884 = vrot.lane.b32.xlu1 %v9369_v13, %s9218_s22 }
 0x341   :  { %933 = vrot.lane.b32.xlu0 %v9372_v14, %s9218_s22  ;;  %7893 = vmatprep.mubr.msk.bf16.mxu1 %vm9205_vm0, %v11622_v0 }
 0x344   :  { %1134 = vrot.lane.b32.xlu1 %v581_v58, %s9220_s24  ;;  %7888 = vmatmul.mubr.msk.bf16.vlgmr.msra.gmra.mrb[12].mxu0 %vm591_vm3, %v581_v58 }
 0x345   :  { %1085 = vrot.lane.b32.xlu0 %v580_v57, %s9220_s24  ;;  %7899 = vmatprep.mubr.msk.bf16.mxu0 %vm9205_vm0, %v11622_v0 }
 0x3aa   :  { %v689_v15 = vpop.permute.xlu1 %688  ;;  %v738_v16 = vpop.permute.xlu0 %737 }
 0x3ab   :  { %v694_v17 = vsel %vm591_vm3, %v689_v15, 0  ;;  %v743_v18 = vsel %vm591_vm3, %v738_v16, 0 }
 0x3ac   :  { %7892 = vmatpush3.bf16.xpose.msra.mxu1 %v694_v17  ;;  %7898 = vmatpush3.bf16.xpose.msra.mxu0 %v743_v18 }
 0x3ad   :  { %7903 = vmatprep.subr.bf16.mxu1 %v11622_v0  ;;  %7909 = vmatprep.subr.bf16.mxu0 %v11622_v0 }
 0x3ae   :  { %v787_v19 = vpop.permute.xlu1 %786  ;;  %v836_v20 = vpop.permute.xlu0 %835 }
 0x3af   :  { %v792_v21 = vsel %vm591_vm3, %v787_v19, 0  ;;  %v841_v22 = vsel %vm591_vm3, %v836_v20, 0 }
 0x3b2   :  { %v885_v23 = vpop.permute.xlu1 %884 }
 0x3b3   :  { %7894 = vmatmul.mubr.msk.bf16.vlgmr.msra.gmra.mrb[12].mxu1 %vm591_vm3, %v9350_v63  ;;  %7900 = vmatmul.mubr.msk.bf16.vlgmr.msra.gmra.mrb[16].mxu0 %vm591_vm3, %v9352_v1  ;;  %v934_v24 = vpop.permute.xlu0 %933  ;;  %v890_v25 = vsel %vm591_vm3, %v885_v23, 0 }
 0x3b4   :  { %7904 = vmatpush3.bf16.xpose.msra.mxu1 %v792_v21  ;;  %7910 = vmatpush3.bf16.xpose.msra.mxu0 %v841_v22  ;;  %v939_v26 = vsel %vm591_vm3, %v934_v24, 0 }
 0x3b5   :  { %7905 = vmatprep.mubr.msk.bf16.mxu1 %vm9205_vm0, %v11622_v0  ;;  %7911 = vmatprep.mubr.msk.bf16.mxu0 %vm9205_vm0, %v11622_v0 }
 0x3b6   :  { %7915 = vmatprep.subr.bf16.mxu1 %v11622_v0  ;;  %7921 = vmatprep.subr.bf16.mxu0 %v11622_v0  ;;  %v1135_v28 = vpop.permute.xlu1 %1134 }
 0x3b7   :  { %v1086_v30 = vpop.permute.xlu0 %1085  ;;  %v1140_v31 = vsel %vm1090_vm4, %v1135_v28, 0 }
 0x3b8   :  { %v1092_v32 = vsel %vm1090_vm4, %v1086_v30, 0 }
 0x3bb   :  { %7906 = vmatmul.mubr.msk.bf16.vlgmr.msra.gmra.mrb[16].mxu1 %vm591_vm3, %v9359_v8  ;;  %7912 = vmatmul.mubr.msk.bf16.vlgmr.msra.gmra.mrb[20].mxu0 %vm591_vm3, %v9361_v9 }
 0x3bc   :  { %7916 = vmatpush3.bf16.xpose.msra.mxu1 %v890_v25  ;;  %7922 = vmatpush3.bf16.xpose.msra.mxu0 %v939_v26 }
 0x3bd   :  { %7917 = vmatprep.mubr.msk.bf16.mxu1 %vm9205_vm0, %v11622_v0  ;;  %7923 = vmatprep.mubr.msk.bf16.mxu0 %vm9205_vm0, %v11622_v0 }
 0x3be   :  { %7927 = vmatprep.subr.bf16.mxu1 %v11622_v0  ;;  %7933 = vmatprep.subr.bf16.mxu0 %v11622_v0 }
 0x3c3   :  { %7918 = vmatmul.mubr.msk.bf16.vlgmr.msra.gmra.mrb[20].mxu1 %vm591_vm3, %v9369_v13  ;;  %7924 = vmatmul.mubr.msk.bf16.vlgmr.msra.gmra.mrb[24].mxu0 %vm591_vm3, %v9372_v14 }
 0x3c4   :  { %7928 = vmatpush3.bf16.msra.mxu1 %v1092_v32  ;;  %7934 = vmatpush3.bf16.msra.mxu0 %v1140_v31 }
 0x3c5   :  { %7929 = vmatprep.mubr.msk.bf16.mxu1 %vm9205_vm0, %v11622_v0  ;;  %7935 = vmatprep.mubr.msk.bf16.mxu0 %vm9205_vm0, %v11622_v0 }
 0x3c6   :  { %7939 = vmatprep.subr.bf16.mxu1 %v11622_v0  ;;  %7945 = vmatprep.subr.bf16.mxu0 %v11622_v0 }
 0x413   :  { %v632_v34 = vpop.f32.mrb[8].mxu1 }
 0x414   :  { %v981_v35 = vmul.f32 0.35355338, %v632_v34  ;;  %v7883_v36 = vpop.f32.mrb[9].mxu1 }
 0x415   :  { %v635_v37 = vpop.f32.mrb[10].mxu1 }
 0x416   :  { %v7884_v38 = vpop.f32.mrb[11].mxu1  ;;  %v989_v39 = vsel %vm591_vm3, %v981_v35, -inf }
 0x417   :  { %990 = vmax.xlane.f32.xlu1 %v989_v39  ;;  %v681_v40 = vpop.f32.mrb[12].mxu0 }
 0x418   :  { %v982_v41 = vmul.f32 0.35355338, %v681_v40  ;;  %v7889_v42 = vpop.f32.mrb[13].mxu0 }
 0x419   :  { %v684_v43 = vpop.f32.mrb[14].mxu0 }
 0x41a   :  { %v7890_v44 = vpop.f32.mrb[15].mxu0  ;;  %v992_v45 = vsel %vm591_vm3, %v982_v41, -inf }
 0x41b   :  { %993 = vmax.xlane.f32.xlu0 %v992_v45 }
 0x486   :  { %v730_v48 = vpop.f32.mrb[12].mxu1  ;;  %v779_v49 = vpop.f32.mrb[16].mxu0 }
 0x487   :  { %v983_v50 = vmul.f32 0.35355338, %v730_v48  ;;  %v984_v51 = vmul.f32 0.35355338, %v779_v49  ;;  %v7895_v52 = vpop.f32.mrb[13].mxu1  ;;  %v7901_v53 = vpop.f32.mrb[17].mxu0 }
 0x488   :  { %v733_v54 = vpop.f32.mrb[14].mxu1  ;;  %v782_v55 = vpop.f32.mrb[18].mxu0 }
 0x489   :  { %v7896_v56 = vpop.f32.mrb[15].mxu1  ;;  %v7902_v57 = vpop.f32.mrb[19].mxu0  ;;  %v995_v58 = vsel %vm591_vm3, %v983_v50, -inf  ;;  %v998_v59 = vsel %vm591_vm3, %v984_v51, -inf }
 0x48a   :  { %996 = vmax.xlane.f32.xlu0 %v995_v58  ;;  %999 = vmax.xlane.f32.xlu1 %v998_v59 }
 0x48e   :  { %v828_v60 = vpop.f32.mrb[16].mxu1  ;;  %v877_v61 = vpop.f32.mrb[20].mxu0 }
 0x48f   :  { %v9430_v62 = vmul.f32 0.35355338, %v828_v60  ;;  %v986_v2 = vmul.f32 0.35355338, %v877_v61  ;;  %v7907_v3 = vpop.f32.mrb[17].mxu1  ;;  %v7913_v4 = vpop.f32.mrb[21].mxu0 }
 0x490   :  { %v831_v5 = vpop.f32.mrb[18].mxu1  ;;  %v880_v6 = vpop.f32.mrb[22].mxu0 }
 0x491   :  { %v7908_v7 = vpop.f32.mrb[19].mxu1  ;;  %v7914_v10 = vpop.f32.mrb[23].mxu0  ;;  %v1001_v11 = vsel %vm591_vm3, %v9430_v62, -inf  ;;  %v1004_v12 = vsel %vm591_vm3, %v986_v2, -inf }
 0x492   :  { %1002 = vmax.xlane.f32.xlu0 %v1001_v11  ;;  %1005 = vmax.xlane.f32.xlu1 %v1004_v12 }
 0x496   :  { %v926_v15 = vpop.f32.mrb[20].mxu1  ;;  %v975_v16 = vpop.f32.mrb[24].mxu0 }
 0x497   :  { %v9435_v17 = vmul.f32 0.35355338, %v926_v15  ;;  %v988_v18 = vmul.f32 0.35355338, %v975_v16  ;;  %v7919_v19 = vpop.f32.mrb[21].mxu1  ;;  %v7925_v20 = vpop.f32.mrb[25].mxu0 }
 0x498   :  { %v929_v21 = vpop.f32.mrb[22].mxu1  ;;  %v978_v22 = vpop.f32.mrb[26].mxu0 }
 0x499   :  { %v7920_v23 = vpop.f32.mrb[23].mxu1  ;;  %v7926_v24 = vpop.f32.mrb[27].mxu0  ;;  %v1007_v25 = vsel %vm591_vm3, %v9435_v17, -inf  ;;  %v1010_v26 = vsel %vm591_vm3, %v988_v18, -inf }
 0x49a   :  { %1008 = vmax.xlane.f32.xlu0 %v1007_v25  ;;  %1011 = vmax.xlane.f32.xlu1 %v1010_v26 }
 0x4a4   :  { %v991_v28 = vpop.xlane.xlu1 %990 }
 0x4a5   :  { %v1013_v31 = vsub.f32 %v981_v35, %v991_v28 }
 0x4a7   :  { %v1021_v34 = vmul.f32 1.442695, %v1013_v31 }
 0x4a8   :  { %v994_v30 = vpop.xlane.xlu0 %993 }
 0x4a9   :  { %v1014_v32 = vsub.f32 %v982_v41, %v994_v30  ;;  %8867 = vpow2.f32 %v1021_v34 }
 0x4ab   :  { %1182 = vrot.lane.b32.xlu1 %v9350_v63, %s9220_s24  ;;  %v1023_v36 = vmul.f32 1.442695, %v1014_v32 }
 0x4ad   :  { %8869 = vpow2.f32 %v1023_v36 }
 0x4b0   :  { %1230 = vrot.lane.b32.xlu0 %v9352_v1, %s9220_s24 }
 0x4b3   :  { %v8868_v37 = vpop.eup %8867 }
 0x4b4   :  { %v1037_v39 = vsel %vm591_vm3, %v8868_v37, 0.0 }
 0x4b7   :  { %v8870_v38 = vpop.eup %8869 }
 0x4b8   :  { %v1040_v40 = vsel %vm591_vm3, %v8870_v38, 0.0 }
 0x4cf   :  { %1038 = vadd.xlane.f32.xlu0 %v1037_v39  ;;  %1041 = vadd.xlane.f32.xlu1 %v1040_v40 }
 0x4e0   :  { %1278 = vrot.lane.b32.xlu1 %v9359_v8, %s9220_s24 }
 0x517   :  { %v997_v63 = vpop.xlane.xlu0 %996  ;;  %v1000_v1 = vpop.xlane.xlu1 %999 }
 0x518   :  { %v1015_v42 = vsub.f32 %v983_v50, %v997_v63  ;;  %v1016_v35 = vsub.f32 %v984_v51, %v1000_v1 }
 0x51a   :  { %v1025_v41 = vmul.f32 1.442695, %v1015_v42  ;;  %v1027_v43 = vmul.f32 1.442695, %v1016_v35 }
 0x51c   :  { %8871 = vpow2.f32 %v1025_v41 }
 0x51d   :  { %8873 = vpow2.f32 %v1027_v43 }
 0x51f   :  { %v1006_v44 = vpop.xlane.xlu1 %1005  ;;  %v1003_v59 = vpop.xlane.xlu0 %1002 }
 0x520   :  { %v1018_v45 = vsub.f32 %v986_v2, %v1006_v44  ;;  %v1017_v60 = vsub.f32 %v9430_v62, %v1003_v59 }
 0x522   :  { %v1031_v48 = vmul.f32 1.442695, %v1018_v45  ;;  %v1029_v2 = vmul.f32 1.442695, %v1017_v60 }
 0x524   :  { %8875 = vpow2.f32 %v1031_v48 }
 0x526   :  { %v9448_v49 = vpop.eup %8871 }
 0x527   :  { %v9450_v52 = vpop.eup %8873  ;;  %v1012_v53 = vpop.xlane.xlu1 %1011  ;;  %v1043_v8 = vsel %vm591_vm3, %v9448_v49, 0.0 }
 0x528   :  { %v1020_v54 = vsub.f32 %v988_v18, %v1012_v53  ;;  %1044 = vadd.xlane.f32.xlu0 %v1043_v8  ;;  %v1046_v50 = vsel %vm591_vm3, %v9450_v52, 0.0  ;;  %v1009_v61 = vpop.xlane.xlu0 %1008 }
 0x529   :  { %1047 = vadd.xlane.f32.xlu1 %v1046_v50  ;;  %v1019_v3 = vsub.f32 %v9435_v17, %v1009_v61 }
 0x52a   :  { %v1035_v51 = vmul.f32 1.442695, %v1020_v54 }
 0x52b   :  { %v1033_v4 = vmul.f32 1.442695, %v1019_v3  ;;  %v1183_v6 = vpop.permute.xlu1 %1182 }
 0x52c   :  { %8877 = vpow2.f32 %v1035_v51  ;;  %v1231_v5 = vpop.permute.xlu0 %1230  ;;  %v1188_v20 = vsel %vm1090_vm4, %v1183_v6, 0 }
 0x52d   :  { %8879 = vpow2.f32 %v1029_v2  ;;  %v1236_v21 = vsel %vm1090_vm4, %v1231_v5, 0 }
 0x52e   :  { %v9456_v55 = vpop.eup %8875  ;;  %8881 = vpow2.f32 %v1033_v4 }
 0x52f   :  { %v1052_v56 = vsel %vm591_vm3, %v9456_v55, 0.0 }
 0x530   :  { %1053 = vadd.xlane.f32.xlu1 %v1052_v56 }
 0x536   :  { %v9460_v57 = vpop.eup %8877 }
 0x537   :  { %v1058_v58 = vsel %vm591_vm3, %v9460_v57, 0.0  ;;  %v9470_v7 = vpop.eup %8879 }
 0x538   :  { %1059 = vadd.xlane.f32.xlu1 %v1058_v58  ;;  %v9474_v62 = vpop.eup %8881 }
 0x53e   :  { %1326 = vrot.lane.b32.xlu0 %v9361_v9, %s9220_s24  ;;  %v1049_v9 = vsel %vm591_vm3, %v9470_v7, 0.0 }
 0x549   :  { %1374 = vrot.lane.b32.xlu1 %v9369_v13, %s9220_s24  ;;  %v1055_v13 = vsel %vm591_vm3, %v9474_v62, 0.0 }
 0x55c   :  { %v1039_v10 = vpop.xlane.xlu0 %1038  ;;  %v1042_v11 = vpop.xlane.xlu1 %1041 }
 0x55d   :  { %8883 = vrcp.f32 %v1039_v10  ;;  %1050 = vadd.xlane.f32.xlu0 %v1049_v9 }
 0x55e   :  { %8885 = vrcp.f32 %v1042_v11 }
 0x560   :  { %v1279_v22 = vpop.permute.xlu1 %1278 }
 0x561   :  { %1056 = vadd.xlane.f32.xlu0 %v1055_v13 }
 0x567   :  { %v8884_v12 = vpop.eup %8883 }
 0x568   :  { %v8886_v15 = vpop.eup %8885  ;;  %v1062_v16 = vmul.f32 %v8884_v12, %v8868_v37  ;;  %v1284_v37 = vsel %vm1090_vm4, %v1279_v22, 0 }
 0x569   :  { %v1064_v17 = vmul.f32 %v8886_v15, %v8870_v38 }
 0x56a   :  { %v1077_v18 = vpack.c.bf16 %v1062_v16, %v1062_v16 }
 0x56b   :  { %v1078_v19 = vpack.c.bf16 %v1064_v17, %v1064_v17  ;;  %v8831_v17 = vld [vmem:[%s7321_s2] sm:$0xff]  }
 0x56c   :  { %7930 = vmatmul.mubr.msk.bf16.vlgmr.msra.gmra.mrb[24].mxu1 %vm591_vm3, %v1077_v18 }
 0x56d   :  { %7936 = vmatmul.mubr.msk.bf16.vlgmr.msra.gmra.mrb[28].mxu0 %vm591_vm3, %v1078_v19  ;;  %7940 = vmatpush3.bf16.msra.mxu1 %v1188_v20 }
 0x56e   :  { %7946 = vmatpush3.bf16.msra.mxu0 %v1236_v21  ;;  %7941 = vmatprep.mubr.msk.bf16.mxu1 %vm9205_vm0, %v11622_v0 }
 0x56f   :  { %7947 = vmatprep.mubr.msk.bf16.mxu0 %vm9205_vm0, %v11622_v0  ;;  %7951 = vmatprep.subr.bf16.mxu1 %v11622_v0 }
 0x570   :  { %7957 = vmatprep.subr.bf16.mxu0 %v11622_v0 }
 0x577   :  { %1422 = vrot.lane.b32.xlu0 %v9372_v14, %s9220_s24 }
 0x5b5   :  { %v1045_v23 = vpop.xlane.xlu0 %1044 }
 0x5b6   :  { %8887 = vrcp.f32 %v1045_v23  ;;  %v1048_v24 = vpop.xlane.xlu1 %1047  ;;  %v8832_v23 = vld [vmem:[%s7321_s2 + $0x8] sm:$0xff]   ;;  %s9229_s2 = smov 9  }
 0x5b7   :  { %8889 = vrcp.f32 %v1048_v24  ;;  %s7322_s6 = sld [smem:[%s11621_s0 + %s9229_s2]]  }
 0x5b9   :  { %v1327_v32 = vpop.permute.xlu0 %1326 }
 0x5ba   :  { %v1332_v14 = vsel %vm1090_vm4, %v1327_v32, 0 }
 0x5bd   :  { %v1054_v25 = vpop.xlane.xlu1 %1053 }
 0x5be   :  { %8891 = vrcp.f32 %v1054_v25 }
 0x5c0   :  { %v8888_v26 = vpop.eup %8887 }
 0x5c1   :  { %v8890_v28 = vpop.eup %8889  ;;  %v1066_v30 = vmul.f32 %v8888_v26, %v9448_v49 }
 0x5c2   :  { %v1068_v31 = vmul.f32 %v8890_v28, %v9450_v52 }
 0x5c3   :  { %v1079_v34 = vpack.c.bf16 %v1066_v30, %v1066_v30 }
 0x5c4   :  { %v1080_v36 = vpack.c.bf16 %v1068_v31, %v1068_v31 }
 0x5c5   :  { %7942 = vmatmul.mubr.msk.bf16.vlgmr.msra.gmra.mrb[28].mxu1 %vm591_vm3, %v1079_v34  ;;  %v1060_v63 = vpop.xlane.xlu1 %1059 }
 0x5c6   :  { %7948 = vmatmul.mubr.msk.bf16.vlgmr.msra.gmra.mrb[32].mxu0 %vm591_vm3, %v1080_v36  ;;  %7952 = vmatpush3.bf16.msra.mxu1 %v1284_v37  ;;  %8893 = vrcp.f32 %v1060_v63 }
 0x5c7   :  { %7958 = vmatpush3.bf16.msra.mxu0 %v1332_v14  ;;  %7959 = vmatprep.mubr.msk.bf16.mxu0 %vm9205_vm0, %v11622_v0 }
 0x5c8   :  { %7969 = vmatprep.subr.bf16.mxu0 %v11622_v0  ;;  %7953 = vmatprep.mubr.msk.bf16.mxu1 %vm9205_vm0, %v11622_v0  ;;  %v8892_v38 = vpop.eup %8891 }
 0x5c9   :  { %7963 = vmatprep.subr.bf16.mxu1 %v11622_v0  ;;  %v1072_v39 = vmul.f32 %v8892_v38, %v9456_v55  ;;  %v1375_v52 = vpop.permute.xlu1 %1374 }
 0x5ca   :  { %v1380_v54 = vsel %vm1090_vm4, %v1375_v52, 0 }
 0x5cb   :  { %v1082_v40 = vpack.c.bf16 %v1072_v39, %v1072_v39 }
 0x5ce   :  { %7960 = vmatmul.mubr.msk.bf16.vlgmr.msra.gmra.mrb[36].mxu0 %vm591_vm3, %v1082_v40 }
 0x5cf   :  { %7971 = vmatprep.mubr.msk.bf16.mxu0 %vm9205_vm0, %v11622_v0 }
 0x5d0   :  { %v8894_v42 = vpop.eup %8893 }
 0x5d1   :  { %v1076_v41 = vmul.f32 %v8894_v42, %v9460_v57 }
 0x5d3   :  { %v1084_v48 = vpack.c.bf16 %v1076_v41, %v1076_v41 }
 0x5ea   :  { %v1051_v1 = vpop.xlane.xlu0 %1050 }
 0x5eb   :  { %8895 = vrcp.f32 %v1051_v1 }
 0x5ee   :  { %v1057_v35 = vpop.xlane.xlu0 %1056 }
 0x5ef   :  { %8897 = vrcp.f32 %v1057_v35 }
 0x5f2   :  { %v1423_v43 = vpop.permute.xlu0 %1422 }
 0x5f3   :  { %v1428_v44 = vsel %vm1090_vm4, %v1423_v43, 0 }
 0x5f4   :  { %7970 = vmatpush3.bf16.msra.mxu0 %v1428_v44 }
 0x5f5   :  { %v8896_v45 = vpop.eup %8895  ;;  %7983 = vmatprep.subr.bf16.mxu0 %v11622_v0 }
 0x5f6   :  { %v1070_v49 = vmul.f32 %v8896_v45, %v9470_v7 }
 0x5f7   :  { %7972 = vmatmul.mubr.msk.bf16.vlgmr.msra.gmra.mrb[40].mxu0 %vm591_vm3, %v1084_v48 }
 0x5f8   :  { %v1081_v53 = vpack.c.bf16 %v1070_v49, %v1070_v49  ;;  %7987 = vmatprep.mubr.msk.bf16.mxu0 %vm9205_vm0, %v11622_v0 }
 0x5f9   :  { %v8898_v8 = vpop.eup %8897 }
 0x5fa   :  { %7954 = vmatmul.mubr.msk.bf16.vlgmr.msra.gmra.mrb[32].mxu1 %vm591_vm3, %v1081_v53  ;;  %v1074_v50 = vmul.f32 %v8898_v8, %v9474_v62  ;;  %v7402_v53 = vld [vmem:[%s7320_s7] ss:$0 sm:$0xff]  ;;  %s9230_s7 = smov 11  }
 0x5fb   :  { %7964 = vmatpush3.bf16.msra.mxu1 %v1380_v54  ;;  %7965 = vmatprep.mubr.msk.bf16.mxu1 %vm9205_vm0, %v11622_v0  ;;  %s7324_s10 = sld [smem:[%s11621_s0 + %s9230_s7]]  }
 0x5fc   :  { %7975 = vmatprep.subr.bf16.mxu1 %v11622_v0  ;;  %v1083_v51 = vpack.c.bf16 %v1074_v50, %v1074_v50 }
 0x602   :  { %7966 = vmatmul.mubr.msk.bf16.vlgmr.msra.gmra.mrb[36].mxu1 %vm591_vm3, %v1083_v51 }
 0x603   :  { %7979 = vmatprep.mubr.msk.bf16.mxu1 %vm9205_vm0, %v11622_v0  ;;  %7976 = vmatpush3.bf16.msra.mxu1 %v8831_v17 }
 0x604   :  { %7977 = vmatprep.subr.bf16.mxu1 %v11622_v0 }
 0x607   :  { %7978 = vmatpush3.bf16.msra.mxu1 %v8832_v23 }
 0x608   :  { %7991 = vmatprep.subr.bf16.mxu1 %v11622_v0 }
 0x63f   :  { %v1128_v55 = vpop.f32.mrb[24].mxu1 }
 0x640   :  { %v1176_v56 = vpop.f32.mrb[28].mxu0  ;;  %v7931_v57 = vpop.f32.mrb[25].mxu1 }
 0x641   :  { %v7937_v58 = vpop.f32.mrb[29].mxu0  ;;  %v1131_v59 = vpop.f32.mrb[26].mxu1 }
 0x642   :  { %v1179_v60 = vpop.f32.mrb[30].mxu0  ;;  %v7932_v61 = vpop.f32.mrb[27].mxu1 }
 0x643   :  { %v7938_v2 = vpop.f32.mrb[31].mxu0 }
 0x698   :  { %v1224_v3 = vpop.f32.mrb[28].mxu1 }
 0x699   :  { %v1272_v4 = vpop.f32.mrb[32].mxu0  ;;  %v7943_v5 = vpop.f32.mrb[29].mxu1 }
 0x69a   :  { %v8598_v6 = vpack.i.bf16 %v1272_v4, %v1224_v3  ;;  %v7949_v7 = vpop.f32.mrb[33].mxu0  ;;  %v1227_v10 = vpop.f32.mrb[30].mxu1 }
 0x69b   :  { %v1275_v11 = vpop.f32.mrb[34].mxu0  ;;  %v7944_v9 = vpop.f32.mrb[31].mxu1 }
 0x69c   :  { %8599 = vrot.lane.b32.xlu1 %v8598_v6, %s9222_s29  ;;  %v7950_v62 = vpop.f32.mrb[35].mxu0 }
 0x6a1   :  { %v1368_v13 = vpop.f32.mrb[36].mxu0 }
 0x6a2   :  { %v7961_v12 = vpop.f32.mrb[37].mxu0 }
 0x6a3   :  { %v1371_v15 = vpop.f32.mrb[38].mxu0 }
 0x6a4   :  { %v7962_v16 = vpop.f32.mrb[39].mxu0 }
 0x6ca   :  { %v1464_v18 = vpop.f32.mrb[40].mxu0 }
 0x6cb   :  { %v7973_v19 = vpop.f32.mrb[41].mxu0 }
 0x6cc   :  { %v1467_v20 = vpop.f32.mrb[42].mxu0 }
 0x6cd   :  { %v1320_v21 = vpop.f32.mrb[32].mxu1  ;;  %v7974_v22 = vpop.f32.mrb[43].mxu0 }
 0x6ce   :  { %v8603_v24 = vpack.i.bf16 %v1368_v13, %v1320_v21  ;;  %v7955_v25 = vpop.f32.mrb[33].mxu1 }
 0x6cf   :  { %v1323_v26 = vpop.f32.mrb[34].mxu1  ;;  %v7406_v25 = vld [vmem:[%s7327_s15] ss:$0 sm:$0xff]  ;;  %s9242_s15 = smov 42  }
 0x6d0   :  { %v7956_v28 = vpop.f32.mrb[35].mxu1  ;;  %8604 = vrot.lane.b32.xlu0 %v8603_v24, %s9223_s3  ;;  %s9864_s18 = sld [smem:[%s11621_s0 + %s9242_s15]]   ;;  %s9255_s15 = smov 48  }
 0x6d5   :  { %v1416_v30 = vpop.f32.mrb[36].mxu1 }
 0x6d6   :  { %v8608_v31 = vpack.i.bf16 %v1464_v18, %v1416_v30  ;;  %v7967_v32 = vpop.f32.mrb[37].mxu1 }
 0x6d7   :  { %v1419_v34 = vpop.f32.mrb[38].mxu1  ;;  %v7407_v32 = vld [vmem:[%s7326_s19] ss:$0 sm:$0xff]  ;;  %s9243_s19 = smov 28  }
 0x6d8   :  { %v7968_v36 = vpop.f32.mrb[39].mxu1  ;;  %8609 = vrot.lane.b32.xlu1 %v8608_v31, %s9221_s25  ;;  %s7341_s30 = sld [smem:[%s11621_s0 + %s9243_s19]]  }
 0x6d9   :  { %s7361_s19 = sld [smem:[%s11621_s0 + %s9255_s15]]  }
 0x70e   :  { %v8600_v37 = vpop.permute.xlu1 %8599 }
 0x70f   :  { %v8602_v38 = vunpack.i.h.bf16 %v8600_v37  ;;  %v8601_v39 = vunpack.i.l.bf16 %v8600_v37 }
 0x711   :  { %v1495_v42 = vsel %vm591_vm3, %v1176_v56, %v8602_v38  ;;  %v1494_v35 = vsel %vm591_vm3, %v1128_v55, %v8601_v39  ;;  %v8835_v38 = vld [vmem:[%s7325_s1] sm:$0xff]   ;;  %v8836_v39 = vld [vmem:[%s7325_s1 + $0x8] sm:$0xff]  }
 0x742   :  { %v8605_v14 = vpop.permute.xlu0 %8604 }
 0x743   :  { %v8607_v40 = vunpack.i.h.bf16 %v8605_v14  ;;  %v8606_v63 = vunpack.i.l.bf16 %v8605_v14 }
 0x745   :  { %v1497_v44 = vsel %vm380_vm2, %v1495_v42, %v8607_v40  ;;  %v1496_v45 = vsel %vm380_vm2, %v1494_v35, %v8606_v63  ;;  %v8837_v40 = vld [vmem:[%s7325_s1 + $0x10] sm:$0xff]   ;;  %v8838_v63 = vld [vmem:[%s7325_s1 + $0x18] sm:$0xff]   ;;  %s9244_s1 = smov 37  }
 0x746   :  { %s7350_s5 = sld [smem:[%s11621_s0 + %s9244_s1]]   ;;  %s9257_s1 = smov 47  }
 0x74a   :  { %v8610_v1 = vpop.permute.xlu1 %8609 }
 0x74b   :  { %v8612_v41 = vunpack.i.h.bf16 %v8610_v1  ;;  %v8611_v43 = vunpack.i.l.bf16 %v8610_v1  ;;  %v7408_v1 = vld [vmem:[%s7322_s6] ss:$0 sm:$0xff]  ;;  %s9245_s6 = smov 34  }
 0x74d   :  { %v1500_v48 = vsel %vm1498_vm5, %v1497_v44, %v8612_v41  ;;  %v1499_v49 = vsel %vm1498_vm5, %v1496_v45, %v8611_v43 }
 0x74e   :  { %v1501_v52 = vpack.c.bf16 %v1500_v48, %v1499_v49 }
 0x750   :  { %7980 = vmatmul.mubr.msk.bf16.vlgmr.msra.gmra.mrb[40].mxu1 %vm244_vm1, %v1501_v52 }
 0x751   :  { %7999 = vmatprep.mubr.msk.bf16.mxu1 %vm9205_vm0, %v11622_v0  ;;  %7992 = vmatpush3.bf16.msra.mxu1 %v8835_v38 }
 0x752   :  { %7993 = vmatprep.subr.bf16.mxu1 %v11622_v0 }
 0x755   :  { %7994 = vmatpush3.bf16.msra.mxu1 %v8836_v39 }
 0x756   :  { %7995 = vmatprep.subr.bf16.mxu1 %v11622_v0 }
 0x759   :  { %7996 = vmatpush3.bf16.msra.mxu1 %v8837_v40 }
 0x75a   :  { %7997 = vmatprep.subr.bf16.mxu1 %v11622_v0 }
 0x75d   :  { %7998 = vmatpush3.bf16.msra.mxu1 %v8838_v63  ;;  %v7419_v63 = vld [vmem:[%s7328_s27] ss:$0 sm:$0xff]  ;;  %s9238_s27 = smov 25  }
 0x75e   :  { %8017 = vmatprep.subr.bf16.mxu1 %v11622_v0  ;;  %s7338_s2 = sld [smem:[%s11621_s0 + %s9238_s27]]  }
 0x823   :  { %v1562_v8 = vpop.f32.mrb[40].mxu1 }
 0x824   :  { %v1563_v54 = vadd.f32 %v7402_v53, %v1562_v8  ;;  %v7981_v50 = vpop.f32.mrb[41].mxu1 }
 0x825   :  { %v1565_v51 = vpop.f32.mrb[42].mxu1 }
 0x826   :  { %v1569_v55 = vadd.f32 %v1563_v54, %v9333_v46  ;;  %v1566_v56 = vadd.f32 %v7402_v53, %v1565_v51  ;;  %v7982_v57 = vpop.f32.mrb[43].mxu1  ;;  %v8833_v46 = vld [vmem:[%s7323_s11] sm:$0xff]  }
 0x827   :  { %7984 = vmatpush3.bf16.msra.mxu0 %v8833_v46 }
 0x828   :  { %v1570_v58 = vadd.f32 %v1566_v56, %v9335_v47  ;;  %v1571_v59 = vsel %vm244_vm1, %v1569_v55, 0.0  ;;  %v1580_v60 = vmul.f32 %v1569_v55, %v1569_v55  ;;  %v8834_v47 = vld [vmem:[%s7323_s11 + $0x8] sm:$0xff]   ;;  %7985 = vmatprep.subr.bf16.mxu0 %v11622_v0  ;;  %s9231_s11 = smov 18  }
 0x829   :  { %1572 = vadd.xlane.f32.xlu0 %v1571_v59  ;;  %s7331_s14 = sld [smem:[%s11621_s0 + %s9231_s11]]   ;;  %s9241_s11 = smov 32  }
 0x82a   :  { %v1574_v61 = vsel %vm244_vm1, %v1570_v58, 0.0  ;;  %v1582_v2 = vsel %vm244_vm1, %v1580_v60, 0.0  ;;  %v1581_v3 = vmul.f32 %v1570_v58, %v1570_v58 }
 0x82b   :  { %1575 = vadd.xlane.f32.xlu1 %v1574_v61  ;;  %7986 = vmatpush3.bf16.msra.mxu0 %v8834_v47 }
 0x82c   :  { %v1585_v4 = vsel %vm244_vm1, %v1581_v3, 0.0  ;;  %8003 = vmatprep.subr.bf16.mxu0 %v11622_v0 }
 0x82d   :  { %1583 = vadd.xlane.f32.xlu0 %v1582_v2 }
 0x831   :  { %1586 = vadd.xlane.f32.xlu0 %v1585_v4 }
 0x8b6   :  { %v1573_v5 = vpop.xlane.xlu0 %1572 }
 0x8b7   :  { %v1578_v6 = vmul.f32 0.03125, %v1573_v5 }
 0x8b8   :  { %v1576_v7 = vpop.xlane.xlu1 %1575 }
 0x8b9   :  { %v1590_v11 = vmul.f32 %v1578_v6, %v1578_v6  ;;  %v1579_v9 = vmul.f32 0.03125, %v1576_v7  ;;  %v1596_v22 = vsub.f32 %v1569_v55, %v1578_v6 }
 0x8ba   :  { %v1584_v10 = vpop.xlane.xlu0 %1583 }
 0x8bb   :  { %v1588_v62 = vmul.f32 0.03125, %v1584_v10  ;;  %v1591_v15 = vmul.f32 %v1579_v9, %v1579_v9  ;;  %v1597_v26 = vsub.f32 %v1570_v58, %v1579_v9  ;;  %v7412_v58 = vld [vmem:[%s7324_s10] ss:$0 sm:$0xff] }
 0x8bd   :  { %v1592_v13 = vsub.f32 %v1588_v62, %v1590_v11  ;;  %v8839_v62 = vld [vmem:[%s7331_s14] sm:$0xff]  }
 0x8be   :  { %v1587_v12 = vpop.xlane.xlu0 %1586 }
 0x8bf   :  { %v1594_v16 = vmax.f32 %v1592_v13, 0.0  ;;  %v1589_v17 = vmul.f32 0.03125, %v1587_v12  ;;  %v8840_v13 = vld [vmem:[%s7331_s14 + $0x8] sm:$0xff]   ;;  %s7345_s14 = sld [smem:[%s11621_s0 + %s9241_s11]]   ;;  %s9254_s11 = smov 49  }
 0x8c1   :  { %v1598_v18 = vadd.f32 1e-05, %v1594_v16  ;;  %v1593_v19 = vsub.f32 %v1589_v17, %v1591_v15 }
 0x8c3   :  { %8899 = vrsqrt.f32 %v1598_v18  ;;  %v1595_v20 = vmax.f32 %v1593_v19, 0.0 }
 0x8c5   :  { %v1599_v21 = vadd.f32 1e-05, %v1595_v20 }
 0x8c7   :  { %8901 = vrsqrt.f32 %v1599_v21 }
 0x8cd   :  { %v8900_v23 = vpop.eup %8899 }
 0x8ce   :  { %v1602_v24 = vmul.f32 %v8900_v23, %v1596_v22 }
 0x8d0   :  { %v1611_v31 = vmul.f32 %v7406_v25, %v1602_v24 }
 0x8d1   :  { %v8902_v28 = vpop.eup %8901 }
 0x8d2   :  { %v1603_v30 = vmul.f32 %v8902_v28, %v1597_v26  ;;  %v1620_v36 = vadd.f32 %v7407_v32, %v1611_v31 }
 0x8d4   :  { %v1612_v34 = vmul.f32 %v7406_v25, %v1603_v30 }
 0x8d6   :  { %v1621_v37 = vadd.f32 %v7407_v32, %v1612_v34 }
 0x8d8   :  { %v1622_v14 = vpack.c.bf16 %v1621_v37, %v1620_v36 }
 0x8da   :  { %7988 = vmatmul.mubr.msk.bf16.vlgmr.msra.gmra.mrb[44].mxu0 %vm244_vm1, %v1622_v14 }
 0x8db   :  { %8007 = vmatprep.mubr.msk.bf16.mxu0 %vm9205_vm0, %v11622_v0  ;;  %8004 = vmatpush3.bf16.msra.mxu0 %v8839_v62 }
 0x8dc   :  { %8005 = vmatprep.subr.bf16.mxu0 %v11622_v0 }
 0x8df   :  { %8006 = vmatpush3.bf16.msra.mxu0 %v8840_v13 }
 0x8e0   :  { %8011 = vmatprep.subr.bf16.mxu0 %v11622_v0 }
 0x9ad   :  { %v1683_v42 = vpop.f32.mrb[44].mxu0 }
 0x9ae   :  { %v1684_v35 = vadd.f32 %v7408_v1, %v1683_v42  ;;  %v7989_v41 = vpop.f32.mrb[45].mxu0 }
 0x9af   :  { %v1686_v43 = vpop.f32.mrb[46].mxu0 }
 0x9b0   :  { %v1692_v44 = vmul.f32 0.70710677, %v1684_v35  ;;  %v1687_v45 = vadd.f32 %v7408_v1, %v1686_v43  ;;  %v7990_v48 = vpop.f32.mrb[47].mxu0  ;;  %v1690_v54 = vmul.f32 0.5, %v1684_v35  ;;  %v7420_v43 = vld [vmem:[%s7330_s4] ss:$0 sm:$0xff] }
 0x9b1   :  { %s9239_s4 = smov 21  }
 0x9b2   :  { %8903 = verf.f32 %v1692_v44  ;;  %v1693_v49 = vmul.f32 0.70710677, %v1687_v45  ;;  %v1691_v50 = vmul.f32 0.5, %v1687_v45  ;;  %s7334_s7 = sld [smem:[%s11621_s0 + %s9239_s4]]   ;;  %s9252_s4 = smov 46  }
 0x9b4   :  { %8905 = verf.f32 %v1693_v49 }
 0x9bc   :  { %v8904_v52 = vpop.eup %8903 }
 0x9bd   :  { %v1696_v53 = vadd.f32 1.0, %v8904_v52 }
 0x9be   :  { %v8906_v8 = vpop.eup %8905 }
 0x9bf   :  { %v1697_v51 = vadd.f32 1.0, %v8906_v8  ;;  %v1698_v55 = vmul.f32 %v1696_v53, %v1690_v54 }
 0x9c1   :  { %v1699_v56 = vmul.f32 %v1697_v51, %v1691_v50 }
 0x9c3   :  { %v1700_v57 = vpack.c.bf16 %v1699_v56, %v1698_v55 }
 0x9c5   :  { %8000 = vmatmul.mubr.msk.bf16.vlgmr.msra.gmra.mrb[44].mxu1 %vm1740_vm6, %v1700_v57 }
 0x9c6   :  { %8019 = vmatprep.mubr.msk.bf16.mxu1 %vm9205_vm0, %v11622_v0 }
 0xa98   :  { %v1778_v59 = vpop.f32.mrb[44].mxu1 }
 0xa99   :  { %v1779_v60 = vadd.f32 %v7412_v58, %v1778_v59  ;;  %v8001_v61 = vpop.f32.mrb[45].mxu1 }
 0xa9a   :  { %v1781_v2 = vpop.f32.mrb[46].mxu1 }
 0xa9b   :  { %v1785_v3 = vadd.f32 %v1779_v60, %v1620_v36  ;;  %v1782_v4 = vadd.f32 %v7412_v58, %v1781_v2  ;;  %v8002_v46 = vpop.f32.mrb[47].mxu1  ;;  %v7418_v36 = vld [vmem:[%s7329_s17] ss:$0 sm:$0xff]  ;;  %s9237_s17 = smov 26  }
 0xa9c   :  { %s7339_s26 = sld [smem:[%s11621_s0 + %s9237_s17]]   ;;  %s9248_s17 = smov 31  }
 0xa9d   :  { %v1786_v47 = vadd.f32 %v1782_v4, %v1621_v37  ;;  %v1787_v5 = vsel %vm244_vm1, %v1785_v3, 0.0  ;;  %v1795_v6 = vmul.f32 %v1785_v3, %v1785_v3  ;;  %s9891_s27 = sld [smem:[%s11621_s0 + %s9248_s17]]  }
 0xa9e   :  { %1788 = vadd.xlane.f32.xlu1 %v1787_v5 }
 0xa9f   :  { %v1790_v7 = vsel %vm244_vm1, %v1786_v47, 0.0  ;;  %v1796_v10 = vmul.f32 %v1786_v47, %v1786_v47  ;;  %v1797_v11 = vsel %vm244_vm1, %v1795_v6, 0.0 }
 0xaa0   :  { %1791 = vadd.xlane.f32.xlu0 %v1790_v7 }
 0xaa1   :  { %v1800_v9 = vsel %vm244_vm1, %v1796_v10, 0.0 }
 0xaa2   :  { %1798 = vadd.xlane.f32.xlu1 %v1797_v11 }
 0xaa4   :  { %1801 = vadd.xlane.f32.xlu0 %v1800_v9 }
 0xb2b   :  { %v1789_v12 = vpop.xlane.xlu1 %1788 }
 0xb2c   :  { %v1793_v15 = vmul.f32 0.03125, %v1789_v12 }
 0xb2d   :  { %v1792_v16 = vpop.xlane.xlu0 %1791 }
 0xb2e   :  { %v1794_v17 = vmul.f32 0.03125, %v1792_v16  ;;  %v1805_v19 = vmul.f32 %v1793_v15, %v1793_v15  ;;  %v1811_v32 = vsub.f32 %v1785_v3, %v1793_v15 }
 0xb2f   :  { %v1799_v18 = vpop.xlane.xlu1 %1798 }
 0xb30   :  { %v1803_v20 = vmul.f32 0.03125, %v1799_v18  ;;  %v1806_v22 = vmul.f32 %v1794_v17, %v1794_v17  ;;  %v1812_v37 = vsub.f32 %v1786_v47, %v1794_v17 }
 0xb31   :  { %v1802_v21 = vpop.xlane.xlu0 %1801 }
 0xb32   :  { %v1807_v23 = vsub.f32 %v1803_v20, %v1805_v19  ;;  %v1804_v24 = vmul.f32 0.03125, %v1802_v21 }
 0xb34   :  { %v1809_v25 = vmax.f32 %v1807_v23, 0.0  ;;  %v1808_v26 = vsub.f32 %v1804_v24, %v1806_v22 }
 0xb36   :  { %v1813_v28 = vadd.f32 1e-05, %v1809_v25  ;;  %v1810_v30 = vmax.f32 %v1808_v26, 0.0 }
 0xb38   :  { %8907 = vrsqrt.f32 %v1813_v28  ;;  %v1814_v31 = vadd.f32 1e-05, %v1810_v30 }
 0xb3a   :  { %8909 = vrsqrt.f32 %v1814_v31 }
 0xb42   :  { %v8908_v34 = vpop.eup %8907 }
 0xb43   :  { %v1817_v14 = vmul.f32 %v8908_v34, %v1811_v32 }
 0xb44   :  { %v8910_v38 = vpop.eup %8909 }
 0xb45   :  { %v1818_v39 = vmul.f32 %v8910_v38, %v1812_v37  ;;  %v1826_v40 = vmul.f32 %v7418_v36, %v1817_v14 }
 0xb47   :  { %v1827_v1 = vmul.f32 %v7418_v36, %v1818_v39  ;;  %v9601_v42 = vadd.f32 %v7419_v63, %v1826_v40 }
 0xb49   :  { %v9603_v35 = vadd.f32 %v7419_v63, %v1827_v1 }
 0xb4b   :  { %v1837_v41 = vpack.c.bf16 %v9603_v35, %v9601_v42 }
 0xb4d   :  { %8008 = vmatmul.mubr.msk.bf16.vlgmr.msra.gmra.mrb[48].mxu0 %vm244_vm1, %v1837_v41 }
 0xb4e   :  { %8013 = vmatprep.mubr.msk.bf16.mxu0 %vm9205_vm0, %v11622_v0 }
 0xc20   :  { %v1898_v44 = vpop.f32.mrb[48].mxu0 }
 0xc21   :  { %v8009_v45 = vpop.f32.mrb[49].mxu0  ;;  %v1899_v49 = vadd.f32 %v7420_v43, %v1898_v44 }
 0xc22   :  { %v1901_v48 = vpop.f32.mrb[50].mxu0 }
 0xc23   :  { %v1902_v52 = vadd.f32 %v7420_v43, %v1901_v48  ;;  %v8010_v53 = vpop.f32.mrb[51].mxu0  ;;  %v1925_v50 = vpack.c.bf16 %v1899_v49, %v1899_v49 }
 0xc25   :  { %v8618_v8 = vpack.i.bf16 %v1902_v52, %v1899_v49  ;;  %v1926_v54 = vpack.c.bf16 %v1902_v52, %v1902_v52 }
 0xc27   :  { %8619 = vrot.lane.b32.xlu0 %v8618_v8, %s9219_s23  ;;  %8614 = vrot.lane.b32.xlu1 %v8618_v8, %s9217_s21 }
 0xc2b   :  { %8624 = vrot.lane.b32.xlu1 %v8618_v8, %s9216_s20  ;;  %1983 = vrot.lane.b32.xlu0 %v1926_v54, %s9218_s22 }
 0xc2f   :  { %1934 = vrot.lane.b32.xlu1 %v1925_v50, %s9218_s22 }
 0xc99   :  { %v8620_v51 = vpop.permute.xlu0 %8619  ;;  %v8615_v55 = vpop.permute.xlu1 %8614 }
 0xc9a   :  { %v8617_v56 = vunpack.i.h.bf16 %v8615_v55  ;;  %v8616_v57 = vunpack.i.l.bf16 %v8615_v55  ;;  %v8622_v58 = vunpack.i.h.bf16 %v8620_v51  ;;  %v8621_v59 = vunpack.i.l.bf16 %v8620_v51 }
 0xc9c   :  { %v9618_v60 = vpack.c.bf16 %v8616_v57, %v8616_v57  ;;  %v9620_v61 = vpack.c.bf16 %v8617_v56, %v8617_v56  ;;  %v9627_v5 = vpack.c.bf16 %v8621_v59, %v8621_v59  ;;  %v9629_v6 = vpack.c.bf16 %v8622_v58, %v8622_v58 }
 0xc9d   :  { %v8625_v2 = vpop.permute.xlu1 %8624  ;;  %v1984_v3 = vpop.permute.xlu0 %1983 }
 0xc9e   :  { %v1989_v4 = vsel %vm591_vm3, %v1984_v3, 0  ;;  %2032 = vrot.lane.b32.xlu1 %v9618_v60, %s9218_s22  ;;  %2081 = vrot.lane.b32.xlu0 %v9620_v61, %s9218_s22  ;;  %v8627_v46 = vunpack.i.h.bf16 %v8625_v2  ;;  %v8626_v47 = vunpack.i.l.bf16 %v8625_v2 }
 0xc9f   :  { %8018 = vmatpush3.bf16.xpose.msra.mxu1 %v1989_v4 }
 0xca0   :  { %8029 = vmatprep.subr.bf16.mxu1 %v11622_v0  ;;  %v9637_v11 = vpack.c.bf16 %v8626_v47, %v8626_v47  ;;  %v9639_v9 = vpack.c.bf16 %v8627_v46, %v8627_v46 }
 0xca1   :  { %v1935_v7 = vpop.permute.xlu1 %1934 }
 0xca2   :  { %v1940_v10 = vsel %vm591_vm3, %v1935_v7, 0  ;;  %2130 = vrot.lane.b32.xlu1 %v9627_v5, %s9218_s22  ;;  %2179 = vrot.lane.b32.xlu0 %v9629_v6, %s9218_s22 }
 0xca3   :  { %8012 = vmatpush3.bf16.xpose.msra.mxu0 %v1940_v10 }
 0xca4   :  { %8023 = vmatprep.subr.bf16.mxu0 %v11622_v0 }
 0xca6   :  { %2228 = vrot.lane.b32.xlu1 %v9637_v11, %s9218_s22  ;;  %2277 = vrot.lane.b32.xlu0 %v9639_v9, %s9218_s22 }
 0xca7   :  { %8020 = vmatmul.mubr.msk.bf16.vlgmr.msra.gmra.mrb[48].mxu1 %vm591_vm3, %v1926_v54 }
 0xca8   :  { %8031 = vmatprep.mubr.msk.bf16.mxu1 %vm9205_vm0, %v11622_v0 }
 0xcaa   :  { %8014 = vmatmul.mubr.msk.bf16.vlgmr.msra.gmra.mrb[52].mxu0 %vm591_vm3, %v1925_v50  ;;  %2477 = vrot.lane.b32.xlu1 %v1926_v54, %s9220_s24 }
 0xcab   :  { %2429 = vrot.lane.b32.xlu0 %v1925_v50, %s9220_s24  ;;  %8025 = vmatprep.mubr.msk.bf16.mxu0 %vm9205_vm0, %v11622_v0 }
 0xd10   :  { %v2033_v62 = vpop.permute.xlu1 %2032  ;;  %v2082_v13 = vpop.permute.xlu0 %2081 }
 0xd11   :  { %v2038_v12 = vsel %vm591_vm3, %v2033_v62, 0  ;;  %v2087_v15 = vsel %vm591_vm3, %v2082_v13, 0 }
 0xd12   :  { %8024 = vmatpush3.bf16.xpose.msra.mxu0 %v2038_v12  ;;  %8030 = vmatpush3.bf16.xpose.msra.mxu1 %v2087_v15 }
 0xd13   :  { %8035 = vmatprep.subr.bf16.mxu0 %v11622_v0  ;;  %8041 = vmatprep.subr.bf16.mxu1 %v11622_v0 }
 0xd14   :  { %v2131_v16 = vpop.permute.xlu1 %2130  ;;  %v2180_v17 = vpop.permute.xlu0 %2179 }
 0xd15   :  { %v2136_v18 = vsel %vm591_vm3, %v2131_v16, 0  ;;  %v2185_v19 = vsel %vm591_vm3, %v2180_v17, 0 }
 0xd18   :  { %v2229_v20 = vpop.permute.xlu1 %2228  ;;  %v2278_v21 = vpop.permute.xlu0 %2277 }
 0xd19   :  { %8026 = vmatmul.mubr.msk.bf16.vlgmr.msra.gmra.mrb[56].mxu0 %vm591_vm3, %v9618_v60  ;;  %8032 = vmatmul.mubr.msk.bf16.vlgmr.msra.gmra.mrb[52].mxu1 %vm591_vm3, %v9620_v61  ;;  %v2234_v22 = vsel %vm591_vm3, %v2229_v20, 0  ;;  %v2283_v23 = vsel %vm591_vm3, %v2278_v21, 0 }
 0xd1a   :  { %8036 = vmatpush3.bf16.xpose.msra.mxu0 %v2136_v18  ;;  %8042 = vmatpush3.bf16.xpose.msra.mxu1 %v2185_v19 }
 0xd1b   :  { %8037 = vmatprep.mubr.msk.bf16.mxu0 %vm9205_vm0, %v11622_v0  ;;  %8043 = vmatprep.mubr.msk.bf16.mxu1 %vm9205_vm0, %v11622_v0 }
 0xd1c   :  { %8047 = vmatprep.subr.bf16.mxu0 %v11622_v0  ;;  %8053 = vmatprep.subr.bf16.mxu1 %v11622_v0  ;;  %v2478_v24 = vpop.permute.xlu1 %2477 }
 0xd1d   :  { %v2430_v25 = vpop.permute.xlu0 %2429  ;;  %v2483_v26 = vsel %vm1090_vm4, %v2478_v24, 0 }
 0xd1e   :  { %v2435_v28 = vsel %vm1090_vm4, %v2430_v25, 0 }
 0xd21   :  { %8038 = vmatmul.mubr.msk.bf16.vlgmr.msra.gmra.mrb[60].mxu0 %vm591_vm3, %v9627_v5  ;;  %8044 = vmatmul.mubr.msk.bf16.vlgmr.msra.gmra.mrb[56].mxu1 %vm591_vm3, %v9629_v6 }
 0xd22   :  { %8048 = vmatpush3.bf16.xpose.msra.mxu0 %v2234_v22  ;;  %8054 = vmatpush3.bf16.xpose.msra.mxu1 %v2283_v23 }
 0xd23   :  { %8049 = vmatprep.mubr.msk.bf16.mxu0 %vm9205_vm0, %v11622_v0  ;;  %8055 = vmatprep.mubr.msk.bf16.mxu1 %vm9205_vm0, %v11622_v0 }
 0xd24   :  { %8059 = vmatprep.subr.bf16.mxu0 %v11622_v0  ;;  %8065 = vmatprep.subr.bf16.mxu1 %v11622_v0 }
 0xd29   :  { %8050 = vmatmul.mubr.msk.bf16.vlgmr.msra.gmra.mrb[64].mxu0 %vm591_vm3, %v9637_v11  ;;  %8056 = vmatmul.mubr.msk.bf16.vlgmr.msra.gmra.mrb[60].mxu1 %vm591_vm3, %v9639_v9 }
 0xd2a   :  { %8060 = vmatpush3.bf16.msra.mxu0 %v2435_v28  ;;  %8066 = vmatpush3.bf16.msra.mxu1 %v2483_v26 }
 0xd2b   :  { %8061 = vmatprep.mubr.msk.bf16.mxu0 %vm9205_vm0, %v11622_v0  ;;  %8067 = vmatprep.mubr.msk.bf16.mxu1 %vm9205_vm0, %v11622_v0 }
 0xd2c   :  { %8071 = vmatprep.subr.bf16.mxu0 %v11622_v0  ;;  %8077 = vmatprep.subr.bf16.mxu1 %v11622_v0 }
 0xd7a   :  { %v2025_v30 = vpop.f32.mrb[48].mxu1 }
 0xd7b   :  { %v2326_v31 = vmul.f32 0.35355338, %v2025_v30  ;;  %v8021_v32 = vpop.f32.mrb[49].mxu1 }
 0xd7c   :  { %v2028_v34 = vpop.f32.mrb[50].mxu1 }
 0xd7d   :  { %v8022_v36 = vpop.f32.mrb[51].mxu1  ;;  %v2336_v37 = vsel %vm591_vm3, %v2326_v31, -inf  ;;  %v1976_v14 = vpop.f32.mrb[52].mxu0 }
 0xd7e   :  { %2337 = vmax.xlane.f32.xlu0 %v2336_v37  ;;  %v2325_v38 = vmul.f32 0.35355338, %v1976_v14  ;;  %v8015_v39 = vpop.f32.mrb[53].mxu0 }
 0xd7f   :  { %v1979_v40 = vpop.f32.mrb[54].mxu0 }
 0xd80   :  { %v8016_v63 = vpop.f32.mrb[55].mxu0  ;;  %v2333_v1 = vsel %vm591_vm3, %v2325_v38, -inf }
 0xd81   :  { %2334 = vmax.xlane.f32.xlu1 %v2333_v1 }
 0xdec   :  { %v2074_v41 = vpop.f32.mrb[56].mxu0  ;;  %v2123_v43 = vpop.f32.mrb[52].mxu1 }
 0xded   :  { %v2327_v44 = vmul.f32 0.35355338, %v2074_v41  ;;  %v2328_v45 = vmul.f32 0.35355338, %v2123_v43  ;;  %v8027_v48 = vpop.f32.mrb[57].mxu0  ;;  %v8033_v49 = vpop.f32.mrb[53].mxu1 }
 0xdee   :  { %v2077_v52 = vpop.f32.mrb[58].mxu0  ;;  %v2126_v53 = vpop.f32.mrb[54].mxu1 }
 0xdef   :  { %v8028_v8 = vpop.f32.mrb[59].mxu0  ;;  %v8034_v54 = vpop.f32.mrb[55].mxu1  ;;  %v2342_v50 = vsel %vm591_vm3, %v2328_v45, -inf  ;;  %v2339_v51 = vsel %vm591_vm3, %v2327_v44, -inf }
 0xdf0   :  { %2343 = vmax.xlane.f32.xlu1 %v2342_v50  ;;  %2340 = vmax.xlane.f32.xlu0 %v2339_v51 }
 0xdf4   :  { %v2172_v55 = vpop.f32.mrb[60].mxu0  ;;  %v2221_v56 = vpop.f32.mrb[56].mxu1 }
 0xdf5   :  { %v9698_v57 = vmul.f32 0.35355338, %v2172_v55  ;;  %v2330_v58 = vmul.f32 0.35355338, %v2221_v56  ;;  %v8039_v59 = vpop.f32.mrb[61].mxu0  ;;  %v8045_v2 = vpop.f32.mrb[57].mxu1 }
 0xdf6   :  { %v2175_v3 = vpop.f32.mrb[62].mxu0  ;;  %v2224_v4 = vpop.f32.mrb[58].mxu1 }
 0xdf7   :  { %v8040_v46 = vpop.f32.mrb[63].mxu0  ;;  %v8046_v47 = vpop.f32.mrb[59].mxu1  ;;  %v2348_v7 = vsel %vm591_vm3, %v2330_v58, -inf  ;;  %v2345_v10 = vsel %vm591_vm3, %v9698_v57, -inf }
 0xdf8   :  { %2349 = vmax.xlane.f32.xlu1 %v2348_v7  ;;  %2346 = vmax.xlane.f32.xlu0 %v2345_v10 }
 0xdfc   :  { %v2270_v62 = vpop.f32.mrb[64].mxu0  ;;  %v2319_v13 = vpop.f32.mrb[60].mxu1 }
 0xdfd   :  { %v9703_v12 = vmul.f32 0.35355338, %v2270_v62  ;;  %v2332_v15 = vmul.f32 0.35355338, %v2319_v13  ;;  %v8051_v16 = vpop.f32.mrb[65].mxu0  ;;  %v8057_v17 = vpop.f32.mrb[61].mxu1 }
 0xdfe   :  { %v2273_v18 = vpop.f32.mrb[66].mxu0  ;;  %v2322_v19 = vpop.f32.mrb[62].mxu1 }
 0xdff   :  { %v8052_v20 = vpop.f32.mrb[67].mxu0  ;;  %v8058_v21 = vpop.f32.mrb[63].mxu1  ;;  %v2354_v22 = vsel %vm591_vm3, %v2332_v15, -inf  ;;  %v2351_v23 = vsel %vm591_vm3, %v9703_v12, -inf }
 0xe00   :  { %2355 = vmax.xlane.f32.xlu1 %v2354_v22  ;;  %2352 = vmax.xlane.f32.xlu0 %v2351_v23 }
 0xe0b   :  { %v2338_v24 = vpop.xlane.xlu0 %2337 }
 0xe0c   :  { %v2358_v26 = vsub.f32 %v2326_v31, %v2338_v24 }
 0xe0e   :  { %v2335_v25 = vpop.xlane.xlu1 %2334  ;;  %v2367_v30 = vmul.f32 1.442695, %v2358_v26 }
 0xe0f   :  { %v2357_v28 = vsub.f32 %v2325_v38, %v2335_v25 }
 0xe10   :  { %8911 = vpow2.f32 %v2367_v30 }
 0xe11   :  { %2525 = vrot.lane.b32.xlu1 %v9618_v60, %s9220_s24  ;;  %v2365_v32 = vmul.f32 1.442695, %v2357_v28 }
 0xe13   :  { %8913 = vpow2.f32 %v2365_v32 }
 0xe16   :  { %2573 = vrot.lane.b32.xlu0 %v9620_v61, %s9220_s24 }
 0xe1a   :  { %v8912_v34 = vpop.eup %8911 }
 0xe1b   :  { %v2384_v37 = vsel %vm591_vm3, %v8912_v34, 0.0 }
 0xe1d   :  { %v8914_v36 = vpop.eup %8913 }
 0xe1e   :  { %v2381_v14 = vsel %vm591_vm3, %v8914_v36, 0.0 }
 0xe35   :  { %2385 = vadd.xlane.f32.xlu1 %v2384_v37  ;;  %2382 = vadd.xlane.f32.xlu0 %v2381_v14 }
 0xe46   :  { %2621 = vrot.lane.b32.xlu1 %v9627_v5, %s9220_s24 }
 0xe7d   :  { %v2344_v60 = vpop.xlane.xlu1 %2343  ;;  %v2341_v61 = vpop.xlane.xlu0 %2340 }
 0xe7e   :  { %v2360_v39 = vsub.f32 %v2328_v45, %v2344_v60  ;;  %v2359_v31 = vsub.f32 %v2327_v44, %v2341_v61 }
 0xe80   :  { %v2371_v38 = vmul.f32 1.442695, %v2360_v39  ;;  %v2369_v40 = vmul.f32 1.442695, %v2359_v31 }
 0xe82   :  { %8915 = vpow2.f32 %v2371_v38 }
 0xe83   :  { %8917 = vpow2.f32 %v2369_v40 }
 0xe85   :  { %v2350_v63 = vpop.xlane.xlu1 %2349  ;;  %v2347_v51 = vpop.xlane.xlu0 %2346 }
 0xe86   :  { %v2362_v1 = vsub.f32 %v2330_v58, %v2350_v63  ;;  %v2361_v55 = vsub.f32 %v9698_v57, %v2347_v51 }
 0xe88   :  { %v2375_v41 = vmul.f32 1.442695, %v2362_v1  ;;  %v2373_v58 = vmul.f32 1.442695, %v2361_v55 }
 0xe8a   :  { %8919 = vpow2.f32 %v2375_v41 }
 0xe8c   :  { %v9716_v43 = vpop.eup %8915 }
 0xe8d   :  { %v9718_v48 = vpop.eup %8917  ;;  %v2356_v49 = vpop.xlane.xlu1 %2355  ;;  %v2390_v5 = vsel %vm591_vm3, %v9716_v43, 0.0 }
 0xe8e   :  { %v2364_v52 = vsub.f32 %v2332_v15, %v2356_v49  ;;  %2391 = vadd.xlane.f32.xlu1 %v2390_v5  ;;  %v2387_v44 = vsel %vm591_vm3, %v9718_v48, 0.0  ;;  %v2353_v56 = vpop.xlane.xlu0 %2352 }
 0xe8f   :  { %2388 = vadd.xlane.f32.xlu0 %v2387_v44  ;;  %v2363_v59 = vsub.f32 %v9703_v12, %v2353_v56 }
 0xe90   :  { %v2379_v45 = vmul.f32 1.442695, %v2364_v52 }
 0xe91   :  { %v2377_v2 = vmul.f32 1.442695, %v2363_v59  ;;  %v2526_v3 = vpop.permute.xlu1 %2525 }
 0xe92   :  { %8921 = vpow2.f32 %v2379_v45  ;;  %v2574_v4 = vpop.permute.xlu0 %2573  ;;  %v2531_v18 = vsel %vm1090_vm4, %v2526_v3, 0 }
 0xe93   :  { %8923 = vpow2.f32 %v2373_v58  ;;  %v2579_v17 = vsel %vm1090_vm4, %v2574_v4, 0 }
 0xe94   :  { %v9724_v53 = vpop.eup %8919  ;;  %8925 = vpow2.f32 %v2377_v2 }
 0xe95   :  { %v2396_v8 = vsel %vm591_vm3, %v9724_v53, 0.0 }
 0xe96   :  { %2397 = vadd.xlane.f32.xlu1 %v2396_v8 }
 0xe9c   :  { %v9728_v54 = vpop.eup %8921 }
 0xe9d   :  { %v2402_v50 = vsel %vm591_vm3, %v9728_v54, 0.0  ;;  %v9738_v46 = vpop.eup %8923 }
 0xe9e   :  { %2403 = vadd.xlane.f32.xlu1 %v2402_v50  ;;  %v9742_v57 = vpop.eup %8925 }
 0xea5   :  { %2669 = vrot.lane.b32.xlu0 %v9629_v6, %s9220_s24  ;;  %v2393_v6 = vsel %vm591_vm3, %v9738_v46, 0.0 }
 0xeaf   :  { %2717 = vrot.lane.b32.xlu1 %v9637_v11, %s9220_s24  ;;  %v2399_v11 = vsel %vm591_vm3, %v9742_v57, 0.0 }
 0xec2   :  { %v2386_v47 = vpop.xlane.xlu1 %2385  ;;  %v2383_v7 = vpop.xlane.xlu0 %2382 }
 0xec3   :  { %8927 = vrcp.f32 %v2386_v47 }
 0xec4   :  { %8929 = vrcp.f32 %v2383_v7  ;;  %2394 = vadd.xlane.f32.xlu0 %v2393_v6 }
 0xec6   :  { %v2622_v19 = vpop.permute.xlu1 %2621 }
 0xec8   :  { %2400 = vadd.xlane.f32.xlu0 %v2399_v11 }
 0xecd   :  { %v8928_v10 = vpop.eup %8927 }
 0xece   :  { %v8930_v62 = vpop.eup %8929  ;;  %v2408_v13 = vmul.f32 %v8928_v10, %v8912_v34 }
 0xecf   :  { %v2406_v12 = vmul.f32 %v8930_v62, %v8914_v36 }
 0xed0   :  { %v2422_v15 = vpack.c.bf16 %v2408_v13, %v2408_v13 }
 0xed1   :  { %v2421_v16 = vpack.c.bf16 %v2406_v12, %v2406_v12  ;;  %v8841_v12 = vld [vmem:[%s7333_s8] sm:$0xff]  }
 0xed2   :  { %8068 = vmatmul.mubr.msk.bf16.vlgmr.msra.gmra.mrb[64].mxu1 %vm591_vm3, %v2422_v15 }
 0xed3   :  { %8062 = vmatmul.mubr.msk.bf16.vlgmr.msra.gmra.mrb[68].mxu0 %vm591_vm3, %v2421_v16  ;;  %8078 = vmatpush3.bf16.msra.mxu1 %v2579_v17 }
 0xed4   :  { %8072 = vmatpush3.bf16.msra.mxu0 %v2531_v18  ;;  %8073 = vmatprep.mubr.msk.bf16.mxu0 %vm9205_vm0, %v11622_v0  ;;  %v8842_v18 = vld [vmem:[%s7333_s8 + $0x8] sm:$0xff]   ;;  %s7347_s8 = sld [smem:[%s11621_s0 + %s9245_s6]]   ;;  %s9260_s6 = smov 51  }
 0xed5   :  { %8079 = vmatprep.mubr.msk.bf16.mxu1 %vm9205_vm0, %v11622_v0  ;;  %8083 = vmatprep.subr.bf16.mxu0 %v11622_v0 }
 0xed6   :  { %8089 = vmatprep.subr.bf16.mxu1 %v11622_v0 }
 0xede   :  { %2765 = vrot.lane.b32.xlu0 %v9639_v9, %s9220_s24  ;;  %v2627_v9 = vsel %vm1090_vm4, %v2622_v19, 0 }
 0xf1b   :  { %v2392_v20 = vpop.xlane.xlu1 %2391 }
 0xf1c   :  { %8931 = vrcp.f32 %v2392_v20  ;;  %v2389_v21 = vpop.xlane.xlu0 %2388 }
 0xf1d   :  { %8933 = vrcp.f32 %v2389_v21 }
 0xf20   :  { %v2670_v26 = vpop.permute.xlu0 %2669 }
 0xf21   :  { %v2675_v34 = vsel %vm1090_vm4, %v2670_v26, 0 }
 0xf23   :  { %v2398_v22 = vpop.xlane.xlu1 %2397 }
 0xf24   :  { %8935 = vrcp.f32 %v2398_v22 }
 0xf26   :  { %v8932_v23 = vpop.eup %8931 }
 0xf27   :  { %v8934_v24 = vpop.eup %8933  ;;  %v2412_v25 = vmul.f32 %v8932_v23, %v9716_v43 }
 0xf28   :  { %v2410_v28 = vmul.f32 %v8934_v24, %v9718_v48 }
 0xf29   :  { %v2424_v30 = vpack.c.bf16 %v2412_v25, %v2412_v25 }
 0xf2a   :  { %v2423_v32 = vpack.c.bf16 %v2410_v28, %v2410_v28 }
 0xf2b   :  { %8080 = vmatmul.mubr.msk.bf16.vlgmr.msra.gmra.mrb[68].mxu1 %vm591_vm3, %v2424_v30  ;;  %v2404_v60 = vpop.xlane.xlu1 %2403 }
 0xf2c   :  { %8074 = vmatmul.mubr.msk.bf16.vlgmr.msra.gmra.mrb[72].mxu0 %vm591_vm3, %v2423_v32  ;;  %8090 = vmatpush3.bf16.msra.mxu1 %v2675_v34  ;;  %8937 = vrcp.f32 %v2404_v60 }
 0xf2d   :  { %8084 = vmatpush3.bf16.msra.mxu0 %v2627_v9  ;;  %8091 = vmatprep.mubr.msk.bf16.mxu1 %vm9205_vm0, %v11622_v0 }
 0xf2e   :  { %v8936_v36 = vpop.eup %8935  ;;  %8101 = vmatprep.subr.bf16.mxu1 %v11622_v0  ;;  %8085 = vmatprep.mubr.msk.bf16.mxu0 %vm9205_vm0, %v11622_v0 }
 0xf2f   :  { %v2416_v37 = vmul.f32 %v8936_v36, %v9724_v53  ;;  %8095 = vmatprep.subr.bf16.mxu0 %v11622_v0  ;;  %v2718_v48 = vpop.permute.xlu1 %2717 }
 0xf30   :  { %v2723_v52 = vsel %vm1090_vm4, %v2718_v48, 0 }
 0xf31   :  { %v2426_v14 = vpack.c.bf16 %v2416_v37, %v2416_v37 }
 0xf33   :  { %8092 = vmatmul.mubr.msk.bf16.vlgmr.msra.gmra.mrb[72].mxu1 %vm591_vm3, %v2426_v14 }
 0xf34   :  { %8103 = vmatprep.mubr.msk.bf16.mxu1 %vm9205_vm0, %v11622_v0 }
 0xf36   :  { %v8938_v39 = vpop.eup %8937 }
 0xf37   :  { %v2420_v38 = vmul.f32 %v8938_v39, %v9728_v54 }
 0xf39   :  { %v2428_v41 = vpack.c.bf16 %v2420_v38, %v2420_v38 }
 0xf51   :  { %v2395_v61 = vpop.xlane.xlu0 %2394 }
 0xf52   :  { %8939 = vrcp.f32 %v2395_v61 }
 0xf55   :  { %v2401_v31 = vpop.xlane.xlu0 %2400 }
 0xf56   :  { %8941 = vrcp.f32 %v2401_v31 }
 0xf59   :  { %v2766_v40 = vpop.permute.xlu0 %2765 }
 0xf5a   :  { %v2771_v63 = vsel %vm1090_vm4, %v2766_v40, 0 }
 0xf5b   :  { %8102 = vmatpush3.bf16.msra.mxu1 %v2771_v63 }
 0xf5c   :  { %v8940_v1 = vpop.eup %8939  ;;  %8115 = vmatprep.subr.bf16.mxu1 %v11622_v0 }
 0xf5d   :  { %v2414_v43 = vmul.f32 %v8940_v1, %v9738_v46 }
 0xf5e   :  { %8104 = vmatmul.mubr.msk.bf16.vlgmr.msra.gmra.mrb[76].mxu1 %vm591_vm3, %v2428_v41 }
 0xf5f   :  { %v2425_v49 = vpack.c.bf16 %v2414_v43, %v2414_v43  ;;  %8119 = vmatprep.mubr.msk.bf16.mxu1 %vm9205_vm0, %v11622_v0 }
 0xf60   :  { %v8942_v5 = vpop.eup %8941 }
 0xf61   :  { %8086 = vmatmul.mubr.msk.bf16.vlgmr.msra.gmra.mrb[76].mxu0 %vm591_vm3, %v2425_v49  ;;  %v2418_v44 = vmul.f32 %v8942_v5, %v9742_v57  ;;  %v7440_v49 = vld [vmem:[%s7332_s12] ss:$0 sm:$0xff]  ;;  %s7340_s12 = sld [smem:[%s11621_s0 + %s9246_s9]]   ;;  %s9261_s9 = smov 39  }
 0xf62   :  { %8096 = vmatpush3.bf16.msra.mxu0 %v2723_v52  ;;  %8097 = vmatprep.mubr.msk.bf16.mxu0 %vm9205_vm0, %v11622_v0 }
 0xf63   :  { %8107 = vmatprep.subr.bf16.mxu0 %v11622_v0  ;;  %v2427_v45 = vpack.c.bf16 %v2418_v44, %v2418_v44 }
 0xf69   :  { %8098 = vmatmul.mubr.msk.bf16.vlgmr.msra.gmra.mrb[80].mxu0 %vm591_vm3, %v2427_v45 }
 0xf6a   :  { %8111 = vmatprep.mubr.msk.bf16.mxu0 %vm9205_vm0, %v11622_v0  ;;  %8108 = vmatpush3.bf16.msra.mxu0 %v8841_v12 }
 0xf6b   :  { %8109 = vmatprep.subr.bf16.mxu0 %v11622_v0 }
 0xf6e   :  { %8110 = vmatpush3.bf16.msra.mxu0 %v8842_v18 }
 0xf6f   :  { %8123 = vmatprep.subr.bf16.mxu0 %v11622_v0 }
 0xfa5   :  { %v2519_v53 = vpop.f32.mrb[64].mxu1 }
 0xfa6   :  { %v2471_v8 = vpop.f32.mrb[68].mxu0  ;;  %v8069_v54 = vpop.f32.mrb[65].mxu1 }
 0xfa7   :  { %v8063_v50 = vpop.f32.mrb[69].mxu0  ;;  %v2522_v51 = vpop.f32.mrb[66].mxu1 }
 0xfa8   :  { %v2474_v55 = vpop.f32.mrb[70].mxu0  ;;  %v8070_v56 = vpop.f32.mrb[67].mxu1 }
 0xfa9   :  { %v8064_v58 = vpop.f32.mrb[71].mxu0 }
 0xffe   :  { %v2615_v59 = vpop.f32.mrb[68].mxu1 }
 0xfff   :  { %v2567_v2 = vpop.f32.mrb[72].mxu0  ;;  %v8081_v3 = vpop.f32.mrb[69].mxu1 }
0x1000   :  { %v8628_v4 = vpack.i.bf16 %v2615_v59, %v2567_v2  ;;  %v8075_v46 = vpop.f32.mrb[73].mxu0  ;;  %v2618_v47 = vpop.f32.mrb[70].mxu1 }
0x1001   :  { %v2570_v7 = vpop.f32.mrb[74].mxu0  ;;  %v8082_v6 = vpop.f32.mrb[71].mxu1 }
0x1002   :  { %8629 = vrot.lane.b32.xlu1 %v8628_v4, %s9222_s29  ;;  %v8076_v57 = vpop.f32.mrb[75].mxu0 }
0x1006   :  { %v2711_v11 = vpop.f32.mrb[72].mxu1 }
0x1007   :  { %v8093_v10 = vpop.f32.mrb[73].mxu1 }
0x1008   :  { %v2714_v62 = vpop.f32.mrb[74].mxu1 }
0x1009   :  { %v8094_v13 = vpop.f32.mrb[75].mxu1 }
0x1031   :  { %v2807_v15 = vpop.f32.mrb[76].mxu1 }
0x1032   :  { %v8105_v16 = vpop.f32.mrb[77].mxu1 }
0x1033   :  { %v2810_v17 = vpop.f32.mrb[78].mxu1 }
0x1034   :  { %v2663_v19 = vpop.f32.mrb[76].mxu0  ;;  %v8106_v20 = vpop.f32.mrb[79].mxu1 }
0x1035   :  { %v8633_v21 = vpack.i.bf16 %v2711_v11, %v2663_v19  ;;  %v8087_v22 = vpop.f32.mrb[77].mxu0 }
0x1036   :  { %v2666_v23 = vpop.f32.mrb[78].mxu0  ;;  %v7444_v22 = vld [vmem:[%s7339_s26] ss:$0 sm:$0xff]  ;;  %s9256_s26 = smov 45  }
0x1037   :  { %8634 = vrot.lane.b32.xlu0 %v8633_v21, %s9223_s3  ;;  %v8088_v24 = vpop.f32.mrb[79].mxu0 }
0x103c   :  { %v2759_v25 = vpop.f32.mrb[80].mxu0 }
0x103d   :  { %v8638_v26 = vpack.i.bf16 %v2807_v15, %v2759_v25  ;;  %v8099_v28 = vpop.f32.mrb[81].mxu0 }
0x103e   :  { %v2762_v30 = vpop.f32.mrb[82].mxu0  ;;  %v7445_v28 = vld [vmem:[%s7338_s2] ss:$0 sm:$0xff] }
0x103f   :  { %8639 = vrot.lane.b32.xlu1 %v8638_v26, %s9221_s25  ;;  %v8100_v32 = vpop.f32.mrb[83].mxu0 }
0x1074   :  { %v8630_v34 = vpop.permute.xlu1 %8629 }
0x1075   :  { %v8632_v36 = vunpack.i.h.bf16 %v8630_v34  ;;  %v8631_v37 = vunpack.i.l.bf16 %v8630_v34 }
0x1077   :  { %v2838_v39 = vsel %vm591_vm3, %v2519_v53, %v8632_v36  ;;  %v2837_v31 = vsel %vm591_vm3, %v2471_v8, %v8631_v37  ;;  %v8845_v36 = vld [vmem:[%s9526_s28] sm:$0xff]   ;;  %v8846_v37 = vld [vmem:[%s9526_s28 + $0x8] sm:$0xff]  }
0x10a9   :  { %v8635_v9 = vpop.permute.xlu0 %8634 }
0x10aa   :  { %v8637_v14 = vunpack.i.h.bf16 %v8635_v9  ;;  %v8636_v60 = vunpack.i.l.bf16 %v8635_v9 }
0x10ac   :  { %v2840_v63 = vsel %vm380_vm2, %v2838_v39, %v8637_v14  ;;  %v2839_v1 = vsel %vm380_vm2, %v2837_v31, %v8636_v60  ;;  %v8847_v14 = vld [vmem:[%s9526_s28 + $0x10] sm:$0xff]   ;;  %v8848_v60 = vld [vmem:[%s9526_s28 + $0x18] sm:$0xff]   ;;  %s9240_s28 = smov 23  }
0x10ad   :  { %s7336_s10 = sld [smem:[%s11621_s0 + %s9240_s28]]   ;;  %s9253_s28 = smov 50  }
0x10b1   :  { %v8640_v61 = vpop.permute.xlu1 %8639 }
0x10b2   :  { %v8642_v38 = vunpack.i.h.bf16 %v8640_v61  ;;  %v8641_v40 = vunpack.i.l.bf16 %v8640_v61  ;;  %v7446_v61 = vld [vmem:[%s7334_s7] ss:$0 sm:$0xff]  ;;  %s7359_s7 = sld [smem:[%s11621_s0 + %s9252_s4]]  }
0x10b4   :  { %v2842_v41 = vsel %vm1498_vm5, %v2840_v63, %v8642_v38  ;;  %v2841_v43 = vsel %vm1498_vm5, %v2839_v1, %v8641_v40 }
0x10b5   :  { %v2843_v48 = vpack.c.bf16 %v2842_v41, %v2841_v43 }
0x10b7   :  { %8112 = vmatmul.mubr.msk.bf16.vlgmr.msra.gmra.mrb[84].mxu0 %vm244_vm1, %v2843_v48 }
0x10b8   :  { %8131 = vmatprep.mubr.msk.bf16.mxu0 %vm9205_vm0, %v11622_v0  ;;  %8124 = vmatpush3.bf16.msra.mxu0 %v8845_v36 }
0x10b9   :  { %8125 = vmatprep.subr.bf16.mxu0 %v11622_v0 }
0x10bc   :  { %8126 = vmatpush3.bf16.msra.mxu0 %v8846_v37  ;;  %v7376_v37 = vld [vmem:[%s7350_s5] ss:$0 sm:$0xff] }
0x10bd   :  { %8127 = vmatprep.subr.bf16.mxu0 %v11622_v0 }
0x10c0   :  { %8128 = vmatpush3.bf16.msra.mxu0 %v8847_v14 }
0x10c1   :  { %8129 = vmatprep.subr.bf16.mxu0 %v11622_v0 }
0x10c4   :  { %8130 = vmatpush3.bf16.msra.mxu0 %v8848_v60 }
0x118a   :  { %v2904_v5 = vpop.f32.mrb[84].mxu0 }
0x118b   :  { %v2905_v52 = vadd.f32 %v7440_v49, %v2904_v5  ;;  %v8113_v44 = vpop.f32.mrb[85].mxu0 }
0x118c   :  { %v2907_v45 = vpop.f32.mrb[86].mxu0 }
0x118d   :  { %v2911_v53 = vadd.f32 %v2905_v52, %v9601_v42  ;;  %v2908_v8 = vadd.f32 %v7440_v49, %v2907_v45  ;;  %v8114_v54 = vpop.f32.mrb[87].mxu0  ;;  %v8843_v42 = vld [vmem:[%s7335_s16] sm:$0xff]  }
0x118e   :  { %8116 = vmatpush3.bf16.msra.mxu1 %v8843_v42 }
0x118f   :  { %v2912_v50 = vadd.f32 %v2908_v8, %v9603_v35  ;;  %v2913_v51 = vsel %vm244_vm1, %v2911_v53, 0.0  ;;  %v2921_v55 = vmul.f32 %v2911_v53, %v2911_v53  ;;  %v8844_v35 = vld [vmem:[%s7335_s16 + $0x8] sm:$0xff]   ;;  %8117 = vmatprep.subr.bf16.mxu1 %v11622_v0  ;;  %s9886_s16 = sld [smem:[%s11621_s0 + %s9247_s13]]   ;;  %s9262_s13 = smov 53  }
0x1190   :  { %2914 = vadd.xlane.f32.xlu0 %v2913_v51 }
0x1191   :  { %v2916_v56 = vsel %vm244_vm1, %v2912_v50, 0.0  ;;  %v2923_v58 = vsel %vm244_vm1, %v2921_v55, 0.0  ;;  %v2922_v59 = vmul.f32 %v2912_v50, %v2912_v50 }
0x1192   :  { %2917 = vadd.xlane.f32.xlu1 %v2916_v56  ;;  %8118 = vmatpush3.bf16.msra.mxu1 %v8844_v35 }
0x1193   :  { %v2926_v2 = vsel %vm244_vm1, %v2922_v59, 0.0  ;;  %8135 = vmatprep.subr.bf16.mxu1 %v11622_v0 }
0x1194   :  { %2924 = vadd.xlane.f32.xlu0 %v2923_v58 }
0x1198   :  { %2927 = vadd.xlane.f32.xlu0 %v2926_v2 }
0x121d   :  { %v2915_v3 = vpop.xlane.xlu0 %2914 }
0x121e   :  { %v2919_v4 = vmul.f32 0.03125, %v2915_v3 }
0x121f   :  { %v2918_v46 = vpop.xlane.xlu1 %2917 }
0x1220   :  { %v2931_v7 = vmul.f32 %v2919_v4, %v2919_v4  ;;  %v2920_v6 = vmul.f32 0.03125, %v2918_v46  ;;  %v2937_v19 = vsub.f32 %v2911_v53, %v2919_v4 }
0x1221   :  { %v2925_v47 = vpop.xlane.xlu0 %2924 }
0x1222   :  { %v2929_v57 = vmul.f32 0.03125, %v2925_v47  ;;  %v2932_v62 = vmul.f32 %v2920_v6, %v2920_v6  ;;  %v2938_v23 = vsub.f32 %v2912_v50, %v2920_v6  ;;  %v7450_v50 = vld [vmem:[%s7336_s10] ss:$0 sm:$0xff]  ;;  %s7363_s10 = sld [smem:[%s11621_s0 + %s9253_s28]]  }
0x1224   :  { %v2933_v11 = vsub.f32 %v2929_v57, %v2931_v7  ;;  %v8849_v57 = vld [vmem:[%s7345_s14] sm:$0xff]  }
0x1225   :  { %v2928_v10 = vpop.xlane.xlu0 %2927 }
0x1226   :  { %v2935_v13 = vmax.f32 %v2933_v11, 0.0  ;;  %v2930_v12 = vmul.f32 0.03125, %v2928_v10  ;;  %v8850_v11 = vld [vmem:[%s7345_s14 + $0x8] sm:$0xff]   ;;  %v9868_v10 = vld [vmem:[%s9864_s18] sm:$0xff]   ;;  %s11446_s14 = sld [smem:[%s11621_s0 + %s9254_s11]]  }
0x1228   :  { %v2939_v15 = vadd.f32 1e-05, %v2935_v13  ;;  %v2934_v16 = vsub.f32 %v2930_v12, %v2932_v62 }
0x122a   :  { %8943 = vrsqrt.f32 %v2939_v15  ;;  %v2936_v17 = vmax.f32 %v2934_v16, 0.0 }
0x122c   :  { %v2940_v18 = vadd.f32 1e-05, %v2936_v17 }
0x122e   :  { %8945 = vrsqrt.f32 %v2940_v18 }
0x1234   :  { %v8944_v20 = vpop.eup %8943 }
0x1235   :  { %v2943_v21 = vmul.f32 %v8944_v20, %v2937_v19 }
0x1237   :  { %v2952_v26 = vmul.f32 %v7444_v22, %v2943_v21 }
0x1238   :  { %v8946_v24 = vpop.eup %8945 }
0x1239   :  { %v2944_v25 = vmul.f32 %v8946_v24, %v2938_v23  ;;  %v2961_v32 = vadd.f32 %v7445_v28, %v2952_v26 }
0x123b   :  { %v2953_v30 = vmul.f32 %v7444_v22, %v2944_v25 }
0x123d   :  { %v2962_v34 = vadd.f32 %v7445_v28, %v2953_v30  ;;  %v3251_v30 = vlaneseq }
0x123f   :  { %v2963_v9 = vpack.c.bf16 %v2962_v34, %v2961_v32  ;;  %v3252_v36 = vshrl.u32 %v3251_v30, 7 }
0x1241   :  { %8120 = vmatmul.mubr.msk.bf16.vlgmr.msra.gmra.mrb[80].mxu1 %vm244_vm1, %v2963_v9  ;;  %v7456_v9 = vld [vmem:[%s7341_s30] ss:$0 sm:$0xff]  ;;  %s7358_s30 = sld [smem:[%s11621_s0 + %s9256_s26]]  }
0x1242   :  { %8139 = vmatprep.mubr.msk.bf16.mxu1 %vm9205_vm0, %v11622_v0  ;;  %8136 = vmatpush3.bf16.msra.mxu1 %v8849_v57  ;;  %v3265_v57 = vld [vmem:[%s9886_s16 + $0x30] sm:$0xff] }
0x1243   :  { %8137 = vmatprep.subr.bf16.mxu1 %v11622_v0 }
0x1246   :  { %8138 = vmatpush3.bf16.msra.mxu1 %v8850_v11 }
0x1247   :  { %8143 = vmatprep.subr.bf16.mxu1 %v9868_v10 }
0x1314   :  { %v3024_v39 = vpop.f32.mrb[80].mxu1 }
0x1315   :  { %v3025_v31 = vadd.f32 %v7446_v61, %v3024_v39  ;;  %v8121_v38 = vpop.f32.mrb[81].mxu1  ;;  %v7372_v39 = vld [vmem:[%s7347_s8] ss:$0 sm:$0xff]  ;;  %s7364_s8 = sld [smem:[%s11621_s0 + %s9260_s6]]  }
0x1316   :  { %v3027_v40 = vpop.f32.mrb[82].mxu1  ;;  %v3259_v38 = vld [vmem:[%s9886_s16] sm:$0xff] }
0x1317   :  { %v3033_v63 = vmul.f32 0.70710677, %v3025_v31  ;;  %v3028_v1 = vadd.f32 %v7446_v61, %v3027_v40  ;;  %v8122_v41 = vpop.f32.mrb[83].mxu1  ;;  %v3031_v52 = vmul.f32 0.5, %v3025_v31  ;;  %v419_v31 = vadd.f32 %v7376_v37, %v9316_v27  ;;  %v3260_v40 = vld [vmem:[%s9886_s16 + $0x8] sm:$0xff] }
0x1318   :  { %v7457_v41 = vld [vmem:[%s7340_s12] ss:$0 sm:$0xff]  ;;  %s7352_s12 = sld [smem:[%s11621_s0 + %s9261_s9]]  }
0x1319   :  { %8947 = verf.f32 %v3033_v63  ;;  %v3034_v43 = vmul.f32 0.70710677, %v3028_v1  ;;  %v3032_v44 = vmul.f32 0.5, %v3028_v1 }
0x131b   :  { %8949 = verf.f32 %v3034_v43  ;;  %v357_v43 = vadd.f32 %v7372_v39, %v9328_v33  ;;  %v3261_v33 = vld [vmem:[%s9886_s16 + $0x10] sm:$0xff] }
0x1323   :  { %v8948_v48 = vpop.eup %8947 }
0x1324   :  { %v3037_v49 = vadd.f32 1.0, %v8948_v48  ;;  %v7462_v48 = vld [vmem:[%s9891_s27] ss:$0 sm:$0xff] }
0x1325   :  { %v8950_v5 = vpop.eup %8949 }
0x1326   :  { %v3038_v45 = vadd.f32 1.0, %v8950_v5  ;;  %v3039_v53 = vmul.f32 %v3037_v49, %v3031_v52  ;;  %v3253_v49 = vsub.s32 0, %v3252_v36  ;;  %v3257_v52 = vsub.s32 1, %v3252_v36 }
0x1328   :  { %v3040_v8 = vmul.f32 %v3038_v45, %v3032_v44  ;;  %v9901_v44 = vadd.f32 %v3259_v38, %v419_v31  ;;  %v9903_v45 = vadd.f32 %v7462_v48, %v3260_v40 }
0x132a   :  { %v3041_v54 = vpack.c.bf16 %v3040_v8, %v3039_v53  ;;  %11665 = vst [vmem:[#allocation2_spill] sm:$0xff] %v9901_v44  ;;  %11666 = vst [vmem:[#allocation3_spill] sm:$0xff] %v9903_v45  ;;  %v3254_v8 = vrot.slane %v357_v43, %v3253_v49 }
0x132c   :  { %8132 = vmatmul.mubr.msk.bf16.vlgmr.msra.gmra.mrb[88].mxu0 %vm1740_vm6, %v3041_v54  ;;  %v422_v54 = vadd.f32 %v7376_v37, %v9318_v29  ;;  %v9916_v29 = vadd.f32 %v3261_v33, %v3254_v8 }
0x132e   :  { %11667 = vst [vmem:[#allocation4_spill] sm:$0xff] %v9916_v29 }
0x13ff   :  { %v3118_v51 = vpop.f32.mrb[88].mxu0 }
0x1400   :  { %v3119_v55 = vadd.f32 %v7450_v50, %v3118_v51  ;;  %v8133_v56 = vpop.f32.mrb[89].mxu0  ;;  %v8852_v51 = vld [vmem:[%s9864_s18 + $0x8] sm:$0xff]   ;;  %s9249_s18 = smov 41  }
0x1401   :  { %v3121_v58 = vpop.f32.mrb[90].mxu0  ;;  %v3283_v56 = vpack.c.bf16 %v9903_v45, %v9901_v44  ;;  %s7354_s2 = sld [smem:[%s11621_s0 + %s9249_s18]]  }
0x1402   :  { %v9844_v59 = vadd.f32 %v3119_v55, %v2961_v32  ;;  %v3122_v2 = vadd.f32 %v7450_v50, %v3121_v58  ;;  %v8134_v42 = vpop.f32.mrb[91].mxu0  ;;  %v3258_v55 = vrot.slane %v357_v43, %v3257_v52  ;;  %v3262_v58 = vld [vmem:[%s9886_s16 + $0x18] sm:$0xff] }
0x1403   :  { %v9918_v42 = vadd.f32 %v3262_v58, %v422_v54 }
0x1404   :  { %v9846_v35 = vadd.f32 %v3122_v2, %v2962_v34  ;;  %v3127_v3 = vsel %vm244_vm1, %v9844_v59, 0.0  ;;  %v3135_v4 = vmul.f32 %v9844_v59, %v9844_v59  ;;  %v3264_v2 = vld [vmem:[%s9886_s16 + $0x28] sm:$0xff] }
0x1405   :  { %3128 = vadd.xlane.f32.xlu1 %v3127_v3  ;;  %11668 = vst [vmem:[#allocation5_spill] sm:$0xff] %v9918_v42  ;;  %v9922_v3 = vadd.f32 %v3264_v2, %v3258_v55 }
0x1406   :  { %v3130_v46 = vsel %vm244_vm1, %v9846_v35, 0.0  ;;  %v3136_v47 = vmul.f32 %v9846_v35, %v9846_v35  ;;  %v3137_v7 = vsel %vm244_vm1, %v3135_v4, 0.0  ;;  %v3284_v4 = vpack.c.bf16 %v9918_v42, %v9916_v29 }
0x1407   :  { %3131 = vadd.xlane.f32.xlu0 %v3130_v46  ;;  %11670 = vst [vmem:[#allocation7_spill] sm:$0xff] %v9922_v3 }
0x1408   :  { %v3140_v6 = vsel %vm244_vm1, %v3136_v47, 0.0  ;;  %v7458_v47 = vld [vmem:[%s9891_s27] ss:$0 sm:$0xff] }
0x1409   :  { %3138 = vadd.xlane.f32.xlu1 %v3137_v7  ;;  %v3267_v7 = vld [vmem:[%s9886_s16 + $0x40] sm:$0xff] }
0x140b   :  { %3141 = vadd.xlane.f32.xlu0 %v3140_v6  ;;  %v3268_v6 = vld [vmem:[%s9886_s16 + $0x48] sm:$0xff] }
0x1492   :  { %v3129_v62 = vpop.xlane.xlu1 %3128 }
0x1493   :  { %v3133_v13 = vmul.f32 0.03125, %v3129_v62 }
0x1494   :  { %v3132_v12 = vpop.xlane.xlu0 %3131 }
0x1495   :  { %v3134_v15 = vmul.f32 0.03125, %v3132_v12  ;;  %v3145_v17 = vmul.f32 %v3133_v13, %v3133_v13  ;;  %v3151_v32 = vsub.f32 %v9844_v59, %v3133_v13  ;;  %v3263_v59 = vld [vmem:[%s9886_s16 + $0x20] sm:$0xff]  ;;  %v9938_v12 = vadd.f32 %v3267_v7, %v3254_v8 }
0x1496   :  { %v3139_v16 = vpop.xlane.xlu1 %3138 }
0x1497   :  { %v3143_v18 = vmul.f32 0.03125, %v3139_v16  ;;  %v3146_v20 = vmul.f32 %v3134_v15, %v3134_v15  ;;  %v3152_v14 = vsub.f32 %v9846_v35, %v3134_v15  ;;  %v9920_v35 = vadd.f32 %v7462_v48, %v3263_v59  ;;  %11671 = vst [vmem:[#allocation8_spill] sm:$0xff] %v9938_v12 }
0x1498   :  { %v3142_v19 = vpop.xlane.xlu0 %3141  ;;  %v9940_v15 = vadd.f32 %v3268_v6, %v422_v54 }
0x1499   :  { %v3147_v21 = vsub.f32 %v3143_v18, %v3145_v17  ;;  %v3144_v22 = vmul.f32 0.03125, %v3142_v19  ;;  %11669 = vst [vmem:[#allocation6_spill] sm:$0xff] %v9920_v35  ;;  %v3285_v46 = vpack.c.bf16 %v9922_v3, %v9920_v35  ;;  %v9942_v17 = vadd.f32 %v3265_v57, %v419_v31 }
0x149a   :  { %11672 = vst [vmem:[#allocation9_spill] sm:$0xff] %v9940_v15 }
0x149b   :  { %v3149_v23 = vmax.f32 %v3147_v21, 0.0  ;;  %v3148_v24 = vsub.f32 %v3144_v22, %v3146_v20  ;;  %11673 = vst [vmem:[#allocation10_spill] sm:$0xff] %v9942_v17  ;;  %v3287_v22 = vpack.c.bf16 %v9940_v15, %v9938_v12 }
0x149d   :  { %v3153_v25 = vadd.f32 1e-05, %v3149_v23  ;;  %v3150_v26 = vmax.f32 %v3148_v24, 0.0  ;;  %v3269_v23 = vld [vmem:[%s9886_s16 + $0x50] sm:$0xff]  ;;  %v3270_v24 = vld [vmem:[%s9886_s16 + $0x58] sm:$0xff] }
0x149f   :  { %8951 = vrsqrt.f32 %v3153_v25  ;;  %v3154_v28 = vadd.f32 1e-05, %v3150_v26  ;;  %v7463_v26 = vld [vmem:[%s7354_s2] ss:$0 sm:$0xff] }
0x14a1   :  { %8953 = vrsqrt.f32 %v3154_v28 }
0x14a9   :  { %v8952_v34 = vpop.eup %8951 }
0x14aa   :  { %v3157_v60 = vmul.f32 %v8952_v34, %v3151_v32 }
0x14ab   :  { %v8954_v61 = vpop.eup %8953 }
0x14ac   :  { %v3158_v63 = vmul.f32 %v8954_v61, %v3152_v14  ;;  %v3166_v1 = vmul.f32 %v7456_v9, %v3157_v60 }
0x14ae   :  { %v3167_v5 = vmul.f32 %v7456_v9, %v3158_v63  ;;  %v3175_v27 = vadd.f32 %v7457_v41, %v3166_v1  ;;  %v9956_v9 = vadd.f32 %v3270_v24, %v3258_v55 }
0x14b0   :  { %v3176_v53 = vadd.f32 %v7457_v41, %v3167_v5  ;;  %11676 = vst [vmem:[#allocation13_spill] sm:$0xff] %v9956_v9 }
0x14b2   :  { %v3177_v50 = vpack.c.bf16 %v3176_v53, %v3175_v27 }
0x14b4   :  { %8140 = vmatmul.mubr.msk.bf16.vlgmr.msra.gmra.mrb[84].mxu1 %vm244_vm1, %v3177_v50 }
0x14b5   :  { %8144 = vmatpush3.bf16.msra.mxu1 %v9868_v10  ;;  %8147 = vmatprep.mubr.msk.bf16.mxu1 %vm244_vm1, %v3283_v56  ;;  %v3266_v10 = vld [vmem:[%s9886_s16 + $0x38] sm:$0xff]  ;;  %s7366_s16 = sld [smem:[%s11621_s0 + %s9262_s13]]  }
0x14b6   :  { %8145 = vmatprep.subr.bf16.mxu1 %v8852_v51 }
0x14b9   :  { %8146 = vmatpush3.bf16.msra.mxu1 %v8852_v51 }
0x14bc   :  { %8148 = vmatmul.mubr.msk.bf16.vlgmr.msra.gmra.mrb[88].mxu1 %vm244_vm1, %v3284_v4 }
0x14bd   :  { %8151 = vmatprep.mubr.msk.bf16.mxu1 %vm244_vm1, %v3285_v46 }
0x1587   :  { %v3238_v11 = vpop.f32.mrb[84].mxu1 }
0x1588   :  { %v3239_v62 = vadd.f32 %v7458_v47, %v3238_v11  ;;  %v8141_v13 = vpop.f32.mrb[85].mxu1 }
0x1589   :  { %v3241_v16 = vpop.f32.mrb[86].mxu1 }
0x158a   :  { %v9944_v18 = vadd.f32 %v3266_v10, %v3239_v62  ;;  %v8142_v19 = vpop.f32.mrb[87].mxu1  ;;  %v3242_v21 = vadd.f32 %v7458_v47, %v3241_v16 }
0x158c   :  { %11674 = vst [vmem:[#allocation11_spill] sm:$0xff] %v9944_v18  ;;  %v3286_v20 = vpack.c.bf16 %v9944_v18, %v9942_v17  ;;  %v9954_v28 = vadd.f32 %v3269_v23, %v3242_v21 }
0x158e   :  { %8152 = vmatmul.mubr.msk.bf16.gmra.mrb[92].mxu1 %vm244_vm1, %v3286_v20  ;;  %11675 = vst [vmem:[#allocation12_spill] sm:$0xff] %v9954_v28  ;;  %v3288_v39 = vpack.c.bf16 %v9956_v9, %v9954_v28 }
0x158f   :  { %v8149_v25 = vpop.f32.mrb[88].mxu1  ;;  %8155 = vmatprep.mubr.msk.bf16.mxu1 %vm244_vm1, %v3287_v22 }
0x1590   :  { %v3364_v32 = vpop.f32.mrb[89].mxu1  ;;  %v3373_v36 = vadd.f32 %v8149_v25, %v7463_v26 }
0x1591   :  { %v8150_v34 = vpop.f32.mrb[90].mxu1  ;;  %v3365_v60 = vadd.f32 %v7463_v26, %v3364_v32 }
0x1592   :  { %v3376_v37 = vadd.f32 %v8150_v34, %v7463_v26  ;;  %v3367_v14 = vpop.f32.mrb[91].mxu1  ;;  %v9991_v7 = vpack.c.bf16 %v3373_v36, %v3373_v36 }
0x1593   :  { %v3368_v61 = vadd.f32 %v7463_v26, %v3367_v14 }
0x1594   :  { %v8648_v31 = vpack.i.bf16 %v3376_v37, %v3373_v36 }
0x1595   :  { %v8643_v38 = vpack.i.bf16 %v3368_v61, %v3365_v60  ;;  %v9960_v40 = vpack.c.bf16 %v3368_v61, %v3365_v60 }
0x1596   :  { %8156 = vmatmul.mubr.msk.bf16.gmra.mrb[96].mxu1 %vm244_vm1, %v3288_v39  ;;  %8649 = vrot.lane.b32.xlu0 %v8648_v31, %s9217_s21 }
0x1597   :  { %8644 = vrot.lane.b32.xlu1 %v8643_v38, %s9217_s21  ;;  %8163 = vmatprep.mubr.msk.bf16.mxu0 %vm591_vm3, %v9960_v40 }
0x1608   :  { %v8650_v16 = vpop.permute.xlu0 %8649 }
0x1609   :  { %v8645_v11 = vpop.permute.xlu1 %8644  ;;  %v8651_v19 = vunpack.i.l.bf16 %v8650_v16  ;;  %v8652_v23 = vunpack.i.h.bf16 %v8650_v16 }
0x160a   :  { %v8647_v10 = vunpack.i.h.bf16 %v8645_v11  ;;  %v8646_v62 = vunpack.i.l.bf16 %v8645_v11 }
0x160b   :  { %v10026_v21 = vpack.c.bf16 %v8651_v19, %v8651_v19 }
0x160c   :  { %v10021_v20 = vpack.c.bf16 %v8647_v10, %v8646_v62 }
0x1661   :  { %v8153_v63 = vpop.f32.mrb[92].mxu1 }
0x1662   :  { %v3380_v1 = vpop.f32.mrb[93].mxu1  ;;  %v3389_v48 = vadd.f32 %v8153_v63, %v7463_v26 }
0x1663   :  { %v3381_v41 = vadd.f32 %v7463_v26, %v3380_v1  ;;  %v8154_v43 = vpop.f32.mrb[94].mxu1 }
0x1664   :  { %v3392_v49 = vadd.f32 %v8154_v43, %v7463_v26  ;;  %v3383_v5 = vpop.f32.mrb[95].mxu1 }
0x1665   :  { %v3384_v52 = vadd.f32 %v7463_v26, %v3383_v5  ;;  %v9967_v27 = vpack.c.bf16 %v3381_v41, %v3376_v37 }
0x1666   :  { %v9969_v53 = vpack.i.bf16 %v3392_v49, %v3389_v48  ;;  %v9971_v8 = vpack.c.bf16 %v3392_v49, %v3389_v48 }
0x1667   :  { %8171 = vmatprep.mubr.msk.bf16.mxu1 %vm591_vm3, %v9967_v27  ;;  %v8653_v54 = vpack.i.bf16 %v3384_v52, %v3381_v41  ;;  %v9999_v6 = vpack.c.bf16 %v3384_v52, %v3384_v52 }
0x1669   :  { %v8157_v50 = vpop.f32.mrb[96].mxu1  ;;  %8654 = vrot.lane.b32.xlu1 %v8653_v54, %s9217_s21 }
0x166a   :  { %v3396_v51 = vpop.f32.mrb[97].mxu1  ;;  %v3405_v33 = vadd.f32 %v8157_v50, %v7463_v26 }
0x166b   :  { %v8158_v55 = vpop.f32.mrb[98].mxu1  ;;  %v3397_v59 = vadd.f32 %v7463_v26, %v3396_v51 }
0x166c   :  { %v3408_v56 = vadd.f32 %v8158_v55, %v7463_v26  ;;  %v3399_v58 = vpop.f32.mrb[99].mxu1 }
0x166d   :  { %v3400_v2 = vadd.f32 %v7463_v26, %v3399_v58  ;;  %8659 = vrot.lane.b32.xlu1 %v9969_v53, %s9217_s21  ;;  %v10005_v57 = vpack.c.bf16 %v3397_v59, %v3397_v59 }
0x166e   :  { %v9978_v4 = vpack.i.bf16 %v3408_v56, %v3405_v33  ;;  %v10015_v13 = vpack.c.bf16 %v3408_v56, %v3408_v56 }
0x166f   :  { %v9980_v46 = vpack.i.bf16 %v3400_v2, %v3397_v59  ;;  %v9982_v47 = vpack.c.bf16 %v3405_v33, %v3400_v2 }
0x1671   :  { %8669 = vrot.lane.b32.xlu0 %v9980_v46, %s9217_s21  ;;  %8664 = vrot.lane.b32.xlu1 %v9978_v4, %s9217_s21  ;;  %s7360_s21 = sld [smem:[%s11621_s0 + %s9257_s1]]  }
0x1675   :  { %8674 = vrot.lane.b32.xlu1 %v8643_v38, %s9219_s23  ;;  %3565 = vrot.lane.b32.xlu0 %v9960_v40, %s9218_s22 }
0x1679   :  { %3631 = vrot.lane.b32.xlu1 %v9967_v27, %s9218_s22  ;;  %3567 = vrot.lane.b32.xlu0 %v9991_v7, %s9218_s22 }
0x167d   :  { %8684 = vrot.lane.b32.xlu1 %v8653_v54, %s9219_s23  ;;  %8679 = vrot.lane.b32.xlu0 %v8648_v31, %s9219_s23 }
0x1681   :  { %3697 = vrot.lane.b32.xlu1 %v9971_v8, %s9218_s22  ;;  %3633 = vrot.lane.b32.xlu0 %v9999_v6, %s9218_s22 }
0x1685   :  { %3699 = vrot.lane.b32.xlu1 %v10005_v57, %s9218_s22  ;;  %8689 = vrot.lane.b32.xlu0 %v9969_v53, %s9219_s23 }
0x1689   :  { %8694 = vrot.lane.b32.xlu1 %v9980_v46, %s9219_s23  ;;  %3763 = vrot.lane.b32.xlu0 %v9982_v47, %s9218_s22 }
0x168d   :  { %3765 = vrot.lane.b32.xlu1 %v10015_v13, %s9218_s22  ;;  %8699 = vrot.lane.b32.xlu0 %v9978_v4, %s9219_s23 }
0x1691   :  { %8704 = vrot.lane.b32.xlu1 %v8643_v38, %s9216_s20  ;;  %3829 = vrot.lane.b32.xlu0 %v10021_v20, %s9218_s22 }
0x1695   :  { %3831 = vrot.lane.b32.xlu0 %v10026_v21, %s9218_s22 }
0x1699   :  { %8709 = vrot.lane.b32.xlu0 %v8648_v31, %s9216_s20 }
0x16db   :  { %v8655_v22 = vpop.permute.xlu1 %8654 }
0x16dc   :  { %v8657_v24 = vunpack.i.h.bf16 %v8655_v22  ;;  %v8656_v25 = vunpack.i.l.bf16 %v8655_v22 }
0x16de   :  { %v10031_v26 = vpack.c.bf16 %v8657_v24, %v8657_v24  ;;  %v10033_v32 = vpack.c.bf16 %v8656_v25, %v8652_v23 }
0x16df   :  { %v8660_v34 = vpop.permute.xlu1 %8659 }
0x16e0   :  { %3895 = vrot.lane.b32.xlu1 %v10033_v32, %s9218_s22  ;;  %3897 = vrot.lane.b32.xlu0 %v10031_v26, %s9218_s22  ;;  %v8662_v36 = vunpack.i.h.bf16 %v8660_v34  ;;  %v8661_v37 = vunpack.i.l.bf16 %v8660_v34 }
0x16e2   :  { %v10042_v31 = vpack.c.bf16 %v8662_v36, %v8661_v37 }
0x16e3   :  { %v8670_v14 = vpop.permute.xlu0 %8669  ;;  %v8665_v60 = vpop.permute.xlu1 %8664 }
0x16e4   :  { %v8672_v61 = vunpack.i.h.bf16 %v8670_v14  ;;  %v8666_v39 = vunpack.i.l.bf16 %v8665_v60  ;;  %8714 = vrot.lane.b32.xlu1 %v8653_v54, %s9216_s20  ;;  %8719 = vrot.lane.b32.xlu0 %v9969_v53, %s9216_s20  ;;  %v8671_v38 = vunpack.i.l.bf16 %v8670_v14  ;;  %v8667_v50 = vunpack.i.h.bf16 %v8665_v60 }
0x16e6   :  { %v10044_v63 = vpack.c.bf16 %v8666_v39, %v8672_v61  ;;  %v10052_v48 = vpack.c.bf16 %v8671_v38, %v8671_v38  ;;  %v10068_v2 = vpack.c.bf16 %v8667_v50, %v8667_v50 }
0x16e7   :  { %v8675_v1 = vpop.permute.xlu1 %8674  ;;  %v3566_v41 = vpop.permute.xlu0 %3565 }
0x16e8   :  { %3961 = vrot.lane.b32.xlu1 %v10042_v31, %s9218_s22  ;;  %4027 = vrot.lane.b32.xlu0 %v10044_v63, %s9218_s22  ;;  %v3576_v43 = vsel %vm591_vm3, %v3566_v41, 0  ;;  %v8677_v49 = vunpack.i.h.bf16 %v8675_v1  ;;  %v8676_v5 = vunpack.i.l.bf16 %v8675_v1 }
0x16e9   :  { %8475 = vmatprep.subr.msk.bf16.mxu0 %vm591_vm3, %v3566_v41 }
0x16ea   :  { %8160 = vmatpush3.bf16.xpose.msra.mxu0 %v3576_v43  ;;  %v10061_v51 = vpack.c.bf16 %v8677_v49, %v8676_v5 }
0x16eb   :  { %v3632_v52 = vpop.permute.xlu1 %3631  ;;  %v3568_v53 = vpop.permute.xlu0 %3567 }
0x16ec   :  { %8477 = vmatprep.subr.msk.bf16.mxu1 %vm591_vm3, %v3632_v52  ;;  %3963 = vrot.lane.b32.xlu1 %v10052_v48, %s9218_s22  ;;  %v3642_v54 = vsel %vm591_vm3, %v3632_v52, 0  ;;  %v3579_v59 = vsel %vm591_vm3, %v3568_v53, 0 }
0x16ed   :  { %8729 = vrot.lane.b32.xlu0 %v9978_v4, %s9216_s20  ;;  %8476 = vmatprep.subr.msk.bf16.mxu0 %vm591_vm3, %v3568_v53 }
0x16ee   :  { %8168 = vmatpush3.bf16.xpose.msra.mxu1 %v3642_v54 }
0x16ef   :  { %v8685_v55 = vpop.permute.xlu1 %8684  ;;  %v8680_v33 = vpop.permute.xlu0 %8679 }
0x16f0   :  { %v8686_v56 = vunpack.i.l.bf16 %v8685_v55  ;;  %v8682_v58 = vunpack.i.h.bf16 %v8680_v33  ;;  %8724 = vrot.lane.b32.xlu1 %v9980_v46, %s9216_s20  ;;  %v8681_v11 = vunpack.i.l.bf16 %v8680_v33  ;;  %v8687_v19 = vunpack.i.h.bf16 %v8685_v55  ;;  %s9250_s20 = smov 44  }
0x16f1   :  { %4093 = vrot.lane.b32.xlu0 %v10061_v51, %s9218_s22  ;;  %s7357_s23 = sld [smem:[%s11621_s0 + %s9250_s20]]  }
0x16f2   :  { %v10070_v4 = vpack.c.bf16 %v8686_v56, %v8682_v58  ;;  %8162 = vmatpush3.bf16.xpose.msra.mxu0 %v3579_v59  ;;  %v10079_v16 = vpack.c.bf16 %v8681_v11, %v8681_v11  ;;  %v10090_v37 = vpack.c.bf16 %v8687_v19, %v8687_v19 }
0x16f3   :  { %v3698_v10 = vpop.permute.xlu1 %3697  ;;  %v3634_v62 = vpop.permute.xlu0 %3633 }
0x16f4   :  { %4029 = vrot.lane.b32.xlu1 %v10068_v2, %s9218_s22  ;;  %8478 = vmatprep.subr.msk.bf16.mxu1 %vm591_vm3, %v3634_v62  ;;  %v3645_v46 = vsel %vm591_vm3, %v3634_v62, 0  ;;  %v3708_v34 = vsel %vm591_vm3, %v3698_v10, 0 }
0x16f5   :  { %8479 = vmatprep.subr.msk.bf16.mxu0 %vm591_vm3, %v3698_v10  ;;  %4159 = vrot.lane.b32.xlu0 %v10070_v4, %s9218_s22 }
0x16f6   :  { %8170 = vmatpush3.bf16.xpose.msra.mxu1 %v3645_v46 }
0x16f7   :  { %v3700_v22 = vpop.permute.xlu1 %3699  ;;  %v8690_v23 = vpop.permute.xlu0 %8689 }
0x16f8   :  { %v8692_v24 = vunpack.i.h.bf16 %v8690_v23  ;;  %v8691_v25 = vunpack.i.l.bf16 %v8690_v23  ;;  %4095 = vrot.lane.b32.xlu1 %v10079_v16, %s9218_s22  ;;  %v3711_v52 = vsel %vm591_vm3, %v3700_v22, 0 }
0x16f9   :  { %8164 = vmatmul.mubr.msk.bf16.vlgmr.msra.gmra.mrb[92].mxu0 %vm591_vm3, %v9991_v7 }
0x16fa   :  { %v10086_v36 = vpack.c.bf16 %v8692_v24, %v8691_v25  ;;  %8176 = vmatpush3.bf16.xpose.msra.mxu0 %v3708_v34  ;;  %8179 = vmatprep.mubr.msk.bf16.mxu0 %vm591_vm3, %v9971_v8 }
0x16fb   :  { %8480 = vmatprep.subr.msk.bf16.mxu0 %vm591_vm3, %v3700_v22  ;;  %v8695_v14 = vpop.permute.xlu1 %8694  ;;  %v3764_v60 = vpop.permute.xlu0 %3763 }
0x16fc   :  { %v8696_v61 = vunpack.i.l.bf16 %v8695_v14  ;;  %8481 = vmatprep.subr.msk.bf16.mxu1 %vm591_vm3, %v3764_v60  ;;  %4225 = vrot.lane.b32.xlu0 %v10086_v36, %s9218_s22  ;;  %v3774_v39 = vsel %vm591_vm3, %v3764_v60, 0  ;;  %v8697_v43 = vunpack.i.h.bf16 %v8695_v14 }
0x16fd   :  { %8172 = vmatmul.mubr.msk.bf16.vlgmr.msra.gmra.mrb[100].mxu1 %vm591_vm3, %v9999_v6  ;;  %4161 = vrot.lane.b32.xlu1 %v10090_v37, %s9218_s22 }
0x16fe   :  { %v10101_v38 = vpack.c.bf16 %v8696_v61, %v8696_v61  ;;  %8184 = vmatpush3.bf16.xpose.msra.mxu1 %v3774_v39  ;;  %8187 = vmatprep.mubr.msk.bf16.mxu1 %vm591_vm3, %v9982_v47 }
0x16ff   :  { %v3766_v1 = vpop.permute.xlu1 %3765  ;;  %v8700_v41 = vpop.permute.xlu0 %8699 }
0x1700   :  { %v8702_v49 = vunpack.i.h.bf16 %v8700_v41  ;;  %v8701_v5 = vunpack.i.l.bf16 %v8700_v41  ;;  %8482 = vmatprep.subr.msk.bf16.mxu1 %vm591_vm3, %v3766_v1  ;;  %v3777_v58 = vsel %vm591_vm3, %v3766_v1, 0 }
0x1701   :  { %4227 = vrot.lane.b32.xlu1 %v10101_v38, %s9218_s22 }
0x1702   :  { %v10109_v53 = vpack.c.bf16 %v8702_v49, %v8702_v49  ;;  %v10111_v54 = vpack.c.bf16 %v8701_v5, %v8697_v43  ;;  %8178 = vmatpush3.bf16.xpose.msra.mxu0 %v3711_v52 }
0x1703   :  { %v8705_v50 = vpop.permute.xlu1 %8704  ;;  %v3830_v55 = vpop.permute.xlu0 %3829 }
0x1704   :  { %v8707_v33 = vunpack.i.h.bf16 %v8705_v50  ;;  %v8706_v56 = vunpack.i.l.bf16 %v8705_v50  ;;  %4291 = vrot.lane.b32.xlu0 %v10111_v54, %s9218_s22  ;;  %8483 = vmatprep.subr.msk.bf16.mxu0 %vm591_vm3, %v3830_v55  ;;  %v3840_v10 = vsel %vm591_vm3, %v3830_v55, 0 }
0x1705   :  { %4293 = vrot.lane.b32.xlu1 %v10109_v53, %s9218_s22 }
0x1706   :  { %v10119_v59 = vpack.c.bf16 %v8707_v33, %v8706_v56  ;;  %8186 = vmatpush3.bf16.xpose.msra.mxu1 %v3777_v58 }
0x1707   :  { %v3832_v11 = vpop.permute.xlu0 %3831 }
0x1708   :  { %4357 = vrot.lane.b32.xlu0 %v10119_v59, %s9218_s22  ;;  %v3843_v22 = vsel %vm591_vm3, %v3832_v11, 0 }
0x1709   :  { %8180 = vmatmul.mubr.msk.bf16.vlgmr.msra.gmra.mrb[96].mxu0 %vm591_vm3, %v10005_v57 }
0x170a   :  { %8192 = vmatpush3.bf16.xpose.msra.mxu0 %v3840_v10  ;;  %8195 = vmatprep.mubr.msk.bf16.mxu0 %vm591_vm3, %v10021_v20 }
0x170b   :  { %8484 = vmatprep.subr.msk.bf16.mxu0 %vm591_vm3, %v3832_v11  ;;  %v8710_v62 = vpop.permute.xlu0 %8709 }
0x170c   :  { %v8711_v46 = vunpack.i.l.bf16 %v8710_v62  ;;  %v8712_v60 = vunpack.i.h.bf16 %v8710_v62 }
0x170d   :  { %8188 = vmatmul.mubr.msk.bf16.vlgmr.msra.gmra.mrb[104].mxu1 %vm591_vm3, %v10015_v13 }
0x170e   :  { %v10131_v19 = vpack.c.bf16 %v8711_v46, %v8711_v46  ;;  %8203 = vmatprep.mubr.msk.bf16.mxu1 %vm591_vm3, %v10033_v32 }
0x1710   :  { %4359 = vrot.lane.b32.xlu1 %v10131_v19, %s9218_s22 }
0x1712   :  { %8194 = vmatpush3.bf16.xpose.msra.mxu0 %v3843_v22 }
0x1719   :  { %8196 = vmatmul.mubr.msk.bf16.vlgmr.msra.gmra.mrb[100].mxu0 %vm591_vm3, %v10026_v21 }
0x171a   :  { %8211 = vmatprep.mubr.msk.bf16.mxu0 %vm591_vm3, %v10042_v31 }
0x1752   :  { %v3896_v23 = vpop.permute.xlu1 %3895  ;;  %v3898_v24 = vpop.permute.xlu0 %3897 }
0x1753   :  { %8485 = vmatprep.subr.msk.bf16.mxu1 %vm591_vm3, %v3896_v23  ;;  %v3906_v25 = vsel %vm591_vm3, %v3896_v23, 0  ;;  %v3909_v50 = vsel %vm591_vm3, %v3898_v24, 0 }
0x1754   :  { %8200 = vmatpush3.bf16.xpose.msra.mxu1 %v3906_v25 }
0x1755   :  { %8486 = vmatprep.subr.msk.bf16.mxu1 %vm591_vm3, %v3898_v24 }
0x1756   :  { %v8715_v34 = vpop.permute.xlu1 %8714  ;;  %v8720_v14 = vpop.permute.xlu0 %8719 }
0x1757   :  { %v8717_v61 = vunpack.i.h.bf16 %v8715_v34  ;;  %v8716_v39 = vunpack.i.l.bf16 %v8715_v34  ;;  %v8722_v43 = vunpack.i.h.bf16 %v8720_v14  ;;  %v8721_v49 = vunpack.i.l.bf16 %v8720_v14 }
0x1759   :  { %v10145_v1 = vpack.c.bf16 %v8717_v61, %v8717_v61  ;;  %v10147_v41 = vpack.c.bf16 %v8716_v39, %v8712_v60  ;;  %v10156_v33 = vpack.c.bf16 %v8722_v43, %v8721_v49 }
0x175a   :  { %v3962_v5 = vpop.permute.xlu1 %3961  ;;  %v4028_v52 = vpop.permute.xlu0 %4027 }
0x175b   :  { %4423 = vrot.lane.b32.xlu0 %v10147_v41, %s9218_s22  ;;  %4425 = vrot.lane.b32.xlu1 %v10145_v1, %s9218_s22  ;;  %v3972_v55 = vsel %vm591_vm3, %v3962_v5, 0  ;;  %v4038_v22 = vsel %vm591_vm3, %v4028_v52, 0 }
0x175c   :  { %8487 = vmatprep.subr.msk.bf16.mxu0 %vm591_vm3, %v3962_v5  ;;  %8202 = vmatpush3.bf16.xpose.msra.mxu1 %v3909_v50 }
0x175d   :  { %8208 = vmatpush3.bf16.xpose.msra.mxu0 %v3972_v55  ;;  %8489 = vmatprep.subr.msk.bf16.mxu1 %vm591_vm3, %v4028_v52 }
0x175e   :  { %v3964_v56 = vpop.permute.xlu1 %3963 }
0x175f   :  { %v8730_v58 = vpop.permute.xlu0 %8729  ;;  %4489 = vrot.lane.b32.xlu0 %v10156_v33, %s9218_s22  ;;  %8488 = vmatprep.subr.msk.bf16.mxu0 %vm591_vm3, %v3964_v56  ;;  %v3975_v23 = vsel %vm591_vm3, %v3964_v56, 0 }
0x1760   :  { %v8731_v10 = vunpack.i.l.bf16 %v8730_v58  ;;  %v8732_v14 = vunpack.i.h.bf16 %v8730_v58 }
0x1762   :  { %v8725_v11 = vpop.permute.xlu1 %8724  ;;  %v10178_v61 = vpack.c.bf16 %v8732_v14, %v8732_v14 }
0x1763   :  { %v8727_v62 = vunpack.i.h.bf16 %v8725_v11  ;;  %v8726_v46 = vunpack.i.l.bf16 %v8725_v11  ;;  %8204 = vmatmul.mubr.msk.bf16.vlgmr.msra.gmra.mrb[108].mxu1 %vm591_vm3, %v10031_v26  ;;  %v4094_v34 = vpop.permute.xlu0 %4093 }
0x1764   :  { %8216 = vmatpush3.bf16.xpose.msra.mxu1 %v4038_v22  ;;  %8219 = vmatprep.mubr.msk.bf16.mxu1 %vm591_vm3, %v10044_v63  ;;  %11678 = vst [vmem:[#allocation15_spill] sm:$0xff] %v10178_v61  ;;  %v4104_v43 = vsel %vm591_vm3, %v4094_v34, 0 }
0x1765   :  { %v10168_v24 = vpack.c.bf16 %v8726_v46, %v8726_v46  ;;  %v10170_v25 = vpack.c.bf16 %v8731_v10, %v8727_v62  ;;  %8210 = vmatpush3.bf16.xpose.msra.mxu0 %v3975_v23 }
0x1766   :  { %8491 = vmatprep.subr.msk.bf16.mxu0 %vm591_vm3, %v4094_v34  ;;  %v4030_v60 = vpop.permute.xlu1 %4029 }
0x1767   :  { %11677 = vst [vmem:[#allocation14_spill] sm:$0xff] %v10170_v25  ;;  %8490 = vmatprep.subr.msk.bf16.mxu1 %vm591_vm3, %v4030_v60  ;;  %4555 = vrot.lane.b32.xlu0 %v10170_v25, %s9218_s22  ;;  %v4041_v39 = vsel %vm591_vm3, %v4030_v60, 0  ;;  %v4160_v5 = vpop.permute.xlu0 %4159 }
0x1768   :  { %4491 = vrot.lane.b32.xlu1 %v10168_v24, %s9218_s22  ;;  %v4170_v52 = vsel %vm591_vm3, %v4160_v5, 0 }
0x176a   :  { %v4096_v49 = vpop.permute.xlu1 %4095 }
0x176b   :  { %5278 = vrot.lane.b32.xlu0 %v9960_v40, %s9220_s24  ;;  %v4107_v40 = vsel %vm591_vm3, %v4096_v49, 0 }
0x176c   :  { %4557 = vrot.lane.b32.xlu1 %v10178_v61, %s9218_s22  ;;  %8212 = vmatmul.mubr.msk.bf16.vlgmr.msra.gmra.mrb[104].mxu0 %vm591_vm3, %v10052_v48  ;;  %s9258_s22 = smov 40  }
0x176d   :  { %8218 = vmatpush3.bf16.xpose.msra.mxu1 %v4041_v39  ;;  %8224 = vmatpush3.bf16.xpose.msra.mxu0 %v4104_v43 }
0x176e   :  { %8227 = vmatprep.mubr.msk.bf16.mxu0 %vm591_vm3, %v10061_v51  ;;  %8492 = vmatprep.subr.msk.bf16.mxu0 %vm591_vm3, %v4096_v49 }
0x176f   :  { %8493 = vmatprep.subr.msk.bf16.mxu1 %vm591_vm3, %v4160_v5  ;;  %5340 = vrot.lane.b32.xlu0 %v9967_v27, %s9220_s24  ;;  %v4162_v50 = vpop.permute.xlu1 %4161  ;;  %v4226_v27 = vpop.permute.xlu0 %4225 }
0x1770   :  { %5280 = vrot.lane.b32.xlu1 %v9991_v7, %s9220_s24  ;;  %v4236_v7 = vsel %vm591_vm3, %v4226_v27, 0 }
0x1773   :  { %5402 = vrot.lane.b32.xlu0 %v9971_v8, %s9220_s24  ;;  %v4173_v8 = vsel %vm591_vm3, %v4162_v50, 0 }
0x1774   :  { %8220 = vmatmul.mubr.msk.bf16.vlgmr.msra.gmra.mrb[112].mxu1 %vm591_vm3, %v10068_v2  ;;  %5342 = vrot.lane.b32.xlu1 %v9999_v6, %s9220_s24  ;;  %v4228_v6 = vpop.permute.xlu1 %4227 }
0x1775   :  { %8226 = vmatpush3.bf16.xpose.msra.mxu0 %v4107_v40  ;;  %8232 = vmatpush3.bf16.xpose.msra.mxu1 %v4170_v52 }
0x1776   :  { %8235 = vmatprep.mubr.msk.bf16.mxu1 %vm591_vm3, %v10070_v4  ;;  %8494 = vmatprep.subr.msk.bf16.mxu1 %vm591_vm3, %v4162_v50 }
0x1777   :  { %8495 = vmatprep.subr.msk.bf16.mxu0 %vm591_vm3, %v4226_v27  ;;  %5464 = vrot.lane.b32.xlu0 %v9982_v47, %s9220_s24  ;;  %v4292_v47 = vpop.permute.xlu0 %4291 }
0x1778   :  { %5404 = vrot.lane.b32.xlu1 %v10005_v57, %s9220_s24  ;;  %v4239_v57 = vsel %vm591_vm3, %v4228_v6, 0 }
0x177b   :  { %5466 = vrot.lane.b32.xlu0 %v10015_v13, %s9220_s24  ;;  %v4302_v13 = vsel %vm591_vm3, %v4292_v47, 0 }
0x177c   :  { %5526 = vrot.lane.b32.xlu1 %v10021_v20, %s9220_s24  ;;  %8228 = vmatmul.mubr.msk.bf16.vlgmr.msra.gmra.mrb[108].mxu0 %vm591_vm3, %v10079_v16  ;;  %v4294_v20 = vpop.permute.xlu1 %4293 }
0x177d   :  { %8234 = vmatpush3.bf16.xpose.msra.mxu1 %v4173_v8  ;;  %8240 = vmatpush3.bf16.xpose.msra.mxu0 %v4236_v7 }
0x177e   :  { %8243 = vmatprep.mubr.msk.bf16.mxu0 %vm591_vm3, %v10086_v36  ;;  %8496 = vmatprep.subr.msk.bf16.mxu0 %vm591_vm3, %v4228_v6 }
0x177f   :  { %8497 = vmatprep.subr.msk.bf16.mxu1 %vm591_vm3, %v4292_v47  ;;  %5588 = vrot.lane.b32.xlu0 %v10033_v32, %s9220_s24  ;;  %v4358_v32 = vpop.permute.xlu0 %4357 }
0x1780   :  { %5528 = vrot.lane.b32.xlu1 %v10026_v21, %s9220_s24  ;;  %v4305_v21 = vsel %vm591_vm3, %v4294_v20, 0 }
0x1783   :  { %5590 = vrot.lane.b32.xlu0 %v10031_v26, %s9220_s24  ;;  %v4368_v26 = vsel %vm591_vm3, %v4358_v32, 0 }
0x1784   :  { %5650 = vrot.lane.b32.xlu1 %v10042_v31, %s9220_s24  ;;  %8236 = vmatmul.mubr.msk.bf16.vlgmr.msra.gmra.mrb[116].mxu1 %vm591_vm3, %v10090_v37  ;;  %v4360_v31 = vpop.permute.xlu1 %4359 }
0x1785   :  { %8242 = vmatpush3.bf16.xpose.msra.mxu0 %v4239_v57  ;;  %8248 = vmatpush3.bf16.xpose.msra.mxu1 %v4302_v13 }
0x1786   :  { %8251 = vmatprep.mubr.msk.bf16.mxu1 %vm591_vm3, %v10111_v54  ;;  %8498 = vmatprep.subr.msk.bf16.mxu1 %vm591_vm3, %v4294_v20 }
0x1787   :  { %8499 = vmatprep.subr.msk.bf16.mxu0 %vm591_vm3, %v4358_v32  ;;  %5652 = vrot.lane.b32.xlu0 %v10052_v48, %s9220_s24  ;;  %v4371_v48 = vsel %vm591_vm3, %v4360_v31, 0 }
0x1788   :  { %5774 = vrot.lane.b32.xlu1 %v10061_v51, %s9220_s24  ;;  %v10287_v51 = vand.u32 127, %v3251_v30 }
0x178a   :  { %vm4669_vm7 = vcmp.lt.s32.totalorder %v10287_v51, 17 }
0x178b   :  { %5714 = vrot.lane.b32.xlu0 %v10068_v2, %s9220_s24 }
0x178c   :  { %5776 = vrot.lane.b32.xlu1 %v10079_v16, %s9220_s24  ;;  %8244 = vmatmul.mubr.msk.bf16.vlgmr.msra.gmra.mrb[112].mxu0 %vm591_vm3, %v10101_v38 }
0x178d   :  { %8250 = vmatpush3.bf16.xpose.msra.mxu1 %v4305_v21  ;;  %8256 = vmatpush3.bf16.xpose.msra.mxu0 %v4368_v26 }
0x178e   :  { %8259 = vmatprep.mubr.msk.bf16.mxu0 %vm591_vm3, %v10119_v59  ;;  %8500 = vmatprep.subr.msk.bf16.mxu0 %vm591_vm3, %v4360_v31 }
0x178f   :  { %5836 = vrot.lane.b32.xlu0 %v10070_v4, %s9220_s24 }
0x1790   :  { %5898 = vrot.lane.b32.xlu1 %v10086_v36, %s9220_s24 }
0x1793   :  { %5838 = vrot.lane.b32.xlu0 %v10090_v37, %s9220_s24 }
0x1794   :  { %5900 = vrot.lane.b32.xlu1 %v10101_v38, %s9220_s24  ;;  %8252 = vmatmul.mubr.msk.bf16.vlgmr.msra.gmra.mrb[120].mxu1 %vm591_vm3, %v10109_v53 }
0x1795   :  { %8258 = vmatpush3.bf16.xpose.msra.mxu0 %v4371_v48  ;;  %8267 = vmatprep.mubr.msk.bf16.mxu1 %vm591_vm3, %v10147_v41 }
0x1797   :  { %5962 = vrot.lane.b32.xlu0 %v10109_v53, %s9220_s24 }
0x1798   :  { %6084 = vrot.lane.b32.xlu1 %v10147_v41, %s9220_s24 }
0x179b   :  { %6022 = vrot.lane.b32.xlu0 %v10119_v59, %s9220_s24 }
0x179c   :  { %6086 = vrot.lane.b32.xlu1 %v10145_v1, %s9220_s24  ;;  %8260 = vmatmul.mubr.msk.bf16.vlgmr.msra.gmra.mrb[116].mxu0 %vm591_vm3, %v10131_v19 }
0x179d   :  { %8275 = vmatprep.mubr.msk.bf16.mxu0 %vm591_vm3, %v10156_v33 }
0x179f   :  { %6024 = vrot.lane.b32.xlu0 %v10131_v19, %s9220_s24 }
0x17a0   :  { %5712 = vrot.lane.b32.xlu1 %v10044_v63, %s9220_s24 }
0x17a3   :  { %5960 = vrot.lane.b32.xlu0 %v10111_v54, %s9220_s24 }
0x17cc   :  { %v8165_v2 = vpop.f32.mrb[92].mxu0 }
0x17cd   :  { %v4621_v4 = vmul.f32 0.35355338, %v8165_v2  ;;  %v3615_v16 = vpop.f32.mrb[93].mxu0  ;;  %v4424_v36 = vpop.permute.xlu0 %4423 }
0x17ce   :  { %v4619_v37 = vmul.f32 0.35355338, %v3615_v16  ;;  %v8166_v38 = vpop.f32.mrb[94].mxu0  ;;  %8501 = vmatprep.subr.msk.bf16.mxu1 %vm591_vm3, %v4424_v36  ;;  %v4434_v53 = vsel %vm591_vm3, %v4424_v36, 0  ;;  %v4426_v54 = vpop.permute.xlu1 %4425 }
0x17cf   :  { %v10294_v63 = vsel %vm4669_vm7, %v4621_v4, -1e+30  ;;  %v3618_v59 = vpop.f32.mrb[95].mxu0  ;;  %8264 = vmatpush3.bf16.xpose.msra.mxu1 %v4434_v53  ;;  %v4437_v34 = vsel %vm591_vm3, %v4426_v54, 0 }
0x17d0   :  { %v4620_v30 = vmul.f32 0.35355338, %v3618_v59  ;;  %v10296_v19 = vpop.f32.mrb[100].mxu1  ;;  %8502 = vmatprep.subr.msk.bf16.mxu1 %vm591_vm3, %v4426_v54  ;;  %v4724_v41 = vsel %vm1498_vm5, %v10294_v63, -inf  ;;  %v10303_v55 = vsel %vm4669_vm7, %v4619_v37, -1e+30 }
0x17d1   :  { %v10305_v56 = vpop.f32.mrb[101].mxu1  ;;  %4725 = vmax.xlane.f32.xlu0 %v4724_v41  ;;  %v4490_v58 = vpop.permute.xlu0 %4489  ;;  %v4718_v23 = vsel %vm1498_vm5, %v10303_v55, -inf }
0x17d2   :  { %v10309_v11 = vsel %vm4669_vm7, %v4620_v30, -1e+30  ;;  %v8174_v10 = vpop.f32.mrb[102].mxu1  ;;  %8503 = vmatprep.subr.msk.bf16.mxu0 %vm591_vm3, %v4490_v58  ;;  %v4500_v62 = vsel %vm591_vm3, %v4490_v58, 0 }
0x17d3   :  { %v10313_v46 = vpop.f32.mrb[103].mxu1  ;;  %8272 = vmatpush3.bf16.xpose.msra.mxu0 %v4500_v62  ;;  %v4721_v22 = vsel %vm1498_vm5, %v10309_v11, -inf }
0x17d4   :  { %4722 = vmax.xlane.f32.xlu1 %v4721_v22 }
0x17d5   :  { %4719 = vmax.xlane.f32.xlu0 %v4718_v23 }
0x17d7   :  { %8266 = vmatpush3.bf16.xpose.msra.mxu1 %v4437_v34 }
0x17d9   :  { %v4556_v14 = vpop.permute.xlu0 %4555 }
0x17da   :  { %v4492_v60 = vpop.permute.xlu1 %4491  ;;  %8505 = vmatprep.subr.msk.bf16.mxu1 %vm591_vm3, %v4556_v14  ;;  %v4566_v50 = vsel %vm591_vm3, %v4556_v14, 0 }
0x17db   :  { %8504 = vmatprep.subr.msk.bf16.mxu0 %vm591_vm3, %v4492_v60  ;;  %v4503_v39 = vsel %vm591_vm3, %v4492_v60, 0 }
0x17dc   :  { %v10323_v43 = vpop.f32.mrb[96].mxu0  ;;  %8274 = vmatpush3.bf16.xpose.msra.mxu0 %v4503_v39 }
0x17dd   :  { %v10325_v49 = vpop.f32.mrb[97].mxu0  ;;  %v5279_v5 = vpop.permute.xlu0 %5278 }
0x17de   :  { %v4558_v40 = vpop.permute.xlu1 %4557  ;;  %v8182_v52 = vpop.f32.mrb[98].mxu0  ;;  %8268 = vmatmul.mubr.msk.bf16.vlgmr.msra.gmra.mrb[124].mxu1 %vm591_vm3, %v10145_v1  ;;  %8287 = vmatprep.subr.bf16.mxu0 %v5279_v5 }
0x17df   :  { %v10330_v27 = vpop.f32.mrb[99].mxu0  ;;  %8280 = vmatpush3.bf16.xpose.msra.mxu1 %v4566_v50  ;;  %8283 = vmatprep.mubr.msk.bf16.mxu1 %vm591_vm3, %v10170_v25  ;;  %v4569_v13 = vsel %vm591_vm3, %v4558_v40, 0 }
0x17e0   :  { %v10334_v8 = vpop.f32.mrb[104].mxu1  ;;  %8506 = vmatprep.subr.msk.bf16.mxu1 %vm591_vm3, %v4558_v40 }
0x17e1   :  { %v10337_v7 = vpop.f32.mrb[105].mxu1  ;;  %v10339_v6 = vpop.permute.xlu0 %5340 }
0x17e2   :  { %v8190_v47 = vpop.f32.mrb[106].mxu1  ;;  %v5281_v57 = vpop.permute.xlu1 %5280 }
0x17e3   :  { %v10341_v1 = vpop.f32.mrb[107].mxu1  ;;  %8276 = vmatmul.mubr.msk.bf16.vlgmr.msra.gmra.mrb[120].mxu0 %vm591_vm3, %v10168_v24  ;;  %v5290_v21 = vsel %vm1090_vm4, %v5281_v57, 0 }
0x17e4   :  { %8288 = vmatpush3.bf16.msra.mxu0 %v5279_v5 }
0x17e5   :  { %8507 = vmatprep.subr.msk.bf16.mxu0 %vm1090_vm4, %v5281_v57  ;;  %v5403_v20 = vpop.permute.xlu0 %5402 }
0x17e6   :  { %v10347_v32 = vpop.permute.xlu1 %5342 }
0x17e7   :  { %8282 = vmatpush3.bf16.xpose.msra.mxu1 %v4569_v13 }
0x17e8   :  { %8290 = vmatpush3.bf16.msra.mxu0 %v5290_v21  ;;  %8303 = vmatprep.subr.bf16.mxu1 %v5403_v20 }
0x17e9   :  { %8295 = vmatprep.subr.bf16.mxu0 %v10339_v6  ;;  %v10364_v37 = vpop.permute.xlu0 %5464 }
0x17ea   :  { %v5405_v31 = vpop.permute.xlu1 %5404 }
0x17eb   :  { %v5414_v16 = vsel %vm1090_vm4, %v5405_v31, 0 }
0x17ec   :  { %v10351_v26 = vpop.f32.mrb[100].mxu0 }
0x17ed   :  { %v10353_v48 = vpop.f32.mrb[101].mxu0  ;;  %v10366_v38 = vpop.permute.xlu0 %5466 }
0x17ee   :  { %v8198_v2 = vpop.f32.mrb[102].mxu0  ;;  %8284 = vmatmul.mubr.msk.bf16.vlgmr.msra.gmra.mrb[128].mxu1 %vm591_vm3, %v10178_v61  ;;  %v10361_v36 = vpop.permute.xlu1 %5526  ;;  %11680 = vst [vmem:[#allocation17_spill] sm:$0xff] %v10366_v38 }
0x17ef   :  { %v10357_v4 = vpop.f32.mrb[103].mxu0  ;;  %8304 = vmatpush3.bf16.msra.mxu1 %v5403_v20  ;;  %11679 = vst [vmem:[#allocation16_spill] sm:$0xff] %v10361_v36 }
0x17f0   :  { %8509 = vmatprep.subr.msk.bf16.mxu1 %vm1090_vm4, %v5405_v31 }
0x17f1   :  { %v10368_v53 = vpop.permute.xlu0 %5588 }
0x17f2   :  { %11681 = vst [vmem:[#allocation18_spill] sm:$0xff] %v10368_v53  ;;  %v10372_v59 = vpop.permute.xlu1 %5528 }
0x17f3   :  { %8306 = vmatpush3.bf16.msra.mxu1 %v5414_v16  ;;  %11683 = vst [vmem:[#allocation20_spill] sm:$0xff] %v10372_v59 }
0x17f4   :  { %8319 = vmatprep.subr.bf16.mxu1 %v10361_v36 }
0x17f5   :  { %v10370_v54 = vpop.permute.xlu0 %5590 }
0x17f6   :  { %11682 = vst [vmem:[#allocation19_spill] sm:$0xff] %v10370_v54  ;;  %v10376_v41 = vpop.permute.xlu1 %5650 }
0x17f7   :  { %11685 = vst [vmem:[#allocation22_spill] sm:$0xff] %v10376_v41 }
0x17f9   :  { %v10374_v30 = vpop.permute.xlu0 %5652 }
0x17fa   :  { %11684 = vst [vmem:[#allocation21_spill] sm:$0xff] %v10374_v30  ;;  %v10384_v23 = vpop.permute.xlu1 %5774 }
0x17fb   :  { %11687 = vst [vmem:[#allocation24_spill] sm:$0xff] %v10384_v23 }
0x17fd   :  { %v10378_v58 = vpop.permute.xlu0 %5714 }
0x17fe   :  { %11686 = vst [vmem:[#allocation23_spill] sm:$0xff] %v10378_v58  ;;  %v10390_v60 = vpop.permute.xlu1 %5776  ;;  %v4623_v58 = vmul.f32 0.35355338, %v10313_v46 }
0x17ff   :  { %11689 = vst [vmem:[#allocation26_spill] sm:$0xff] %v10390_v60 }
0x1800   :  { %v10506_v46 = vsel %vm4669_vm7, %v4623_v58, -1e+30 }
0x1801   :  { %v10388_v14 = vpop.permute.xlu0 %5836 }
0x1802   :  { %11688 = vst [vmem:[#allocation25_spill] sm:$0xff] %v10388_v14  ;;  %v10400_v47 = vpop.permute.xlu1 %5898 }
0x1803   :  { %11691 = vst [vmem:[#allocation28_spill] sm:$0xff] %v10400_v47 }
0x1805   :  { %v10396_v52 = vpop.permute.xlu0 %5838 }
0x1806   :  { %11690 = vst [vmem:[#allocation27_spill] sm:$0xff] %v10396_v52  ;;  %v10410_v2 = vpop.permute.xlu1 %5900 }
0x1807   :  { %11693 = vst [vmem:[#allocation30_spill] sm:$0xff] %v10410_v2 }
0x1809   :  { %v10404_v13 = vpop.permute.xlu0 %5962 }
0x180a   :  { %11692 = vst [vmem:[#allocation29_spill] sm:$0xff] %v10404_v13  ;;  %v10418_v0 = vpop.permute.xlu1 %6084 }
0x180b   :  { %11695 = vst [vmem:[#allocation32_spill] sm:$0xff] %v10418_v0 }
0x180d   :  { %v10412_v16 = vpop.permute.xlu0 %6022 }
0x180e   :  { %11694 = vst [vmem:[#allocation31_spill] sm:$0xff] %v10412_v16  ;;  %v10424_v28 = vpop.permute.xlu1 %6086 }
0x180f   :  { %11697 = vst [vmem:[#allocation34_spill] sm:$0xff] %v10424_v28 }
0x1811   :  { %v10422_v12 = vpop.permute.xlu0 %6024 }
0x1812   :  { %11696 = vst [vmem:[#allocation33_spill] sm:$0xff] %v10422_v12  ;;  %v10434_v42 = vpop.permute.xlu1 %5712 }
0x1813   :  { %11699 = vst [vmem:[#allocation36_spill] sm:$0xff] %v10434_v42 }
0x1815   :  { %v10430_v35 = vpop.permute.xlu0 %5960 }
0x1816   :  { %11698 = vst [vmem:[#allocation35_spill] sm:$0xff] %v10430_v35 }
0x1836   :  { %v10380_v10 = vpop.f32.mrb[108].mxu1 }
0x1837   :  { %v10382_v62 = vpop.f32.mrb[109].mxu1 }
0x1838   :  { %v8206_v22 = vpop.f32.mrb[110].mxu1 }
0x1839   :  { %v10386_v34 = vpop.f32.mrb[111].mxu1 }
0x183f   :  { %v10392_v39 = vpop.f32.mrb[104].mxu0 }
0x1840   :  { %v10394_v5 = vpop.f32.mrb[105].mxu0 }
0x1841   :  { %v8214_v40 = vpop.f32.mrb[106].mxu0 }
0x1842   :  { %v10398_v50 = vpop.f32.mrb[107].mxu0 }
0x1847   :  { %v10402_v57 = vpop.f32.mrb[112].mxu1 }
0x1848   :  { %v10406_v20 = vpop.f32.mrb[113].mxu1 }
0x1849   :  { %v8222_v21 = vpop.f32.mrb[114].mxu1 }
0x184a   :  { %v10408_v31 = vpop.f32.mrb[115].mxu1 }
0x184f   :  { %v10414_v22 = vpop.f32.mrb[108].mxu0 }
0x1850   :  { %v10416_v40 = vpop.f32.mrb[109].mxu0 }
0x1851   :  { %v8230_v15 = vpop.f32.mrb[110].mxu0 }
0x1852   :  { %v10420_v9 = vpop.f32.mrb[111].mxu0 }
0x1857   :  { %v10426_v21 = vpop.f32.mrb[116].mxu1 }
0x1858   :  { %v10428_v3 = vpop.f32.mrb[117].mxu1 }
0x1859   :  { %v8238_v18 = vpop.f32.mrb[118].mxu1 }
0x185a   :  { %v10432_v17 = vpop.f32.mrb[119].mxu1 }
0x185e   :  { %v4726_v45 = vpop.xlane.xlu0 %4725 }
0x185f   :  { %v4864_v15 = vsub.f32 %v10294_v63, %v4726_v45  ;;  %v10437_v44 = vpop.f32.mrb[112].mxu0 }
0x1860   :  { %v10439_v29 = vpop.f32.mrb[113].mxu0 }
0x1861   :  { %v4914_v0 = vmul.f32 1.442695, %v4864_v15  ;;  %v4723_v28 = vpop.xlane.xlu1 %4722  ;;  %v8246_v12 = vpop.f32.mrb[114].mxu0 }
0x1862   :  { %v4863_v16 = vsub.f32 %v10309_v11, %v4723_v28  ;;  %v4720_v13 = vpop.xlane.xlu0 %4719  ;;  %v10442_v18 = vpop.f32.mrb[115].mxu0  ;;  %v4624_v28 = vmul.f32 0.35355338, %v10296_v19 }
0x1863   :  { %8955 = vpow2.f32 %v4914_v0  ;;  %v4862_v35 = vsub.f32 %v10303_v55, %v4720_v13  ;;  %v4627_v55 = vmul.f32 0.35355338, %v10323_v43 }
0x1864   :  { %v4912_v2 = vmul.f32 1.442695, %v4863_v16  ;;  %v10469_v19 = vsel %vm4669_vm7, %v4624_v28, -1e+30  ;;  %v4622_v16 = vmul.f32 0.35355338, %v10305_v56 }
0x1865   :  { %v4910_v52 = vmul.f32 1.442695, %v4862_v35  ;;  %v10478_v14 = vsel %vm4669_vm7, %v4627_v55, -1e+30  ;;  %v4733_v60 = vsel %vm1498_vm5, %v10469_v19, -inf }
0x1866   :  { %8957 = vpow2.f32 %v4912_v2  ;;  %v10485_v28 = vsel %vm4669_vm7, %v4622_v16, -1e+30  ;;  %v4626_v56 = vmul.f32 0.35355338, %v10330_v27  ;;  %v4630_v27 = vmul.f32 0.35355338, %v10334_v8 }
0x1867   :  { %8959 = vpow2.f32 %v4910_v52  ;;  %v10445_v45 = vpop.f32.mrb[120].mxu1  ;;  %v4628_v8 = vmul.f32 0.35355338, %v10337_v7  ;;  %v4632_v7 = vmul.f32 0.35355338, %v10357_v4 }
0x1868   :  { %v10447_v63 = vpop.f32.mrb[121].mxu1  ;;  %v10499_v16 = vsel %vm4669_vm7, %v4626_v56, -1e+30  ;;  %v10513_v56 = vsel %vm4669_vm7, %v4630_v27, -1e+30 }
0x1869   :  { %v8254_v47 = vpop.f32.mrb[122].mxu1  ;;  %v10527_v27 = vsel %vm4669_vm7, %v4628_v8, -1e+30  ;;  %v10541_v8 = vsel %vm4669_vm7, %v4632_v7, -1e+30 }
0x186a   :  { %v10449_v15 = vpop.f32.mrb[123].mxu1  ;;  %v4636_v4 = vmul.f32 0.35355338, %v10380_v10  ;;  %v4634_v10 = vmul.f32 0.35355338, %v10382_v62 }
0x186b   :  { %v4638_v62 = vmul.f32 0.35355338, %v10398_v50  ;;  %v4642_v50 = vmul.f32 0.35355338, %v10402_v57  ;;  %v4640_v57 = vmul.f32 0.35355338, %v10406_v20 }
0x186c   :  { %v10555_v7 = vsel %vm4669_vm7, %v4636_v4, -1e+30  ;;  %v10569_v4 = vsel %vm4669_vm7, %v4634_v10, -1e+30  ;;  %v4644_v20 = vmul.f32 0.35355338, %v10420_v9 }
0x186d   :  { %v10451_v12 = vpop.eup %8955  ;;  %v10583_v10 = vsel %vm4669_vm7, %v4638_v62, -1e+30  ;;  %v10597_v62 = vsel %vm4669_vm7, %v4642_v50, -1e+30  ;;  %v10611_v50 = vsel %vm4669_vm7, %v4640_v57, -1e+30 }
0x186e   :  { %v5012_v0 = vsel %vm1498_vm5, %v10451_v12, 0.0  ;;  %v10625_v57 = vsel %vm4669_vm7, %v4644_v20, -1e+30  ;;  %v4648_v9 = vmul.f32 0.35355338, %v10426_v21 }
0x186f   :  { %5013 = vadd.xlane.f32.xlu1 %v5012_v0  ;;  %v10457_v35 = vpop.f32.mrb[116].mxu0  ;;  %11700 = vst [vmem:[#allocation37_spill] sm:$0xff] %v10625_v57  ;;  %v4646_v21 = vmul.f32 0.35355338, %v10428_v3  ;;  %v4650_v3 = vmul.f32 0.35355338, %v10442_v18 }
0x1870   :  { %v10459_v11 = vpop.eup %8957  ;;  %v10461_v52 = vpop.f32.mrb[117].mxu0  ;;  %v10639_v20 = vsel %vm4669_vm7, %v4648_v9, -1e+30 }
0x1871   :  { %v10463_v13 = vpop.eup %8959  ;;  %v8262_v47 = vpop.f32.mrb[118].mxu0  ;;  %v5009_v2 = vsel %vm1498_vm5, %v10459_v11, 0.0  ;;  %v10653_v9 = vsel %vm4669_vm7, %v4646_v21, -1e+30  ;;  %v10667_v21 = vsel %vm4669_vm7, %v4650_v3, -1e+30 }
0x1872   :  { %5010 = vadd.xlane.f32.xlu0 %v5009_v2  ;;  %v10472_v43 = vpop.f32.mrb[119].mxu0  ;;  %v5006_v0 = vsel %vm1498_vm5, %v10463_v13, 0.0  ;;  %v4625_v47 = vmul.f32 0.35355338, %v10325_v49  ;;  %v4742_v2 = vsel %vm1498_vm5, %v10478_v14, -inf  ;;  %v4727_v49 = vsel %vm1498_vm5, %v10485_v28, -inf }
0x1873   :  { %5007 = vadd.xlane.f32.xlu1 %v5006_v0  ;;  %v4633_v0 = vmul.f32 0.35355338, %v10351_v26  ;;  %v4631_v26 = vmul.f32 0.35355338, %v10353_v48  ;;  %v4745_v48 = vsel %vm1498_vm5, %v10527_v27, -inf  ;;  %11704 = vst [vmem:[#allocation41_spill] sm:$0xff] %v10667_v21 }
0x1874   :  { %v10493_v55 = vsel %vm4669_vm7, %v4625_v47, -1e+30  ;;  %v4739_v47 = vsel %vm1498_vm5, %v10499_v16, -inf }
0x1875   :  { %v10520_v58 = vsel %vm4669_vm7, %v4633_v0, -1e+30  ;;  %v10535_v0 = vsel %vm4669_vm7, %v4631_v26, -1e+30  ;;  %v4639_v26 = vmul.f32 0.35355338, %v10392_v39 }
0x1876   :  { %4734 = vmax.xlane.f32.xlu0 %v4733_v60  ;;  %v4736_v60 = vsel %vm1498_vm5, %v10493_v55, -inf  ;;  %v4637_v39 = vmul.f32 0.35355338, %v10394_v5  ;;  %v4763_v5 = vsel %vm1498_vm5, %v10569_v4, -inf }
0x1877   :  { %4743 = vmax.xlane.f32.xlu1 %v4742_v2  ;;  %v4730_v2 = vsel %vm1498_vm5, %v10506_v46, -inf }
0x187a   :  { %4728 = vmax.xlane.f32.xlu0 %v4727_v49  ;;  %v4751_v49 = vsel %vm1498_vm5, %v10513_v56, -inf }
0x187b   :  { %4737 = vmax.xlane.f32.xlu1 %v4736_v60  ;;  %v4760_v60 = vsel %vm1498_vm5, %v10520_v58, -inf }
0x187e   :  { %4740 = vmax.xlane.f32.xlu0 %v4739_v47  ;;  %v4629_v47 = vmul.f32 0.35355338, %v10341_v1 }
0x187f   :  { %4731 = vmax.xlane.f32.xlu1 %v4730_v2  ;;  %v4754_v2 = vsel %vm1498_vm5, %v10535_v0, -inf }
0x1880   :  { %v10548_v1 = vsel %vm4669_vm7, %v4629_v47, -1e+30  ;;  %v10562_v47 = vsel %vm4669_vm7, %v4639_v26, -1e+30  ;;  %v10577_v26 = vsel %vm4669_vm7, %v4637_v39, -1e+30 }
0x1881   :  { %v4645_v39 = vmul.f32 0.35355338, %v10414_v22  ;;  %v4643_v22 = vmul.f32 0.35355338, %v10416_v40  ;;  %v4781_v40 = vsel %vm1498_vm5, %v10611_v50, -inf }
0x1882   :  { %4752 = vmax.xlane.f32.xlu0 %v4751_v49  ;;  %v4757_v49 = vsel %vm1498_vm5, %v10541_v8, -inf }
0x1883   :  { %4761 = vmax.xlane.f32.xlu1 %v4760_v60  ;;  %v4748_v60 = vsel %vm1498_vm5, %v10548_v1, -inf }
0x1886   :  { %4746 = vmax.xlane.f32.xlu0 %v4745_v48  ;;  %v4769_v48 = vsel %vm1498_vm5, %v10555_v7, -inf }
0x1887   :  { %4755 = vmax.xlane.f32.xlu1 %v4754_v2  ;;  %v4778_v2 = vsel %vm1498_vm5, %v10562_v47, -inf }
0x188a   :  { %4758 = vmax.xlane.f32.xlu0 %v4757_v49  ;;  %v4635_v49 = vmul.f32 0.35355338, %v10386_v34 }
0x188b   :  { %4749 = vmax.xlane.f32.xlu1 %v4748_v60  ;;  %v4772_v60 = vsel %vm1498_vm5, %v10577_v26, -inf }
0x188c   :  { %v10590_v34 = vsel %vm4669_vm7, %v4635_v49, -1e+30  ;;  %v10604_v49 = vsel %vm4669_vm7, %v4645_v39, -1e+30  ;;  %v10619_v39 = vsel %vm4669_vm7, %v4643_v22, -1e+30 }
0x188d   :  { %v4651_v22 = vmul.f32 0.35355338, %v10437_v44  ;;  %v4649_v44 = vmul.f32 0.35355338, %v10439_v29  ;;  %v4799_v29 = vsel %vm1498_vm5, %v10653_v9, -inf }
0x188e   :  { %4770 = vmax.xlane.f32.xlu0 %v4769_v48  ;;  %v4775_v48 = vsel %vm1498_vm5, %v10583_v10, -inf }
0x188f   :  { %4779 = vmax.xlane.f32.xlu1 %v4778_v2  ;;  %v4766_v2 = vsel %vm1498_vm5, %v10590_v34, -inf }
0x1892   :  { %4764 = vmax.xlane.f32.xlu0 %v4763_v5  ;;  %v4787_v5 = vsel %vm1498_vm5, %v10597_v62, -inf }
0x1893   :  { %4773 = vmax.xlane.f32.xlu1 %v4772_v60  ;;  %v4796_v60 = vsel %vm1498_vm5, %v10604_v49, -inf }
0x1896   :  { %4776 = vmax.xlane.f32.xlu0 %v4775_v48  ;;  %v4641_v48 = vmul.f32 0.35355338, %v10408_v31 }
0x1897   :  { %4767 = vmax.xlane.f32.xlu1 %v4766_v2  ;;  %v4790_v2 = vsel %vm1498_vm5, %v10619_v39, -inf }
0x1898   :  { %v10632_v31 = vsel %vm4669_vm7, %v4641_v48, -1e+30  ;;  %v10646_v48 = vsel %vm4669_vm7, %v4651_v22, -1e+30  ;;  %v10661_v22 = vsel %vm4669_vm7, %v4649_v44, -1e+30 }
0x1899   :  { %11701 = vst [vmem:[#allocation38_spill] sm:$0xff] %v10632_v31  ;;  %11702 = vst [vmem:[#allocation39_spill] sm:$0xff] %v10646_v48  ;;  %v4808_v18 = vsel %vm1498_vm5, %v10661_v22, -inf }
0x189a   :  { %4788 = vmax.xlane.f32.xlu0 %v4787_v5  ;;  %v4793_v5 = vsel %vm1498_vm5, %v10625_v57, -inf  ;;  %11703 = vst [vmem:[#allocation40_spill] sm:$0xff] %v10661_v22 }
0x189b   :  { %4797 = vmax.xlane.f32.xlu1 %v4796_v60  ;;  %v4784_v60 = vsel %vm1498_vm5, %v10632_v31, -inf }
0x189e   :  { %4782 = vmax.xlane.f32.xlu0 %v4781_v40  ;;  %v4805_v40 = vsel %vm1498_vm5, %v10639_v20, -inf }
0x189f   :  { %4791 = vmax.xlane.f32.xlu1 %v4790_v2  ;;  %v4814_v2 = vsel %vm1498_vm5, %v10646_v48, -inf }
0x18a2   :  { %4794 = vmax.xlane.f32.xlu0 %v4793_v5  ;;  %v4647_v5 = vmul.f32 0.35355338, %v10432_v17  ;;  %v4811_v17 = vsel %vm1498_vm5, %v10667_v21, -inf }
0x18a3   :  { %4785 = vmax.xlane.f32.xlu1 %v4784_v60 }
0x18a4   :  { %v10673_v60 = vsel %vm4669_vm7, %v4647_v5, -1e+30 }
0x18a5   :  { %11705 = vst [vmem:[#allocation42_spill] sm:$0xff] %v10673_v60  ;;  %v4802_v44 = vsel %vm1498_vm5, %v10673_v60, -inf }
0x18a6   :  { %4806 = vmax.xlane.f32.xlu0 %v4805_v40 }
0x18a7   :  { %4815 = vmax.xlane.f32.xlu1 %v4814_v2 }
0x18aa   :  { %4800 = vmax.xlane.f32.xlu0 %v4799_v29 }
0x18ab   :  { %4809 = vmax.xlane.f32.xlu1 %v4808_v18 }
0x18ae   :  { %4812 = vmax.xlane.f32.xlu0 %v4811_v17 }
0x18af   :  { %4803 = vmax.xlane.f32.xlu1 %v4802_v44 }
0x18b1   :  { %v10679_v40 = vpop.f32.mrb[124].mxu1 }
0x18b2   :  { %v10681_v3 = vpop.f32.mrb[125].mxu1 }
0x18b3   :  { %v8270_v2 = vpop.f32.mrb[126].mxu1 }
0x18b4   :  { %v10683_v29 = vpop.f32.mrb[127].mxu1 }
0x18b6   :  { %v10685_v25 = vpop.f32.mrb[120].mxu0 }
0x18b7   :  { %v10687_v5 = vpop.f32.mrb[121].mxu0 }
0x18b8   :  { %v8278_v18 = vpop.f32.mrb[122].mxu0 }
0x18b9   :  { %v10689_v61 = vpop.f32.mrb[123].mxu0 }
0x18c1   :  { %v10691_v42 = vpop.f32.mrb[128].mxu1 }
0x18c2   :  { %v10693_v17 = vpop.f32.mrb[129].mxu1 }
0x18c3   :  { %v8286_v23 = vpop.f32.mrb[130].mxu1 }
0x18c4   :  { %v10695_v44 = vpop.f32.mrb[131].mxu1 }
0x18fc   :  { %v5014_v54 = vpop.xlane.xlu1 %5013 }
0x18fd   :  { %8961 = vrcp.f32 %v5014_v54 }
0x18ff   :  { %v5011_v30 = vpop.xlane.xlu0 %5010 }
0x1900   :  { %8963 = vrcp.f32 %v5011_v30  ;;  %v5008_v2 = vpop.xlane.xlu1 %5007 }
0x1901   :  { %8965 = vrcp.f32 %v5008_v2 }
0x1903   :  { %v4735_v53 = vpop.xlane.xlu0 %4734 }
0x1904   :  { %v4867_v41 = vsub.f32 %v10469_v19, %v4735_v53  ;;  %v4744_v38 = vpop.xlane.xlu1 %4743 }
0x1905   :  { %v4870_v18 = vsub.f32 %v10478_v14, %v4744_v38 }
0x1906   :  { %v4920_v59 = vmul.f32 1.442695, %v4867_v41 }
0x1907   :  { %v4926_v36 = vmul.f32 1.442695, %v4870_v18  ;;  %v4729_v21 = vpop.xlane.xlu0 %4728  ;;  %v8962_v60 = vpop.eup %8961 }
0x1908   :  { %8967 = vpow2.f32 %v4920_v59  ;;  %v4865_v23 = vsub.f32 %v10485_v28, %v4729_v21  ;;  %v4738_v22 = vpop.xlane.xlu1 %4737  ;;  %v5155_v38 = vmul.f32 %v8962_v60, %v10451_v12 }
0x1909   :  { %8969 = vpow2.f32 %v4926_v36  ;;  %v4868_v54 = vsub.f32 %v10493_v55, %v4738_v22 }
0x190a   :  { %v8964_v30 = vpop.eup %8963  ;;  %v4916_v57 = vmul.f32 1.442695, %v4865_v23  ;;  %v5247_v21 = vpack.c.bf16 %v5155_v38, %v5155_v38 }
0x190b   :  { %v8966_v2 = vpop.eup %8965  ;;  %v4922_v48 = vmul.f32 1.442695, %v4868_v54  ;;  %v4741_v31 = vpop.xlane.xlu0 %4740  ;;  %v5153_v53 = vmul.f32 %v8964_v30, %v10459_v11  ;;  %v4654_v30 = vmul.f32 0.35355338, %v10445_v45 }
0x190c   :  { %8971 = vpow2.f32 %v4916_v57  ;;  %v4869_v41 = vsub.f32 %v10499_v16, %v4741_v31  ;;  %v4732_v14 = vpop.xlane.xlu1 %4731  ;;  %v5151_v59 = vmul.f32 %v8966_v2, %v10463_v13  ;;  %v5352_v31 = vsel %vm1090_vm4, %v10347_v32, 0 }
0x190d   :  { %8973 = vpow2.f32 %v4922_v48  ;;  %v4866_v36 = vsub.f32 %v10506_v46, %v4732_v14  ;;  %v4657_v2 = vmul.f32 0.35355338, %v10457_v35  ;;  %v4652_v35 = vmul.f32 0.35355338, %v10447_v63 }
0x190e   :  { %v4924_v19 = vmul.f32 1.442695, %v4869_v41  ;;  %v5246_v28 = vpack.c.bf16 %v5153_v53, %v5151_v59 }
0x190f   :  { %v4918_v55 = vmul.f32 1.442695, %v4866_v36  ;;  %v4753_v22 = vpop.xlane.xlu0 %4752  ;;  %v10744_v36 = vsel %vm4669_vm7, %v4654_v30, -1e+30 }
0x1910   :  { %8975 = vpow2.f32 %v4924_v19  ;;  %8291 = vmatprep.mubr.msk.bf16.mxu0 %vm1498_vm5, %v5246_v28  ;;  %v4762_v11 = vpop.xlane.xlu1 %4761  ;;  %v10751_v28 = vsel %vm4669_vm7, %v4657_v2, -1e+30 }
0x1911   :  { %8977 = vpow2.f32 %v4918_v55  ;;  %8292 = vmatmul.mubr.msk.bf16.vlgmr.msra.gmra.mrb[124].mxu0 %vm1498_vm5, %v5247_v21  ;;  %v4876_v23 = vsub.f32 %v10520_v58, %v4762_v11  ;;  %v4823_v11 = vsel %vm1498_vm5, %v10744_v36, -inf }
0x1912   :  { %v10708_v12 = vpop.eup %8967  ;;  %8296 = vmatpush3.bf16.msra.mxu0 %v10339_v6  ;;  %v4873_v6 = vsub.f32 %v10513_v56, %v4753_v22 }
0x1913   :  { %v10711_v13 = vpop.eup %8969  ;;  %8508 = vmatprep.subr.msk.bf16.mxu0 %vm1090_vm4, %v10347_v32  ;;  %v5021_v16 = vsel %vm1498_vm5, %v10708_v12, 0.0  ;;  %v4747_v57 = vpop.xlane.xlu0 %4746  ;;  %v4938_v41 = vmul.f32 1.442695, %v4876_v23 }
0x1914   :  { %5022 = vadd.xlane.f32.xlu0 %v5021_v16  ;;  %v5030_v46 = vsel %vm1498_vm5, %v10711_v13, 0.0  ;;  %v4756_v60 = vpop.xlane.xlu1 %4755  ;;  %v4932_v53 = vmul.f32 1.442695, %v4873_v6  ;;  %v4871_v38 = vsub.f32 %v10527_v27, %v4747_v57  ;;  %v10760_v16 = vsel %vm4669_vm7, %v4652_v35, -1e+30 }
0x1915   :  { %5031 = vadd.xlane.f32.xlu1 %v5030_v46  ;;  %v4874_v14 = vsub.f32 %v10535_v0, %v4756_v60  ;;  %v4655_v0 = vmul.f32 0.35355338, %v10461_v52  ;;  %v4656_v46 = vmul.f32 0.35355338, %v10472_v43  ;;  %v4832_v52 = vsel %vm1498_vm5, %v10751_v28, -inf }
0x1916   :  { %v10721_v48 = vpop.eup %8971  ;;  %8298 = vmatpush3.bf16.msra.mxu0 %v5352_v31  ;;  %8979 = vpow2.f32 %v4932_v53  ;;  %v4928_v55 = vmul.f32 1.442695, %v4871_v38  ;;  %v4653_v57 = vmul.f32 0.35355338, %v10449_v15  ;;  %v4817_v6 = vsel %vm1498_vm5, %v10760_v16, -inf }
0x1917   :  { %v10724_v18 = vpop.eup %8973  ;;  %8311 = vmatprep.subr.bf16.mxu0 %v10364_v37  ;;  %v5015_v54 = vsel %vm1498_vm5, %v10721_v48, 0.0  ;;  %v4759_v59 = vpop.xlane.xlu0 %4758  ;;  %8981 = vpow2.f32 %v4938_v41  ;;  %v4934_v21 = vmul.f32 1.442695, %v4874_v14  ;;  %v10774_v43 = vsel %vm4669_vm7, %v4656_v46, -1e+30 }
0x1918   :  { %5016 = vadd.xlane.f32.xlu0 %v5015_v54  ;;  %v5024_v32 = vsel %vm1498_vm5, %v10724_v18, 0.0  ;;  %v4750_v19 = vpop.xlane.xlu1 %4749  ;;  %v4875_v22 = vsub.f32 %v10541_v8, %v4759_v59  ;;  %v10768_v8 = vsel %vm4669_vm7, %v4655_v0, -1e+30  ;;  %8983 = vpow2.f32 %v4928_v55 }
0x1919   :  { %5025 = vadd.xlane.f32.xlu1 %v5024_v32  ;;  %v4872_v63 = vsub.f32 %v10548_v1, %v4750_v19  ;;  %8985 = vpow2.f32 %v4934_v21  ;;  %v4826_v15 = vsel %vm1498_vm5, %v10768_v8, -inf  ;;  %v10780_v60 = vsel %vm4669_vm7, %v4653_v57, -1e+30 }
0x191a   :  { %v10734_v56 = vpop.eup %8975  ;;  %v4936_v1 = vmul.f32 1.442695, %v4875_v22  ;;  %v4829_v23 = vsel %vm1498_vm5, %v10774_v43, -inf  ;;  %v4820_v30 = vsel %vm1498_vm5, %v10780_v60, -inf  ;;  %v4658_v22 = vmul.f32 0.35355338, %v10681_v3 }
0x191b   :  { %v10737_v58 = vpop.eup %8977  ;;  %v5027_v45 = vsel %vm1498_vm5, %v10734_v56, 0.0  ;;  %v4930_v31 = vmul.f32 1.442695, %v4872_v63  ;;  %v4662_v3 = vmul.f32 0.35355338, %v10689_v61 }
0x191c   :  { %5028 = vadd.xlane.f32.xlu0 %v5027_v45  ;;  %v5018_v27 = vsel %vm1498_vm5, %v10737_v58, 0.0  ;;  %8987 = vpow2.f32 %v4936_v1  ;;  %v4660_v45 = vmul.f32 0.35355338, %v10679_v40  ;;  %v4666_v61 = vmul.f32 0.35355338, %v10691_v42 }
0x191d   :  { %5019 = vadd.xlane.f32.xlu1 %v5018_v27  ;;  %8989 = vpow2.f32 %v4930_v31  ;;  %v4663_v27 = vmul.f32 0.35355338, %v10685_v25  ;;  %v4661_v25 = vmul.f32 0.35355338, %v10687_v5  ;;  %v10840_v1 = vsel %vm4669_vm7, %v4662_v3, -1e+30 }
0x191e   :  { %v10812_v55 = vsel %vm4669_vm7, %v4660_v45, -1e+30  ;;  %v4664_v42 = vmul.f32 0.35355338, %v10693_v17  ;;  %v4771_v45 = vpop.xlane.xlu0 %4770 }
0x191f   :  { %v10819_v21 = vsel %vm4669_vm7, %v4663_v27, -1e+30  ;;  %v4841_v63 = vsel %vm1498_vm5, %v10812_v55, -inf  ;;  %v10834_v57 = vsel %vm4669_vm7, %v4661_v25, -1e+30 }
0x1920   :  { %4824 = vmax.xlane.f32.xlu0 %v4823_v11  ;;  %v10784_v54 = vpop.eup %8979  ;;  %v10826_v11 = vsel %vm4669_vm7, %v4658_v22, -1e+30  ;;  %v4850_v46 = vsel %vm1498_vm5, %v10819_v21, -inf  ;;  %v4844_v31 = vsel %vm1498_vm5, %v10834_v57, -inf }
0x1921   :  { %4833 = vmax.xlane.f32.xlu1 %v4832_v52  ;;  %v10788_v32 = vpop.eup %8981  ;;  %v5039_v2 = vsel %vm1498_vm5, %v10784_v54, 0.0  ;;  %v4659_v52 = vmul.f32 0.35355338, %v10683_v29  ;;  %v4835_v5 = vsel %vm1498_vm5, %v10826_v11, -inf }
0x1922   :  { %v10792_v53 = vpop.eup %8983  ;;  %v5048_v38 = vsel %vm1498_vm5, %v10788_v32, 0.0  ;;  %v4765_v27 = vpop.xlane.xlu0 %4764 }
0x1923   :  { %v10796_v41 = vpop.eup %8985  ;;  %v5033_v14 = vsel %vm1498_vm5, %v10792_v53, 0.0  ;;  %v10847_v29 = vsel %vm4669_vm7, %v4659_v52, -1e+30 }
0x1924   :  { %4818 = vmax.xlane.f32.xlu0 %v4817_v6  ;;  %v5042_v35 = vsel %vm1498_vm5, %v10796_v41, 0.0  ;;  %v4665_v6 = vmul.f32 0.35355338, %v10695_v44 }
0x1925   :  { %4827 = vmax.xlane.f32.xlu1 %v4826_v15  ;;  %v4847_v15 = vsel %vm1498_vm5, %v10840_v1, -inf }
0x1926   :  { %v10800_v59 = vpop.eup %8987  ;;  %v4777_v22 = vpop.xlane.xlu0 %4776 }
0x1927   :  { %v10805_v19 = vpop.eup %8989  ;;  %v5045_v0 = vsel %vm1498_vm5, %v10800_v59, 0.0 }
0x1928   :  { %4830 = vmax.xlane.f32.xlu0 %v4829_v23  ;;  %v5036_v40 = vsel %vm1498_vm5, %v10805_v19, 0.0  ;;  %v10854_v23 = vsel %vm4669_vm7, %v4666_v61, -1e+30 }
0x1929   :  { %4821 = vmax.xlane.f32.xlu1 %v4820_v30  ;;  %v4838_v30 = vsel %vm1498_vm5, %v10847_v29, -inf  ;;  %v4859_v44 = vsel %vm1498_vm5, %v10854_v23, -inf }
0x192c   :  { %5040 = vadd.xlane.f32.xlu0 %v5039_v2  ;;  %v10861_v2 = vsel %vm4669_vm7, %v4665_v6, -1e+30 }
0x192d   :  { %5049 = vadd.xlane.f32.xlu1 %v5048_v38  ;;  %v10867_v38 = vsel %vm4669_vm7, %v4664_v42, -1e+30  ;;  %v4856_v17 = vsel %vm1498_vm5, %v10861_v2, -inf }
0x1930   :  { %5034 = vadd.xlane.f32.xlu0 %v5033_v14  ;;  %v4853_v14 = vsel %vm1498_vm5, %v10867_v38, -inf }
0x1931   :  { %5043 = vadd.xlane.f32.xlu1 %v5042_v35  ;;  %v4780_v35 = vpop.xlane.xlu1 %4779 }
0x1934   :  { %5046 = vadd.xlane.f32.xlu0 %v5045_v0 }
0x1935   :  { %5037 = vadd.xlane.f32.xlu1 %v5036_v40  ;;  %v4774_v0 = vpop.xlane.xlu1 %4773  ;;  %v4789_v40 = vpop.xlane.xlu0 %4788 }
0x1938   :  { %4842 = vmax.xlane.f32.xlu0 %v4841_v63  ;;  %v4879_v63 = vsub.f32 %v10555_v7, %v4771_v45  ;;  %v4885_v45 = vsub.f32 %v10597_v62, %v4789_v40 }
0x1939   :  { %4851 = vmax.xlane.f32.xlu1 %v4850_v46  ;;  %v4768_v51 = vpop.xlane.xlu1 %4767  ;;  %v4783_v3 = vpop.xlane.xlu0 %4782  ;;  %v4882_v46 = vsub.f32 %v10562_v47, %v4780_v35  ;;  %v4881_v47 = vsub.f32 %v10583_v10, %v4777_v22 }
0x193a   :  { %v4944_v52 = vmul.f32 1.442695, %v4879_v63  ;;  %v4883_v10 = vsub.f32 %v10611_v50, %v4783_v3 }
0x193c   :  { %4836 = vmax.xlane.f32.xlu0 %v4835_v5  ;;  %v4877_v5 = vsub.f32 %v10569_v4, %v4765_v27  ;;  %8991 = vpow2.f32 %v4944_v52 }
0x193d   :  { %4845 = vmax.xlane.f32.xlu1 %v4844_v31  ;;  %v4798_v25 = vpop.xlane.xlu1 %4797  ;;  %v4950_v31 = vmul.f32 1.442695, %v4882_v46  ;;  %v4795_v42 = vpop.xlane.xlu0 %4794  ;;  %v11706_v46 = vld [vmem:[#allocation38_spill] sm:$0xff] }
0x193e   :  { %v4940_v6 = vmul.f32 1.442695, %v4877_v5 }
0x193f   :  { %8993 = vpow2.f32 %v4950_v31  ;;  %v11707_v31 = vld [vmem:[#allocation39_spill] sm:$0xff] }
0x1940   :  { %4848 = vmax.xlane.f32.xlu0 %v4847_v15  ;;  %v4878_v15 = vsub.f32 %v10590_v34, %v4768_v51  ;;  %8995 = vpow2.f32 %v4940_v6  ;;  %v11708_v6 = vld [vmem:[#allocation37_spill] sm:$0xff] }
0x1941   :  { %4839 = vmax.xlane.f32.xlu1 %v4838_v30  ;;  %v4792_v61 = vpop.xlane.xlu1 %4791  ;;  %v4888_v30 = vsub.f32 %v10604_v49, %v4798_v25 }
0x1943   :  { %v4962_v4 = vmul.f32 1.442695, %v4888_v30 }
0x1944   :  { %4860 = vmax.xlane.f32.xlu0 %v4859_v44  ;;  %v4942_v44 = vmul.f32 1.442695, %v4878_v15  ;;  %v4887_v15 = vsub.f32 %v11708_v6, %v4795_v42  ;;  %v11710_v42 = vld [vmem:[#allocation42_spill] sm:$0xff] }
0x1945   :  { %4857 = vmax.xlane.f32.xlu1 %v4856_v17  ;;  %v4786_v7 = vpop.xlane.xlu1 %4785  ;;  %v4807_v17 = vpop.xlane.xlu0 %4806 }
0x1946   :  { %v10886_v35 = vpop.eup %8991  ;;  %v4891_v49 = vsub.f32 %v10639_v20, %v4807_v17  ;;  %v4952_v20 = vmul.f32 1.442695, %v4883_v10  ;;  %v4884_v52 = vsub.f32 %v11706_v46, %v4786_v7 }
0x1948   :  { %4854 = vmax.xlane.f32.xlu0 %v4853_v14  ;;  %v4886_v14 = vsub.f32 %v10619_v39, %v4792_v61  ;;  %v5057_v39 = vsel %vm1498_vm5, %v10886_v35, 0.0  ;;  %v4968_v62 = vmul.f32 1.442695, %v4891_v49 }
0x1949   :  { %v4816_v34 = vpop.xlane.xlu1 %4815  ;;  %v4801_v22 = vpop.xlane.xlu0 %4800 }
0x194a   :  { %v4958_v27 = vmul.f32 1.442695, %v4886_v14  ;;  %v10890_v51 = vpop.eup %8993  ;;  %v4889_v40 = vsub.f32 %v10653_v9, %v4801_v22  ;;  %v4894_v9 = vsub.f32 %v11707_v31, %v4816_v34  ;;  %v11709_v14 = vld [vmem:[#allocation40_spill] sm:$0xff] }
0x194b   :  { %v10894_v25 = vpop.eup %8995  ;;  %v5066_v50 = vsel %vm1498_vm5, %v10890_v51, 0.0 }
0x194c   :  { %v5051_v5 = vsel %vm1498_vm5, %v10894_v25, 0.0 }
0x194d   :  { %v4810_v63 = vpop.xlane.xlu1 %4809 }
0x1956   :  { %6148 = vrot.lane.b32.xlu1 %v10168_v24, %s9220_s24  ;;  %v4880_v24 = vsub.f32 %v10577_v26, %v4774_v0  ;;  %v4948_v26 = vmul.f32 1.442695, %v4881_v47  ;;  %v4956_v0 = vmul.f32 1.442695, %v4885_v45  ;;  %v4804_v47 = vpop.xlane.xlu1 %4803  ;;  %v4960_v45 = vmul.f32 1.442695, %v4887_v15 }
0x1957   :  { %v4890_v34 = vsub.f32 %v11710_v42, %v4804_v47 }
0x195e   :  { %6146 = vrot.lane.b32.xlu0 %v10156_v33, %s9220_s24  ;;  %v4946_v33 = vmul.f32 1.442695, %v4880_v24  ;;  %v4964_v24 = vmul.f32 1.442695, %v4889_v40 }
0x1960   :  { %8997 = vpow2.f32 %v4946_v33  ;;  %v4954_v33 = vmul.f32 1.442695, %v4884_v52 }
0x1961   :  { %8999 = vpow2.f32 %v4942_v44 }
0x1962   :  { %9001 = vpow2.f32 %v4962_v4  ;;  %v4974_v4 = vmul.f32 1.442695, %v4894_v9 }
0x1963   :  { %9003 = vpow2.f32 %v4948_v26  ;;  %v4892_v26 = vsub.f32 %v11709_v14, %v4810_v63  ;;  %v4966_v63 = vmul.f32 1.442695, %v4890_v34 }
0x1964   :  { %9005 = vpow2.f32 %v4958_v27 }
0x1965   :  { %9007 = vpow2.f32 %v4956_v0  ;;  %v4813_v0 = vpop.xlane.xlu0 %4812 }
0x1966   :  { %9009 = vpow2.f32 %v4968_v62  ;;  %v11711_v62 = vld [vmem:[#allocation41_spill] sm:$0xff] }
0x1967   :  { %9011 = vpow2.f32 %v4952_v20  ;;  %v4893_v40 = vsub.f32 %v11711_v62, %v4813_v0 }
0x1968   :  { %9013 = vpow2.f32 %v4964_v24 }
0x1969   :  { %9015 = vpow2.f32 %v4954_v33 }
0x196a   :  { %v10900_v3 = vpop.eup %8997  ;;  %9017 = vpow2.f32 %v4974_v4 }
0x196b   :  { %v10904_v61 = vpop.eup %8999  ;;  %v5060_v30 = vsel %vm1498_vm5, %v10900_v3, 0.0  ;;  %9019 = vpow2.f32 %v4960_v45 }
0x196c   :  { %v10910_v7 = vpop.eup %9001  ;;  %v5054_v44 = vsel %vm1498_vm5, %v10904_v61, 0.0 }
0x196d   :  { %v10914_v17 = vpop.eup %9003  ;;  %v5084_v27 = vsel %vm1498_vm5, %v10910_v7, 0.0 }
0x196e   :  { %v10920_v49 = vpop.eup %9005  ;;  %v5063_v10 = vsel %vm1498_vm5, %v10914_v17, 0.0 }
0x196f   :  { %v10924_v22 = vpop.eup %9007  ;;  %v5078_v20 = vsel %vm1498_vm5, %v10920_v49, 0.0 }
0x1970   :  { %v10929_v46 = vpop.eup %9009  ;;  %v5075_v52 = vsel %vm1498_vm5, %v10924_v22, 0.0 }
0x1971   :  { %v5093_v31 = vsel %vm1498_vm5, %v10929_v46, 0.0 }
0x197a   :  { %5058 = vadd.xlane.f32.xlu1 %v5057_v39  ;;  %v4970_v39 = vmul.f32 1.442695, %v4892_v26 }
0x197c   :  { %9021 = vpow2.f32 %v4970_v39 }
0x197d   :  { %5067 = vadd.xlane.f32.xlu0 %v5066_v50  ;;  %v10933_v50 = vpop.eup %9011  ;;  %9023 = vpow2.f32 %v4966_v63 }
0x197e   :  { %5052 = vadd.xlane.f32.xlu1 %v5051_v5  ;;  %v4972_v5 = vmul.f32 1.442695, %v4893_v40  ;;  %v10937_v9 = vpop.eup %9013  ;;  %v5069_v24 = vsel %vm1498_vm5, %v10933_v50, 0.0 }
0x197f   :  { %v10941_v6 = vpop.eup %9015  ;;  %v5087_v15 = vsel %vm1498_vm5, %v10937_v9, 0.0 }
0x1980   :  { %9025 = vpow2.f32 %v4972_v5  ;;  %v10945_v33 = vpop.eup %9017 }
0x1981   :  { %5061 = vadd.xlane.f32.xlu0 %v5060_v30  ;;  %v5072_v30 = vsel %vm1498_vm5, %v10941_v6, 0.0  ;;  %v10949_v47 = vpop.eup %9019 }
0x1982   :  { %5055 = vadd.xlane.f32.xlu1 %v5054_v44  ;;  %v5102_v44 = vsel %vm1498_vm5, %v10945_v33, 0.0  ;;  %v5081_v14 = vsel %vm1498_vm5, %v10949_v47, 0.0 }
0x1985   :  { %5085 = vadd.xlane.f32.xlu0 %v5084_v27 }
0x1986   :  { %5064 = vadd.xlane.f32.xlu1 %v5063_v10  ;;  %v10953_v4 = vpop.eup %9021 }
0x1987   :  { %v10957_v26 = vpop.eup %9023  ;;  %v5096_v45 = vsel %vm1498_vm5, %v10953_v4, 0.0 }
0x1988   :  { %v5090_v42 = vsel %vm1498_vm5, %v10957_v26, 0.0 }
0x1989   :  { %5079 = vadd.xlane.f32.xlu0 %v5078_v20 }
0x198a   :  { %5076 = vadd.xlane.f32.xlu1 %v5075_v52  ;;  %v10963_v34 = vpop.eup %9025 }
0x198b   :  { %v5099_v27 = vsel %vm1498_vm5, %v10963_v34, 0.0 }
0x198d   :  { %5094 = vadd.xlane.f32.xlu0 %v5093_v31 }
0x198e   :  { %5070 = vadd.xlane.f32.xlu1 %v5069_v24 }
0x1991   :  { %5088 = vadd.xlane.f32.xlu0 %v5087_v15 }
0x1992   :  { %5073 = vadd.xlane.f32.xlu1 %v5072_v30 }
0x1995   :  { %5103 = vadd.xlane.f32.xlu0 %v5102_v44 }
0x1996   :  { %5082 = vadd.xlane.f32.xlu1 %v5081_v14 }
0x1999   :  { %5097 = vadd.xlane.f32.xlu0 %v5096_v45 }
0x199a   :  { %5091 = vadd.xlane.f32.xlu1 %v5090_v42 }
0x199e   :  { %5100 = vadd.xlane.f32.xlu1 %v5099_v27 }
0x19a1   :  { %v5023_v0 = vpop.xlane.xlu0 %5022 }
0x19a2   :  { %v5032_v10 = vpop.xlane.xlu1 %5031  ;;  %9027 = vrcp.f32 %v5023_v0 }
0x19a3   :  { %9029 = vrcp.f32 %v5032_v10 }
0x19a5   :  { %v5017_v39 = vpop.xlane.xlu0 %5016 }
0x19a6   :  { %v5026_v62 = vpop.xlane.xlu1 %5025 }
0x19a7   :  { %9031 = vrcp.f32 %v5026_v62 }
0x19a8   :  { %9033 = vrcp.f32 %v5017_v39 }
0x19a9   :  { %v5029_v40 = vpop.xlane.xlu0 %5028 }
0x19aa   :  { %9035 = vrcp.f32 %v5029_v40  ;;  %v5020_v63 = vpop.xlane.xlu1 %5019 }
0x19ab   :  { %9037 = vrcp.f32 %v5020_v63 }
0x19ac   :  { %v9028_v31 = vpop.eup %9027 }
0x19ad   :  { %v4825_v20 = vpop.xlane.xlu0 %4824  ;;  %v9030_v30 = vpop.eup %9029 }
0x19ae   :  { %v4897_v52 = vsub.f32 %v10744_v36, %v4825_v20  ;;  %v4834_v5 = vpop.xlane.xlu1 %4833  ;;  %v5167_v36 = vmul.f32 %v9030_v30, %v10711_v13 }
0x19af   :  { %v4900_v15 = vsub.f32 %v10751_v28, %v4834_v5  ;;  %v5161_v5 = vmul.f32 %v9028_v31, %v10708_v12  ;;  %v11714_v31 = vld [vmem:[#allocation17_spill] sm:$0xff] }
0x19b0   :  { %v4980_v24 = vmul.f32 1.442695, %v4897_v52 }
0x19b1   :  { %v4819_v44 = vpop.xlane.xlu0 %4818  ;;  %v9032_v14 = vpop.eup %9031  ;;  %v4986_v39 = vmul.f32 1.442695, %v4900_v15 }
0x19b2   :  { %9039 = vpow2.f32 %v4980_v24  ;;  %v4895_v45 = vsub.f32 %v10760_v16, %v4819_v44  ;;  %v4828_v42 = vpop.xlane.xlu1 %4827  ;;  %v9034_v27 = vpop.eup %9033  ;;  %v5163_v28 = vmul.f32 %v9032_v14, %v10724_v18  ;;  %v5251_v18 = vpack.c.bf16 %v5167_v36, %v5167_v36 }
0x19b3   :  { %v4898_v0 = vsub.f32 %v10768_v8, %v4828_v42  ;;  %v5157_v8 = vmul.f32 %v9034_v27, %v10721_v48 }
0x19b4   :  { %v9036_v10 = vpop.eup %9035  ;;  %v4976_v62 = vmul.f32 1.442695, %v4895_v45 }
0x19b5   :  { %v9038_v40 = vpop.eup %9037  ;;  %v4982_v63 = vmul.f32 1.442695, %v4898_v0  ;;  %v4831_v20 = vpop.xlane.xlu0 %4830  ;;  %v5165_v52 = vmul.f32 %v9036_v10, %v10734_v56  ;;  %v5249_v56 = vpack.c.bf16 %v5161_v5, %v5161_v5 }
0x19b6   :  { %9041 = vpow2.f32 %v4976_v62  ;;  %v4899_v16 = vsub.f32 %v10774_v43, %v4831_v20  ;;  %v4822_v24 = vpop.xlane.xlu1 %4821  ;;  %v5159_v15 = vmul.f32 %v9038_v40, %v10737_v58  ;;  %v11712_v58 = vld [vmem:[#allocation16_spill] sm:$0xff]  ;;  %v11715_v62 = vld [vmem:[#allocation22_spill] sm:$0xff] }
0x19b7   :  { %9043 = vpow2.f32 %v4982_v63  ;;  %v4896_v13 = vsub.f32 %v10780_v60, %v4822_v24  ;;  %v5250_v30 = vpack.c.bf16 %v5165_v52, %v5163_v28  ;;  %v11713_v60 = vld [vmem:[#allocation20_spill] sm:$0xff]  ;;  %v11716_v40 = vld [vmem:[#allocation18_spill] sm:$0xff] }
0x19b8   :  { %9045 = vpow2.f32 %v4986_v39  ;;  %v4984_v44 = vmul.f32 1.442695, %v4899_v16  ;;  %v5248_v45 = vpack.c.bf16 %v5159_v15, %v5157_v8  ;;  %v5538_v0 = vsel %vm1090_vm4, %v11713_v60, 0 }
0x19b9   :  { %v4978_v14 = vmul.f32 1.442695, %v4896_v13  ;;  %8307 = vmatprep.mubr.msk.bf16.mxu1 %vm1498_vm5, %v5250_v30  ;;  %v5041_v12 = vpop.xlane.xlu0 %5040 }
0x19ba   :  { %8299 = vmatprep.mubr.msk.bf16.mxu0 %vm1498_vm5, %v5248_v45  ;;  %8308 = vmatmul.mubr.msk.bf16.vlgmr.msra.gmra.mrb[132].mxu1 %vm1498_vm5, %v5251_v18  ;;  %v5050_v48 = vpop.xlane.xlu1 %5049 }
0x19bb   :  { %9047 = vpow2.f32 %v4978_v14  ;;  %8320 = vmatpush3.bf16.msra.mxu1 %v11712_v58  ;;  %8300 = vmatmul.mubr.msk.bf16.vlgmr.msra.gmra.mrb[128].mxu0 %vm1498_vm5, %v5249_v56 }
0x19bc   :  { %v10984_v43 = vpop.eup %9039  ;;  %9049 = vpow2.f32 %v4984_v44  ;;  %8312 = vmatpush3.bf16.msra.mxu0 %v10364_v37  ;;  %8511 = vmatprep.subr.msk.bf16.mxu1 %vm1090_vm4, %v11713_v60  ;;  %v5476_v37 = vsel %vm1090_vm4, %v11714_v31, 0 }
0x19bd   :  { %8510 = vmatprep.subr.msk.bf16.mxu0 %vm1090_vm4, %v11714_v31  ;;  %v5035_v42 = vpop.xlane.xlu0 %5034  ;;  %v5111_v27 = vsel %vm1498_vm5, %v10984_v43, 0.0  ;;  %9051 = vrcp.f32 %v5041_v12 }
0x19be   :  { %v5044_v10 = vpop.xlane.xlu1 %5043  ;;  %5112 = vadd.xlane.f32.xlu0 %v5111_v27  ;;  %9053 = vrcp.f32 %v5050_v48 }
0x19bf   :  { %8322 = vmatpush3.bf16.msra.mxu1 %v5538_v0  ;;  %9055 = vrcp.f32 %v5044_v10 }
0x19c0   :  { %v10997_v39 = vpop.eup %9041  ;;  %8314 = vmatpush3.bf16.msra.mxu0 %v5476_v37  ;;  %8335 = vmatprep.subr.bf16.mxu1 %v11715_v62  ;;  %9057 = vrcp.f32 %v5035_v42 }
0x19c1   :  { %v11000_v36 = vpop.eup %9043  ;;  %8327 = vmatprep.subr.bf16.mxu0 %v11716_v40  ;;  %v5047_v63 = vpop.xlane.xlu0 %5046  ;;  %v5105_v20 = vsel %vm1498_vm5, %v10997_v39, 0.0 }
0x19c2   :  { %v11005_v28 = vpop.eup %9045  ;;  %9059 = vrcp.f32 %v5047_v63  ;;  %v5038_v52 = vpop.xlane.xlu1 %5037  ;;  %5106 = vadd.xlane.f32.xlu0 %v5105_v20  ;;  %v5114_v5 = vsel %vm1498_vm5, %v11000_v36, 0.0 }
0x19c3   :  { %9061 = vrcp.f32 %v5038_v52  ;;  %5115 = vadd.xlane.f32.xlu1 %v5114_v5  ;;  %v5120_v8 = vsel %vm1498_vm5, %v11005_v28, 0.0 }
0x19c5   :  { %v11009_v16 = vpop.eup %9047  ;;  %v4843_v24 = vpop.xlane.xlu0 %4842 }
0x19c6   :  { %v11013_v15 = vpop.eup %9049  ;;  %v4903_v13 = vsub.f32 %v10812_v55, %v4843_v24  ;;  %v4852_v30 = vpop.xlane.xlu1 %4851  ;;  %5121 = vadd.xlane.f32.xlu0 %v5120_v8  ;;  %v5108_v44 = vsel %vm1498_vm5, %v11009_v16, 0.0 }
0x19c7   :  { %5109 = vadd.xlane.f32.xlu1 %v5108_v44  ;;  %v9052_v45 = vpop.eup %9051  ;;  %v4906_v14 = vsub.f32 %v10819_v21, %v4852_v30  ;;  %v5117_v48 = vsel %vm1498_vm5, %v11013_v15, 0.0 }
0x19c8   :  { %v4992_v18 = vmul.f32 1.442695, %v4903_v13  ;;  %v9054_v12 = vpop.eup %9053  ;;  %v5173_v5 = vmul.f32 %v9052_v45, %v10784_v54 }
0x19c9   :  { %v4837_v56 = vpop.xlane.xlu0 %4836  ;;  %v9056_v58 = vpop.eup %9055  ;;  %v4998_v27 = vmul.f32 1.442695, %v4906_v14  ;;  %v5179_v37 = vmul.f32 %v9054_v12, %v10788_v32  ;;  %v11717_v12 = vld [vmem:[#allocation21_spill] sm:$0xff] }
0x19ca   :  { %9063 = vpow2.f32 %v4992_v18  ;;  %v4901_v60 = vsub.f32 %v10826_v11, %v4837_v56  ;;  %v4846_v55 = vpop.xlane.xlu1 %4845  ;;  %5118 = vadd.xlane.f32.xlu0 %v5117_v48  ;;  %v9058_v31 = vpop.eup %9057  ;;  %v5175_v20 = vmul.f32 %v9056_v58, %v10796_v41  ;;  %v5662_v58 = vsel %vm1090_vm4, %v11717_v12, 0 }
0x19cb   :  { %v4904_v10 = vsub.f32 %v10834_v57, %v4846_v55  ;;  %v5169_v8 = vmul.f32 %v9058_v31, %v10792_v53  ;;  %v5255_v18 = vpack.c.bf16 %v5179_v37, %v5179_v37  ;;  %v11719_v31 = vld [vmem:[#allocation24_spill] sm:$0xff] }
0x19cc   :  { %v9060_v42 = vpop.eup %9059  ;;  %v4988_v0 = vmul.f32 1.442695, %v4901_v60 }
0x19cd   :  { %v9062_v21 = vpop.eup %9061  ;;  %v4849_v63 = vpop.xlane.xlu0 %4848  ;;  %v5177_v52 = vmul.f32 %v9060_v42, %v10800_v59  ;;  %v4994_v32 = vmul.f32 1.442695, %v4904_v10  ;;  %v5253_v59 = vpack.c.bf16 %v5173_v5, %v5173_v5  ;;  %v11720_v42 = vld [vmem:[#allocation36_spill] sm:$0xff] }
0x19ce   :  { %9065 = vpow2.f32 %v4988_v0  ;;  %v4905_v11 = vsub.f32 %v10840_v1, %v4849_v63  ;;  %v4840_v24 = vpop.xlane.xlu1 %4839  ;;  %v5171_v13 = vmul.f32 %v9062_v21, %v10805_v19 }
0x19cf   :  { %v4902_v57 = vsub.f32 %v10847_v29, %v4840_v24  ;;  %v5254_v30 = vpack.c.bf16 %v5177_v52, %v5175_v20  ;;  %9067 = vpow2.f32 %v4998_v27 }
0x19d0   :  { %v5252_v44 = vpack.c.bf16 %v5171_v13, %v5169_v8  ;;  %v4996_v41 = vmul.f32 1.442695, %v4905_v11 }
0x19d1   :  { %v4990_v14 = vmul.f32 1.442695, %v4902_v57  ;;  %8323 = vmatprep.mubr.msk.bf16.mxu1 %vm1498_vm5, %v5254_v30  ;;  %v4861_v54 = vpop.xlane.xlu0 %4860 }
0x19d2   :  { %v4909_v1 = vsub.f32 %v10854_v23, %v4861_v54  ;;  %8315 = vmatprep.mubr.msk.bf16.mxu0 %vm1498_vm5, %v5252_v44  ;;  %8324 = vmatmul.mubr.msk.bf16.vlgmr.msra.gmra.mrb[136].mxu1 %vm1498_vm5, %v5255_v18  ;;  %v4858_v53 = vpop.xlane.xlu1 %4857  ;;  %v11718_v23 = vld [vmem:[#allocation19_spill] sm:$0xff] }
0x19d3   :  { %9069 = vpow2.f32 %v4990_v14  ;;  %8336 = vmatpush3.bf16.msra.mxu1 %v11715_v62  ;;  %8316 = vmatmul.mubr.msk.bf16.vlgmr.msra.gmra.mrb[132].mxu0 %vm1498_vm5, %v5253_v59  ;;  %v4908_v45 = vsub.f32 %v10861_v2, %v4858_v53  ;;  %v5600_v2 = vsel %vm1090_vm4, %v11718_v23, 0  ;;  %v11722_v14 = vld [vmem:[#allocation14_spill] sm:$0xff] }
0x19d4   :  { %v11037_v19 = vpop.eup %9063  ;;  %9071 = vpow2.f32 %v4994_v32  ;;  %v5004_v29 = vmul.f32 1.442695, %v4909_v1  ;;  %8328 = vmatpush3.bf16.msra.mxu0 %v11716_v40  ;;  %8513 = vmatprep.subr.msk.bf16.mxu1 %vm1090_vm4, %v11717_v12 }
0x19d5   :  { %9073 = vpow2.f32 %v4996_v41  ;;  %8512 = vmatprep.subr.msk.bf16.mxu0 %vm1090_vm4, %v11718_v23  ;;  %v4855_v56 = vpop.xlane.xlu0 %4854  ;;  %v5129_v62 = vsel %vm1498_vm5, %v11037_v19, 0.0  ;;  %v5002_v60 = vmul.f32 1.442695, %v4908_v45  ;;  %v11721_v41 = vld [vmem:[#allocation15_spill] sm:$0xff] }
0x19d6   :  { %v4907_v48 = vsub.f32 %v10867_v38, %v4855_v56  ;;  %5130 = vadd.xlane.f32.xlu1 %v5129_v62  ;;  %9075 = vpow2.f32 %v5004_v29  ;;  %v11096_v54 = vpop.permute.xlu1 %6148 }
0x19d7   :  { %8338 = vmatpush3.bf16.msra.mxu1 %v5662_v58 }
0x19d8   :  { %v11052_v40 = vpop.eup %9065  ;;  %v5000_v55 = vmul.f32 1.442695, %v4907_v48  ;;  %8330 = vmatpush3.bf16.msra.mxu0 %v5600_v2  ;;  %8351 = vmatprep.subr.bf16.mxu1 %v11719_v31 }
0x19d9   :  { %8343 = vmatprep.subr.bf16.mxu0 %v11720_v42  ;;  %v5123_v38 = vsel %vm1498_vm5, %v11052_v40, 0.0  ;;  %v11058_v27 = vpop.eup %9067  ;;  %v11098_v59 = vpop.permute.xlu0 %6146 }
0x19da   :  { %9077 = vpow2.f32 %v5000_v55  ;;  %5124 = vadd.xlane.f32.xlu1 %v5123_v38  ;;  %v5138_v10 = vsel %vm1498_vm5, %v11058_v27, 0.0 }
0x19db   :  { %9079 = vpow2.f32 %v5002_v60 }
0x19dd   :  { %v11060_v0 = vpop.eup %9069 }
0x19de   :  { %v11064_v37 = vpop.eup %9071  ;;  %5139 = vadd.xlane.f32.xlu1 %v5138_v10  ;;  %v5126_v21 = vsel %vm1498_vm5, %v11060_v0, 0.0 }
0x19df   :  { %v11068_v63 = vpop.eup %9073  ;;  %5127 = vadd.xlane.f32.xlu0 %v5126_v21  ;;  %v5132_v20 = vsel %vm1498_vm5, %v11064_v37, 0.0 }
0x19e0   :  { %v11072_v52 = vpop.eup %9075  ;;  %v5135_v5 = vsel %vm1498_vm5, %v11068_v63, 0.0 }
0x19e1   :  { %v5147_v13 = vsel %vm1498_vm5, %v11072_v52, 0.0 }
0x19e2   :  { %5133 = vadd.xlane.f32.xlu1 %v5132_v20 }
0x19e3   :  { %5136 = vadd.xlane.f32.xlu0 %v5135_v5 }
0x19e4   :  { %v11076_v11 = vpop.eup %9077  ;;  %v11078_v24 = vpop.f32.mrb[124].mxu0 }
0x19e5   :  { %v11080_v8 = vpop.f32.mrb[125].mxu0  ;;  %v5141_v57 = vsel %vm1498_vm5, %v11076_v11, 0.0  ;;  %v11086_v30 = vpop.eup %9079 }
0x19e6   :  { %v8294_v32 = vpop.f32.mrb[126].mxu0  ;;  %5148 = vadd.xlane.f32.xlu1 %v5147_v13  ;;  %v5144_v18 = vsel %vm1498_vm5, %v11086_v30, 0.0 }
0x19e7   :  { %v11088_v44 = vpop.f32.mrb[127].mxu0  ;;  %5142 = vadd.xlane.f32.xlu0 %v5141_v57 }
0x19ea   :  { %5145 = vadd.xlane.f32.xlu1 %v5144_v18 }
0x19fb   :  { %6210 = vrot.lane.b32.xlu1 %v11721_v41, %s9220_s24 }
0x19fd   :  { %6208 = vrot.lane.b32.xlu0 %v11722_v14, %s9220_s24  ;;  %s9251_s24 = smov 43  }
0x1a07   :  { %v5059_v1 = vpop.xlane.xlu1 %5058 }
0x1a08   :  { %9081 = vrcp.f32 %v5059_v1 }
0x1a0a   :  { %v5068_v53 = vpop.xlane.xlu0 %5067 }
0x1a0b   :  { %v5053_v29 = vpop.xlane.xlu1 %5052 }
0x1a0c   :  { %9083 = vrcp.f32 %v5053_v29 }
0x1a0e   :  { %v5062_v45 = vpop.xlane.xlu0 %5061 }
0x1a0f   :  { %v5056_v12 = vpop.xlane.xlu1 %5055 }
0x1a10   :  { %9085 = vrcp.f32 %v5056_v12 }
0x1a11   :  { %9087 = vrcp.f32 %v5068_v53 }
0x1a12   :  { %9089 = vrcp.f32 %v5062_v45  ;;  %v5086_v23 = vpop.xlane.xlu0 %5085  ;;  %v9082_v48 = vpop.eup %9081 }
0x1a13   :  { %v5065_v56 = vpop.xlane.xlu1 %5064  ;;  %v5185_v55 = vmul.f32 %v9082_v48, %v10886_v35 }
0x1a14   :  { %9091 = vrcp.f32 %v5065_v56 }
0x1a15   :  { %v5257_v14 = vpack.c.bf16 %v5185_v55, %v5185_v55 }
0x1a16   :  { %v5080_v62 = vpop.xlane.xlu0 %5079  ;;  %v9084_v2 = vpop.eup %9083 }
0x1a17   :  { %v5077_v58 = vpop.xlane.xlu1 %5076  ;;  %v5181_v20 = vmul.f32 %v9084_v2, %v10894_v25 }
0x1a18   :  { %9093 = vrcp.f32 %v5077_v58 }
0x1a1a   :  { %v9086_v60 = vpop.eup %9085  ;;  %v5095_v38 = vpop.xlane.xlu0 %5094 }
0x1a1b   :  { %v9088_v10 = vpop.eup %9087  ;;  %v5071_v21 = vpop.xlane.xlu1 %5070  ;;  %v5183_v5 = vmul.f32 %v9086_v60, %v10904_v61  ;;  %v11723_v61 = vld [vmem:[#allocation23_spill] sm:$0xff] }
0x1a1c   :  { %v9090_v13 = vpop.eup %9089  ;;  %v5191_v18 = vmul.f32 %v9088_v10, %v10890_v51  ;;  %9095 = vrcp.f32 %v5071_v21 }
0x1a1d   :  { %v5256_v57 = vpack.c.bf16 %v5183_v5, %v5181_v20  ;;  %v5187_v35 = vmul.f32 %v9090_v13, %v10900_v3  ;;  %v5724_v3 = vsel %vm1090_vm4, %v11723_v61, 0 }
0x1a1e   :  { %v9092_v32 = vpop.eup %9091  ;;  %v5089_v41 = vpop.xlane.xlu0 %5088  ;;  %v5259_v29 = vpack.c.bf16 %v5191_v18, %v5191_v18 }
0x1a1f   :  { %8331 = vmatprep.mubr.msk.bf16.mxu0 %vm1498_vm5, %v5256_v57  ;;  %v5074_v1 = vpop.xlane.xlu1 %5073  ;;  %v5189_v53 = vmul.f32 %v9092_v32, %v10914_v17  ;;  %v11724_v17 = vld [vmem:[#allocation26_spill] sm:$0xff] }
0x1a20   :  { %9097 = vrcp.f32 %v5074_v1  ;;  %8332 = vmatmul.mubr.msk.bf16.vlgmr.msra.gmra.mrb[136].mxu0 %vm1498_vm5, %v5257_v14  ;;  %v5786_v48 = vsel %vm1090_vm4, %v11724_v17, 0  ;;  %v11727_v1 = vld [vmem:[#allocation27_spill] sm:$0xff] }
0x1a21   :  { %9099 = vrcp.f32 %v5086_v23  ;;  %8344 = vmatpush3.bf16.msra.mxu0 %v11720_v42  ;;  %v5258_v25 = vpack.c.bf16 %v5189_v53, %v5187_v35  ;;  %v11725_v42 = vld [vmem:[#allocation25_spill] sm:$0xff] }
0x1a22   :  { %9101 = vrcp.f32 %v5080_v62  ;;  %8514 = vmatprep.subr.msk.bf16.mxu0 %vm1090_vm4, %v11723_v61  ;;  %v5104_v51 = vpop.xlane.xlu0 %5103  ;;  %v9094_v12 = vpop.eup %9093 }
0x1a23   :  { %v5083_v45 = vpop.xlane.xlu1 %5082  ;;  %8339 = vmatprep.mubr.msk.bf16.mxu1 %vm1498_vm5, %v5258_v25  ;;  %v5197_v2 = vmul.f32 %v9094_v12, %v10924_v22  ;;  %v5848_v25 = vsel %vm1090_vm4, %v11727_v1, 0  ;;  %v11731_v12 = vld [vmem:[#allocation31_spill] sm:$0xff] }
0x1a24   :  { %9103 = vrcp.f32 %v5083_v45  ;;  %8340 = vmatmul.mubr.msk.bf16.vlgmr.msra.gmra.mrb[140].mxu1 %vm1498_vm5, %v5259_v29  ;;  %v11728_v29 = vld [vmem:[#allocation30_spill] sm:$0xff]  ;;  %v11729_v45 = vld [vmem:[#allocation35_spill] sm:$0xff] }
0x1a25   :  { %9105 = vrcp.f32 %v5095_v38  ;;  %8346 = vmatpush3.bf16.msra.mxu0 %v5724_v3  ;;  %8352 = vmatpush3.bf16.msra.mxu1 %v11719_v31  ;;  %v11726_v31 = vld [vmem:[#allocation28_spill] sm:$0xff]  ;;  %v5261_v57 = vpack.c.bf16 %v5197_v2, %v5197_v2 }
0x1a26   :  { %9107 = vrcp.f32 %v5089_v41  ;;  %8515 = vmatprep.subr.msk.bf16.mxu1 %vm1090_vm4, %v11724_v17  ;;  %8359 = vmatprep.subr.bf16.mxu0 %v11725_v42  ;;  %v5098_v23 = vpop.xlane.xlu0 %5097  ;;  %v9096_v62 = vpop.eup %9095  ;;  %v5910_v17 = vsel %vm1090_vm4, %v11728_v29, 0 }
0x1a27   :  { %v5092_v56 = vpop.xlane.xlu1 %5091  ;;  %v5193_v38 = vmul.f32 %v9096_v62, %v10933_v50 }
0x1a28   :  { %9109 = vrcp.f32 %v5092_v56  ;;  %v11733_v56 = vld [vmem:[#allocation32_spill] sm:$0xff] }
0x1a29   :  { %9111 = vrcp.f32 %v5104_v51  ;;  %8354 = vmatpush3.bf16.msra.mxu1 %v5786_v48 }
0x1a2a   :  { %v9098_v58 = vpop.eup %9097  ;;  %9113 = vrcp.f32 %v5098_v23  ;;  %8367 = vmatprep.subr.bf16.mxu1 %v11726_v31 }
0x1a2b   :  { %v9100_v60 = vpop.eup %9099  ;;  %v5101_v55 = vpop.xlane.xlu1 %5100  ;;  %v5195_v10 = vmul.f32 %v9098_v58, %v10941_v6 }
0x1a2c   :  { %v9102_v21 = vpop.eup %9101  ;;  %9115 = vrcp.f32 %v5101_v55  ;;  %v5203_v13 = vmul.f32 %v9100_v60, %v10910_v7 }
0x1a2d   :  { %v5260_v20 = vpack.c.bf16 %v5195_v10, %v5193_v38  ;;  %v5199_v22 = vmul.f32 %v9102_v21, %v10920_v49 }
0x1a2e   :  { %v9104_v5 = vpop.eup %9103  ;;  %v5263_v7 = vpack.c.bf16 %v5203_v13, %v5203_v13 }
0x1a2f   :  { %v9106_v32 = vpop.eup %9105  ;;  %8347 = vmatprep.mubr.msk.bf16.mxu0 %vm1498_vm5, %v5260_v20  ;;  %v5201_v18 = vmul.f32 %v9104_v5, %v10949_v47 }
0x1a30   :  { %v9108_v41 = vpop.eup %9107  ;;  %8348 = vmatmul.mubr.msk.bf16.vlgmr.msra.gmra.mrb[140].mxu0 %vm1498_vm5, %v5261_v57  ;;  %v5209_v14 = vmul.f32 %v9106_v32, %v10929_v46 }
0x1a31   :  { %8360 = vmatpush3.bf16.msra.mxu0 %v11725_v42  ;;  %v5262_v50 = vpack.c.bf16 %v5201_v18, %v5199_v22  ;;  %v5205_v49 = vmul.f32 %v9108_v41, %v10937_v9  ;;  %v11730_v42 = vld [vmem:[#allocation29_spill] sm:$0xff] }
0x1a32   :  { %v9110_v6 = vpop.eup %9109  ;;  %8516 = vmatprep.subr.msk.bf16.mxu0 %vm1090_vm4, %v11727_v1  ;;  %v5265_v9 = vpack.c.bf16 %v5209_v14, %v5209_v14 }
0x1a33   :  { %v9112_v35 = vpop.eup %9111  ;;  %8355 = vmatprep.mubr.msk.bf16.mxu1 %vm1498_vm5, %v5262_v50  ;;  %v5207_v47 = vmul.f32 %v9110_v6, %v10957_v26 }
0x1a34   :  { %v9114_v53 = vpop.eup %9113  ;;  %8356 = vmatmul.mubr.msk.bf16.vlgmr.msra.gmra.mrb[144].mxu1 %vm1498_vm5, %v5263_v7  ;;  %v5215_v51 = vmul.f32 %v9112_v35, %v10945_v33  ;;  %v11734_v7 = vld [vmem:[#allocation34_spill] sm:$0xff] }
0x1a35   :  { %8362 = vmatpush3.bf16.msra.mxu0 %v5848_v25  ;;  %8368 = vmatpush3.bf16.msra.mxu1 %v11726_v31  ;;  %v5264_v46 = vpack.c.bf16 %v5207_v47, %v5205_v49  ;;  %v5211_v26 = vmul.f32 %v9114_v53, %v10953_v4  ;;  %v5972_v4 = vsel %vm1090_vm4, %v11730_v42, 0 }
0x1a36   :  { %v9116_v61 = vpop.eup %9115  ;;  %8517 = vmatprep.subr.msk.bf16.mxu1 %vm1090_vm4, %v11728_v29  ;;  %8375 = vmatprep.subr.bf16.mxu0 %v11729_v45  ;;  %v5267_v23 = vpack.c.bf16 %v5215_v51, %v5215_v51 }
0x1a37   :  { %8363 = vmatprep.mubr.msk.bf16.mxu0 %vm1498_vm5, %v5264_v46  ;;  %v5213_v3 = vmul.f32 %v9116_v61, %v10963_v34  ;;  %v11732_v34 = vld [vmem:[#allocation33_spill] sm:$0xff] }
0x1a38   :  { %8364 = vmatmul.mubr.msk.bf16.vlgmr.msra.gmra.mrb[144].mxu0 %vm1498_vm5, %v5265_v9  ;;  %v6034_v62 = vsel %vm1090_vm4, %v11732_v34, 0 }
0x1a39   :  { %8370 = vmatpush3.bf16.msra.mxu1 %v5910_v17  ;;  %8376 = vmatpush3.bf16.msra.mxu0 %v11729_v45  ;;  %v5266_v33 = vpack.c.bf16 %v5213_v3, %v5211_v26 }
0x1a3a   :  { %8518 = vmatprep.subr.msk.bf16.mxu0 %vm1090_vm4, %v11730_v42  ;;  %8383 = vmatprep.subr.bf16.mxu1 %v11731_v12 }
0x1a3b   :  { %8371 = vmatprep.mubr.msk.bf16.mxu1 %vm1498_vm5, %v5266_v33 }
0x1a3c   :  { %8372 = vmatmul.mubr.msk.bf16.vlgmr.msra.gmra.mrb[148].mxu1 %vm1498_vm5, %v5267_v23 }
0x1a3d   :  { %8378 = vmatpush3.bf16.msra.mxu0 %v5972_v4  ;;  %8384 = vmatpush3.bf16.msra.mxu1 %v11731_v12 }
0x1a3e   :  { %8519 = vmatprep.subr.msk.bf16.mxu1 %vm1090_vm4, %v11732_v34  ;;  %8391 = vmatprep.subr.bf16.mxu0 %v11733_v56 }
0x1a41   :  { %8386 = vmatpush3.bf16.msra.mxu1 %v6034_v62 }
0x1a42   :  { %8399 = vmatprep.subr.bf16.mxu1 %v11098_v59 }
0x1a4b   :  { %v5113_v48 = vpop.xlane.xlu0 %5112 }
0x1a4c   :  { %9117 = vrcp.f32 %v5113_v48 }
0x1a4f   :  { %v5107_v58 = vpop.xlane.xlu0 %5106 }
0x1a50   :  { %v5116_v2 = vpop.xlane.xlu1 %5115  ;;  %9119 = vrcp.f32 %v5107_v58 }
0x1a53   :  { %v5122_v31 = vpop.xlane.xlu0 %5121 }
0x1a54   :  { %9121 = vrcp.f32 %v5122_v31  ;;  %v5110_v60 = vpop.xlane.xlu1 %5109 }
0x1a55   :  { %9123 = vrcp.f32 %v5110_v60 }
0x1a56   :  { %9125 = vrcp.f32 %v5116_v2  ;;  %v9118_v38 = vpop.eup %9117 }
0x1a57   :  { %v5119_v55 = vpop.xlane.xlu0 %5118  ;;  %v5221_v5 = vmul.f32 %v9118_v38, %v10984_v43 }
0x1a58   :  { %9127 = vrcp.f32 %v5119_v55 }
0x1a59   :  { %v5269_v6 = vpack.c.bf16 %v5221_v5, %v5221_v5 }
0x1a5a   :  { %v9120_v10 = vpop.eup %9119 }
0x1a5b   :  { %v5217_v57 = vmul.f32 %v9120_v10, %v10997_v39 }
0x1a5e   :  { %v9122_v21 = vpop.eup %9121 }
0x1a5f   :  { %v9124_v20 = vpop.eup %9123  ;;  %v5227_v18 = vmul.f32 %v9122_v21, %v11005_v28 }
0x1a60   :  { %v9126_v13 = vpop.eup %9125  ;;  %v5219_v32 = vmul.f32 %v9124_v20, %v11009_v16 }
0x1a61   :  { %v5223_v14 = vmul.f32 %v9126_v13, %v11000_v36  ;;  %v5271_v39 = vpack.c.bf16 %v5227_v18, %v5227_v18  ;;  %v6096_v36 = vsel %vm1090_vm4, %v11734_v7, 0 }
0x1a62   :  { %v9128_v22 = vpop.eup %9127  ;;  %v5268_v41 = vpack.c.bf16 %v5219_v32, %v5217_v57 }
0x1a63   :  { %v5131_v50 = vpop.xlane.xlu1 %5130  ;;  %v5225_v1 = vmul.f32 %v9128_v22, %v11013_v15  ;;  %v6158_v15 = vsel %vm1090_vm4, %v11096_v54, 0 }
0x1a64   :  { %8379 = vmatprep.mubr.msk.bf16.mxu0 %vm1498_vm5, %v5268_v41  ;;  %9129 = vrcp.f32 %v5131_v50 }
0x1a65   :  { %8380 = vmatmul.mubr.msk.bf16.vlgmr.msra.gmra.mrb[148].mxu0 %vm1498_vm5, %v5269_v6  ;;  %v5270_v43 = vpack.c.bf16 %v5225_v1, %v5223_v14 }
0x1a66   :  { %8392 = vmatpush3.bf16.msra.mxu0 %v11733_v56 }
0x1a67   :  { %8520 = vmatprep.subr.msk.bf16.mxu0 %vm1090_vm4, %v11734_v7  ;;  %v5125_v16 = vpop.xlane.xlu1 %5124  ;;  %8387 = vmatprep.mubr.msk.bf16.mxu1 %vm1498_vm5, %v5270_v43 }
0x1a68   :  { %8388 = vmatmul.mubr.msk.bf16.vlgmr.msra.gmra.mrb[152].mxu1 %vm1498_vm5, %v5271_v39  ;;  %9131 = vrcp.f32 %v5125_v16 }
0x1a69   :  { %8400 = vmatpush3.bf16.msra.mxu1 %v11098_v59 }
0x1a6a   :  { %8394 = vmatpush3.bf16.msra.mxu0 %v6096_v36  ;;  %8521 = vmatprep.subr.msk.bf16.mxu1 %vm1090_vm4, %v11096_v54 }
0x1a6b   :  { %v5140_v28 = vpop.xlane.xlu1 %5139 }
0x1a6c   :  { %v5128_v35 = vpop.xlane.xlu0 %5127 }
0x1a6d   :  { %8402 = vmatpush3.bf16.msra.mxu1 %v6158_v15  ;;  %9133 = vrcp.f32 %v5128_v35 }
0x1a6e   :  { %9135 = vrcp.f32 %v5140_v28  ;;  %v9130_v53 = vpop.eup %9129 }
0x1a6f   :  { %v5134_v49 = vpop.xlane.xlu1 %5133  ;;  %v5233_v51 = vmul.f32 %v9130_v53, %v11037_v19 }
0x1a70   :  { %9137 = vrcp.f32 %v5134_v49  ;;  %v5137_v59 = vpop.xlane.xlu0 %5136 }
0x1a71   :  { %9139 = vrcp.f32 %v5137_v59  ;;  %v5273_v12 = vpack.c.bf16 %v5233_v51, %v5233_v51 }
0x1a72   :  { %v9132_v46 = vpop.eup %9131 }
0x1a73   :  { %v5149_v47 = vpop.xlane.xlu1 %5148  ;;  %v5229_v9 = vmul.f32 %v9132_v46, %v11052_v40 }
0x1a74   :  { %v5143_v25 = vpop.xlane.xlu0 %5142  ;;  %9141 = vrcp.f32 %v5149_v47 }
0x1a75   :  { %9143 = vrcp.f32 %v5143_v25 }
0x1a77   :  { %v9134_v61 = vpop.eup %9133  ;;  %v5146_v29 = vpop.xlane.xlu1 %5145 }
0x1a78   :  { %v9136_v45 = vpop.eup %9135  ;;  %9145 = vrcp.f32 %v5146_v29  ;;  %v6209_v54 = vpop.permute.xlu0 %6208  ;;  %v5231_v26 = vmul.f32 %v9134_v61, %v11060_v0 }
0x1a79   :  { %8407 = vmatprep.subr.bf16.mxu0 %v6209_v54  ;;  %v5239_v42 = vmul.f32 %v9136_v45, %v11058_v27 }
0x1a7a   :  { %v9138_v3 = vpop.eup %9137  ;;  %v5272_v17 = vpack.c.bf16 %v5231_v26, %v5229_v9 }
0x1a7b   :  { %v9140_v33 = vpop.eup %9139  ;;  %v5235_v23 = vmul.f32 %v9138_v3, %v11064_v37  ;;  %v6211_v4 = vpop.permute.xlu1 %6210  ;;  %v5275_v0 = vpack.c.bf16 %v5239_v42, %v5239_v42 }
0x1a7c   :  { %8395 = vmatprep.mubr.msk.bf16.mxu0 %vm1498_vm5, %v5272_v17  ;;  %v5237_v19 = vmul.f32 %v9140_v33, %v11068_v63  ;;  %v6220_v27 = vsel %vm1090_vm4, %v6211_v4, 0 }
0x1a7d   :  { %8396 = vmatmul.mubr.msk.bf16.vlgmr.msra.gmra.mrb[152].mxu0 %vm1498_vm5, %v5273_v12 }
0x1a7e   :  { %8408 = vmatpush3.bf16.msra.mxu0 %v6209_v54  ;;  %v5274_v40 = vpack.c.bf16 %v5237_v19, %v5235_v23  ;;  %v9142_v34 = vpop.eup %9141 }
0x1a7f   :  { %8522 = vmatprep.subr.msk.bf16.mxu0 %vm1090_vm4, %v6211_v4  ;;  %v9144_v56 = vpop.eup %9143  ;;  %v5245_v62 = vmul.f32 %v9142_v34, %v11072_v52 }
0x1a80   :  { %8403 = vmatprep.mubr.msk.bf16.mxu1 %vm1498_vm5, %v5274_v40  ;;  %v5241_v63 = vmul.f32 %v9144_v56, %v11076_v11 }
0x1a81   :  { %8404 = vmatmul.mubr.msk.bf16.vlgmr.msra.gmra.mrb[156].mxu1 %vm1498_vm5, %v5275_v0  ;;  %v5277_v2 = vpack.c.bf16 %v5245_v62, %v5245_v62 }
0x1a82   :  { %v9146_v37 = vpop.eup %9145  ;;  %8410 = vmatpush3.bf16.msra.mxu0 %v6220_v27 }
0x1a83   :  { %v5243_v48 = vmul.f32 %v9146_v37, %v11086_v30 }
0x1a85   :  { %v5276_v58 = vpack.c.bf16 %v5243_v48, %v5241_v63 }
0x1a87   :  { %8411 = vmatprep.mubr.msk.bf16.mxu0 %vm1498_vm5, %v5276_v58 }
0x1a88   :  { %8412 = vmatmul.mubr.msk.bf16.vlgmr.msra.gmra.mrb[156].mxu0 %vm1498_vm5, %v5277_v2 }
0x1a8d   :  { %v11203_v31 = vpop.f32.mrb[132].mxu1 }
0x1a8e   :  { %v11205_v60 = vpop.f32.mrb[128].mxu0  ;;  %v11207_v55 = vpop.f32.mrb[133].mxu1 }
0x1a8f   :  { %v11209_v38 = vpop.f32.mrb[129].mxu0  ;;  %v8310_v52 = vpop.f32.mrb[134].mxu1 }
0x1a90   :  { %v8302_v10 = vpop.f32.mrb[130].mxu0  ;;  %v11211_v21 = vpop.f32.mrb[135].mxu1  ;;  %v8853_v52 = vld [vmem:[%s7357_s23] sm:$0xff]  }
0x1a91   :  { %v11213_v11 = vpop.f32.mrb[131].mxu0  ;;  %8415 = vmatprep.subr.bf16.mxu1 %v8853_v52  ;;  %v8854_v10 = vld [vmem:[%s7357_s23 + $0x8] sm:$0xff]  }
0x1a92   :  { %8416 = vmatpush3.bf16.msra.mxu1 %v8853_v52 }
0x1a93   :  { %8417 = vmatprep.subr.bf16.mxu1 %v8854_v10 }
0x1a96   :  { %8418 = vmatpush3.bf16.msra.mxu1 %v8854_v10 }
0x1aa5   :  { %v8325_v30 = vpop.f32.mrb[136].mxu1 }
0x1aa6   :  { %v11215_v20 = vpop.f32.mrb[132].mxu0  ;;  %v5574_v5 = vpop.f32.mrb[137].mxu1 }
0x1aa7   :  { %v11217_v13 = vpop.f32.mrb[133].mxu0  ;;  %v8326_v57 = vpop.f32.mrb[138].mxu1 }
0x1aa8   :  { %v8318_v32 = vpop.f32.mrb[134].mxu0  ;;  %v5577_v22 = vpop.f32.mrb[139].mxu1 }
0x1aa9   :  { %v8733_v18 = vpack.i.bf16 %v5577_v22, %v5574_v5  ;;  %v11219_v41 = vpop.f32.mrb[135].mxu0 }
0x1aab   :  { %8734 = vrot.lane.b32.xlu0 %v8733_v18, %s9222_s29 }
0x1af3   :  { %v8333_v50 = vpop.f32.mrb[136].mxu0 }
0x1af4   :  { %v5636_v6 = vpop.f32.mrb[137].mxu0 }
0x1af5   :  { %v8738_v14 = vpack.i.bf16 %v5636_v6, %v8325_v30  ;;  %v8334_v1 = vpop.f32.mrb[138].mxu0 }
0x1af6   :  { %v5639_v43 = vpop.f32.mrb[139].mxu0 }
0x1af7   :  { %v8743_v39 = vpack.i.bf16 %v8333_v50, %v5639_v43  ;;  %8739 = vrot.lane.b32.xlu1 %v8738_v14, %s9222_s29  ;;  %v8341_v7 = vpop.f32.mrb[140].mxu1 }
0x1af8   :  { %v5698_v16 = vpop.f32.mrb[141].mxu1 }
0x1af9   :  { %8744 = vrot.lane.b32.xlu0 %v8743_v39, %s9222_s29  ;;  %v8342_v36 = vpop.f32.mrb[142].mxu1 }
0x1afa   :  { %v5701_v28 = vpop.f32.mrb[143].mxu1 }
0x1afb   :  { %v8748_v15 = vpack.i.bf16 %v5701_v28, %v5698_v16 }
0x1afd   :  { %8749 = vrot.lane.b32.xlu1 %v8748_v15, %s9222_s29 }
0x1b03   :  { %v8349_v35 = vpop.f32.mrb[140].mxu0 }
0x1b04   :  { %v5760_v49 = vpop.f32.mrb[141].mxu0 }
0x1b05   :  { %v8778_v59 = vpack.i.bf16 %v5760_v49, %v8341_v7  ;;  %v8350_v47 = vpop.f32.mrb[142].mxu0 }
0x1b06   :  { %v5763_v53 = vpop.f32.mrb[143].mxu0 }
0x1b07   :  { %v8788_v25 = vpack.i.bf16 %v8349_v35, %v5763_v53  ;;  %v8357_v46 = vpop.f32.mrb[144].mxu1 }
0x1b08   :  { %v5822_v61 = vpop.f32.mrb[145].mxu1 }
0x1b09   :  { %v8358_v51 = vpop.f32.mrb[146].mxu1 }
0x1b0a   :  { %v5825_v29 = vpop.f32.mrb[147].mxu1 }
0x1b0b   :  { %v8753_v45 = vpack.i.bf16 %v5825_v29, %v5822_v61  ;;  %v8365_v54 = vpop.f32.mrb[144].mxu0 }
0x1b0c   :  { %v5884_v9 = vpop.f32.mrb[145].mxu0 }
0x1b0d   :  { %v8758_v26 = vpack.i.bf16 %v5884_v9, %v8357_v46  ;;  %8754 = vrot.lane.b32.xlu0 %v8753_v45, %s9223_s3  ;;  %v8366_v3 = vpop.f32.mrb[146].mxu0 }
0x1b0e   :  { %v5887_v17 = vpop.f32.mrb[147].mxu0 }
0x1b0f   :  { %v8763_v33 = vpack.i.bf16 %v8365_v54, %v5887_v17  ;;  %8759 = vrot.lane.b32.xlu1 %v8758_v26, %s9223_s3  ;;  %v8373_v42 = vpop.f32.mrb[148].mxu1 }
0x1b10   :  { %v5946_v12 = vpop.f32.mrb[149].mxu1 }
0x1b11   :  { %8764 = vrot.lane.b32.xlu0 %v8763_v33, %s9223_s3  ;;  %v8374_v23 = vpop.f32.mrb[150].mxu1 }
0x1b12   :  { %v5949_v19 = vpop.f32.mrb[151].mxu1 }
0x1b13   :  { %v8768_v4 = vpack.i.bf16 %v5949_v19, %v5946_v12 }
0x1b15   :  { %8769 = vrot.lane.b32.xlu1 %v8768_v4, %s9223_s3 }
0x1b1d   :  { %v8735_v35 = vpop.permute.xlu0 %8734 }
0x1b1e   :  { %v8737_v53 = vunpack.i.h.bf16 %v8735_v35 }
0x1b20   :  { %v6415_v29 = vsel %vm591_vm3, %v11088_v44, %v8737_v53 }
0x1b38   :  { %v8381_v40 = vpop.f32.mrb[148].mxu0 }
0x1b39   :  { %v6008_v34 = vpop.f32.mrb[149].mxu0 }
0x1b3a   :  { %v8798_v0 = vpack.i.bf16 %v6008_v34, %v8373_v42  ;;  %v8382_v56 = vpop.f32.mrb[150].mxu0 }
0x1b3b   :  { %v6011_v27 = vpop.f32.mrb[151].mxu0  ;;  %v8389_v37 = vpop.f32.mrb[152].mxu1 }
0x1b3c   :  { %v8808_v62 = vpack.i.bf16 %v8381_v40, %v6011_v27  ;;  %v6070_v63 = vpop.f32.mrb[153].mxu1 }
0x1b3d   :  { %v8390_v48 = vpop.f32.mrb[154].mxu1 }
0x1b3e   :  { %v6073_v58 = vpop.f32.mrb[155].mxu1 }
0x1b3f   :  { %v8773_v2 = vpack.i.bf16 %v6073_v58, %v6070_v63 }
0x1b41   :  { %8774 = vrot.lane.b32.xlu0 %v8773_v2, %s9221_s25 }
0x1b45   :  { %8779 = vrot.lane.b32.xlu0 %v8778_v59, %s9222_s29 }
0x1b50   :  { %v8397_v30 = vpop.f32.mrb[152].mxu0 }
0x1b51   :  { %v6132_v5 = vpop.f32.mrb[153].mxu0 }
0x1b52   :  { %v8783_v57 = vpack.i.bf16 %v6132_v5, %v8389_v37  ;;  %v8398_v32 = vpop.f32.mrb[154].mxu0 }
0x1b53   :  { %v6135_v22 = vpop.f32.mrb[155].mxu0 }
0x1b54   :  { %v8793_v18 = vpack.i.bf16 %v8397_v30, %v6135_v22  ;;  %8784 = vrot.lane.b32.xlu1 %v8783_v57, %s9221_s25  ;;  %v8405_v50 = vpop.f32.mrb[156].mxu1 }
0x1b55   :  { %v6194_v6 = vpop.f32.mrb[157].mxu1 }
0x1b56   :  { %8794 = vrot.lane.b32.xlu0 %v8793_v18, %s9221_s25  ;;  %v8406_v14 = vpop.f32.mrb[158].mxu1 }
0x1b57   :  { %v6197_v1 = vpop.f32.mrb[159].mxu1 }
0x1b58   :  { %v8803_v43 = vpack.i.bf16 %v6197_v1, %v6194_v6  ;;  %8789 = vrot.lane.b32.xlu1 %v8788_v25, %s9222_s29  ;;  %v8736_v25 = vunpack.i.l.bf16 %v8735_v35  ;;  %s9259_s29 = smov 52  }
0x1b59   :  { %s7365_s5 = sld [smem:[%s11621_s0 + %s9259_s29]]  }
0x1b5a   :  { %8799 = vrot.lane.b32.xlu0 %v8798_v0, %s9223_s3  ;;  %v6414_v45 = vsel %vm591_vm3, %v11080_v8, %v8736_v25 }
0x1b5b   :  { %v8413_v39 = vpop.f32.mrb[156].mxu0 }
0x1b5c   :  { %8804 = vrot.lane.b32.xlu1 %v8803_v43, %s9221_s25  ;;  %v6256_v7 = vpop.f32.mrb[157].mxu0 }
0x1b5d   :  { %v8813_v16 = vpack.i.bf16 %v6256_v7, %v8405_v50  ;;  %v8414_v36 = vpop.f32.mrb[158].mxu0 }
0x1b5e   :  { %v6259_v28 = vpop.f32.mrb[159].mxu0 }
0x1b5f   :  { %v8818_v15 = vpack.i.bf16 %v8413_v39, %v6259_v28  ;;  %8814 = vrot.lane.b32.xlu0 %v8813_v16, %s9221_s25 }
0x1b60   :  { %8809 = vrot.lane.b32.xlu1 %v8808_v62, %s9223_s3  ;;  %s7356_s3 = sld [smem:[%s11621_s0 + %s9251_s24]]  }
0x1b64   :  { %8819 = vrot.lane.b32.xlu1 %v8818_v15, %s9221_s25  ;;  %s7353_s25 = sld [smem:[%s11621_s0 + %s9258_s22]]  }
0x1b69   :  { %v8740_v17 = vpop.permute.xlu1 %8739 }
0x1b6a   :  { %v8742_v44 = vunpack.i.h.bf16 %v8740_v17  ;;  %v8741_v40 = vunpack.i.l.bf16 %v8740_v17 }
0x1b6b   :  { %v8745_v49 = vpop.permute.xlu0 %8744 }
0x1b6c   :  { %v8747_v8 = vunpack.i.h.bf16 %v8745_v49  ;;  %v8746_v34 = vunpack.i.l.bf16 %v8745_v49  ;;  %v6417_v37 = vsel %vm591_vm3, %v11209_v38, %v8742_v44  ;;  %v6416_v58 = vsel %vm591_vm3, %v11078_v24, %v8741_v40 }
0x1b6e   :  { %v6419_v2 = vsel %vm591_vm3, %v11205_v60, %v8747_v8  ;;  %v6418_v30 = vsel %vm591_vm3, %v11213_v11, %v8746_v34 }
0x1b6f   :  { %v8750_v23 = vpop.permute.xlu1 %8749 }
0x1b70   :  { %v8752_v5 = vunpack.i.h.bf16 %v8750_v23  ;;  %v8751_v6 = vunpack.i.l.bf16 %v8750_v23 }
0x1b72   :  { %v6421_v35 = vsel %vm591_vm3, %v11211_v21, %v8752_v5  ;;  %v6420_v49 = vsel %vm591_vm3, %v11207_v55, %v8751_v6  ;;  %v11735_v5 = vld [vmem:[#allocation4_spill] sm:$0xff] }
0x1b7f   :  { %v8755_v59 = vpop.permute.xlu0 %8754 }
0x1b80   :  { %v8757_v46 = vunpack.i.h.bf16 %v8755_v59  ;;  %v8756_v61 = vunpack.i.l.bf16 %v8755_v59 }
0x1b81   :  { %v8760_v19 = vpop.permute.xlu1 %8759 }
0x1b82   :  { %v6426_v26 = vsel %vm380_vm2, %v6414_v45, %v8756_v61  ;;  %v6427_v3 = vsel %vm380_vm2, %v6415_v29, %v8757_v46  ;;  %v8762_v0 = vunpack.i.h.bf16 %v8760_v19  ;;  %v8761_v56 = vunpack.i.l.bf16 %v8760_v19 }
0x1b83   :  { %v8765_v47 = vpop.permute.xlu0 %8764 }
0x1b84   :  { %v8767_v62 = vunpack.i.h.bf16 %v8765_v47  ;;  %v8766_v63 = vunpack.i.l.bf16 %v8765_v47  ;;  %v6429_v57 = vsel %vm380_vm2, %v6417_v37, %v8762_v0  ;;  %v6428_v32 = vsel %vm380_vm2, %v6416_v58, %v8761_v56 }
0x1b86   :  { %v6430_v60 = vsel %vm380_vm2, %v6418_v30, %v8766_v63  ;;  %v6431_v14 = vsel %vm380_vm2, %v6419_v2, %v8767_v62 }
0x1b87   :  { %v8770_v4 = vpop.permute.xlu1 %8769 }
0x1b88   :  { %v8772_v7 = vunpack.i.h.bf16 %v8770_v4  ;;  %v8771_v16 = vunpack.i.l.bf16 %v8770_v4 }
0x1b8a   :  { %v6432_v29 = vsel %vm380_vm2, %v6420_v49, %v8771_v16 }
0x1bb3   :  { %v8775_v51 = vpop.permute.xlu0 %8774 }
0x1bb4   :  { %v8777_v54 = vunpack.i.h.bf16 %v8775_v51  ;;  %v8776_v9 = vunpack.i.l.bf16 %v8775_v51  ;;  %v6433_v51 = vsel %vm380_vm2, %v6421_v35, %v8772_v7 }
0x1bb6   :  { %v6438_v33 = vsel %vm1498_vm5, %v6426_v26, %v8776_v9  ;;  %v6439_v42 = vsel %vm1498_vm5, %v6427_v3, %v8777_v54 }
0x1bb7   :  { %v6450_v12 = vpack.c.bf16 %v6439_v42, %v6438_v33  ;;  %v8780_v27 = vpop.permute.xlu0 %8779 }
0x1bb8   :  { %v8782_v15 = vunpack.i.h.bf16 %v8780_v27  ;;  %v8781_v59 = vunpack.i.l.bf16 %v8780_v27 }
0x1bb9   :  { %8419 = vmatprep.mubr.msk.bf16.mxu1 %vm244_vm1, %v6450_v12 }
0x1bba   :  { %v6423_v45 = vsel %vm591_vm3, %v11217_v13, %v8782_v15  ;;  %v6422_v9 = vsel %vm591_vm3, %v11203_v31, %v8781_v59 }
0x1bc6   :  { %v8785_v48 = vpop.permute.xlu1 %8784 }
0x1bc7   :  { %v8787_v52 = vunpack.i.h.bf16 %v8785_v48  ;;  %v8786_v10 = vunpack.i.l.bf16 %v8785_v48 }
0x1bc8   :  { %v8795_v38 = vpop.permute.xlu0 %8794 }
0x1bc9   :  { %v6441_v22 = vsel %vm1498_vm5, %v6429_v57, %v8787_v52  ;;  %v6440_v18 = vsel %vm1498_vm5, %v6428_v32, %v8786_v10  ;;  %v8797_v50 = vunpack.i.h.bf16 %v8795_v38  ;;  %v8796_v24 = vunpack.i.l.bf16 %v8795_v38 }
0x1bca   :  { %v6451_v1 = vpack.c.bf16 %v6441_v22, %v6440_v18  ;;  %v8790_v43 = vpop.permute.xlu1 %8789  ;;  %v11736_v22 = vld [vmem:[#allocation2_spill] sm:$0xff] }
0x1bcb   :  { %v6442_v11 = vsel %vm1498_vm5, %v6430_v60, %v8796_v24  ;;  %v6443_v39 = vsel %vm1498_vm5, %v6431_v14, %v8797_v50  ;;  %v8792_v42 = vunpack.i.h.bf16 %v8790_v43  ;;  %v8791_v12 = vunpack.i.l.bf16 %v8790_v43  ;;  %v11737_v60 = vld [vmem:[#allocation3_spill] sm:$0xff] }
0x1bcc   :  { %v6452_v36 = vpack.c.bf16 %v6443_v39, %v6442_v11  ;;  %v8800_v28 = vpop.permute.xlu0 %8799  ;;  %8420 = vmatmul.mubr.msk.bf16.vlgmr.msra.gmra.mrb[160].mxu1 %vm244_vm1, %v6451_v1  ;;  %v11738_v11 = vld [vmem:[#allocation5_spill] sm:$0xff] }
0x1bcd   :  { %v8802_v53 = vunpack.i.h.bf16 %v8800_v28  ;;  %v8801_v25 = vunpack.i.l.bf16 %v8800_v28  ;;  %v6425_v34 = vsel %vm591_vm3, %v11215_v20, %v8792_v42  ;;  %v6424_v0 = vsel %vm591_vm3, %v11219_v41, %v8791_v12  ;;  %v11299_v20 = vld [vmem:[%s7356_s3] ss:$0 sm:$0xff] }
0x1bce   :  { %v8805_v47 = vpop.permute.xlu1 %8804  ;;  %8423 = vmatprep.mubr.msk.bf16.mxu1 %vm244_vm1, %v6452_v36 }
0x1bcf   :  { %v8807_v46 = vunpack.i.h.bf16 %v8805_v47  ;;  %v8806_v61 = vunpack.i.l.bf16 %v8805_v47  ;;  %v6434_v23 = vsel %vm380_vm2, %v6422_v9, %v8801_v25  ;;  %v6435_v19 = vsel %vm380_vm2, %v6423_v45, %v8802_v53  ;;  %v11739_v53 = vld [vmem:[#allocation10_spill] sm:$0xff] }
0x1bd0   :  { %v11740_v9 = vld [vmem:[#allocation6_spill] sm:$0xff] }
0x1bd1   :  { %v6445_v21 = vsel %vm1498_vm5, %v6433_v51, %v8807_v46  ;;  %v6444_v54 = vsel %vm1498_vm5, %v6432_v29, %v8806_v61  ;;  %v8815_v55 = vpop.permute.xlu0 %8814 }
0x1bd2   :  { %v6453_v26 = vpack.c.bf16 %v6445_v21, %v6444_v54  ;;  %v8817_v3 = vunpack.i.h.bf16 %v8815_v55  ;;  %v8816_v17 = vunpack.i.l.bf16 %v8815_v55  ;;  %v8810_v33 = vpop.permute.xlu1 %8809 }
0x1bd3   :  { %v8812_v4 = vunpack.i.h.bf16 %v8810_v33  ;;  %v8811_v40 = vunpack.i.l.bf16 %v8810_v33  ;;  %v11741_v33 = vld [vmem:[#allocation11_spill] sm:$0xff] }
0x1bd4   :  { %v6446_v13 = vsel %vm1498_vm5, %v6434_v23, %v8816_v17  ;;  %v6447_v44 = vsel %vm1498_vm5, %v6435_v19, %v8817_v3  ;;  %8424 = vmatmul.mubr.msk.bf16.gmra.mrb[164].mxu1 %vm244_vm1, %v6453_v26 }
0x1bd5   :  { %v6454_v8 = vpack.c.bf16 %v6447_v44, %v6446_v13  ;;  %v6437_v37 = vsel %vm380_vm2, %v6425_v34, %v8812_v4  ;;  %v6436_v62 = vsel %vm380_vm2, %v6424_v0, %v8811_v40  ;;  %v11742_v44 = vld [vmem:[#allocation7_spill] sm:$0xff] }
0x1bd6   :  { %v8820_v31 = vpop.permute.xlu1 %8819 }
0x1bd7   :  { %v8822_v56 = vunpack.i.h.bf16 %v8820_v31  ;;  %v8821_v27 = vunpack.i.l.bf16 %v8820_v31  ;;  %8427 = vmatprep.mubr.msk.bf16.mxu1 %vm244_vm1, %v6454_v8 }
0x1bd9   :  { %v6449_v63 = vsel %vm1498_vm5, %v6437_v37, %v8822_v56  ;;  %v6448_v48 = vsel %vm1498_vm5, %v6436_v62, %v8821_v27  ;;  %v11743_v27 = vld [vmem:[#allocation12_spill] sm:$0xff] }
0x1bda   :  { %v6455_v58 = vpack.c.bf16 %v6449_v63, %v6448_v48 }
0x1bdc   :  { %8428 = vmatmul.mubr.msk.bf16.gmra.mrb[168].mxu1 %vm244_vm1, %v6455_v58 }
0x1c9f   :  { %v8421_v41 = vpop.f32.mrb[160].mxu1 }
0x1ca0   :  { %v6540_v2 = vadd.f32 %v8421_v41, %v11299_v20  ;;  %v6531_v52 = vpop.f32.mrb[161].mxu1 }
0x1ca1   :  { %v6532_v10 = vadd.f32 %v11299_v20, %v6531_v52  ;;  %v8422_v30 = vpop.f32.mrb[162].mxu1 }
0x1ca2   :  { %v11304_v57 = vadd.f32 %v6540_v2, %v11735_v5  ;;  %v6534_v32 = vpop.f32.mrb[163].mxu1  ;;  %v6543_v50 = vadd.f32 %v8422_v30, %v11299_v20  ;;  %v11744_v2 = vld [vmem:[#allocation8_spill] sm:$0xff]  ;;  %v11745_v30 = vld [vmem:[#allocation13_spill] sm:$0xff] }
0x1ca3   :  { %v6535_v38 = vadd.f32 %v11299_v20, %v6534_v32  ;;  %v11308_v18 = vadd.f32 %v6532_v10, %v11736_v22 }
0x1ca4   :  { %v6596_v24 = vsel %vm244_vm1, %v11304_v57, 0.0  ;;  %v6640_v6 = vmul.f32 %v11304_v57, %v11304_v57  ;;  %v11320_v39 = vadd.f32 %v6543_v50, %v11738_v11 }
0x1ca5   :  { %6597 = vadd.xlane.f32.xlu0 %v6596_v24  ;;  %v11316_v14 = vadd.f32 %v6535_v38, %v11737_v60  ;;  %v6590_v16 = vsel %vm244_vm1, %v11308_v18, 0.0  ;;  %v6638_v49 = vmul.f32 %v11308_v18, %v11308_v18  ;;  %v11746_v24 = vld [vmem:[#allocation9_spill] sm:$0xff] }
0x1ca6   :  { %v6656_v1 = vsel %vm244_vm1, %v6640_v6, 0.0  ;;  %v6599_v59 = vsel %vm244_vm1, %v11320_v39, 0.0  ;;  %v6641_v47 = vmul.f32 %v11320_v39, %v11320_v39 }
0x1ca7   :  { %6657 = vadd.xlane.f32.xlu1 %v6656_v1  ;;  %v8425_v43 = vpop.f32.mrb[164].mxu1  ;;  %v6593_v35 = vsel %vm244_vm1, %v11316_v14, 0.0  ;;  %v6650_v61 = vsel %vm244_vm1, %v6638_v49, 0.0  ;;  %v6639_v54 = vmul.f32 %v11316_v14, %v11316_v14  ;;  %v11747_v49 = vmov 0.0  }
0x1ca8   :  { %v6547_v7 = vpop.f32.mrb[165].mxu1  ;;  %v6556_v28 = vadd.f32 %v8425_v43, %v11299_v20  ;;  %v6659_v21 = vsel %vm244_vm1, %v6641_v47, 0.0 }
0x1ca9   :  { %v8426_v36 = vpop.f32.mrb[166].mxu1  ;;  %6591 = vadd.xlane.f32.xlu0 %v6590_v16  ;;  %v6548_v46 = vadd.f32 %v11299_v20, %v6547_v7  ;;  %v6653_v23 = vsel %vm244_vm1, %v6639_v54, 0.0 }
0x1caa   :  { %v6550_v15 = vpop.f32.mrb[167].mxu1  ;;  %v11334_v25 = vadd.f32 %v6556_v28, %v11739_v53  ;;  %v6559_v29 = vadd.f32 %v8426_v36, %v11299_v20 }
0x1cab   :  { %6594 = vadd.xlane.f32.xlu1 %v6593_v35  ;;  %v11343_v26 = vadd.f32 %v6548_v46, %v11740_v9  ;;  %v6551_v12 = vadd.f32 %v11299_v20, %v6550_v15  ;;  %v8855_v15 = vld [vmem:[%s7359_s7] sm:$0xff]   ;;  %v8856_v35 = vld [vmem:[%s7359_s7 + $0x8] sm:$0xff]  }
0x1cac   :  { %v6608_v17 = vsel %vm244_vm1, %v11334_v25, 0.0  ;;  %v11348_v42 = vadd.f32 %v6559_v29, %v11741_v33  ;;  %v6644_v13 = vmul.f32 %v11334_v25, %v11334_v25  ;;  %8431 = vmatprep.subr.bf16.mxu0 %v8855_v15 }
0x1cad   :  { %6600 = vadd.xlane.f32.xlu0 %v6599_v59  ;;  %v6602_v19 = vsel %vm244_vm1, %v11343_v26, 0.0  ;;  %v11357_v4 = vadd.f32 %v6551_v12, %v11742_v44  ;;  %v6642_v34 = vmul.f32 %v11343_v26, %v11343_v26  ;;  %8432 = vmatpush3.bf16.msra.mxu0 %v8855_v15 }
0x1cae   :  { %v6611_v40 = vsel %vm244_vm1, %v11348_v42, 0.0  ;;  %v6668_v31 = vsel %vm244_vm1, %v6644_v13, 0.0  ;;  %v6645_v56 = vmul.f32 %v11348_v42, %v11348_v42  ;;  %8433 = vmatprep.subr.bf16.mxu0 %v8856_v35 }
0x1caf   :  { %v8429_v51 = vpop.f32.mrb[168].mxu1  ;;  %6651 = vadd.xlane.f32.xlu1 %v6650_v61  ;;  %v6605_v0 = vsel %vm244_vm1, %v11357_v4, 0.0  ;;  %v6662_v63 = vsel %vm244_vm1, %v6642_v34, 0.0  ;;  %v6643_v41 = vmul.f32 %v11357_v4, %v11357_v4 }
0x1cb0   :  { %v6563_v45 = vpop.f32.mrb[169].mxu1  ;;  %v6572_v8 = vadd.f32 %v8429_v51, %v11299_v20  ;;  %v6671_v58 = vsel %vm244_vm1, %v6645_v56, 0.0 }
0x1cb1   :  { %v8430_v55 = vpop.f32.mrb[170].mxu1  ;;  %6660 = vadd.xlane.f32.xlu0 %v6659_v21  ;;  %v6564_v62 = vadd.f32 %v11299_v20, %v6563_v45  ;;  %v6665_v38 = vsel %vm244_vm1, %v6643_v41, 0.0  ;;  %8434 = vmatpush3.bf16.msra.mxu0 %v8856_v35 }
0x1cb2   :  { %v6566_v3 = vpop.f32.mrb[171].mxu1  ;;  %v11370_v37 = vadd.f32 %v6572_v8, %v11743_v27  ;;  %v6575_v48 = vadd.f32 %v8430_v55, %v11299_v20  ;;  %8467 = vmatprep.subr.bf16.mxu0 %v11747_v49 }
0x1cb3   :  { %6609 = vadd.xlane.f32.xlu1 %v6608_v17  ;;  %v11379_v52 = vadd.f32 %v6564_v62, %v11744_v2  ;;  %v6567_v32 = vadd.f32 %v11299_v20, %v6566_v3 }
0x1cb4   :  { %v6620_v10 = vsel %vm244_vm1, %v11370_v37, 0.0  ;;  %v11384_v5 = vadd.f32 %v6575_v48, %v11745_v30  ;;  %v6648_v20 = vmul.f32 %v11370_v37, %v11370_v37 }
0x1cb5   :  { %6654 = vadd.xlane.f32.xlu0 %v6653_v23  ;;  %v6614_v22 = vsel %vm244_vm1, %v11379_v52, 0.0  ;;  %v6646_v50 = vmul.f32 %v11379_v52, %v11379_v52  ;;  %v11393_v6 = vadd.f32 %v6567_v32, %v11746_v24 }
0x1cb6   :  { %v6623_v60 = vsel %vm244_vm1, %v11384_v5, 0.0  ;;  %v6680_v7 = vsel %vm244_vm1, %v6648_v20, 0.0  ;;  %v6649_v36 = vmul.f32 %v11384_v5, %v11384_v5 }
0x1cb7   :  { %6603 = vadd.xlane.f32.xlu1 %v6602_v19  ;;  %v6674_v1 = vsel %vm244_vm1, %v6646_v50, 0.0  ;;  %v6617_v43 = vsel %vm244_vm1, %v11393_v6, 0.0  ;;  %v6647_v11 = vmul.f32 %v11393_v6, %v11393_v6 }
0x1cb8   :  { %v6683_v28 = vsel %vm244_vm1, %v6649_v36, 0.0 }
0x1cb9   :  { %6612 = vadd.xlane.f32.xlu0 %v6611_v40  ;;  %v6677_v16 = vsel %vm244_vm1, %v6647_v11, 0.0 }
0x1cbb   :  { %6669 = vadd.xlane.f32.xlu1 %v6668_v31 }
0x1cbd   :  { %6606 = vadd.xlane.f32.xlu0 %v6605_v0 }
0x1cbf   :  { %6663 = vadd.xlane.f32.xlu1 %v6662_v63 }
0x1cc1   :  { %6672 = vadd.xlane.f32.xlu0 %v6671_v58 }
0x1cc3   :  { %6621 = vadd.xlane.f32.xlu1 %v6620_v10 }
0x1cc5   :  { %6666 = vadd.xlane.f32.xlu0 %v6665_v38 }
0x1cc7   :  { %6615 = vadd.xlane.f32.xlu1 %v6614_v22 }
0x1cc9   :  { %6624 = vadd.xlane.f32.xlu0 %v6623_v60 }
0x1ccb   :  { %6675 = vadd.xlane.f32.xlu1 %v6674_v1 }
0x1ccd   :  { %6618 = vadd.xlane.f32.xlu0 %v6617_v43 }
0x1ccf   :  { %6681 = vadd.xlane.f32.xlu1 %v6680_v7 }
0x1cd1   :  { %6678 = vadd.xlane.f32.xlu0 %v6677_v16 }
0x1cd5   :  { %6684 = vadd.xlane.f32.xlu0 %v6683_v28 }
0x1d32   :  { %v6598_v59 = vpop.xlane.xlu0 %6597 }
0x1d33   :  { %v11413_v47 = vmul.f32 0.03125, %v6598_v59 }
0x1d34   :  { %v6658_v53 = vpop.xlane.xlu1 %6657 }
0x1d35   :  { %v6700_v46 = vmul.f32 %v11413_v47, %v11413_v47  ;;  %v6688_v61 = vmul.f32 0.03125, %v6658_v53 }
0x1d36   :  { %v6592_v51 = vpop.xlane.xlu0 %6591 }
0x1d37   :  { %v6712_v45 = vsub.f32 %v6688_v61, %v6700_v46  ;;  %v11417_v21 = vmul.f32 0.03125, %v6592_v51 }
0x1d38   :  { %v6595_v29 = vpop.xlane.xlu1 %6594 }
0x1d39   :  { %v6724_v3 = vmax.f32 %v6712_v45, 0.0  ;;  %v6698_v17 = vmul.f32 %v11417_v21, %v11417_v21  ;;  %v11421_v44 = vmul.f32 0.03125, %v6595_v29 }
0x1d3a   :  { %v6601_v54 = vpop.xlane.xlu0 %6600 }
0x1d3b   :  { %v6629_v55 = vmul.f32 0.03125, %v6601_v54  ;;  %v6748_v8 = vadd.f32 1e-05, %v6724_v3  ;;  %v6699_v62 = vmul.f32 %v11421_v44, %v11421_v44  ;;  %v6736_v3 = vsub.f32 %v11304_v57, %v11413_v47 }
0x1d3c   :  { %v6652_v9 = vpop.xlane.xlu1 %6651 }
0x1d3d   :  { %v6686_v33 = vmul.f32 0.03125, %v6652_v9  ;;  %v6701_v23 = vmul.f32 %v6629_v55, %v6629_v55  ;;  %9147 = vrsqrt.f32 %v6748_v8  ;;  %v6737_v46 = vsub.f32 %v11320_v39, %v6629_v55 }
0x1d3e   :  { %v6661_v12 = vpop.xlane.xlu0 %6660 }
0x1d3f   :  { %v6710_v19 = vsub.f32 %v6686_v33, %v6698_v17  ;;  %v6689_v13 = vmul.f32 0.03125, %v6661_v12  ;;  %v6734_v17 = vsub.f32 %v11308_v18, %v11417_v21  ;;  %v6735_v18 = vsub.f32 %v11316_v14, %v11421_v44  ;;  %v11468_v14 = vld [vmem:[%s11446_s14] ss:$0 sm:$0xff] }
0x1d40   :  { %v6610_v40 = vpop.xlane.xlu1 %6609 }
0x1d41   :  { %v6722_v31 = vmax.f32 %v6710_v19, 0.0  ;;  %v6713_v34 = vsub.f32 %v6689_v13, %v6701_v23  ;;  %v11425_v41 = vmul.f32 0.03125, %v6610_v40 }
0x1d42   :  { %v6655_v0 = vpop.xlane.xlu0 %6654 }
0x1d43   :  { %v6746_v56 = vadd.f32 1e-05, %v6722_v31  ;;  %v6725_v27 = vmax.f32 %v6713_v34, 0.0  ;;  %v6687_v63 = vmul.f32 0.03125, %v6655_v0  ;;  %v6704_v38 = vmul.f32 %v11425_v41, %v11425_v41  ;;  %v11456_v0 = vld [vmem:[%s7363_s10] ss:$0 sm:$0xff] }
0x1d44   :  { %v6604_v48 = vpop.xlane.xlu1 %6603 }
0x1d45   :  { %v6749_v58 = vadd.f32 1e-05, %v6725_v27  ;;  %9149 = vrsqrt.f32 %v6746_v56  ;;  %v6711_v2 = vsub.f32 %v6687_v63, %v6699_v62  ;;  %v11429_v22 = vmul.f32 0.03125, %v6604_v48 }
0x1d46   :  { %v6613_v10 = vpop.xlane.xlu0 %6612 }
0x1d47   :  { %9151 = vrsqrt.f32 %v6749_v58  ;;  %v6723_v30 = vmax.f32 %v6711_v2, 0.0  ;;  %v11431_v1 = vmul.f32 0.03125, %v6613_v10  ;;  %v6702_v11 = vmul.f32 %v11429_v22, %v11429_v22  ;;  %v9148_v28 = vpop.eup %9147 }
0x1d48   :  { %v6670_v32 = vpop.xlane.xlu1 %6669  ;;  %v6772_v23 = vmul.f32 %v9148_v28, %v6736_v3 }
0x1d49   :  { %v6692_v50 = vmul.f32 0.03125, %v6670_v32  ;;  %v6747_v24 = vadd.f32 1e-05, %v6723_v30  ;;  %v6705_v15 = vmul.f32 %v11431_v1, %v11431_v1  ;;  %v6741_v3 = vsub.f32 %v11348_v42, %v11431_v1 }
0x1d4a   :  { %v6607_v60 = vpop.xlane.xlu0 %6606  ;;  %v6791_v58 = vmul.f32 %v11456_v0, %v6772_v23 }
0x1d4b   :  { %v6716_v20 = vsub.f32 %v6692_v50, %v6704_v38  ;;  %9153 = vrsqrt.f32 %v6747_v24  ;;  %v11441_v61 = vmul.f32 0.03125, %v6607_v60 }
0x1d4c   :  { %v6664_v43 = vpop.xlane.xlu1 %6663 }
0x1d4d   :  { %v6728_v7 = vmax.f32 %v6716_v20, 0.0  ;;  %v6690_v16 = vmul.f32 0.03125, %v6664_v43  ;;  %v6703_v19 = vmul.f32 %v11441_v61, %v11441_v61 }
0x1d4e   :  { %v6673_v36 = vpop.xlane.xlu0 %6672 }
0x1d4f   :  { %v6714_v35 = vsub.f32 %v6690_v16, %v6702_v11  ;;  %v6693_v59 = vmul.f32 0.03125, %v6673_v36  ;;  %v9150_v53 = vpop.eup %9149  ;;  %v6752_v45 = vadd.f32 1e-05, %v6728_v7  ;;  %v6810_v7 = vadd.f32 %v11468_v14, %v6791_v58 }
0x1d50   :  { %v6622_v51 = vpop.xlane.xlu1 %6621  ;;  %v6770_v8 = vmul.f32 %v9150_v53, %v6734_v17 }
0x1d51   :  { %v9152_v29 = vpop.eup %9151  ;;  %v6726_v54 = vmax.f32 %v6714_v35, 0.0  ;;  %v6717_v9 = vsub.f32 %v6693_v59, %v6705_v15  ;;  %9155 = vrsqrt.f32 %v6752_v45  ;;  %v11463_v2 = vmul.f32 0.03125, %v6622_v51 }
0x1d52   :  { %v6773_v39 = vmul.f32 %v9152_v29, %v6737_v46  ;;  %v6667_v55 = vpop.xlane.xlu0 %6666  ;;  %v6789_v48 = vmul.f32 %v11456_v0, %v6770_v8 }
0x1d53   :  { %v6750_v33 = vadd.f32 1e-05, %v6726_v54  ;;  %v6729_v12 = vmax.f32 %v6717_v9, 0.0  ;;  %v6691_v13 = vmul.f32 0.03125, %v6667_v55  ;;  %v6708_v16 = vmul.f32 %v11463_v2, %v11463_v2 }
0x1d54   :  { %v6616_v40 = vpop.xlane.xlu1 %6615  ;;  %v6792_v56 = vmul.f32 %v11456_v0, %v6773_v39  ;;  %v11477_v43 = vadd.f32 %v11468_v14, %v6789_v48  ;;  %v6738_v39 = vsub.f32 %v11343_v26, %v11429_v22  ;;  %v6739_v26 = vsub.f32 %v11357_v4, %v11441_v61 }
0x1d55   :  { %v6753_v31 = vadd.f32 1e-05, %v6729_v12  ;;  %v11454_v34 = vmul.f32 0.03125, %v6616_v40  ;;  %v9154_v57 = vpop.eup %9153  ;;  %9157 = vrsqrt.f32 %v6750_v33  ;;  %v6715_v47 = vsub.f32 %v6691_v13, %v6703_v19 }
0x1d56   :  { %v6625_v21 = vpop.xlane.xlu0 %6624  ;;  %v6771_v63 = vmul.f32 %v9154_v57, %v6735_v18  ;;  %v11472_v50 = vadd.f32 %v11468_v14, %v6792_v56  ;;  %v6740_v12 = vsub.f32 %v11334_v25, %v11425_v41 }
0x1d57   :  { %9159 = vrsqrt.f32 %v6753_v31  ;;  %v6727_v27 = vmax.f32 %v6715_v47, 0.0  ;;  %v6706_v10 = vmul.f32 %v11454_v34, %v11454_v34  ;;  %v11483_v15 = vmul.f32 0.03125, %v6625_v21 }
0x1d58   :  { %v6676_v62 = vpop.xlane.xlu1 %6675  ;;  %v6790_v38 = vmul.f32 %v11456_v0, %v6771_v63  ;;  %v6821_v53 = vpack.c.bf16 %v11472_v50, %v6810_v7  ;;  %v6742_v58 = vsub.f32 %v11379_v52, %v11454_v34 }
0x1d59   :  { %v6694_v30 = vmul.f32 0.03125, %v6676_v62  ;;  %v6751_v44 = vadd.f32 1e-05, %v6727_v27  ;;  %v6709_v23 = vmul.f32 %v11483_v15, %v11483_v15 }
0x1d5a   :  { %v6619_v32 = vpop.xlane.xlu0 %6618  ;;  %v6809_v11 = vadd.f32 %v11468_v14, %v6790_v38 }
0x1d5b   :  { %v6718_v24 = vsub.f32 %v6694_v30, %v6706_v10  ;;  %v11474_v60 = vmul.f32 0.03125, %v6619_v32  ;;  %9161 = vrsqrt.f32 %v6751_v44  ;;  %v9156_v46 = vpop.eup %9155 }
0x1d5c   :  { %v6682_v20 = vpop.xlane.xlu1 %6681  ;;  %v6820_v35 = vpack.c.bf16 %v6809_v11, %v11477_v43  ;;  %v6776_v31 = vmul.f32 %v9156_v46, %v6740_v12  ;;  %v8857_v46 = vld [vmem:[%s7361_s19] sm:$0xff]  }
0x1d5d   :  { %v6730_v36 = vmax.f32 %v6718_v24, 0.0  ;;  %v6696_v28 = vmul.f32 0.03125, %v6682_v20  ;;  %v6707_v29 = vmul.f32 %v11474_v60, %v11474_v60  ;;  %v6744_v24 = vsub.f32 %v11370_v37, %v11463_v2  ;;  %8447 = vmatprep.subr.bf16.mxu1 %v8857_v46 }
0x1d5e   :  { %v6679_v59 = vpop.xlane.xlu0 %6678  ;;  %8435 = vmatprep.mubr.msk.bf16.mxu0 %vm244_vm1, %v6820_v35  ;;  %v6795_v56 = vmul.f32 %v11456_v0, %v6776_v31  ;;  %v6743_v20 = vsub.f32 %v11393_v6, %v11474_v60  ;;  %8448 = vmatpush3.bf16.msra.mxu1 %v8857_v46 }
0x1d5f   :  { %v6754_v51 = vadd.f32 1e-05, %v6730_v36  ;;  %v6720_v45 = vsub.f32 %v6696_v28, %v6708_v16  ;;  %v6695_v54 = vmul.f32 0.03125, %v6679_v59  ;;  %v9158_v9 = vpop.eup %9157  ;;  %8436 = vmatmul.mubr.msk.bf16.vlgmr.msra.gmra.mrb[160].mxu0 %vm244_vm1, %v6821_v53  ;;  %v6745_v16 = vsub.f32 %v11384_v5, %v11483_v15 }
0x1d60   :  { %v6774_v8 = vmul.f32 %v9158_v9, %v6738_v39  ;;  %v11511_v10 = vadd.f32 %v11468_v14, %v6795_v56 }
0x1d61   :  { %v9160_v17 = vpop.eup %9159  ;;  %9163 = vrsqrt.f32 %v6754_v51  ;;  %v6732_v55 = vmax.f32 %v6720_v45, 0.0  ;;  %v6719_v33 = vsub.f32 %v6695_v54, %v6707_v29  ;;  %v8859_v51 = vld [vmem:[%s7361_s19 + $0x10] sm:$0xff]   ;;  %v11543_v29 = vld [vmem:[%s7358_s30] ss:$0 sm:$0xff] }
0x1d62   :  { %v6685_v19 = vpop.xlane.xlu0 %6684  ;;  %v6777_v13 = vmul.f32 %v9160_v17, %v6741_v3  ;;  %v6793_v21 = vmul.f32 %v11456_v0, %v6774_v8 }
0x1d63   :  { %v6756_v42 = vadd.f32 1e-05, %v6732_v55  ;;  %v6731_v1 = vmax.f32 %v6719_v33, 0.0  ;;  %v6697_v40 = vmul.f32 0.03125, %v6685_v19 }
0x1d64   :  { %v6796_v47 = vmul.f32 %v11456_v0, %v6777_v13  ;;  %v6812_v4 = vadd.f32 %v11468_v14, %v6793_v21 }
0x1d65   :  { %9165 = vrsqrt.f32 %v6756_v42  ;;  %v6755_v22 = vadd.f32 1e-05, %v6731_v1  ;;  %v6721_v57 = vsub.f32 %v6697_v40, %v6709_v23  ;;  %v9162_v18 = vpop.eup %9161 }
0x1d66   :  { %v6775_v41 = vmul.f32 %v9162_v18, %v6739_v26  ;;  %v6815_v63 = vadd.f32 %v11468_v14, %v6796_v47 }
0x1d67   :  { %9167 = vrsqrt.f32 %v6755_v22  ;;  %v6733_v25 = vmax.f32 %v6721_v57, 0.0 }
0x1d68   :  { %v6794_v62 = vmul.f32 %v11456_v0, %v6775_v41  ;;  %v6823_v44 = vpack.c.bf16 %v6815_v63, %v11511_v10 }
0x1d69   :  { %v6757_v27 = vadd.f32 1e-05, %v6733_v25 }
0x1d6a   :  { %v6813_v61 = vadd.f32 %v11468_v14, %v6794_v62 }
0x1d6b   :  { %v9164_v48 = vpop.eup %9163  ;;  %9169 = vrsqrt.f32 %v6757_v27 }
0x1d6c   :  { %v6822_v30 = vpack.c.bf16 %v6813_v61, %v6812_v4  ;;  %v6778_v32 = vmul.f32 %v9164_v48, %v6742_v58 }
0x1d6e   :  { %8439 = vmatprep.mubr.msk.bf16.mxu0 %vm244_vm1, %v6822_v30  ;;  %v6797_v34 = vmul.f32 %v11456_v0, %v6778_v32 }
0x1d6f   :  { %v9166_v38 = vpop.eup %9165  ;;  %8440 = vmatmul.mubr.msk.bf16.gmra.mrb[164].mxu0 %vm244_vm1, %v6823_v44 }
0x1d70   :  { %v6780_v7 = vmul.f32 %v9166_v38, %v6744_v24  ;;  %v6816_v35 = vadd.f32 %v11468_v14, %v6797_v34 }
0x1d71   :  { %v9168_v11 = vpop.eup %9167 }
0x1d72   :  { %v6779_v52 = vmul.f32 %v9168_v11, %v6743_v20  ;;  %v6799_v6 = vmul.f32 %v11456_v0, %v6780_v7 }
0x1d74   :  { %v6798_v36 = vmul.f32 %v11456_v0, %v6779_v52  ;;  %v6818_v53 = vadd.f32 %v11468_v14, %v6799_v6 }
0x1d75   :  { %v9170_v28 = vpop.eup %9169 }
0x1d76   :  { %v11526_v37 = vadd.f32 %v11468_v14, %v6798_v36  ;;  %v6781_v2 = vmul.f32 %v9170_v28, %v6745_v16 }
0x1d78   :  { %v6824_v60 = vpack.c.bf16 %v11526_v37, %v6816_v35  ;;  %v6800_v59 = vmul.f32 %v11456_v0, %v6781_v2  ;;  %v8858_v0 = vld [vmem:[%s7361_s19 + $0x8] sm:$0xff]  }
0x1d79   :  { %8449 = vmatprep.subr.bf16.mxu1 %v8858_v0 }
0x1d7a   :  { %8443 = vmatprep.mubr.msk.bf16.mxu0 %vm244_vm1, %v6824_v60  ;;  %v6819_v5 = vadd.f32 %v11468_v14, %v6800_v59  ;;  %8450 = vmatpush3.bf16.msra.mxu1 %v8858_v0  ;;  %v8860_v14 = vld [vmem:[%s7361_s19 + $0x18] sm:$0xff]  }
0x1d7b   :  { %8451 = vmatprep.subr.bf16.mxu1 %v8859_v51 }
0x1d7c   :  { %v6825_v15 = vpack.c.bf16 %v6819_v5, %v6818_v53 }
0x1d7e   :  { %8444 = vmatmul.mubr.msk.bf16.gmra.mrb[168].mxu0 %vm244_vm1, %v6825_v15  ;;  %8452 = vmatpush3.bf16.msra.mxu1 %v8859_v51 }
0x1d7f   :  { %8471 = vmatprep.mubr.msk.bf16.mxu0 %vm9205_vm0, %v11747_v49  ;;  %8453 = vmatprep.subr.bf16.mxu1 %v8860_v14 }
0x1d82   :  { %8454 = vmatpush3.bf16.msra.mxu1 %v8860_v14 }
0x1e32   :  { %v8437_v45 = vpop.f32.mrb[160].mxu0 }
0x1e33   :  { %v6910_v54 = vadd.f32 %v8437_v45, %v11543_v29  ;;  %v6901_v9 = vpop.f32.mrb[161].mxu0 }
0x1e34   :  { %v6902_v3 = vadd.f32 %v11543_v29, %v6901_v9  ;;  %v8438_v17 = vpop.f32.mrb[162].mxu0 }
0x1e35   :  { %v6962_v39 = vmul.f32 0.70710677, %v6910_v54  ;;  %v6913_v55 = vadd.f32 %v8438_v17, %v11543_v29  ;;  %v6904_v33 = vpop.f32.mrb[163].mxu0  ;;  %v6950_v57 = vmul.f32 0.5, %v6910_v54 }
0x1e36   :  { %v6960_v12 = vmul.f32 0.70710677, %v6902_v3  ;;  %v6905_v23 = vadd.f32 %v11543_v29, %v6904_v33  ;;  %v6948_v21 = vmul.f32 0.5, %v6902_v3 }
0x1e37   :  { %9171 = verf.f32 %v6962_v39  ;;  %v6963_v19 = vmul.f32 0.70710677, %v6913_v55  ;;  %v6951_v56 = vmul.f32 0.5, %v6913_v55 }
0x1e38   :  { %9173 = verf.f32 %v6960_v12  ;;  %v6961_v13 = vmul.f32 0.70710677, %v6905_v23  ;;  %v6949_v4 = vmul.f32 0.5, %v6905_v23 }
0x1e39   :  { %9175 = verf.f32 %v6963_v19 }
0x1e3a   :  { %9177 = verf.f32 %v6961_v13 }
0x1e41   :  { %v9172_v42 = vpop.eup %9171 }
0x1e42   :  { %v8441_v1 = vpop.f32.mrb[164].mxu0  ;;  %v9174_v40 = vpop.eup %9173  ;;  %v6986_v8 = vadd.f32 1.0, %v9172_v42 }
0x1e43   :  { %v6926_v31 = vadd.f32 %v8441_v1, %v11543_v29  ;;  %v6917_v26 = vpop.f32.mrb[165].mxu0  ;;  %v9176_v22 = vpop.eup %9175  ;;  %v6984_v18 = vadd.f32 1.0, %v9174_v40 }
0x1e44   :  { %v6918_v47 = vadd.f32 %v11543_v29, %v6917_v26  ;;  %v8442_v25 = vpop.f32.mrb[166].mxu0  ;;  %v9178_v41 = vpop.eup %9177  ;;  %v6987_v27 = vadd.f32 1.0, %v9176_v22  ;;  %v6998_v48 = vmul.f32 %v6986_v8, %v6950_v57 }
0x1e45   :  { %v6966_v62 = vmul.f32 0.70710677, %v6926_v31  ;;  %v6920_v63 = vpop.f32.mrb[167].mxu0  ;;  %v6985_v61 = vadd.f32 1.0, %v9178_v41  ;;  %v6929_v44 = vadd.f32 %v8442_v25, %v11543_v29  ;;  %v6996_v38 = vmul.f32 %v6984_v18, %v6948_v21 }
0x1e46   :  { %v6964_v58 = vmul.f32 0.70710677, %v6918_v47  ;;  %v6999_v30 = vmul.f32 %v6987_v27, %v6951_v56  ;;  %v6921_v32 = vadd.f32 %v11543_v29, %v6920_v63  ;;  %v6954_v51 = vmul.f32 0.5, %v6926_v31 }
0x1e47   :  { %9179 = verf.f32 %v6966_v62  ;;  %v6997_v24 = vmul.f32 %v6985_v61, %v6949_v4  ;;  %v6967_v11 = vmul.f32 0.70710677, %v6929_v44  ;;  %v6955_v9 = vmul.f32 0.5, %v6929_v44  ;;  %v7556_v61 = vld [vmem:[%s7360_s21] ss:$0 sm:$0xff] }
0x1e48   :  { %9181 = verf.f32 %v6964_v58  ;;  %v7009_v20 = vpack.c.bf16 %v6999_v30, %v6998_v48  ;;  %v6965_v34 = vmul.f32 0.70710677, %v6921_v32  ;;  %v6952_v39 = vmul.f32 0.5, %v6918_v47 }
0x1e49   :  { %v7008_v52 = vpack.c.bf16 %v6997_v24, %v6996_v38  ;;  %9183 = verf.f32 %v6967_v11  ;;  %v6953_v55 = vmul.f32 0.5, %v6921_v32 }
0x1e4a   :  { %9185 = verf.f32 %v6965_v34 }
0x1e4b   :  { %8455 = vmatprep.mubr.msk.bf16.mxu1 %vm1740_vm6, %v7008_v52 }
0x1e4c   :  { %8456 = vmatmul.mubr.msk.bf16.vlgmr.msra.gmra.mrb[172].mxu1 %vm1740_vm6, %v7009_v20 }
0x1e51   :  { %v8445_v7 = vpop.f32.mrb[168].mxu0  ;;  %v9180_v16 = vpop.eup %9179 }
0x1e52   :  { %v6942_v36 = vadd.f32 %v8445_v7, %v11543_v29  ;;  %v6933_v28 = vpop.f32.mrb[169].mxu0  ;;  %v9182_v35 = vpop.eup %9181  ;;  %v6990_v5 = vadd.f32 1.0, %v9180_v16 }
0x1e53   :  { %v6934_v2 = vadd.f32 %v11543_v29, %v6933_v28  ;;  %v8446_v6 = vpop.f32.mrb[170].mxu0  ;;  %v9184_v0 = vpop.eup %9183  ;;  %v6988_v14 = vadd.f32 1.0, %v9182_v35 }
0x1e54   :  { %v6970_v60 = vmul.f32 0.70710677, %v6942_v36  ;;  %v6945_v59 = vadd.f32 %v8446_v6, %v11543_v29  ;;  %v6936_v53 = vpop.f32.mrb[171].mxu0  ;;  %v9186_v54 = vpop.eup %9185  ;;  %v6991_v3 = vadd.f32 1.0, %v9184_v0  ;;  %v7002_v12 = vmul.f32 %v6990_v5, %v6954_v51 }
0x1e55   :  { %v6968_v15 = vmul.f32 0.70710677, %v6934_v2  ;;  %v6937_v46 = vadd.f32 %v11543_v29, %v6936_v53  ;;  %v6989_v33 = vadd.f32 1.0, %v9186_v54  ;;  %v7000_v19 = vmul.f32 %v6988_v14, %v6952_v39 }
0x1e56   :  { %9187 = verf.f32 %v6970_v60  ;;  %v6971_v45 = vmul.f32 0.70710677, %v6945_v59  ;;  %v7003_v23 = vmul.f32 %v6991_v3, %v6955_v9  ;;  %v6958_v57 = vmul.f32 0.5, %v6942_v36  ;;  %v8861_v3 = vld [vmem:[%s7353_s25] sm:$0xff]  }
0x1e57   :  { %9189 = verf.f32 %v6968_v15  ;;  %v6969_v17 = vmul.f32 0.70710677, %v6937_v46  ;;  %v7001_v13 = vmul.f32 %v6989_v33, %v6953_v55  ;;  %v6959_v18 = vmul.f32 0.5, %v6945_v59  ;;  %8468 = vmatpush3.bf16.msra.mxu0 %v8861_v3 }
0x1e58   :  { %9191 = verf.f32 %v6971_v45  ;;  %v7011_v29 = vpack.c.bf16 %v7003_v23, %v7002_v12  ;;  %v6956_v25 = vmul.f32 0.5, %v6934_v2  ;;  %v6957_v41 = vmul.f32 0.5, %v6937_v46  ;;  %8469 = vmatprep.subr.bf16.mxu0 %v11747_v49 }
0x1e59   :  { %9193 = verf.f32 %v6969_v17  ;;  %v7010_v42 = vpack.c.bf16 %v7001_v13, %v7000_v19  ;;  %v8862_v17 = vld [vmem:[%s7353_s25 + $0x8] sm:$0xff]  }
0x1e5b   :  { %8459 = vmatprep.mubr.msk.bf16.mxu1 %vm1740_vm6, %v7010_v42  ;;  %8470 = vmatpush3.bf16.msra.mxu0 %v8862_v17 }
0x1e5c   :  { %8460 = vmatmul.mubr.msk.bf16.gmra.mrb[176].mxu1 %vm1740_vm6, %v7011_v29 }
0x1e60   :  { %v9188_v1 = vpop.eup %9187 }
0x1e61   :  { %v9190_v40 = vpop.eup %9189  ;;  %v6994_v8 = vadd.f32 1.0, %v9188_v1 }
0x1e62   :  { %v9192_v31 = vpop.eup %9191  ;;  %v6992_v26 = vadd.f32 1.0, %v9190_v40 }
0x1e63   :  { %v9194_v22 = vpop.eup %9193  ;;  %v6995_v47 = vadd.f32 1.0, %v9192_v31  ;;  %v7006_v56 = vmul.f32 %v6994_v8, %v6958_v57 }
0x1e64   :  { %v6993_v21 = vadd.f32 1.0, %v9194_v22  ;;  %v7004_v62 = vmul.f32 %v6992_v26, %v6956_v25 }
0x1e65   :  { %v7007_v27 = vmul.f32 %v6995_v47, %v6959_v18 }
0x1e66   :  { %v7005_v63 = vmul.f32 %v6993_v21, %v6957_v41 }
0x1e67   :  { %v7013_v48 = vpack.c.bf16 %v7007_v27, %v7006_v56 }
0x1e68   :  { %v7012_v4 = vpack.c.bf16 %v7005_v63, %v7004_v62 }
0x1e6a   :  { %8463 = vmatprep.mubr.msk.bf16.mxu1 %vm1740_vm6, %v7012_v4 }
0x1e6b   :  { %8464 = vmatmul.mubr.msk.bf16.gmra.mrb[180].mxu1 %vm1740_vm6, %v7013_v48 }
0x1f1f   :  { %v8457_v58 = vpop.f32.mrb[172].mxu1 }
0x1f20   :  { %v7105_v30 = vpop.f32.mrb[173].mxu1 }
0x1f21   :  { %v7106_v44 = vadd.f32 %v7556_v61, %v7105_v30  ;;  %v8458_v32 = vpop.f32.mrb[174].mxu1 }
0x1f22   :  { %v7115_v38 = vadd.f32 %v8458_v32, %v7556_v61  ;;  %v7108_v24 = vpop.f32.mrb[175].mxu1 }
0x1f23   :  { %v11567_v20 = vadd.f32 %v7106_v44, %v11477_v43 }
0x1f24   :  { %v11570_v11 = vadd.f32 %v7115_v38, %v11472_v50 }
0x1f25   :  { %v7148_v52 = vsel %vm244_vm1, %v11567_v20, 0.0  ;;  %v7164_v34 = vmul.f32 %v11567_v20, %v11567_v20 }
0x1f26   :  { %7149 = vadd.xlane.f32.xlu1 %v7148_v52  ;;  %v7151_v7 = vsel %vm244_vm1, %v11570_v11, 0.0  ;;  %v7165_v16 = vmul.f32 %v11570_v11, %v11570_v11 }
0x1f27   :  { %7152 = vadd.xlane.f32.xlu0 %v7151_v7  ;;  %v7168_v43 = vsel %vm244_vm1, %v7164_v34, 0.0 }
0x1f28   :  { %v7171_v50 = vsel %vm244_vm1, %v7165_v16, 0.0  ;;  %v7567_v16 = vld [vmem:[%s7365_s5] ss:$0 sm:$0xff] }
0x1f2a   :  { %7169 = vadd.xlane.f32.xlu1 %v7168_v43 }
0x1f2b   :  { %7172 = vadd.xlane.f32.xlu0 %v7171_v50 }
0x1f2f   :  { %v8461_v36 = vpop.f32.mrb[176].mxu1 }
0x1f30   :  { %v7126_v28 = vadd.f32 %v8461_v36, %v7556_v61  ;;  %v7119_v35 = vpop.f32.mrb[177].mxu1 }
0x1f31   :  { %v8462_v2 = vpop.f32.mrb[178].mxu1  ;;  %v7568_v35 = vld [vmem:[%s7364_s8] ss:$0 sm:$0xff] }
0x1f32   :  { %v11583_v6 = vadd.f32 %v7126_v28, %v11511_v10  ;;  %v7121_v60 = vpop.f32.mrb[179].mxu1 }
0x1f34   :  { %v7154_v59 = vsel %vm244_vm1, %v11583_v6, 0.0  ;;  %v7166_v53 = vmul.f32 %v11583_v6, %v11583_v6 }
0x1f35   :  { %7155 = vadd.xlane.f32.xlu1 %v7154_v59 }
0x1f36   :  { %v7174_v5 = vsel %vm244_vm1, %v7166_v53, 0.0 }
0x1f39   :  { %7175 = vadd.xlane.f32.xlu1 %v7174_v5 }
0x1f3e   :  { %v8465_v15 = vpop.f32.mrb[180].mxu1 }
0x1f3f   :  { %v7132_v46 = vpop.f32.mrb[181].mxu1 }
0x1f40   :  { %v8466_v0 = vpop.f32.mrb[182].mxu1 }
0x1f41   :  { %v7134_v51 = vpop.f32.mrb[183].mxu1 }
0x1f42   :  { %v7135_v14 = vadd.f32 %v7556_v61, %v7134_v51 }
0x1f44   :  { %v11591_v45 = vadd.f32 %v7135_v14, %v11526_v37 }
0x1f46   :  { %v7157_v10 = vsel %vm244_vm1, %v11591_v45, 0.0  ;;  %v7167_v54 = vmul.f32 %v11591_v45, %v11591_v45 }
0x1f47   :  { %7158 = vadd.xlane.f32.xlu0 %v7157_v10 }
0x1f48   :  { %v7177_v9 = vsel %vm244_vm1, %v7167_v54, 0.0 }
0x1f4b   :  { %7178 = vadd.xlane.f32.xlu0 %v7177_v9 }
0x1fb3   :  { %v7150_v37 = vpop.xlane.xlu1 %7149 }
0x1fb4   :  { %v7153_v55 = vpop.xlane.xlu0 %7152  ;;  %v7160_v33 = vmul.f32 0.03125, %v7150_v37 }
0x1fb5   :  { %v7161_v42 = vmul.f32 0.03125, %v7153_v55 }
0x1fb6   :  { %v7184_v29 = vmul.f32 %v7160_v33, %v7160_v33  ;;  %v7196_v24 = vsub.f32 %v11567_v20, %v7160_v33 }
0x1fb7   :  { %v7170_v39 = vpop.xlane.xlu1 %7169  ;;  %v7185_v57 = vmul.f32 %v7161_v42, %v7161_v42  ;;  %v7197_v43 = vsub.f32 %v11570_v11, %v7161_v42 }
0x1fb8   :  { %v7180_v19 = vmul.f32 0.03125, %v7170_v39  ;;  %v7173_v13 = vpop.xlane.xlu0 %7172 }
0x1fb9   :  { %v7181_v26 = vmul.f32 0.03125, %v7173_v13 }
0x1fba   :  { %v7188_v31 = vsub.f32 %v7180_v19, %v7184_v29 }
0x1fbb   :  { %v7189_v47 = vsub.f32 %v7181_v26, %v7185_v57 }
0x1fbc   :  { %v7192_v49 = vmax.f32 %v7188_v31, 0.0 }
0x1fbd   :  { %v7193_v21 = vmax.f32 %v7189_v47, 0.0 }
0x1fbe   :  { %v7200_v41 = vadd.f32 1e-05, %v7192_v49 }
0x1fbf   :  { %v7201_v62 = vadd.f32 1e-05, %v7193_v21 }
0x1fc2   :  { %v7156_v12 = vpop.xlane.xlu1 %7155 }
0x1fc3   :  { %v7162_v23 = vmul.f32 0.03125, %v7156_v12 }
0x1fc5   :  { %v7186_v40 = vmul.f32 %v7162_v23, %v7162_v23  ;;  %v7198_v32 = vsub.f32 %v11583_v6, %v7162_v23 }
0x1fc6   :  { %v7176_v1 = vpop.xlane.xlu1 %7175 }
0x1fc7   :  { %v7182_v8 = vmul.f32 0.03125, %v7176_v1 }
0x1fc9   :  { %v7190_v22 = vsub.f32 %v7182_v8, %v7186_v40 }
0x1fcb   :  { %v7194_v18 = vmax.f32 %v7190_v22, 0.0 }
0x1fcd   :  { %v7202_v25 = vadd.f32 1e-05, %v7194_v18 }
0x1fcf   :  { %9195 = vrsqrt.f32 %v7202_v25 }
0x1fd0   :  { %9197 = vrsqrt.f32 %v7200_v41 }
0x1fd1   :  { %9199 = vrsqrt.f32 %v7201_v62 }
0x1fd4   :  { %v7159_v56 = vpop.xlane.xlu0 %7158 }
0x1fd5   :  { %v7163_v27 = vmul.f32 0.03125, %v7159_v56 }
0x1fd7   :  { %v7187_v48 = vmul.f32 %v7163_v27, %v7163_v27  ;;  %v7199_v6 = vsub.f32 %v11591_v45, %v7163_v27  ;;  %v7569_v45 = vld [vmem:[%s7352_s12] ss:$0 sm:$0xff] }
0x1fd8   :  { %v7179_v63 = vpop.xlane.xlu0 %7178 }
0x1fd9   :  { %v7183_v4 = vmul.f32 0.03125, %v7179_v63  ;;  %v9196_v30 = vpop.eup %9195 }
0x1fda   :  { %v9198_v38 = vpop.eup %9197  ;;  %v7210_v52 = vmul.f32 %v9196_v30, %v7198_v32 }
0x1fdb   :  { %v7191_v61 = vsub.f32 %v7183_v4, %v7187_v48  ;;  %v7208_v34 = vmul.f32 %v9198_v38, %v7196_v24  ;;  %v9200_v7 = vpop.eup %9199 }
0x1fdc   :  { %v7221_v50 = vmul.f32 %v7567_v16, %v7210_v52  ;;  %v7209_v28 = vmul.f32 %v9200_v7, %v7197_v43 }
0x1fdd   :  { %v7195_v58 = vmax.f32 %v7191_v61, 0.0  ;;  %v7219_v36 = vmul.f32 %v7567_v16, %v7208_v34 }
0x1fde   :  { %v7232_v2 = vadd.f32 %v7568_v35, %v7221_v50  ;;  %v7220_v53 = vmul.f32 %v7567_v16, %v7209_v28 }
0x1fdf   :  { %v7203_v44 = vadd.f32 1e-05, %v7195_v58  ;;  %v7230_v59 = vadd.f32 %v7568_v35, %v7219_v36 }
0x1fe0   :  { %v7231_v20 = vadd.f32 %v7568_v35, %v7220_v53 }
0x1fe1   :  { %9201 = vrsqrt.f32 %v7203_v44  ;;  %v7234_v15 = vsub.f32 %v7232_v2, %v7230_v59 }
0x1fe3   :  { %v7236_v51 = vmul.f32 2.0, %v7234_v15 }
0x1fe5   :  { %v7238_v54 = vadd.f32 %v7236_v51, %v7230_v59 }
0x1feb   :  { %v9202_v60 = vpop.eup %9201 }
0x1fec   :  { %v7211_v5 = vmul.f32 %v9202_v60, %v7199_v6 }
0x1fee   :  { %v7222_v46 = vmul.f32 %v7567_v16, %v7211_v5 }
0x1ff0   :  { %v7233_v0 = vadd.f32 %v7568_v35, %v7222_v46 }
0x1ff2   :  { %v7235_v14 = vsub.f32 %v7233_v0, %v7231_v20 }
0x1ff4   :  { %v7237_v10 = vmul.f32 2.0, %v7235_v14 }
0x1ff6   :  { %v7239_v11 = vadd.f32 %v7237_v10, %v7231_v20 }
0x1ff8   :  { %v7240_v9 = vpack.c.bf16 %v7239_v11, %v7238_v54 }
0x1ffa   :  { %8472 = vmatmul.mubr.msk.bf16.vlgmr.msra.gmra.mrb[172].mxu0 %vm244_vm1, %v7240_v9 }
0x20cd   :  { %v7301_v3 = vpop.f32.mrb[172].mxu0 }
0x20ce   :  { %v7302_v17 = vadd.f32 %v7569_v45, %v7301_v3  ;;  %v8473_v37 = vpop.f32.mrb[173].mxu0 }
0x20cf   :  { %v7304_v39 = vpop.f32.mrb[174].mxu0 }
0x20d0   :  { %7308 = vst.msk [vmem:[%s7366_s16] sm:$0xff] %vm380_vm2, %v7302_v17  ;;  %v7305_v55 = vadd.f32 %v7569_v45, %v7304_v39  ;;  %v8474_v33 = vpop.f32.mrb[175].mxu0 }
0x20d2   :  { %7309 = vst.msk [vmem:[%s7366_s16 + $0x8] sm:$0xff] %vm380_vm2, %v7305_v55 }

</bundles_post_ra>
